<compile_context>
chip_gen: v6e
topology: v6e:2x2x1
jax: 0.10.0
libtpu: 0.0.40
codegen_flags: <defaults>
</compile_context>

<pallas_src>
import math
import numpy as np
import jax
import jax.numpy as jnp
from jax.experimental import pallas as pl
from jax.experimental.pallas import tpu as pltpu

_VMEM_LIMIT = 32 * 1024 * 1024   # explicit scoped-VMEM budget (fits v5e/v6e/v7x)


# --------------------------- tiling helpers ----------------------------------

def _row_tile(m):
    """Rows per grid step: a multiple of 8 that divides m, capped at 128; split once
    more when the grid would collapse to one step so a 'parallel' axis exists for
    megacore sharding on v7x."""
    if m <= 8:
        return m
    t = min(128, m)
    t -= t % 8
    while t >= 8 and m % t:
        t -= 8
    if t < 8:
        return m
    if m // t == 1 and (m // 2) % 8 == 0:
        t = m // 2
    return t


def _k_tile(k):
    if k > 256 and k % 256 == 0:
        return 256
    if k > 128 and k % 128 == 0:
        return 128
    return k


def _n_tile(n):
    if n > 512 and n % 256 == 0:
        return 256
    return n


def _gelu_exact(x):
    """Exact (erf) GELU built only from exp/mul/add/where (A&S 7.1.26, |err|<1.5e-7)
    so it fuses into the matmul epilogue without relying on a Mosaic erf lowering."""
    z = x * 0.7071067811865476
    az = jnp.abs(z)
    t = 1.0 / (1.0 + 0.3275911 * az)
    poly = t * (0.254829592 + t * (-0.284496736 + t * (1.421413741 +
           t * (-1.453152027 + t * 1.061405429))))
    erf_abs = 1.0 - poly * jnp.exp(-az * az)
    erf = jnp.where(z >= 0, erf_abs, -erf_abs)
    return 0.5 * x * (1.0 + erf)


# --------------------------- Pallas wrappers ----------------------------------

def linear(x, w, b=None):
    """x: (..., K) @ w: (K, N) [+ b].  Tiled (M, N, K) grid with f32 accumulator
    scratch; bias-less variant skips the bias operand entirely."""
    orig = x.shape
    K = orig[-1]
    M = int(np.prod(orig[:-1]))
    N = w.shape[1]
    tm, tn, tk = _row_tile(M), _n_tile(N), _k_tile(K)
    has_bias = b is not None

    def kernel(*refs):
        if has_bias:
            x_ref, w_ref, b_ref, o_ref, acc_ref = refs
        else:
            x_ref, w_ref, o_ref, acc_ref = refs

        @pl.when(pl.program_id(2) == 0)
        def _():
            acc_ref[...] = jnp.zeros_like(acc_ref)

        acc_ref[...] += jnp.dot(x_ref[...].astype(jnp.float32),
                                w_ref[...].astype(jnp.float32),
                                preferred_element_type=jnp.float32)

        @pl.when(pl.program_id(2) == pl.num_programs(2) - 1)
        def _():
            res = acc_ref[...]
            if has_bias:
                res = res + b_ref[...].astype(jnp.float32)
            o_ref[...] = res.astype(o_ref.dtype)

    in_specs = [pl.BlockSpec((tm, tk), lambda i, j, k: (i, k)),
                pl.BlockSpec((tk, tn), lambda i, j, k: (k, j))]
    args = [x.reshape(M, K), w]
    if has_bias:
        in_specs.append(pl.BlockSpec((1, tn), lambda i, j, k: (0, j)))
        args.append(b.reshape(1, N))

    out = pl.pallas_call(
        kernel,
        out_shape=jax.ShapeDtypeStruct((M, N), x.dtype),
        grid=(M // tm, N // tn, K // tk),
        in_specs=in_specs,
        out_specs=pl.BlockSpec((tm, tn), lambda i, j, k: (i, j)),
        scratch_shapes=[pltpu.VMEM((tm, tn), jnp.float32)],
        compiler_params=pltpu.CompilerParams(
            dimension_semantics=("parallel", "parallel", "arbitrary"),
            vmem_limit_bytes=_VMEM_LIMIT),
    )(*args)
    return out.reshape(orig[:-1] + (N,))


def ln_linear(x, gamma, beta, w, b=None, apply_gelu=False):
    """Fused LayerNorm(last dim) -> matmul [+ bias] [+ exact GELU].  Tiled over rows
    (full K/N per block: LN needs the whole feature dim; N here is small)."""
    orig = x.shape
    C = orig[-1]
    M = int(np.prod(orig[:-1]))
    N = w.shape[1]
    tm = _row_tile(M)
    has_bias = b is not None

    def kernel(*refs):
        if has_bias:
            x_ref, g_ref, bt_ref, w_ref, b_ref, o_ref = refs
        else:
            x_ref, g_ref, bt_ref, w_ref, o_ref = refs
        xv = x_ref[...].astype(jnp.float32)
        mu = jnp.mean(xv, axis=-1, keepdims=True)
        var = jnp.mean((xv - mu) ** 2, axis=-1, keepdims=True)
        xn = (xv - mu) * jax.lax.rsqrt(var + 1e-5)          # torch LN: eps=1e-5, biased var
        xn = xn * g_ref[...].astype(jnp.float32) + bt_ref[...].astype(jnp.float32)
        acc = jnp.dot(xn, w_ref[...].astype(jnp.float32),
                      preferred_element_type=jnp.float32)
        if has_bias:
            acc = acc + b_ref[...].astype(jnp.float32)
        if apply_gelu:
            acc = _gelu_exact(acc)
        o_ref[...] = acc.astype(o_ref.dtype)

    in_specs = [pl.BlockSpec((tm, C), lambda i: (i, 0)),
                pl.BlockSpec((1, C), lambda i: (0, 0)),
                pl.BlockSpec((1, C), lambda i: (0, 0)),
                pl.BlockSpec((C, N), lambda i: (0, 0))]
    args = [x.reshape(M, C), gamma.reshape(1, C), beta.reshape(1, C), w]
    if has_bias:
        in_specs.append(pl.BlockSpec((1, N), lambda i: (0, 0)))
        args.append(b.reshape(1, N))

    out = pl.pallas_call(
        kernel,
        out_shape=jax.ShapeDtypeStruct((M, N), x.dtype),
        grid=(M // tm,),
        in_specs=in_specs,
        out_specs=pl.BlockSpec((tm, N), lambda i: (i, 0)),
        compiler_params=pltpu.CompilerParams(
            dimension_semantics=("parallel",),
            vmem_limit_bytes=_VMEM_LIMIT),
    )(*args)
    return out.reshape(orig[:-1] + (N,))


def layer_norm(x, gamma, beta):
    """Standalone LayerNorm, tiled over rows with a parallel grid axis."""
    orig = x.shape
    C = orig[-1]
    M = int(np.prod(orig[:-1]))
    tm = _row_tile(M)

    def kernel(x_ref, g_ref, b_ref, o_ref):
        xv = x_ref[...].astype(jnp.float32)
        mu = jnp.mean(xv, axis=-1, keepdims=True)
        var = jnp.mean((xv - mu) ** 2, axis=-1, keepdims=True)
        y = (xv - mu) * jax.lax.rsqrt(var + 1e-5)
        o_ref[...] = (y * g_ref[...].astype(jnp.float32)
                      + b_ref[...].astype(jnp.float32)).astype(o_ref.dtype)

    out = pl.pallas_call(
        kernel,
        out_shape=jax.ShapeDtypeStruct((M, C), x.dtype),
        grid=(M // tm,),
        in_specs=[pl.BlockSpec((tm, C), lambda i: (i, 0)),
                  pl.BlockSpec((1, C), lambda i: (0, 0)),
                  pl.BlockSpec((1, C), lambda i: (0, 0))],
        out_specs=pl.BlockSpec((tm, C), lambda i: (i, 0)),
        compiler_params=pltpu.CompilerParams(
            dimension_semantics=("parallel",),
            vmem_limit_bytes=_VMEM_LIMIT),
    )(x.reshape(M, C), gamma.reshape(1, C), beta.reshape(1, C))
    return out.reshape(orig)


def window_attention_fused(qkv_win, bias, proj_w, proj_b, num_heads, windows_per_step):
    """Fused windowed MHA: per-head scores + bias/mask + softmax + AV + head-merged
    output projection.  Processes G windows per grid step; bias is de-duplicated
    ((nW, nH, N, N) or (1, nH, N, N)) and fetched with a constant index_map.

    qkv_win: (B_, N, 3C) with 3C ordered [q|k|v] x [head-major, head_dim]."""
    B_, N, C3 = qkv_win.shape
    C = C3 // 3
    D = C // num_heads
    G = windows_per_step
    steps = B_ // G
    nWb = bias.shape[0]                       # == G (shifted) or 1 (unshifted)
    scale = float(D) ** -0.5

    def kernel(qkv_ref, bias_ref, pw_ref, pb_ref, o_ref):
        qkv = qkv_ref[...].astype(jnp.float32)           # (G, N, 3C)
        ball = bias_ref[...].astype(jnp.float32)         # (nWb, nH, N, N)
        pw = pw_ref[...].astype(jnp.float32)             # (C, C)
        acc = None
        for h in range(num_heads):                       # unrolled: nH is small
            q = qkv[:, :, h * D:(h + 1) * D] * scale
            k = qkv[:, :, C + h * D:C + (h + 1) * D]
            v = qkv[:, :, 2 * C + h * D:2 * C + (h + 1) * D]
            s = jnp.einsum('gqd,gkd->gqk', q, k,
                           preferred_element_type=jnp.float32)
            s = s + ball[:, h]                           # broadcasts when nWb == 1
            m = jnp.max(s, axis=-1, keepdims=True)
            p = jnp.exp(s - m)
            l = jnp.sum(p, axis=-1, keepdims=True)
            o = jnp.einsum('gqk,gkd->gqd', p, v,
                           preferred_element_type=jnp.float32)
            o = (o * pl.reciprocal(l, approx=True)).reshape(G * N, D)
            # head-merged projection: concat_h(o_h) @ Wp == sum_h o_h @ Wp[hD:(h+1)D]
            part = jnp.dot(o, pw[h * D:(h + 1) * D, :],
                           preferred_element_type=jnp.float32)
            acc = part if acc is None else acc + part
        out = acc + pb_ref[...].astype(jnp.float32)      # (G*N, C) + (1, C)
        o_ref[...] = out.reshape(G, N, C).astype(o_ref.dtype)

    return pl.pallas_call(
        kernel,
        out_shape=jax.ShapeDtypeStruct((B_, N, C), qkv_win.dtype),
        grid=(steps,),
        in_specs=[pl.BlockSpec((G, N, C3), lambda i: (i, 0, 0)),
                  pl.BlockSpec((nWb, num_heads, N, N), lambda i: (0, 0, 0, 0)),
                  pl.BlockSpec((C, C), lambda i: (0, 0)),
                  pl.BlockSpec((1, C), lambda i: (0, 0))],
        out_specs=pl.BlockSpec((G, N, C), lambda i: (i, 0, 0)),
        compiler_params=pltpu.CompilerParams(
            dimension_semantics=("parallel",),
            vmem_limit_bytes=_VMEM_LIMIT),
    )(qkv_win, bias, proj_w, proj_b.reshape(1, C))


# --------------------------- Swin building blocks -----------------------------

def window_partition(x, ws):
    B, H, W, C = x.shape
    x = x.reshape(B, H // ws, ws, W // ws, ws, C)
    return x.transpose(0, 1, 3, 2, 4, 5).reshape(-1, ws, ws, C)


def window_reverse(windows, ws, H, W):
    B = windows.shape[0] // (H * W // ws // ws)
    x = windows.reshape(B, H // ws, W // ws, ws, ws, -1)
    return x.transpose(0, 1, 3, 2, 4, 5).reshape(B, H, W, -1)


def relative_position_index(ws):
    coords = np.stack(np.meshgrid(np.arange(ws), np.arange(ws), indexing='ij'))
    flat = coords.reshape(2, -1)
    rel = (flat[:, :, None] - flat[:, None, :]).transpose(1, 2, 0).astype(np.int64)
    rel[:, :, 0] += ws - 1
    rel[:, :, 1] += ws - 1
    rel[:, :, 0] *= 2 * ws - 1
    return rel.sum(-1)            # (N, N)


def compute_attn_mask(Hp, Wp, ws, shift):
    img_mask = np.zeros((1, Hp, Wp, 1), np.float32)
    cnt = 0
    for h in (slice(0, -ws), slice(-ws, -shift), slice(-shift, None)):
        for w in (slice(0, -ws), slice(-ws, -shift), slice(-shift, None)):
            img_mask[:, h, w, :] = cnt
            cnt += 1
    x = img_mask.reshape(1, Hp // ws, ws, Wp // ws, ws, 1)
    mw = x.transpose(0, 1, 3, 2, 4, 5).reshape(-1, ws * ws)
    am = mw[:, None, :] - mw[:, :, None]
    return jnp.asarray(np.where(am != 0, -100.0, 0.0).astype(np.float32))  # (nW, N, N)


def swin_block(x, H, W, p, num_heads, ws, shift, bias):
    """bias: (nW, nH, N, N) for shifted blocks, (1, nH, N, N) otherwise."""
    B, L, C = x.shape
    shortcut = x
    a = p['attn']
    pad_r = (ws - W % ws) % ws
    pad_b = (ws - H % ws) % ws

    if pad_r == 0 and pad_b == 0:
        # Fused LayerNorm(norm1)+qkv on tokens: both are per-token, so they commute
        # with the (permutation-only) roll / window-partition when no padding occurs.
        qkv = ln_linear(x, p['norm1_g'], p['norm1_b'], a['qkv_w'], a['qkv_b'])
        xs = qkv.reshape(B, H, W, 3 * C)
        Hp, Wp = H, W
        if shift > 0:
            xs = jnp.roll(xs, shift=(-shift, -shift), axis=(1, 2))
        qkv_win = window_partition(xs, ws).reshape(-1, ws * ws, 3 * C)
    else:
        # TODO(synk): padded path keeps LN unfused so zero-padding semantics match torch.
        xn = layer_norm(x, p['norm1_g'], p['norm1_b']).reshape(B, H, W, C)
        xn = jnp.pad(xn, ((0, 0), (0, pad_b), (0, pad_r), (0, 0)))
        Hp, Wp = H + pad_b, W + pad_r
        if shift > 0:
            xn = jnp.roll(xn, shift=(-shift, -shift), axis=(1, 2))
        xw = window_partition(xn, ws).reshape(-1, ws * ws, C)
        qkv_win = linear(xw, a['qkv_w'], a['qkv_b'])

    G = (Hp // ws) * (Wp // ws)                        # windows per image per grid step
    attn_win = window_attention_fused(qkv_win, bias, a['proj_w'], a['proj_b'],
                                      num_heads, G)    # (B_, N, C)
    spat = window_reverse(attn_win.reshape(-1, ws, ws, C), ws, Hp, Wp)
    if shift > 0:
        spat = jnp.roll(spat, shift=(shift, shift), axis=(1, 2))
    if pad_r or pad_b:
        spat = spat[:, :H, :W, :]
    x = shortcut + spat.reshape(B, H * W, C)           # drop_path = identity (inference)

    # MLP: fused LN(norm2)+fc1+GELU, then fc2
    y = ln_linear(x, p['norm2_g'], p['norm2_b'], p['fc1_w'], p['fc1_b'], apply_gelu=True)
    y = linear(y, p['fc2_w'], p['fc2_b'])
    return x + y


def patch_merging(x, H, W, p):
    B, L, C = x.shape
    x = x.reshape(B, H, W, C)
    if (H % 2 == 1) or (W % 2 == 1):
        x = jnp.pad(x, ((0, 0), (0, H % 2), (0, W % 2), (0, 0)))
    x0 = x[:, 0::2, 0::2, :]
    x1 = x[:, 1::2, 0::2, :]
    x2 = x[:, 0::2, 1::2, :]
    x3 = x[:, 1::2, 1::2, :]
    x = jnp.concatenate([x0, x1, x2, x3], -1).reshape(B, -1, 4 * C)
    # fused LayerNorm + bias-free reduction Linear(4C, 2C)
    return ln_linear(x, p['norm_g'], p['norm_b'], p['red_w'], None)


def swin_transformer_forward(params, x, *, embed_dim=32, depths=(2, 2),
                             num_heads=(2, 4), window_size=4, patch_size=4,
                             out_indices=(0, 1)):
    B, C_in, H_in, W_in = x.shape
    # patch embed: Conv2d(C_in, embed_dim, k=4, s=4) as patch-flatten matmul
    gh, gw = H_in // patch_size, W_in // patch_size
    patches = x.reshape(B, C_in, gh, patch_size, gw, patch_size)
    patches = patches.transpose(0, 2, 4, 1, 3, 5).reshape(
        B * gh * gw, C_in * patch_size * patch_size)
    pe = params['patch_embed']
    tok = linear(patches, pe['w'], pe['b'])
    tok = layer_norm(tok, pe['norm_g'], pe['norm_b'])
    x_tok = tok.reshape(B, gh * gw, embed_dim)

    Wh, Ww = gh, gw
    outs = []
    num_features = [embed_dim * (2 ** i) for i in range(len(depths))]
    for i, depth in enumerate(depths):
        lp = params['layers'][i]
        H, W = Wh, Ww
        ws, shift = window_size, window_size // 2
        Hp = int(math.ceil(H / ws)) * ws
        Wp = int(math.ceil(W / ws)) * ws
        # per-stage constant, shared by every block of the stage (hoisted)
        mask = compute_attn_mask(Hp, Wp, ws, shift)            # (nW, N, N)
        for d in range(depth):
            blk = lp['blocks'][d]
            blk_shift = 0 if d % 2 == 0 else shift
            rb = blk['attn']['rel_bias'][None]                 # (1, nH, N, N)
            bias = rb if blk_shift == 0 else rb + mask[:, None]
            x_tok = swin_block(x_tok, H, W, blk, num_heads[i], ws, blk_shift, bias)
        if i in out_indices:
            on = params['out_norms'][i]
            xo = layer_norm(x_tok, on['g'], on['b'])
            outs.append(xo.reshape(B, H, W, num_features[i]).transpose(0, 3, 1, 2))
        if i < len(depths) - 1:
            x_tok = patch_merging(x_tok, H, W, lp['downsample'])
            Wh, Ww = (H + 1) // 2, (W + 1) // 2
    return tuple(outs)


# --------------------------- deterministic param init -------------------------

def init_params(key, in_chans=3, embed_dim=32, depths=(2, 2), num_heads=(2, 4),
                window_size=4, patch_size=4, mlp_ratio=4, out_indices=(0, 1)):
    keys = iter(jax.random.split(key, 256))

    def nrm(shape, std=0.02):
        return std * jax.random.normal(next(keys), shape, jnp.float32)

    N = window_size * window_size
    rel_idx = relative_position_index(window_size).reshape(-1)   # (N*N,) static

    params = {
        'patch_embed': {
            'w': nrm((in_chans * patch_size * patch_size, embed_dim)),
            'b': jnp.zeros((embed_dim,), jnp.float32),
            'norm_g': jnp.ones((embed_dim,), jnp.float32),
            'norm_b': jnp.zeros((embed_dim,), jnp.float32),
        },
        'layers': [],
        'out_norms': {},
    }
    for i, depth in enumerate(depths):
        C = embed_dim * (2 ** i)
        blocks = []
        for _ in range(depth):
            table = nrm(((2 * window_size - 1) ** 2, num_heads[i]))
            # relative-position bias precomputed at parameter-setup time (hoists the
            # per-forward gather+transpose out of the block path)
            rel_bias = jnp.transpose(
                table[rel_idx].reshape(N, N, num_heads[i]), (2, 0, 1))   # (nH, N, N)
            blocks.append({
                'norm1_g': jnp.ones((C,), jnp.float32), 'norm1_b': jnp.zeros((C,), jnp.float32),
                'norm2_g': jnp.ones((C,), jnp.float32), 'norm2_b': jnp.zeros((C,), jnp.float32),
                'attn': {
                    'qkv_w': nrm((C, 3 * C)), 'qkv_b': jnp.zeros((3 * C,), jnp.float32),
                    'proj_w': nrm((C, C)), 'proj_b': jnp.zeros((C,), jnp.float32),
                    'rel_bias': rel_bias,
                },
                'fc1_w': nrm((C, mlp_ratio * C)), 'fc1_b': jnp.zeros((mlp_ratio * C,), jnp.float32),
                'fc2_w': nrm((mlp_ratio * C, C)), 'fc2_b': jnp.zeros((C,), jnp.float32),
            })
        lp = {'blocks': blocks}
        if i < len(depths) - 1:
            lp['downsample'] = {
                'norm_g': jnp.ones((4 * C,), jnp.float32),
                'norm_b': jnp.zeros((4 * C,), jnp.float32),
                'red_w': nrm((4 * C, 2 * C)),
            }
        params['layers'].append(lp)
    for i in out_indices:
        C = embed_dim * (2 ** i)
        params['out_norms'][i] = {'g': jnp.ones((C,), jnp.float32),
                                  'b': jnp.zeros((C,), jnp.float32)}
    return params


# --------------------------- main ---------------------------------------------

if __name__ == "__main__":
    key = jax.random.PRNGKey(0)
    pkey, xkey = jax.random.split(key)

    # Scaled-down Swin-tiny-style config (embed_dim=32, depths=(2,2), heads=(2,4),
    # window=4) at small input (2, 3, 32, 32); structure / semantics match the
    # detection SwinTransformer forward (patch embed -> W-MSA/SW-MSA blocks ->
    # patch merging -> per-stage LayerNorm -> NCHW outputs).
    params = init_params(pkey)
    v_input = jax.random.normal(xkey, (2, 3, 32, 32), jnp.float32)

    fwd = jax.jit(swin_transformer_forward)
    outs = fwd(params, v_input)
    outs = jax.block_until_ready(outs)

    assert outs[0].shape == (2, 32, 8, 8)
    assert outs[1].shape == (2, 64, 4, 4)
    assert all(bool(jnp.all(jnp.isfinite(o))) for o in outs)
    print("KERNEL_OK")
</pallas_src>

<mosaic_0001>
module attributes {stable_mosaic.version = 11 : i64} {
  func.func @kernel(%arg0: i32, %arg1: i32, %arg2: i32, %arg3: memref<64x48xf32, #tpu.memory_space<vmem>>, %arg4: memref<48x32xf32, #tpu.memory_space<vmem>>, %arg5: memref<1x32xf32, #tpu.memory_space<vmem>>, %arg6: memref<64x32xf32, #tpu.memory_space<vmem>>, %arg7: memref<64x32xf32, #tpu.memory_space<vmem>>) attributes {dimension_semantics = [#tpu.dimension_semantics<parallel>, #tpu.dimension_semantics<parallel>, #tpu.dimension_semantics<arbitrary>], iteration_bounds = array<i64: 2, 1, 1>, scalar_prefetch = 0 : i64, scratch_operands = 1 : i64, tpu.core_type = #tpu.core_type<tc>, window_params = [{transform_indices = @transform_0, window_bounds = array<i64: 64, 48>}, {transform_indices = @transform_1, window_bounds = array<i64: 48, 32>}, {transform_indices = @transform_2, window_bounds = array<i64: 1, 32>}, {transform_indices = @transform_3, window_bounds = array<i64: 64, 32>}]} {
    %c0_i32 = arith.constant 0 : i32
    %0 = arith.cmpi eq, %arg2, %c0_i32 : i32
    %1 = arith.extui %0 : i1 to i32
    %c0_i32_0 = arith.constant 0 : i32
    %2 = arith.cmpi ne, %1, %c0_i32_0 : i32
    scf.if %2 {
      %cst_10 = arith.constant 0.000000e+00 : f32
      %12 = vector.broadcast %cst_10 : f32 to vector<64x32xf32>
      %c0_11 = arith.constant 0 : index
      %c0_12 = arith.constant 0 : index
      %13 = vector.load %arg7[%c0_11, %c0_12] : memref<64x32xf32, #tpu.memory_space<vmem>>, vector<64x32xf32>
      tpu.vector_store %arg7[%c0_11, %c0_12], %12 {strides = array<i32>} : memref<64x32xf32, #tpu.memory_space<vmem>>, vector<64x32xf32>,
    } else {
    }
    %c0 = arith.constant 0 : index
    %c0_1 = arith.constant 0 : index
    %3 = vector.load %arg7[%c0, %c0_1] : memref<64x32xf32, #tpu.memory_space<vmem>>, vector<64x32xf32>
    %c0_2 = arith.constant 0 : index
    %c0_3 = arith.constant 0 : index
    %4 = vector.load %arg3[%c0_2, %c0_3] : memref<64x48xf32, #tpu.memory_space<vmem>>, vector<64x48xf32>
    %c0_4 = arith.constant 0 : index
    %c0_5 = arith.constant 0 : index
    %5 = vector.load %arg4[%c0_4, %c0_5] : memref<48x32xf32, #tpu.memory_space<vmem>>, vector<48x32xf32>
    %cst = arith.constant dense<0.000000e+00> : vector<64x32xf32>
    %6 = tpu.matmul %4, %5, %cst {dimension_numbers = #tpu.dot_dimension_numbers<[1], [0], [0], [1], [0, 0, 1, 1], [], []>} : vector<64x48xf32>, vector<48x32xf32>, vector<64x32xf32> -> vector<64x32xf32>
    %7 = arith.addf %3, %6 : vector<64x32xf32>
    %c0_6 = arith.constant 0 : index
    %c0_7 = arith.constant 0 : index
    %8 = vector.load %arg7[%c0_6, %c0_7] : memref<64x32xf32, #tpu.memory_space<vmem>>, vector<64x32xf32>
    tpu.vector_store %arg7[%c0_6, %c0_7], %7 {strides = array<i32>} : memref<64x32xf32, #tpu.memory_space<vmem>>, vector<64x32xf32>,
    %c0_i32_8 = arith.constant 0 : i32
    %9 = arith.cmpi eq, %arg2, %c0_i32_8 : i32
    %10 = arith.extui %9 : i1 to i32
    %c0_i32_9 = arith.constant 0 : i32
    %11 = arith.cmpi ne, %10, %c0_i32_9 : i32
    scf.if %11 {
      %c0_10 = arith.constant 0 : index
      %c0_11 = arith.constant 0 : index
      %12 = vector.load %arg7[%c0_10, %c0_11] : memref<64x32xf32, #tpu.memory_space<vmem>>, vector<64x32xf32>
      %c0_12 = arith.constant 0 : index
      %c0_13 = arith.constant 0 : index
      %13 = vector.load %arg5[%c0_12, %c0_13] : memref<1x32xf32, #tpu.memory_space<vmem>>, vector<1x32xf32>
      %14 = vector.broadcast %13 : vector<1x32xf32> to vector<64x32xf32>
      %15 = arith.addf %12, %14 : vector<64x32xf32>
      %c0_14 = arith.constant 0 : index
      %c0_15 = arith.constant 0 : index
      %16 = vector.load %arg6[%c0_14, %c0_15] : memref<64x32xf32, #tpu.memory_space<vmem>>, vector<64x32xf32>
      tpu.vector_store %arg6[%c0_14, %c0_15], %15 {strides = array<i32>} : memref<64x32xf32, #tpu.memory_space<vmem>>, vector<64x32xf32>,
    } else {
    }
    return
  }
  func.func @transform_0(%arg0: i32, %arg1: i32, %arg2: i32) -> (i32, i32) {
    %c0_i32 = arith.constant 0 : i32
    return %arg0, %arg2 : i32, i32
  }
  func.func @transform_1(%arg0: i32, %arg1: i32, %arg2: i32) -> (i32, i32) {
    %c0_i32 = arith.constant 0 : i32
    return %arg2, %arg1 : i32, i32
  }
  func.func @transform_2(%arg0: i32, %arg1: i32, %arg2: i32) -> (i32, i32) {
    %c0_i32 = arith.constant 0 : i32
    %c0_i32_0 = arith.constant 0 : i32
    return %c0_i32, %arg1 : i32, i32
  }
  func.func @transform_3(%arg0: i32, %arg1: i32, %arg2: i32) -> (i32, i32) {
    %c0_i32 = arith.constant 0 : i32
    return %arg0, %arg1 : i32, i32
  }
}

module attributes {stable_mosaic.version = 11 : i64} {
  func.func @kernel(%arg0: i32, %arg1: memref<64x32xf32, #tpu.memory_space<vmem>>, %arg2: memref<1x32xf32, #tpu.memory_space<vmem>>, %arg3: memref<1x32xf32, #tpu.memory_space<vmem>>, %arg4: memref<64x32xf32, #tpu.memory_space<vmem>>) attributes {dimension_semantics = [#tpu.dimension_semantics<parallel>], iteration_bounds = array<i64: 2>, scalar_prefetch = 0 : i64, scratch_operands = 0 : i64, tpu.core_type = #tpu.core_type<tc>, window_params = [{transform_indices = @transform_0, window_bounds = array<i64: 64, 32>}, {pipeline_mode = #tpu.pipeline_mode<synchronous>, transform_indices = @transform_1, window_bounds = array<i64: 1, 32>}, {pipeline_mode = #tpu.pipeline_mode<synchronous>, transform_indices = @transform_2, window_bounds = array<i64: 1, 32>}, {transform_indices = @transform_3, window_bounds = array<i64: 64, 32>}]} {
    %c0 = arith.constant 0 : index
    %c0_0 = arith.constant 0 : index
    %0 = vector.load %arg1[%c0, %c0_0] : memref<64x32xf32, #tpu.memory_space<vmem>>, vector<64x32xf32>
    %cst = arith.constant dense<0.000000e+00> : vector<64xf32>
    %1 = vector.multi_reduction <add>, %0, %cst [1] : vector<64x32xf32> to vector<64xf32>
    %2 = vector.shape_cast %1 : vector<64xf32> to vector<64x1xf32>
    %cst_1 = arith.constant 3.200000e+01 : f32
    %3 = vector.broadcast %cst_1 : f32 to vector<64x1xf32>
    %4 = arith.divf %2, %3 : vector<64x1xf32>
    %5 = vector.broadcast %4 : vector<64x1xf32> to vector<64x32xf32>
    %6 = arith.subf %0, %5 : vector<64x32xf32>
    %7 = arith.mulf %6, %6 : vector<64x32xf32>
    %cst_2 = arith.constant dense<0.000000e+00> : vector<64xf32>
    %8 = vector.multi_reduction <add>, %7, %cst_2 [1] : vector<64x32xf32> to vector<64xf32>
    %9 = vector.shape_cast %8 : vector<64xf32> to vector<64x1xf32>
    %cst_3 = arith.constant 3.200000e+01 : f32
    %10 = vector.broadcast %cst_3 : f32 to vector<64x1xf32>
    %11 = arith.divf %9, %10 : vector<64x1xf32>
    %12 = vector.broadcast %4 : vector<64x1xf32> to vector<64x32xf32>
    %13 = arith.subf %0, %12 : vector<64x32xf32>
    %cst_4 = arith.constant 9.99999974E-6 : f32
    %14 = vector.broadcast %cst_4 : f32 to vector<64x1xf32>
    %15 = arith.addf %11, %14 : vector<64x1xf32>
    %16 = math.rsqrt %15 : vector<64x1xf32>
    %17 = vector.broadcast %16 : vector<64x1xf32> to vector<64x32xf32>
    %18 = arith.mulf %13, %17 : vector<64x32xf32>
    %c0_5 = arith.constant 0 : index
    %c0_6 = arith.constant 0 : index
    %19 = vector.load %arg2[%c0_5, %c0_6] : memref<1x32xf32, #tpu.memory_space<vmem>>, vector<1x32xf32>
    %20 = vector.broadcast %19 : vector<1x32xf32> to vector<64x32xf32>
    %21 = arith.mulf %18, %20 : vector<64x32xf32>
    %c0_7 = arith.constant 0 : index
    %c0_8 = arith.constant 0 : index
    %22 = vector.load %arg3[%c0_7, %c0_8] : memref<1x32xf32, #tpu.memory_space<vmem>>, vector<1x32xf32>
    %23 = vector.broadcast %22 : vector<1x32xf32> to vector<64x32xf32>
    %24 = arith.addf %21, %23 : vector<64x32xf32>
    %c0_9 = arith.constant 0 : index
    %c0_10 = arith.constant 0 : index
    %25 = vector.load %arg4[%c0_9, %c0_10] : memref<64x32xf32, #tpu.memory_space<vmem>>, vector<64x32xf32>
    tpu.vector_store %arg4[%c0_9, %c0_10], %24 {strides = array<i32>} : memref<64x32xf32, #tpu.memory_space<vmem>>, vector<64x32xf32>,
    return
  }
  func.func @transform_0(%arg0: i32) -> (i32, i32) {
    %c0_i32 = arith.constant 0 : i32
    %c0_i32_0 = arith.constant 0 : i32
    return %arg0, %c0_i32 : i32, i32
  }
  func.func @transform_1(%arg0: i32) -> (i32, i32) {
    %c0_i32 = arith.constant 0 : i32
    %c0_i32_0 = arith.constant 0 : i32
    %c0_i32_1 = arith.constant 0 : i32
    return %c0_i32, %c0_i32_0 : i32, i32
  }
  func.func @transform_2(%arg0: i32) -> (i32, i32) {
    %c0_i32 = arith.constant 0 : i32
    %c0_i32_0 = arith.constant 0 : i32
    %c0_i32_1 = arith.constant 0 : i32
    return %c0_i32, %c0_i32_0 : i32, i32
  }
  func.func @transform_3(%arg0: i32) -> (i32, i32) {
    %c0_i32 = arith.constant 0 : i32
    %c0_i32_0 = arith.constant 0 : i32
    return %arg0, %c0_i32 : i32, i32
  }
}

module attributes {stable_mosaic.version = 11 : i64} {
  func.func @kernel(%arg0: i32, %arg1: memref<64x32xf32, #tpu.memory_space<vmem>>, %arg2: memref<1x32xf32, #tpu.memory_space<vmem>>, %arg3: memref<1x32xf32, #tpu.memory_space<vmem>>, %arg4: memref<32x96xf32, #tpu.memory_space<vmem>>, %arg5: memref<1x96xf32, #tpu.memory_space<vmem>>, %arg6: memref<64x96xf32, #tpu.memory_space<vmem>>) attributes {dimension_semantics = [#tpu.dimension_semantics<parallel>], iteration_bounds = array<i64: 2>, scalar_prefetch = 0 : i64, scratch_operands = 0 : i64, tpu.core_type = #tpu.core_type<tc>, window_params = [{transform_indices = @transform_0, window_bounds = array<i64: 64, 32>}, {pipeline_mode = #tpu.pipeline_mode<synchronous>, transform_indices = @transform_1, window_bounds = array<i64: 1, 32>}, {pipeline_mode = #tpu.pipeline_mode<synchronous>, transform_indices = @transform_2, window_bounds = array<i64: 1, 32>}, {pipeline_mode = #tpu.pipeline_mode<synchronous>, transform_indices = @transform_3, window_bounds = array<i64: 32, 96>}, {pipeline_mode = #tpu.pipeline_mode<synchronous>, transform_indices = @transform_4, window_bounds = array<i64: 1, 96>}, {transform_indices = @transform_5, window_bounds = array<i64: 64, 96>}]} {
    %c0 = arith.constant 0 : index
    %c0_0 = arith.constant 0 : index
    %0 = vector.load %arg1[%c0, %c0_0] : memref<64x32xf32, #tpu.memory_space<vmem>>, vector<64x32xf32>
    %cst = arith.constant dense<0.000000e+00> : vector<64xf32>
    %1 = vector.multi_reduction <add>, %0, %cst [1] : vector<64x32xf32> to vector<64xf32>
    %2 = vector.shape_cast %1 : vector<64xf32> to vector<64x1xf32>
    %cst_1 = arith.constant 3.200000e+01 : f32
    %3 = vector.broadcast %cst_1 : f32 to vector<64x1xf32>
    %4 = arith.divf %2, %3 : vector<64x1xf32>
    %5 = vector.broadcast %4 : vector<64x1xf32> to vector<64x32xf32>
    %6 = arith.subf %0, %5 : vector<64x32xf32>
    %7 = arith.mulf %6, %6 : vector<64x32xf32>
    %cst_2 = arith.constant dense<0.000000e+00> : vector<64xf32>
    %8 = vector.multi_reduction <add>, %7, %cst_2 [1] : vector<64x32xf32> to vector<64xf32>
    %9 = vector.shape_cast %8 : vector<64xf32> to vector<64x1xf32>
    %cst_3 = arith.constant 3.200000e+01 : f32
    %10 = vector.broadcast %cst_3 : f32 to vector<64x1xf32>
    %11 = arith.divf %9, %10 : vector<64x1xf32>
    %12 = vector.broadcast %4 : vector<64x1xf32> to vector<64x32xf32>
    %13 = arith.subf %0, %12 : vector<64x32xf32>
    %cst_4 = arith.constant 9.99999974E-6 : f32
    %14 = vector.broadcast %cst_4 : f32 to vector<64x1xf32>
    %15 = arith.addf %11, %14 : vector<64x1xf32>
    %16 = math.rsqrt %15 : vector<64x1xf32>
    %17 = vector.broadcast %16 : vector<64x1xf32> to vector<64x32xf32>
    %18 = arith.mulf %13, %17 : vector<64x32xf32>
    %c0_5 = arith.constant 0 : index
    %c0_6 = arith.constant 0 : index
    %19 = vector.load %arg2[%c0_5, %c0_6] : memref<1x32xf32, #tpu.memory_space<vmem>>, vector<1x32xf32>
    %20 = vector.broadcast %19 : vector<1x32xf32> to vector<64x32xf32>
    %21 = arith.mulf %18, %20 : vector<64x32xf32>
    %c0_7 = arith.constant 0 : index
    %c0_8 = arith.constant 0 : index
    %22 = vector.load %arg3[%c0_7, %c0_8] : memref<1x32xf32, #tpu.memory_space<vmem>>, vector<1x32xf32>
    %23 = vector.broadcast %22 : vector<1x32xf32> to vector<64x32xf32>
    %24 = arith.addf %21, %23 : vector<64x32xf32>
    %c0_9 = arith.constant 0 : index
    %c0_10 = arith.constant 0 : index
    %25 = vector.load %arg4[%c0_9, %c0_10] : memref<32x96xf32, #tpu.memory_space<vmem>>, vector<32x96xf32>
    %cst_11 = arith.constant dense<0.000000e+00> : vector<64x96xf32>
    %26 = tpu.matmul %24, %25, %cst_11 {dimension_numbers = #tpu.dot_dimension_numbers<[1], [0], [0], [1], [0, 0, 1, 1], [], []>} : vector<64x32xf32>, vector<32x96xf32>, vector<64x96xf32> -> vector<64x96xf32>
    %c0_12 = arith.constant 0 : index
    %c0_13 = arith.constant 0 : index
    %27 = vector.load %arg5[%c0_12, %c0_13] : memref<1x96xf32, #tpu.memory_space<vmem>>, vector<1x96xf32>
    %28 = vector.broadcast %27 : vector<1x96xf32> to vector<64x96xf32>
    %29 = arith.addf %26, %28 : vector<64x96xf32>
    %c0_14 = arith.constant 0 : index
    %c0_15 = arith.constant 0 : index
    %30 = vector.load %arg6[%c0_14, %c0_15] : memref<64x96xf32, #tpu.memory_space<vmem>>, vector<64x96xf32>
    tpu.vector_store %arg6[%c0_14, %c0_15], %29 {strides = array<i32>} : memref<64x96xf32, #tpu.memory_space<vmem>>, vector<64x96xf32>,
    return
  }
  func.func @transform_0(%arg0: i32) -> (i32, i32) {
    %c0_i32 = arith.constant 0 : i32
    %c0_i32_0 = arith.constant 0 : i32
    return %arg0, %c0_i32 : i32, i32
  }
  func.func @transform_1(%arg0: i32) -> (i32, i32) {
    %c0_i32 = arith.constant 0 : i32
    %c0_i32_0 = arith.constant 0 : i32
    %c0_i32_1 = arith.constant 0 : i32
    return %c0_i32, %c0_i32_0 : i32, i32
  }
  func.func @transform_2(%arg0: i32) -> (i32, i32) {
    %c0_i32 = arith.constant 0 : i32
    %c0_i32_0 = arith.constant 0 : i32
    %c0_i32_1 = arith.constant 0 : i32
    return %c0_i32, %c0_i32_0 : i32, i32
  }
  func.func @transform_3(%arg0: i32) -> (i32, i32) {
    %c0_i32 = arith.constant 0 : i32
    %c0_i32_0 = arith.constant 0 : i32
    %c0_i32_1 = arith.constant 0 : i32
    return %c0_i32, %c0_i32_0 : i32, i32
  }
  func.func @transform_4(%arg0: i32) -> (i32, i32) {
    %c0_i32 = arith.constant 0 : i32
    %c0_i32_0 = arith.constant 0 : i32
    %c0_i32_1 = arith.constant 0 : i32
    return %c0_i32, %c0_i32_0 : i32, i32
  }
  func.func @transform_5(%arg0: i32) -> (i32, i32) {
    %c0_i32 = arith.constant 0 : i32
    %c0_i32_0 = arith.constant 0 : i32
    return %arg0, %c0_i32 : i32, i32
  }
}

module attributes {stable_mosaic.version = 11 : i64} {
  func.func @kernel(%arg0: i32, %arg1: memref<4x16x96xf32, #tpu.memory_space<vmem>>, %arg2: memref<1x2x16x16xf32, #tpu.memory_space<vmem>>, %arg3: memref<32x32xf32, #tpu.memory_space<vmem>>, %arg4: memref<1x32xf32, #tpu.memory_space<vmem>>, %arg5: memref<4x16x32xf32, #tpu.memory_space<vmem>>) attributes {dimension_semantics = [#tpu.dimension_semantics<parallel>], iteration_bounds = array<i64: 2>, scalar_prefetch = 0 : i64, scratch_operands = 0 : i64, tpu.core_type = #tpu.core_type<tc>, window_params = [{transform_indices = @transform_0, window_bounds = array<i64: 4, 16, 96>}, {pipeline_mode = #tpu.pipeline_mode<synchronous>, transform_indices = @transform_1, window_bounds = array<i64: 1, 2, 16, 16>}, {pipeline_mode = #tpu.pipeline_mode<synchronous>, transform_indices = @transform_2, window_bounds = array<i64: 32, 32>}, {pipeline_mode = #tpu.pipeline_mode<synchronous>, transform_indices = @transform_3, window_bounds = array<i64: 1, 32>}, {transform_indices = @transform_4, window_bounds = array<i64: 4, 16, 32>}]} {
    %c0 = arith.constant 0 : index
    %c0_0 = arith.constant 0 : index
    %c0_1 = arith.constant 0 : index
    %0 = vector.load %arg1[%c0, %c0_0, %c0_1] : memref<4x16x96xf32, #tpu.memory_space<vmem>>, vector<4x16x96xf32>
    %c0_2 = arith.constant 0 : index
    %c0_3 = arith.constant 0 : index
    %c0_4 = arith.constant 0 : index
    %c0_5 = arith.constant 0 : index
    %1 = vector.load %arg2[%c0_2, %c0_3, %c0_4, %c0_5] : memref<1x2x16x16xf32, #tpu.memory_space<vmem>>, vector<1x2x16x16xf32>
    %c0_6 = arith.constant 0 : index
    %c0_7 = arith.constant 0 : index
    %2 = vector.load %arg3[%c0_6, %c0_7] : memref<32x32xf32, #tpu.memory_space<vmem>>, vector<32x32xf32>
    %3 = vector.extract_strided_slice %0 {offsets = [0, 0, 0], sizes = [4, 16, 16], strides = [1, 1, 1]} : vector<4x16x96xf32> to vector<4x16x16xf32>
    %cst = arith.constant 2.500000e-01 : f32
    %4 = vector.broadcast %cst : f32 to vector<4x16x16xf32>
    %5 = arith.mulf %3, %4 : vector<4x16x16xf32>
    %6 = vector.extract_strided_slice %0 {offsets = [0, 0, 32], sizes = [4, 16, 16], strides = [1, 1, 1]} : vector<4x16x96xf32> to vector<4x16x16xf32>
    %7 = vector.extract_strided_slice %0 {offsets = [0, 0, 64], sizes = [4, 16, 16], strides = [1, 1, 1]} : vector<4x16x96xf32> to vector<4x16x16xf32>
    "tpu.trace_start"() <{level = 10 : i32, message = "gqd,gkd->gqk"}> : () -> ()
    %cst_8 = arith.constant dense<0.000000e+00> : vector<4x16x16xf32>
    %8 = tpu.matmul %5, %6, %cst_8 {dimension_numbers = #tpu.dot_dimension_numbers<[2], [2], [1], [1], [0, 0, 0, 1, 1, 1], [0], [0]>} : vector<4x16x16xf32>, vector<4x16x16xf32>, vector<4x16x16xf32> -> vector<4x16x16xf32>
    "tpu.trace_stop"() : () -> ()
    %9 = vector.extract_strided_slice %1 {offsets = [0, 0, 0, 0], sizes = [1, 1, 16, 16], strides = [1, 1, 1, 1]} : vector<1x2x16x16xf32> to vector<1x1x16x16xf32>
    %10 = vector.shape_cast %9 : vector<1x1x16x16xf32> to vector<1x16x16xf32>
    %11 = vector.broadcast %10 : vector<1x16x16xf32> to vector<4x16x16xf32>
    %12 = arith.addf %8, %11 : vector<4x16x16xf32>
    %cst_9 = arith.constant dense<0xFF800000> : vector<4x16xf32>
    %13 = vector.multi_reduction <maximumf>, %12, %cst_9 [2] : vector<4x16x16xf32> to vector<4x16xf32>
    %14 = vector.shape_cast %13 : vector<4x16xf32> to vector<4x16x1xf32>
    %15 = vector.broadcast %14 : vector<4x16x1xf32> to vector<4x16x16xf32>
    %16 = arith.subf %12, %15 : vector<4x16x16xf32>
    %17 = math.exp %16 : vector<4x16x16xf32>
    %cst_10 = arith.constant dense<0.000000e+00> : vector<4x16xf32>
    %18 = vector.multi_reduction <add>, %17, %cst_10 [2] : vector<4x16x16xf32> to vector<4x16xf32>
    %19 = vector.shape_cast %18 : vector<4x16xf32> to vector<4x16x1xf32>
    "tpu.trace_start"() <{level = 10 : i32, message = "gqk,gkd->gqd"}> : () -> ()
    %cst_11 = arith.constant dense<0.000000e+00> : vector<4x16x16xf32>
    %20 = tpu.matmul %17, %7, %cst_11 {dimension_numbers = #tpu.dot_dimension_numbers<[2], [1], [1], [2], [0, 0, 0, 1, 1, 2], [0], [0]>} : vector<4x16x16xf32>, vector<4x16x16xf32>, vector<4x16x16xf32> -> vector<4x16x16xf32>
    "tpu.trace_stop"() : () -> ()
    %21 = tpu.reciprocal %19 {approx = true} : vector<4x16x1xf32> -> vector<4x16x1xf32>
    %22 = vector.broadcast %21 : vector<4x16x1xf32> to vector<4x16x16xf32>
    %23 = arith.mulf %20, %22 : vector<4x16x16xf32>
    %24 = vector.shape_cast %23 : vector<4x16x16xf32> to vector<64x16xf32>
    %25 = vector.extract_strided_slice %2 {offsets = [0, 0], sizes = [16, 32], strides = [1, 1]} : vector<32x32xf32> to vector<16x32xf32>
    %cst_12 = arith.constant dense<0.000000e+00> : vector<64x32xf32>
    %26 = tpu.matmul %24, %25, %cst_12 {dimension_numbers = #tpu.dot_dimension_numbers<[1], [0], [0], [1], [0, 0, 1, 1], [], []>} : vector<64x16xf32>, vector<16x32xf32>, vector<64x32xf32> -> vector<64x32xf32>
    %27 = vector.extract_strided_slice %0 {offsets = [0, 0, 16], sizes = [4, 16, 16], strides = [1, 1, 1]} : vector<4x16x96xf32> to vector<4x16x16xf32>
    %cst_13 = arith.constant 2.500000e-01 : f32
    %28 = vector.broadcast %cst_13 : f32 to vector<4x16x16xf32>
    %29 = arith.mulf %27, %28 : vector<4x16x16xf32>
    %30 = vector.extract_strided_slice %0 {offsets = [0, 0, 48], sizes = [4, 16, 16], strides = [1, 1, 1]} : vector<4x16x96xf32> to vector<4x16x16xf32>
    %31 = vector.extract_strided_slice %0 {offsets = [0, 0, 80], sizes = [4, 16, 16], strides = [1, 1, 1]} : vector<4x16x96xf32> to vector<4x16x16xf32>
    "tpu.trace_start"() <{level = 10 : i32, message = "gqd,gkd->gqk"}> : () -> ()
    %cst_14 = arith.constant dense<0.000000e+00> : vector<4x16x16xf32>
    %32 = tpu.matmul %29, %30, %cst_14 {dimension_numbers = #tpu.dot_dimension_numbers<[2], [2], [1], [1], [0, 0, 0, 1, 1, 1], [0], [0]>} : vector<4x16x16xf32>, vector<4x16x16xf32>, vector<4x16x16xf32> -> vector<4x16x16xf32>
    "tpu.trace_stop"() : () -> ()
    %33 = vector.extract_strided_slice %1 {offsets = [0, 1, 0, 0], sizes = [1, 1, 16, 16], strides = [1, 1, 1, 1]} : vector<1x2x16x16xf32> to vector<1x1x16x16xf32>
    %34 = vector.shape_cast %33 : vector<1x1x16x16xf32> to vector<1x16x16xf32>
    %35 = vector.broadcast %34 : vector<1x16x16xf32> to vector<4x16x16xf32>
    %36 = arith.addf %32, %35 : vector<4x16x16xf32>
    %cst_15 = arith.constant dense<0xFF800000> : vector<4x16xf32>
    %37 = vector.multi_reduction <maximumf>, %36, %cst_15 [2] : vector<4x16x16xf32> to vector<4x16xf32>
    %38 = vector.shape_cast %37 : vector<4x16xf32> to vector<4x16x1xf32>
    %39 = vector.broadcast %38 : vector<4x16x1xf32> to vector<4x16x16xf32>
    %40 = arith.subf %36, %39 : vector<4x16x16xf32>
    %41 = math.exp %40 : vector<4x16x16xf32>
    %cst_16 = arith.constant dense<0.000000e+00> : vector<4x16xf32>
    %42 = vector.multi_reduction <add>, %41, %cst_16 [2] : vector<4x16x16xf32> to vector<4x16xf32>
    %43 = vector.shape_cast %42 : vector<4x16xf32> to vector<4x16x1xf32>
    "tpu.trace_start"() <{level = 10 : i32, message = "gqk,gkd->gqd"}> : () -> ()
    %cst_17 = arith.constant dense<0.000000e+00> : vector<4x16x16xf32>
    %44 = tpu.matmul %41, %31, %cst_17 {dimension_numbers = #tpu.dot_dimension_numbers<[2], [1], [1], [2], [0, 0, 0, 1, 1, 2], [0], [0]>} : vector<4x16x16xf32>, vector<4x16x16xf32>, vector<4x16x16xf32> -> vector<4x16x16xf32>
    "tpu.trace_stop"() : () -> ()
    %45 = tpu.reciprocal %43 {approx = true} : vector<4x16x1xf32> -> vector<4x16x1xf32>
    %46 = vector.broadcast %45 : vector<4x16x1xf32> to vector<4x16x16xf32>
    %47 = arith.mulf %44, %46 : vector<4x16x16xf32>
    %48 = vector.shape_cast %47 : vector<4x16x16xf32> to vector<64x16xf32>
    %49 = vector.extract_strided_slice %2 {offsets = [16, 0], sizes = [16, 32], strides = [1, 1]} : vector<32x32xf32> to vector<16x32xf32>
    %cst_18 = arith.constant dense<0.000000e+00> : vector<64x32xf32>
    %50 = tpu.matmul %48, %49, %cst_18 {dimension_numbers = #tpu.dot_dimension_numbers<[1], [0], [0], [1], [0, 0, 1, 1], [], []>} : vector<64x16xf32>, vector<16x32xf32>, vector<64x32xf32> -> vector<64x32xf32>
    %51 = arith.addf %26, %50 : vector<64x32xf32>
    %c0_19 = arith.constant 0 : index
    %c0_20 = arith.constant 0 : index
    %52 = vector.load %arg4[%c0_19, %c0_20] : memref<1x32xf32, #tpu.memory_space<vmem>>, vector<1x32xf32>
    %53 = vector.broadcast %52 : vector<1x32xf32> to vector<64x32xf32>
    %54 = arith.addf %51, %53 : vector<64x32xf32>
    %55 = vector.shape_cast %54 : vector<64x32xf32> to vector<4x16x32xf32>
    %c0_21 = arith.constant 0 : index
    %c0_22 = arith.constant 0 : index
    %c0_23 = arith.constant 0 : index
    %56 = vector.load %arg5[%c0_21, %c0_22, %c0_23] : memref<4x16x32xf32, #tpu.memory_space<vmem>>, vector<4x16x32xf32>
    tpu.vector_store %arg5[%c0_21, %c0_22, %c0_23], %55 {strides = array<i32>} : memref<4x16x32xf32, #tpu.memory_space<vmem>>, vector<4x16x32xf32>,
    return
  }
  func.func @transform_0(%arg0: i32) -> (i32, i32, i32) {
    %c0_i32 = arith.constant 0 : i32
    %c0_i32_0 = arith.constant 0 : i32
    %c0_i32_1 = arith.constant 0 : i32
    return %arg0, %c0_i32, %c0_i32_0 : i32, i32, i32
  }
  func.func @transform_1(%arg0: i32) -> (i32, i32, i32, i32) {
    %c0_i32 = arith.constant 0 : i32
    %c0_i32_0 = arith.constant 0 : i32
    %c0_i32_1 = arith.constant 0 : i32
    %c0_i32_2 = arith.constant 0 : i32
    %c0_i32_3 = arith.constant 0 : i32
    return %c0_i32, %c0_i32_0, %c0_i32_1, %c0_i32_2 : i32, i32, i32, i32
  }
  func.func @transform_2(%arg0: i32) -> (i32, i32) {
    %c0_i32 = arith.constant 0 : i32
    %c0_i32_0 = arith.constant 0 : i32
    %c0_i32_1 = arith.constant 0 : i32
    return %c0_i32, %c0_i32_0 : i32, i32
  }
  func.func @transform_3(%arg0: i32) -> (i32, i32) {
    %c0_i32 = arith.constant 0 : i32
    %c0_i32_0 = arith.constant 0 : i32
    %c0_i32_1 = arith.constant 0 : i32
    return %c0_i32, %c0_i32_0 : i32, i32
  }
  func.func @transform_4(%arg0: i32) -> (i32, i32, i32) {
    %c0_i32 = arith.constant 0 : i32
    %c0_i32_0 = arith.constant 0 : i32
    %c0_i32_1 = arith.constant 0 : i32
    return %arg0, %c0_i32, %c0_i32_0 : i32, i32, i32
  }
}

module attributes {stable_mosaic.version = 11 : i64} {
  func.func @kernel(%arg0: i32, %arg1: memref<64x32xf32, #tpu.memory_space<vmem>>, %arg2: memref<1x32xf32, #tpu.memory_space<vmem>>, %arg3: memref<1x32xf32, #tpu.memory_space<vmem>>, %arg4: memref<32x128xf32, #tpu.memory_space<vmem>>, %arg5: memref<1x128xf32, #tpu.memory_space<vmem>>, %arg6: memref<64x128xf32, #tpu.memory_space<vmem>>) attributes {dimension_semantics = [#tpu.dimension_semantics<parallel>], iteration_bounds = array<i64: 2>, scalar_prefetch = 0 : i64, scratch_operands = 0 : i64, tpu.core_type = #tpu.core_type<tc>, window_params = [{transform_indices = @transform_0, window_bounds = array<i64: 64, 32>}, {pipeline_mode = #tpu.pipeline_mode<synchronous>, transform_indices = @transform_1, window_bounds = array<i64: 1, 32>}, {pipeline_mode = #tpu.pipeline_mode<synchronous>, transform_indices = @transform_2, window_bounds = array<i64: 1, 32>}, {pipeline_mode = #tpu.pipeline_mode<synchronous>, transform_indices = @transform_3, window_bounds = array<i64: 32, 128>}, {pipeline_mode = #tpu.pipeline_mode<synchronous>, transform_indices = @transform_4, window_bounds = array<i64: 1, 128>}, {transform_indices = @transform_5, window_bounds = array<i64: 64, 128>}]} {
    %c0 = arith.constant 0 : index
    %c0_0 = arith.constant 0 : index
    %0 = vector.load %arg1[%c0, %c0_0] : memref<64x32xf32, #tpu.memory_space<vmem>>, vector<64x32xf32>
    %cst = arith.constant dense<0.000000e+00> : vector<64xf32>
    %1 = vector.multi_reduction <add>, %0, %cst [1] : vector<64x32xf32> to vector<64xf32>
    %2 = vector.shape_cast %1 : vector<64xf32> to vector<64x1xf32>
    %cst_1 = arith.constant 3.200000e+01 : f32
    %3 = vector.broadcast %cst_1 : f32 to vector<64x1xf32>
    %4 = arith.divf %2, %3 : vector<64x1xf32>
    %5 = vector.broadcast %4 : vector<64x1xf32> to vector<64x32xf32>
    %6 = arith.subf %0, %5 : vector<64x32xf32>
    %7 = arith.mulf %6, %6 : vector<64x32xf32>
    %cst_2 = arith.constant dense<0.000000e+00> : vector<64xf32>
    %8 = vector.multi_reduction <add>, %7, %cst_2 [1] : vector<64x32xf32> to vector<64xf32>
    %9 = vector.shape_cast %8 : vector<64xf32> to vector<64x1xf32>
    %cst_3 = arith.constant 3.200000e+01 : f32
    %10 = vector.broadcast %cst_3 : f32 to vector<64x1xf32>
    %11 = arith.divf %9, %10 : vector<64x1xf32>
    %12 = vector.broadcast %4 : vector<64x1xf32> to vector<64x32xf32>
    %13 = arith.subf %0, %12 : vector<64x32xf32>
    %cst_4 = arith.constant 9.99999974E-6 : f32
    %14 = vector.broadcast %cst_4 : f32 to vector<64x1xf32>
    %15 = arith.addf %11, %14 : vector<64x1xf32>
    %16 = math.rsqrt %15 : vector<64x1xf32>
    %17 = vector.broadcast %16 : vector<64x1xf32> to vector<64x32xf32>
    %18 = arith.mulf %13, %17 : vector<64x32xf32>
    %c0_5 = arith.constant 0 : index
    %c0_6 = arith.constant 0 : index
    %19 = vector.load %arg2[%c0_5, %c0_6] : memref<1x32xf32, #tpu.memory_space<vmem>>, vector<1x32xf32>
    %20 = vector.broadcast %19 : vector<1x32xf32> to vector<64x32xf32>
    %21 = arith.mulf %18, %20 : vector<64x32xf32>
    %c0_7 = arith.constant 0 : index
    %c0_8 = arith.constant 0 : index
    %22 = vector.load %arg3[%c0_7, %c0_8] : memref<1x32xf32, #tpu.memory_space<vmem>>, vector<1x32xf32>
    %23 = vector.broadcast %22 : vector<1x32xf32> to vector<64x32xf32>
    %24 = arith.addf %21, %23 : vector<64x32xf32>
    %c0_9 = arith.constant 0 : index
    %c0_10 = arith.constant 0 : index
    %25 = vector.load %arg4[%c0_9, %c0_10] : memref<32x128xf32, #tpu.memory_space<vmem>>, vector<32x128xf32>
    %cst_11 = arith.constant dense<0.000000e+00> : vector<64x128xf32>
    %26 = tpu.matmul %24, %25, %cst_11 {dimension_numbers = #tpu.dot_dimension_numbers<[1], [0], [0], [1], [0, 0, 1, 1], [], []>} : vector<64x32xf32>, vector<32x128xf32>, vector<64x128xf32> -> vector<64x128xf32>
    %c0_12 = arith.constant 0 : index
    %c0_13 = arith.constant 0 : index
    %27 = vector.load %arg5[%c0_12, %c0_13] : memref<1x128xf32, #tpu.memory_space<vmem>>, vector<1x128xf32>
    %28 = vector.broadcast %27 : vector<1x128xf32> to vector<64x128xf32>
    %29 = arith.addf %26, %28 : vector<64x128xf32>
    %cst_14 = arith.constant 0.707106769 : f32
    %30 = vector.broadcast %cst_14 : f32 to vector<64x128xf32>
    %31 = arith.mulf %29, %30 : vector<64x128xf32>
    %32 = math.absf %31 : vector<64x128xf32>
    %cst_15 = arith.constant 0.327591091 : f32
    %33 = vector.broadcast %cst_15 : f32 to vector<64x128xf32>
    %34 = arith.mulf %33, %32 : vector<64x128xf32>
    %cst_16 = arith.constant 1.000000e+00 : f32
    %35 = vector.broadcast %cst_16 : f32 to vector<64x128xf32>
    %36 = arith.addf %35, %34 : vector<64x128xf32>
    %cst_17 = arith.constant 1.000000e+00 : f32
    %37 = vector.broadcast %cst_17 : f32 to vector<64x128xf32>
    %38 = arith.divf %37, %36 : vector<64x128xf32>
    %cst_18 = arith.constant 1.06140542 : f32
    %39 = vector.broadcast %cst_18 : f32 to vector<64x128xf32>
    %40 = arith.mulf %38, %39 : vector<64x128xf32>
    %cst_19 = arith.constant -1.45315206 : f32
    %41 = vector.broadcast %cst_19 : f32 to vector<64x128xf32>
    %42 = arith.addf %41, %40 : vector<64x128xf32>
    %43 = arith.mulf %38, %42 : vector<64x128xf32>
    %cst_20 = arith.constant 1.42141378 : f32
    %44 = vector.broadcast %cst_20 : f32 to vector<64x128xf32>
    %45 = arith.addf %44, %43 : vector<64x128xf32>
    %46 = arith.mulf %38, %45 : vector<64x128xf32>
    %cst_21 = arith.constant -0.284496725 : f32
    %47 = vector.broadcast %cst_21 : f32 to vector<64x128xf32>
    %48 = arith.addf %47, %46 : vector<64x128xf32>
    %49 = arith.mulf %38, %48 : vector<64x128xf32>
    %cst_22 = arith.constant 0.254829586 : f32
    %50 = vector.broadcast %cst_22 : f32 to vector<64x128xf32>
    %51 = arith.addf %50, %49 : vector<64x128xf32>
    %52 = arith.mulf %38, %51 : vector<64x128xf32>
    %cst_23 = arith.constant 0.000000e+00 : f32
    %53 = vector.broadcast %cst_23 : f32 to vector<64x128xf32>
    %54 = arith.subf %53, %32 : vector<64x128xf32>
    %55 = arith.mulf %54, %32 : vector<64x128xf32>
    %56 = math.exp %55 : vector<64x128xf32>
    %57 = arith.mulf %52, %56 : vector<64x128xf32>
    %cst_24 = arith.constant 1.000000e+00 : f32
    %58 = vector.broadcast %cst_24 : f32 to vector<64x128xf32>
    %59 = arith.subf %58, %57 : vector<64x128xf32>
    %cst_25 = arith.constant 0.000000e+00 : f32
    %60 = vector.broadcast %cst_25 : f32 to vector<64x128xf32>
    %61 = arith.cmpf oge, %31, %60 : vector<64x128xf32>
    %cst_26 = arith.constant 0.000000e+00 : f32
    %62 = vector.broadcast %cst_26 : f32 to vector<64x128xf32>
    %63 = arith.subf %62, %59 : vector<64x128xf32>
    %64 = arith.select %61, %59, %63 : vector<64x128xi1>, vector<64x128xf32>
    %cst_27 = arith.constant 5.000000e-01 : f32
    %65 = vector.broadcast %cst_27 : f32 to vector<64x128xf32>
    %66 = arith.mulf %65, %29 : vector<64x128xf32>
    %cst_28 = arith.constant 1.000000e+00 : f32
    %67 = vector.broadcast %cst_28 : f32 to vector<64x128xf32>
    %68 = arith.addf %67, %64 : vector<64x128xf32>
    %69 = arith.mulf %66, %68 : vector<64x128xf32>
    %c0_29 = arith.constant 0 : index
    %c0_30 = arith.constant 0 : index
    %70 = vector.load %arg6[%c0_29, %c0_30] : memref<64x128xf32, #tpu.memory_space<vmem>>, vector<64x128xf32>
    tpu.vector_store %arg6[%c0_29, %c0_30], %69 {strides = array<i32>} : memref<64x128xf32, #tpu.memory_space<vmem>>, vector<64x128xf32>,
    return
  }
  func.func @transform_0(%arg0: i32) -> (i32, i32) {
    %c0_i32 = arith.constant 0 : i32
    %c0_i32_0 = arith.constant 0 : i32
    return %arg0, %c0_i32 : i32, i32
  }
  func.func @transform_1(%arg0: i32) -> (i32, i32) {
    %c0_i32 = arith.constant 0 : i32
    %c0_i32_0 = arith.constant 0 : i32
    %c0_i32_1 = arith.constant 0 : i32
    return %c0_i32, %c0_i32_0 : i32, i32
  }
  func.func @transform_2(%arg0: i32) -> (i32, i32) {
    %c0_i32 = arith.constant 0 : i32
    %c0_i32_0 = arith.constant 0 : i32
    %c0_i32_1 = arith.constant 0 : i32
    return %c0_i32, %c0_i32_0 : i32, i32
  }
  func.func @transform_3(%arg0: i32) -> (i32, i32) {
    %c0_i32 = arith.constant 0 : i32
    %c0_i32_0 = arith.constant 0 : i32
    %c0_i32_1 = arith.constant 0 : i32
    return %c0_i32, %c0_i32_0 : i32, i32
  }
  func.func @transform_4(%arg0: i32) -> (i32, i32) {
    %c0_i32 = arith.constant 0 : i32
    %c0_i32_0 = arith.constant 0 : i32
    %c0_i32_1 = arith.constant 0 : i32
    return %c0_i32, %c0_i32_0 : i32, i32
  }
  func.func @transform_5(%arg0: i32) -> (i32, i32) {
    %c0_i32 = arith.constant 0 : i32
    %c0_i32_0 = arith.constant 0 : i32
    return %arg0, %c0_i32 : i32, i32
  }
}

module attributes {stable_mosaic.version = 11 : i64} {
  func.func @kernel(%arg0: i32, %arg1: i32, %arg2: i32, %arg3: memref<64x128xf32, #tpu.memory_space<vmem>>, %arg4: memref<128x32xf32, #tpu.memory_space<vmem>>, %arg5: memref<1x32xf32, #tpu.memory_space<vmem>>, %arg6: memref<64x32xf32, #tpu.memory_space<vmem>>, %arg7: memref<64x32xf32, #tpu.memory_space<vmem>>) attributes {dimension_semantics = [#tpu.dimension_semantics<parallel>, #tpu.dimension_semantics<parallel>, #tpu.dimension_semantics<arbitrary>], iteration_bounds = array<i64: 2, 1, 1>, scalar_prefetch = 0 : i64, scratch_operands = 1 : i64, tpu.core_type = #tpu.core_type<tc>, window_params = [{transform_indices = @transform_0, window_bounds = array<i64: 64, 128>}, {transform_indices = @transform_1, window_bounds = array<i64: 128, 32>}, {transform_indices = @transform_2, window_bounds = array<i64: 1, 32>}, {transform_indices = @transform_3, window_bounds = array<i64: 64, 32>}]} {
    %c0_i32 = arith.constant 0 : i32
    %0 = arith.cmpi eq, %arg2, %c0_i32 : i32
    %1 = arith.extui %0 : i1 to i32
    %c0_i32_0 = arith.constant 0 : i32
    %2 = arith.cmpi ne, %1, %c0_i32_0 : i32
    scf.if %2 {
      %cst_10 = arith.constant 0.000000e+00 : f32
      %12 = vector.broadcast %cst_10 : f32 to vector<64x32xf32>
      %c0_11 = arith.constant 0 : index
      %c0_12 = arith.constant 0 : index
      %13 = vector.load %arg7[%c0_11, %c0_12] : memref<64x32xf32, #tpu.memory_space<vmem>>, vector<64x32xf32>
      tpu.vector_store %arg7[%c0_11, %c0_12], %12 {strides = array<i32>} : memref<64x32xf32, #tpu.memory_space<vmem>>, vector<64x32xf32>,
    } else {
    }
    %c0 = arith.constant 0 : index
    %c0_1 = arith.constant 0 : index
    %3 = vector.load %arg7[%c0, %c0_1] : memref<64x32xf32, #tpu.memory_space<vmem>>, vector<64x32xf32>
    %c0_2 = arith.constant 0 : index
    %c0_3 = arith.constant 0 : index
    %4 = vector.load %arg3[%c0_2, %c0_3] : memref<64x128xf32, #tpu.memory_space<vmem>>, vector<64x128xf32>
    %c0_4 = arith.constant 0 : index
    %c0_5 = arith.constant 0 : index
    %5 = vector.load %arg4[%c0_4, %c0_5] : memref<128x32xf32, #tpu.memory_space<vmem>>, vector<128x32xf32>
    %cst = arith.constant dense<0.000000e+00> : vector<64x32xf32>
    %6 = tpu.matmul %4, %5, %cst {dimension_numbers = #tpu.dot_dimension_numbers<[1], [0], [0], [1], [0, 0, 1, 1], [], []>} : vector<64x128xf32>, vector<128x32xf32>, vector<64x32xf32> -> vector<64x32xf32>
    %7 = arith.addf %3, %6 : vector<64x32xf32>
    %c0_6 = arith.constant 0 : index
    %c0_7 = arith.constant 0 : index
    %8 = vector.load %arg7[%c0_6, %c0_7] : memref<64x32xf32, #tpu.memory_space<vmem>>, vector<64x32xf32>
    tpu.vector_store %arg7[%c0_6, %c0_7], %7 {strides = array<i32>} : memref<64x32xf32, #tpu.memory_space<vmem>>, vector<64x32xf32>,
    %c0_i32_8 = arith.constant 0 : i32
    %9 = arith.cmpi eq, %arg2, %c0_i32_8 : i32
    %10 = arith.extui %9 : i1 to i32
    %c0_i32_9 = arith.constant 0 : i32
    %11 = arith.cmpi ne, %10, %c0_i32_9 : i32
    scf.if %11 {
      %c0_10 = arith.constant 0 : index
      %c0_11 = arith.constant 0 : index
      %12 = vector.load %arg7[%c0_10, %c0_11] : memref<64x32xf32, #tpu.memory_space<vmem>>, vector<64x32xf32>
      %c0_12 = arith.constant 0 : index
      %c0_13 = arith.constant 0 : index
      %13 = vector.load %arg5[%c0_12, %c0_13] : memref<1x32xf32, #tpu.memory_space<vmem>>, vector<1x32xf32>
      %14 = vector.broadcast %13 : vector<1x32xf32> to vector<64x32xf32>
      %15 = arith.addf %12, %14 : vector<64x32xf32>
      %c0_14 = arith.constant 0 : index
      %c0_15 = arith.constant 0 : index
      %16 = vector.load %arg6[%c0_14, %c0_15] : memref<64x32xf32, #tpu.memory_space<vmem>>, vector<64x32xf32>
      tpu.vector_store %arg6[%c0_14, %c0_15], %15 {strides = array<i32>} : memref<64x32xf32, #tpu.memory_space<vmem>>, vector<64x32xf32>,
    } else {
    }
    return
  }
  func.func @transform_0(%arg0: i32, %arg1: i32, %arg2: i32) -> (i32, i32) {
    %c0_i32 = arith.constant 0 : i32
    return %arg0, %arg2 : i32, i32
  }
  func.func @transform_1(%arg0: i32, %arg1: i32, %arg2: i32) -> (i32, i32) {
    %c0_i32 = arith.constant 0 : i32
    return %arg2, %arg1 : i32, i32
  }
  func.func @transform_2(%arg0: i32, %arg1: i32, %arg2: i32) -> (i32, i32) {
    %c0_i32 = arith.constant 0 : i32
    %c0_i32_0 = arith.constant 0 : i32
    return %c0_i32, %arg1 : i32, i32
  }
  func.func @transform_3(%arg0: i32, %arg1: i32, %arg2: i32) -> (i32, i32) {
    %c0_i32 = arith.constant 0 : i32
    return %arg0, %arg1 : i32, i32
  }
}

module attributes {stable_mosaic.version = 11 : i64} {
  func.func @kernel(%arg0: i32, %arg1: memref<4x16x96xf32, #tpu.memory_space<vmem>>, %arg2: memref<4x2x16x16xf32, #tpu.memory_space<vmem>>, %arg3: memref<32x32xf32, #tpu.memory_space<vmem>>, %arg4: memref<1x32xf32, #tpu.memory_space<vmem>>, %arg5: memref<4x16x32xf32, #tpu.memory_space<vmem>>) attributes {dimension_semantics = [#tpu.dimension_semantics<parallel>], iteration_bounds = array<i64: 2>, scalar_prefetch = 0 : i64, scratch_operands = 0 : i64, tpu.core_type = #tpu.core_type<tc>, window_params = [{transform_indices = @transform_0, window_bounds = array<i64: 4, 16, 96>}, {pipeline_mode = #tpu.pipeline_mode<synchronous>, transform_indices = @transform_1, window_bounds = array<i64: 4, 2, 16, 16>}, {pipeline_mode = #tpu.pipeline_mode<synchronous>, transform_indices = @transform_2, window_bounds = array<i64: 32, 32>}, {pipeline_mode = #tpu.pipeline_mode<synchronous>, transform_indices = @transform_3, window_bounds = array<i64: 1, 32>}, {transform_indices = @transform_4, window_bounds = array<i64: 4, 16, 32>}]} {
    %c0 = arith.constant 0 : index
    %c0_0 = arith.constant 0 : index
    %c0_1 = arith.constant 0 : index
    %0 = vector.load %arg1[%c0, %c0_0, %c0_1] : memref<4x16x96xf32, #tpu.memory_space<vmem>>, vector<4x16x96xf32>
    %c0_2 = arith.constant 0 : index
    %c0_3 = arith.constant 0 : index
    %c0_4 = arith.constant 0 : index
    %c0_5 = arith.constant 0 : index
    %1 = vector.load %arg2[%c0_2, %c0_3, %c0_4, %c0_5] : memref<4x2x16x16xf32, #tpu.memory_space<vmem>>, vector<4x2x16x16xf32>
    %c0_6 = arith.constant 0 : index
    %c0_7 = arith.constant 0 : index
    %2 = vector.load %arg3[%c0_6, %c0_7] : memref<32x32xf32, #tpu.memory_space<vmem>>, vector<32x32xf32>
    %3 = vector.extract_strided_slice %0 {offsets = [0, 0, 0], sizes = [4, 16, 16], strides = [1, 1, 1]} : vector<4x16x96xf32> to vector<4x16x16xf32>
    %cst = arith.constant 2.500000e-01 : f32
    %4 = vector.broadcast %cst : f32 to vector<4x16x16xf32>
    %5 = arith.mulf %3, %4 : vector<4x16x16xf32>
    %6 = vector.extract_strided_slice %0 {offsets = [0, 0, 32], sizes = [4, 16, 16], strides = [1, 1, 1]} : vector<4x16x96xf32> to vector<4x16x16xf32>
    %7 = vector.extract_strided_slice %0 {offsets = [0, 0, 64], sizes = [4, 16, 16], strides = [1, 1, 1]} : vector<4x16x96xf32> to vector<4x16x16xf32>
    "tpu.trace_start"() <{level = 10 : i32, message = "gqd,gkd->gqk"}> : () -> ()
    %cst_8 = arith.constant dense<0.000000e+00> : vector<4x16x16xf32>
    %8 = tpu.matmul %5, %6, %cst_8 {dimension_numbers = #tpu.dot_dimension_numbers<[2], [2], [1], [1], [0, 0, 0, 1, 1, 1], [0], [0]>} : vector<4x16x16xf32>, vector<4x16x16xf32>, vector<4x16x16xf32> -> vector<4x16x16xf32>
    "tpu.trace_stop"() : () -> ()
    %9 = vector.extract_strided_slice %1 {offsets = [0, 0, 0, 0], sizes = [4, 1, 16, 16], strides = [1, 1, 1, 1]} : vector<4x2x16x16xf32> to vector<4x1x16x16xf32>
    %10 = vector.shape_cast %9 : vector<4x1x16x16xf32> to vector<4x16x16xf32>
    %11 = arith.addf %8, %10 : vector<4x16x16xf32>
    %cst_9 = arith.constant dense<0xFF800000> : vector<4x16xf32>
    %12 = vector.multi_reduction <maximumf>, %11, %cst_9 [2] : vector<4x16x16xf32> to vector<4x16xf32>
    %13 = vector.shape_cast %12 : vector<4x16xf32> to vector<4x16x1xf32>
    %14 = vector.broadcast %13 : vector<4x16x1xf32> to vector<4x16x16xf32>
    %15 = arith.subf %11, %14 : vector<4x16x16xf32>
    %16 = math.exp %15 : vector<4x16x16xf32>
    %cst_10 = arith.constant dense<0.000000e+00> : vector<4x16xf32>
    %17 = vector.multi_reduction <add>, %16, %cst_10 [2] : vector<4x16x16xf32> to vector<4x16xf32>
    %18 = vector.shape_cast %17 : vector<4x16xf32> to vector<4x16x1xf32>
    "tpu.trace_start"() <{level = 10 : i32, message = "gqk,gkd->gqd"}> : () -> ()
    %cst_11 = arith.constant dense<0.000000e+00> : vector<4x16x16xf32>
    %19 = tpu.matmul %16, %7, %cst_11 {dimension_numbers = #tpu.dot_dimension_numbers<[2], [1], [1], [2], [0, 0, 0, 1, 1, 2], [0], [0]>} : vector<4x16x16xf32>, vector<4x16x16xf32>, vector<4x16x16xf32> -> vector<4x16x16xf32>
    "tpu.trace_stop"() : () -> ()
    %20 = tpu.reciprocal %18 {approx = true} : vector<4x16x1xf32> -> vector<4x16x1xf32>
    %21 = vector.broadcast %20 : vector<4x16x1xf32> to vector<4x16x16xf32>
    %22 = arith.mulf %19, %21 : vector<4x16x16xf32>
    %23 = vector.shape_cast %22 : vector<4x16x16xf32> to vector<64x16xf32>
    %24 = vector.extract_strided_slice %2 {offsets = [0, 0], sizes = [16, 32], strides = [1, 1]} : vector<32x32xf32> to vector<16x32xf32>
    %cst_12 = arith.constant dense<0.000000e+00> : vector<64x32xf32>
    %25 = tpu.matmul %23, %24, %cst_12 {dimension_numbers = #tpu.dot_dimension_numbers<[1], [0], [0], [1], [0, 0, 1, 1], [], []>} : vector<64x16xf32>, vector<16x32xf32>, vector<64x32xf32> -> vector<64x32xf32>
    %26 = vector.extract_strided_slice %0 {offsets = [0, 0, 16], sizes = [4, 16, 16], strides = [1, 1, 1]} : vector<4x16x96xf32> to vector<4x16x16xf32>
    %cst_13 = arith.constant 2.500000e-01 : f32
    %27 = vector.broadcast %cst_13 : f32 to vector<4x16x16xf32>
    %28 = arith.mulf %26, %27 : vector<4x16x16xf32>
    %29 = vector.extract_strided_slice %0 {offsets = [0, 0, 48], sizes = [4, 16, 16], strides = [1, 1, 1]} : vector<4x16x96xf32> to vector<4x16x16xf32>
    %30 = vector.extract_strided_slice %0 {offsets = [0, 0, 80], sizes = [4, 16, 16], strides = [1, 1, 1]} : vector<4x16x96xf32> to vector<4x16x16xf32>
    "tpu.trace_start"() <{level = 10 : i32, message = "gqd,gkd->gqk"}> : () -> ()
    %cst_14 = arith.constant dense<0.000000e+00> : vector<4x16x16xf32>
    %31 = tpu.matmul %28, %29, %cst_14 {dimension_numbers = #tpu.dot_dimension_numbers<[2], [2], [1], [1], [0, 0, 0, 1, 1, 1], [0], [0]>} : vector<4x16x16xf32>, vector<4x16x16xf32>, vector<4x16x16xf32> -> vector<4x16x16xf32>
    "tpu.trace_stop"() : () -> ()
    %32 = vector.extract_strided_slice %1 {offsets = [0, 1, 0, 0], sizes = [4, 1, 16, 16], strides = [1, 1, 1, 1]} : vector<4x2x16x16xf32> to vector<4x1x16x16xf32>
    %33 = vector.shape_cast %32 : vector<4x1x16x16xf32> to vector<4x16x16xf32>
    %34 = arith.addf %31, %33 : vector<4x16x16xf32>
    %cst_15 = arith.constant dense<0xFF800000> : vector<4x16xf32>
    %35 = vector.multi_reduction <maximumf>, %34, %cst_15 [2] : vector<4x16x16xf32> to vector<4x16xf32>
    %36 = vector.shape_cast %35 : vector<4x16xf32> to vector<4x16x1xf32>
    %37 = vector.broadcast %36 : vector<4x16x1xf32> to vector<4x16x16xf32>
    %38 = arith.subf %34, %37 : vector<4x16x16xf32>
    %39 = math.exp %38 : vector<4x16x16xf32>
    %cst_16 = arith.constant dense<0.000000e+00> : vector<4x16xf32>
    %40 = vector.multi_reduction <add>, %39, %cst_16 [2] : vector<4x16x16xf32> to vector<4x16xf32>
    %41 = vector.shape_cast %40 : vector<4x16xf32> to vector<4x16x1xf32>
    "tpu.trace_start"() <{level = 10 : i32, message = "gqk,gkd->gqd"}> : () -> ()
    %cst_17 = arith.constant dense<0.000000e+00> : vector<4x16x16xf32>
    %42 = tpu.matmul %39, %30, %cst_17 {dimension_numbers = #tpu.dot_dimension_numbers<[2], [1], [1], [2], [0, 0, 0, 1, 1, 2], [0], [0]>} : vector<4x16x16xf32>, vector<4x16x16xf32>, vector<4x16x16xf32> -> vector<4x16x16xf32>
    "tpu.trace_stop"() : () -> ()
    %43 = tpu.reciprocal %41 {approx = true} : vector<4x16x1xf32> -> vector<4x16x1xf32>
    %44 = vector.broadcast %43 : vector<4x16x1xf32> to vector<4x16x16xf32>
    %45 = arith.mulf %42, %44 : vector<4x16x16xf32>
    %46 = vector.shape_cast %45 : vector<4x16x16xf32> to vector<64x16xf32>
    %47 = vector.extract_strided_slice %2 {offsets = [16, 0], sizes = [16, 32], strides = [1, 1]} : vector<32x32xf32> to vector<16x32xf32>
    %cst_18 = arith.constant dense<0.000000e+00> : vector<64x32xf32>
    %48 = tpu.matmul %46, %47, %cst_18 {dimension_numbers = #tpu.dot_dimension_numbers<[1], [0], [0], [1], [0, 0, 1, 1], [], []>} : vector<64x16xf32>, vector<16x32xf32>, vector<64x32xf32> -> vector<64x32xf32>
    %49 = arith.addf %25, %48 : vector<64x32xf32>
    %c0_19 = arith.constant 0 : index
    %c0_20 = arith.constant 0 : index
    %50 = vector.load %arg4[%c0_19, %c0_20] : memref<1x32xf32, #tpu.memory_space<vmem>>, vector<1x32xf32>
    %51 = vector.broadcast %50 : vector<1x32xf32> to vector<64x32xf32>
    %52 = arith.addf %49, %51 : vector<64x32xf32>
    %53 = vector.shape_cast %52 : vector<64x32xf32> to vector<4x16x32xf32>
    %c0_21 = arith.constant 0 : index
    %c0_22 = arith.constant 0 : index
    %c0_23 = arith.constant 0 : index
    %54 = vector.load %arg5[%c0_21, %c0_22, %c0_23] : memref<4x16x32xf32, #tpu.memory_space<vmem>>, vector<4x16x32xf32>
    tpu.vector_store %arg5[%c0_21, %c0_22, %c0_23], %53 {strides = array<i32>} : memref<4x16x32xf32, #tpu.memory_space<vmem>>, vector<4x16x32xf32>,
    return
  }
  func.func @transform_0(%arg0: i32) -> (i32, i32, i32) {
    %c0_i32 = arith.constant 0 : i32
    %c0_i32_0 = arith.constant 0 : i32
    %c0_i32_1 = arith.constant 0 : i32
    return %arg0, %c0_i32, %c0_i32_0 : i32, i32, i32
  }
  func.func @transform_1(%arg0: i32) -> (i32, i32, i32, i32) {
    %c0_i32 = arith.constant 0 : i32
    %c0_i32_0 = arith.constant 0 : i32
    %c0_i32_1 = arith.constant 0 : i32
    %c0_i32_2 = arith.constant 0 : i32
    %c0_i32_3 = arith.constant 0 : i32
    return %c0_i32, %c0_i32_0, %c0_i32_1, %c0_i32_2 : i32, i32, i32, i32
  }
  func.func @transform_2(%arg0: i32) -> (i32, i32) {
    %c0_i32 = arith.constant 0 : i32
    %c0_i32_0 = arith.constant 0 : i32
    %c0_i32_1 = arith.constant 0 : i32
    return %c0_i32, %c0_i32_0 : i32, i32
  }
  func.func @transform_3(%arg0: i32) -> (i32, i32) {
    %c0_i32 = arith.constant 0 : i32
    %c0_i32_0 = arith.constant 0 : i32
    %c0_i32_1 = arith.constant 0 : i32
    return %c0_i32, %c0_i32_0 : i32, i32
  }
  func.func @transform_4(%arg0: i32) -> (i32, i32, i32) {
    %c0_i32 = arith.constant 0 : i32
    %c0_i32_0 = arith.constant 0 : i32
    %c0_i32_1 = arith.constant 0 : i32
    return %arg0, %c0_i32, %c0_i32_0 : i32, i32, i32
  }
}

module attributes {stable_mosaic.version = 11 : i64} {
  func.func @kernel(%arg0: i32, %arg1: memref<16x64xf32, #tpu.memory_space<vmem>>, %arg2: memref<1x64xf32, #tpu.memory_space<vmem>>, %arg3: memref<1x64xf32, #tpu.memory_space<vmem>>, %arg4: memref<64x192xf32, #tpu.memory_space<vmem>>, %arg5: memref<1x192xf32, #tpu.memory_space<vmem>>, %arg6: memref<16x192xf32, #tpu.memory_space<vmem>>) attributes {dimension_semantics = [#tpu.dimension_semantics<parallel>], iteration_bounds = array<i64: 2>, scalar_prefetch = 0 : i64, scratch_operands = 0 : i64, tpu.core_type = #tpu.core_type<tc>, window_params = [{transform_indices = @transform_0, window_bounds = array<i64: 16, 64>}, {pipeline_mode = #tpu.pipeline_mode<synchronous>, transform_indices = @transform_1, window_bounds = array<i64: 1, 64>}, {pipeline_mode = #tpu.pipeline_mode<synchronous>, transform_indices = @transform_2, window_bounds = array<i64: 1, 64>}, {pipeline_mode = #tpu.pipeline_mode<synchronous>, transform_indices = @transform_3, window_bounds = array<i64: 64, 192>}, {pipeline_mode = #tpu.pipeline_mode<synchronous>, transform_indices = @transform_4, window_bounds = array<i64: 1, 192>}, {transform_indices = @transform_5, window_bounds = array<i64: 16, 192>}]} {
    %c0 = arith.constant 0 : index
    %c0_0 = arith.constant 0 : index
    %0 = vector.load %arg1[%c0, %c0_0] : memref<16x64xf32, #tpu.memory_space<vmem>>, vector<16x64xf32>
    %cst = arith.constant dense<0.000000e+00> : vector<16xf32>
    %1 = vector.multi_reduction <add>, %0, %cst [1] : vector<16x64xf32> to vector<16xf32>
    %2 = vector.shape_cast %1 : vector<16xf32> to vector<16x1xf32>
    %cst_1 = arith.constant 6.400000e+01 : f32
    %3 = vector.broadcast %cst_1 : f32 to vector<16x1xf32>
    %4 = arith.divf %2, %3 : vector<16x1xf32>
    %5 = vector.broadcast %4 : vector<16x1xf32> to vector<16x64xf32>
    %6 = arith.subf %0, %5 : vector<16x64xf32>
    %7 = arith.mulf %6, %6 : vector<16x64xf32>
    %cst_2 = arith.constant dense<0.000000e+00> : vector<16xf32>
    %8 = vector.multi_reduction <add>, %7, %cst_2 [1] : vector<16x64xf32> to vector<16xf32>
    %9 = vector.shape_cast %8 : vector<16xf32> to vector<16x1xf32>
    %cst_3 = arith.constant 6.400000e+01 : f32
    %10 = vector.broadcast %cst_3 : f32 to vector<16x1xf32>
    %11 = arith.divf %9, %10 : vector<16x1xf32>
    %12 = vector.broadcast %4 : vector<16x1xf32> to vector<16x64xf32>
    %13 = arith.subf %0, %12 : vector<16x64xf32>
    %cst_4 = arith.constant 9.99999974E-6 : f32
    %14 = vector.broadcast %cst_4 : f32 to vector<16x1xf32>
    %15 = arith.addf %11, %14 : vector<16x1xf32>
    %16 = math.rsqrt %15 : vector<16x1xf32>
    %17 = vector.broadcast %16 : vector<16x1xf32> to vector<16x64xf32>
    %18 = arith.mulf %13, %17 : vector<16x64xf32>
    %c0_5 = arith.constant 0 : index
    %c0_6 = arith.constant 0 : index
    %19 = vector.load %arg2[%c0_5, %c0_6] : memref<1x64xf32, #tpu.memory_space<vmem>>, vector<1x64xf32>
    %20 = vector.broadcast %19 : vector<1x64xf32> to vector<16x64xf32>
    %21 = arith.mulf %18, %20 : vector<16x64xf32>
    %c0_7 = arith.constant 0 : index
    %c0_8 = arith.constant 0 : index
    %22 = vector.load %arg3[%c0_7, %c0_8] : memref<1x64xf32, #tpu.memory_space<vmem>>, vector<1x64xf32>
    %23 = vector.broadcast %22 : vector<1x64xf32> to vector<16x64xf32>
    %24 = arith.addf %21, %23 : vector<16x64xf32>
    %c0_9 = arith.constant 0 : index
    %c0_10 = arith.constant 0 : index
    %25 = vector.load %arg4[%c0_9, %c0_10] : memref<64x192xf32, #tpu.memory_space<vmem>>, vector<64x192xf32>
    %cst_11 = arith.constant dense<0.000000e+00> : vector<16x192xf32>
    %26 = tpu.matmul %24, %25, %cst_11 {dimension_numbers = #tpu.dot_dimension_numbers<[1], [0], [0], [1], [0, 0, 1, 1], [], []>} : vector<16x64xf32>, vector<64x192xf32>, vector<16x192xf32> -> vector<16x192xf32>
    %c0_12 = arith.constant 0 : index
    %c0_13 = arith.constant 0 : index
    %27 = vector.load %arg5[%c0_12, %c0_13] : memref<1x192xf32, #tpu.memory_space<vmem>>, vector<1x192xf32>
    %28 = vector.broadcast %27 : vector<1x192xf32> to vector<16x192xf32>
    %29 = arith.addf %26, %28 : vector<16x192xf32>
    %c0_14 = arith.constant 0 : index
    %c0_15 = arith.constant 0 : index
    %30 = vector.load %arg6[%c0_14, %c0_15] : memref<16x192xf32, #tpu.memory_space<vmem>>, vector<16x192xf32>
    tpu.vector_store %arg6[%c0_14, %c0_15], %29 {strides = array<i32>} : memref<16x192xf32, #tpu.memory_space<vmem>>, vector<16x192xf32>,
    return
  }
  func.func @transform_0(%arg0: i32) -> (i32, i32) {
    %c0_i32 = arith.constant 0 : i32
    %c0_i32_0 = arith.constant 0 : i32
    return %arg0, %c0_i32 : i32, i32
  }
  func.func @transform_1(%arg0: i32) -> (i32, i32) {
    %c0_i32 = arith.constant 0 : i32
    %c0_i32_0 = arith.constant 0 : i32
    %c0_i32_1 = arith.constant 0 : i32
    return %c0_i32, %c0_i32_0 : i32, i32
  }
  func.func @transform_2(%arg0: i32) -> (i32, i32) {
    %c0_i32 = arith.constant 0 : i32
    %c0_i32_0 = arith.constant 0 : i32
    %c0_i32_1 = arith.constant 0 : i32
    return %c0_i32, %c0_i32_0 : i32, i32
  }
  func.func @transform_3(%arg0: i32) -> (i32, i32) {
    %c0_i32 = arith.constant 0 : i32
    %c0_i32_0 = arith.constant 0 : i32
    %c0_i32_1 = arith.constant 0 : i32
    return %c0_i32, %c0_i32_0 : i32, i32
  }
  func.func @transform_4(%arg0: i32) -> (i32, i32) {
    %c0_i32 = arith.constant 0 : i32
    %c0_i32_0 = arith.constant 0 : i32
    %c0_i32_1 = arith.constant 0 : i32
    return %c0_i32, %c0_i32_0 : i32, i32
  }
  func.func @transform_5(%arg0: i32) -> (i32, i32) {
    %c0_i32 = arith.constant 0 : i32
    %c0_i32_0 = arith.constant 0 : i32
    return %arg0, %c0_i32 : i32, i32
  }
}

module attributes {stable_mosaic.version = 11 : i64} {
  func.func @kernel(%arg0: i32, %arg1: memref<1x16x192xf32, #tpu.memory_space<vmem>>, %arg2: memref<1x4x16x16xf32, #tpu.memory_space<vmem>>, %arg3: memref<64x64xf32, #tpu.memory_space<vmem>>, %arg4: memref<1x64xf32, #tpu.memory_space<vmem>>, %arg5: memref<1x16x64xf32, #tpu.memory_space<vmem>>) attributes {dimension_semantics = [#tpu.dimension_semantics<parallel>], iteration_bounds = array<i64: 2>, scalar_prefetch = 0 : i64, scratch_operands = 0 : i64, tpu.core_type = #tpu.core_type<tc>, window_params = [{transform_indices = @transform_0, window_bounds = array<i64: 1, 16, 192>}, {pipeline_mode = #tpu.pipeline_mode<synchronous>, transform_indices = @transform_1, window_bounds = array<i64: 1, 4, 16, 16>}, {pipeline_mode = #tpu.pipeline_mode<synchronous>, transform_indices = @transform_2, window_bounds = array<i64: 64, 64>}, {pipeline_mode = #tpu.pipeline_mode<synchronous>, transform_indices = @transform_3, window_bounds = array<i64: 1, 64>}, {transform_indices = @transform_4, window_bounds = array<i64: 1, 16, 64>}]} {
    %c0 = arith.constant 0 : index
    %c0_0 = arith.constant 0 : index
    %c0_1 = arith.constant 0 : index
    %0 = vector.load %arg1[%c0, %c0_0, %c0_1] : memref<1x16x192xf32, #tpu.memory_space<vmem>>, vector<1x16x192xf32>
    %c0_2 = arith.constant 0 : index
    %c0_3 = arith.constant 0 : index
    %c0_4 = arith.constant 0 : index
    %c0_5 = arith.constant 0 : index
    %1 = vector.load %arg2[%c0_2, %c0_3, %c0_4, %c0_5] : memref<1x4x16x16xf32, #tpu.memory_space<vmem>>, vector<1x4x16x16xf32>
    %c0_6 = arith.constant 0 : index
    %c0_7 = arith.constant 0 : index
    %2 = vector.load %arg3[%c0_6, %c0_7] : memref<64x64xf32, #tpu.memory_space<vmem>>, vector<64x64xf32>
    %3 = vector.extract_strided_slice %0 {offsets = [0, 0, 0], sizes = [1, 16, 16], strides = [1, 1, 1]} : vector<1x16x192xf32> to vector<1x16x16xf32>
    %cst = arith.constant 2.500000e-01 : f32
    %4 = vector.broadcast %cst : f32 to vector<1x16x16xf32>
    %5 = arith.mulf %3, %4 : vector<1x16x16xf32>
    %6 = vector.extract_strided_slice %0 {offsets = [0, 0, 64], sizes = [1, 16, 16], strides = [1, 1, 1]} : vector<1x16x192xf32> to vector<1x16x16xf32>
    %7 = vector.extract_strided_slice %0 {offsets = [0, 0, 128], sizes = [1, 16, 16], strides = [1, 1, 1]} : vector<1x16x192xf32> to vector<1x16x16xf32>
    "tpu.trace_start"() <{level = 10 : i32, message = "gqd,gkd->gqk"}> : () -> ()
    %cst_8 = arith.constant dense<0.000000e+00> : vector<1x16x16xf32>
    %8 = tpu.matmul %5, %6, %cst_8 {dimension_numbers = #tpu.dot_dimension_numbers<[2], [2], [1], [1], [0, 0, 0, 1, 1, 1], [0], [0]>} : vector<1x16x16xf32>, vector<1x16x16xf32>, vector<1x16x16xf32> -> vector<1x16x16xf32>
    "tpu.trace_stop"() : () -> ()
    %9 = vector.extract_strided_slice %1 {offsets = [0, 0, 0, 0], sizes = [1, 1, 16, 16], strides = [1, 1, 1, 1]} : vector<1x4x16x16xf32> to vector<1x1x16x16xf32>
    %10 = vector.shape_cast %9 : vector<1x1x16x16xf32> to vector<1x16x16xf32>
    %11 = arith.addf %8, %10 : vector<1x16x16xf32>
    %cst_9 = arith.constant dense<0xFF800000> : vector<1x16xf32>
    %12 = vector.multi_reduction <maximumf>, %11, %cst_9 [2] : vector<1x16x16xf32> to vector<1x16xf32>
    %13 = vector.shape_cast %12 : vector<1x16xf32> to vector<1x16x1xf32>
    %14 = vector.broadcast %13 : vector<1x16x1xf32> to vector<1x16x16xf32>
    %15 = arith.subf %11, %14 : vector<1x16x16xf32>
    %16 = math.exp %15 : vector<1x16x16xf32>
    %cst_10 = arith.constant dense<0.000000e+00> : vector<1x16xf32>
    %17 = vector.multi_reduction <add>, %16, %cst_10 [2] : vector<1x16x16xf32> to vector<1x16xf32>
    %18 = vector.shape_cast %17 : vector<1x16xf32> to vector<1x16x1xf32>
    "tpu.trace_start"() <{level = 10 : i32, message = "gqk,gkd->gqd"}> : () -> ()
    %cst_11 = arith.constant dense<0.000000e+00> : vector<1x16x16xf32>
    %19 = tpu.matmul %16, %7, %cst_11 {dimension_numbers = #tpu.dot_dimension_numbers<[2], [1], [1], [2], [0, 0, 0, 1, 1, 2], [0], [0]>} : vector<1x16x16xf32>, vector<1x16x16xf32>, vector<1x16x16xf32> -> vector<1x16x16xf32>
    "tpu.trace_stop"() : () -> ()
    %20 = tpu.reciprocal %18 {approx = true} : vector<1x16x1xf32> -> vector<1x16x1xf32>
    %21 = vector.broadcast %20 : vector<1x16x1xf32> to vector<1x16x16xf32>
    %22 = arith.mulf %19, %21 : vector<1x16x16xf32>
    %23 = vector.shape_cast %22 : vector<1x16x16xf32> to vector<16x16xf32>
    %24 = vector.extract_strided_slice %2 {offsets = [0, 0], sizes = [16, 64], strides = [1, 1]} : vector<64x64xf32> to vector<16x64xf32>
    %cst_12 = arith.constant dense<0.000000e+00> : vector<16x64xf32>
    %25 = tpu.matmul %23, %24, %cst_12 {dimension_numbers = #tpu.dot_dimension_numbers<[1], [0], [0], [1], [0, 0, 1, 1], [], []>} : vector<16x16xf32>, vector<16x64xf32>, vector<16x64xf32> -> vector<16x64xf32>
    %26 = vector.extract_strided_slice %0 {offsets = [0, 0, 16], sizes = [1, 16, 16], strides = [1, 1, 1]} : vector<1x16x192xf32> to vector<1x16x16xf32>
    %cst_13 = arith.constant 2.500000e-01 : f32
    %27 = vector.broadcast %cst_13 : f32 to vector<1x16x16xf32>
    %28 = arith.mulf %26, %27 : vector<1x16x16xf32>
    %29 = vector.extract_strided_slice %0 {offsets = [0, 0, 80], sizes = [1, 16, 16], strides = [1, 1, 1]} : vector<1x16x192xf32> to vector<1x16x16xf32>
    %30 = vector.extract_strided_slice %0 {offsets = [0, 0, 144], sizes = [1, 16, 16], strides = [1, 1, 1]} : vector<1x16x192xf32> to vector<1x16x16xf32>
    "tpu.trace_start"() <{level = 10 : i32, message = "gqd,gkd->gqk"}> : () -> ()
    %cst_14 = arith.constant dense<0.000000e+00> : vector<1x16x16xf32>
    %31 = tpu.matmul %28, %29, %cst_14 {dimension_numbers = #tpu.dot_dimension_numbers<[2], [2], [1], [1], [0, 0, 0, 1, 1, 1], [0], [0]>} : vector<1x16x16xf32>, vector<1x16x16xf32>, vector<1x16x16xf32> -> vector<1x16x16xf32>
    "tpu.trace_stop"() : () -> ()
    %32 = vector.extract_strided_slice %1 {offsets = [0, 1, 0, 0], sizes = [1, 1, 16, 16], strides = [1, 1, 1, 1]} : vector<1x4x16x16xf32> to vector<1x1x16x16xf32>
    %33 = vector.shape_cast %32 : vector<1x1x16x16xf32> to vector<1x16x16xf32>
    %34 = arith.addf %31, %33 : vector<1x16x16xf32>
    %cst_15 = arith.constant dense<0xFF800000> : vector<1x16xf32>
    %35 = vector.multi_reduction <maximumf>, %34, %cst_15 [2] : vector<1x16x16xf32> to vector<1x16xf32>
    %36 = vector.shape_cast %35 : vector<1x16xf32> to vector<1x16x1xf32>
    %37 = vector.broadcast %36 : vector<1x16x1xf32> to vector<1x16x16xf32>
    %38 = arith.subf %34, %37 : vector<1x16x16xf32>
    %39 = math.exp %38 : vector<1x16x16xf32>
    %cst_16 = arith.constant dense<0.000000e+00> : vector<1x16xf32>
    %40 = vector.multi_reduction <add>, %39, %cst_16 [2] : vector<1x16x16xf32> to vector<1x16xf32>
    %41 = vector.shape_cast %40 : vector<1x16xf32> to vector<1x16x1xf32>
    "tpu.trace_start"() <{level = 10 : i32, message = "gqk,gkd->gqd"}> : () -> ()
    %cst_17 = arith.constant dense<0.000000e+00> : vector<1x16x16xf32>
    %42 = tpu.matmul %39, %30, %cst_17 {dimension_numbers = #tpu.dot_dimension_numbers<[2], [1], [1], [2], [0, 0, 0, 1, 1, 2], [0], [0]>} : vector<1x16x16xf32>, vector<1x16x16xf32>, vector<1x16x16xf32> -> vector<1x16x16xf32>
    "tpu.trace_stop"() : () -> ()
    %43 = tpu.reciprocal %41 {approx = true} : vector<1x16x1xf32> -> vector<1x16x1xf32>
    %44 = vector.broadcast %43 : vector<1x16x1xf32> to vector<1x16x16xf32>
    %45 = arith.mulf %42, %44 : vector<1x16x16xf32>
    %46 = vector.shape_cast %45 : vector<1x16x16xf32> to vector<16x16xf32>
    %47 = vector.extract_strided_slice %2 {offsets = [16, 0], sizes = [16, 64], strides = [1, 1]} : vector<64x64xf32> to vector<16x64xf32>
    %cst_18 = arith.constant dense<0.000000e+00> : vector<16x64xf32>
    %48 = tpu.matmul %46, %47, %cst_18 {dimension_numbers = #tpu.dot_dimension_numbers<[1], [0], [0], [1], [0, 0, 1, 1], [], []>} : vector<16x16xf32>, vector<16x64xf32>, vector<16x64xf32> -> vector<16x64xf32>
    %49 = arith.addf %25, %48 : vector<16x64xf32>
    %50 = vector.extract_strided_slice %0 {offsets = [0, 0, 32], sizes = [1, 16, 16], strides = [1, 1, 1]} : vector<1x16x192xf32> to vector<1x16x16xf32>
    %cst_19 = arith.constant 2.500000e-01 : f32
    %51 = vector.broadcast %cst_19 : f32 to vector<1x16x16xf32>
    %52 = arith.mulf %50, %51 : vector<1x16x16xf32>
    %53 = vector.extract_strided_slice %0 {offsets = [0, 0, 96], sizes = [1, 16, 16], strides = [1, 1, 1]} : vector<1x16x192xf32> to vector<1x16x16xf32>
    %54 = vector.extract_strided_slice %0 {offsets = [0, 0, 160], sizes = [1, 16, 16], strides = [1, 1, 1]} : vector<1x16x192xf32> to vector<1x16x16xf32>
    "tpu.trace_start"() <{level = 10 : i32, message = "gqd,gkd->gqk"}> : () -> ()
    %cst_20 = arith.constant dense<0.000000e+00> : vector<1x16x16xf32>
    %55 = tpu.matmul %52, %53, %cst_20 {dimension_numbers = #tpu.dot_dimension_numbers<[2], [2], [1], [1], [0, 0, 0, 1, 1, 1], [0], [0]>} : vector<1x16x16xf32>, vector<1x16x16xf32>, vector<1x16x16xf32> -> vector<1x16x16xf32>
    "tpu.trace_stop"() : () -> ()
    %56 = vector.extract_strided_slice %1 {offsets = [0, 2, 0, 0], sizes = [1, 1, 16, 16], strides = [1, 1, 1, 1]} : vector<1x4x16x16xf32> to vector<1x1x16x16xf32>
    %57 = vector.shape_cast %56 : vector<1x1x16x16xf32> to vector<1x16x16xf32>
    %58 = arith.addf %55, %57 : vector<1x16x16xf32>
    %cst_21 = arith.constant dense<0xFF800000> : vector<1x16xf32>
    %59 = vector.multi_reduction <maximumf>, %58, %cst_21 [2] : vector<1x16x16xf32> to vector<1x16xf32>
    %60 = vector.shape_cast %59 : vector<1x16xf32> to vector<1x16x1xf32>
    %61 = vector.broadcast %60 : vector<1x16x1xf32> to vector<1x16x16xf32>
    %62 = arith.subf %58, %61 : vector<1x16x16xf32>
    %63 = math.exp %62 : vector<1x16x16xf32>
    %cst_22 = arith.constant dense<0.000000e+00> : vector<1x16xf32>
    %64 = vector.multi_reduction <add>, %63, %cst_22 [2] : vector<1x16x16xf32> to vector<1x16xf32>
    %65 = vector.shape_cast %64 : vector<1x16xf32> to vector<1x16x1xf32>
    "tpu.trace_start"() <{level = 10 : i32, message = "gqk,gkd->gqd"}> : () -> ()
    %cst_23 = arith.constant dense<0.000000e+00> : vector<1x16x16xf32>
    %66 = tpu.matmul %63, %54, %cst_23 {dimension_numbers = #tpu.dot_dimension_numbers<[2], [1], [1], [2], [0, 0, 0, 1, 1, 2], [0], [0]>} : vector<1x16x16xf32>, vector<1x16x16xf32>, vector<1x16x16xf32> -> vector<1x16x16xf32>
    "tpu.trace_stop"() : () -> ()
    %67 = tpu.reciprocal %65 {approx = true} : vector<1x16x1xf32> -> vector<1x16x1xf32>
    %68 = vector.broadcast %67 : vector<1x16x1xf32> to vector<1x16x16xf32>
    %69 = arith.mulf %66, %68 : vector<1x16x16xf32>
    %70 = vector.shape_cast %69 : vector<1x16x16xf32> to vector<16x16xf32>
    %71 = vector.extract_strided_slice %2 {offsets = [32, 0], sizes = [16, 64], strides = [1, 1]} : vector<64x64xf32> to vector<16x64xf32>
    %cst_24 = arith.constant dense<0.000000e+00> : vector<16x64xf32>
    %72 = tpu.matmul %70, %71, %cst_24 {dimension_numbers = #tpu.dot_dimension_numbers<[1], [0], [0], [1], [0, 0, 1, 1], [], []>} : vector<16x16xf32>, vector<16x64xf32>, vector<16x64xf32> -> vector<16x64xf32>
    %73 = arith.addf %49, %72 : vector<16x64xf32>
    %74 = vector.extract_strided_slice %0 {offsets = [0, 0, 48], sizes = [1, 16, 16], strides = [1, 1, 1]} : vector<1x16x192xf32> to vector<1x16x16xf32>
    %cst_25 = arith.constant 2.500000e-01 : f32
    %75 = vector.broadcast %cst_25 : f32 to vector<1x16x16xf32>
    %76 = arith.mulf %74, %75 : vector<1x16x16xf32>
    %77 = vector.extract_strided_slice %0 {offsets = [0, 0, 112], sizes = [1, 16, 16], strides = [1, 1, 1]} : vector<1x16x192xf32> to vector<1x16x16xf32>
    %78 = vector.extract_strided_slice %0 {offsets = [0, 0, 176], sizes = [1, 16, 16], strides = [1, 1, 1]} : vector<1x16x192xf32> to vector<1x16x16xf32>
    "tpu.trace_start"() <{level = 10 : i32, message = "gqd,gkd->gqk"}> : () -> ()
    %cst_26 = arith.constant dense<0.000000e+00> : vector<1x16x16xf32>
    %79 = tpu.matmul %76, %77, %cst_26 {dimension_numbers = #tpu.dot_dimension_numbers<[2], [2], [1], [1], [0, 0, 0, 1, 1, 1], [0], [0]>} : vector<1x16x16xf32>, vector<1x16x16xf32>, vector<1x16x16xf32> -> vector<1x16x16xf32>
    "tpu.trace_stop"() : () -> ()
    %80 = vector.extract_strided_slice %1 {offsets = [0, 3, 0, 0], sizes = [1, 1, 16, 16], strides = [1, 1, 1, 1]} : vector<1x4x16x16xf32> to vector<1x1x16x16xf32>
    %81 = vector.shape_cast %80 : vector<1x1x16x16xf32> to vector<1x16x16xf32>
    %82 = arith.addf %79, %81 : vector<1x16x16xf32>
    %cst_27 = arith.constant dense<0xFF800000> : vector<1x16xf32>
    %83 = vector.multi_reduction <maximumf>, %82, %cst_27 [2] : vector<1x16x16xf32> to vector<1x16xf32>
    %84 = vector.shape_cast %83 : vector<1x16xf32> to vector<1x16x1xf32>
    %85 = vector.broadcast %84 : vector<1x16x1xf32> to vector<1x16x16xf32>
    %86 = arith.subf %82, %85 : vector<1x16x16xf32>
    %87 = math.exp %86 : vector<1x16x16xf32>
    %cst_28 = arith.constant dense<0.000000e+00> : vector<1x16xf32>
    %88 = vector.multi_reduction <add>, %87, %cst_28 [2] : vector<1x16x16xf32> to vector<1x16xf32>
    %89 = vector.shape_cast %88 : vector<1x16xf32> to vector<1x16x1xf32>
    "tpu.trace_start"() <{level = 10 : i32, message = "gqk,gkd->gqd"}> : () -> ()
    %cst_29 = arith.constant dense<0.000000e+00> : vector<1x16x16xf32>
    %90 = tpu.matmul %87, %78, %cst_29 {dimension_numbers = #tpu.dot_dimension_numbers<[2], [1], [1], [2], [0, 0, 0, 1, 1, 2], [0], [0]>} : vector<1x16x16xf32>, vector<1x16x16xf32>, vector<1x16x16xf32> -> vector<1x16x16xf32>
    "tpu.trace_stop"() : () -> ()
    %91 = tpu.reciprocal %89 {approx = true} : vector<1x16x1xf32> -> vector<1x16x1xf32>
    %92 = vector.broadcast %91 : vector<1x16x1xf32> to vector<1x16x16xf32>
    %93 = arith.mulf %90, %92 : vector<1x16x16xf32>
    %94 = vector.shape_cast %93 : vector<1x16x16xf32> to vector<16x16xf32>
    %95 = vector.extract_strided_slice %2 {offsets = [48, 0], sizes = [16, 64], strides = [1, 1]} : vector<64x64xf32> to vector<16x64xf32>
    %cst_30 = arith.constant dense<0.000000e+00> : vector<16x64xf32>
    %96 = tpu.matmul %94, %95, %cst_30 {dimension_numbers = #tpu.dot_dimension_numbers<[1], [0], [0], [1], [0, 0, 1, 1], [], []>} : vector<16x16xf32>, vector<16x64xf32>, vector<16x64xf32> -> vector<16x64xf32>
    %97 = arith.addf %73, %96 : vector<16x64xf32>
    %c0_31 = arith.constant 0 : index
    %c0_32 = arith.constant 0 : index
    %98 = vector.load %arg4[%c0_31, %c0_32] : memref<1x64xf32, #tpu.memory_space<vmem>>, vector<1x64xf32>
    %99 = vector.broadcast %98 : vector<1x64xf32> to vector<16x64xf32>
    %100 = arith.addf %97, %99 : vector<16x64xf32>
    %101 = vector.shape_cast %100 : vector<16x64xf32> to vector<1x16x64xf32>
    %c0_33 = arith.constant 0 : index
    %c0_34 = arith.constant 0 : index
    %c0_35 = arith.constant 0 : index
    %102 = vector.load %arg5[%c0_33, %c0_34, %c0_35] : memref<1x16x64xf32, #tpu.memory_space<vmem>>, vector<1x16x64xf32>
    tpu.vector_store %arg5[%c0_33, %c0_34, %c0_35], %101 {strides = array<i32>} : memref<1x16x64xf32, #tpu.memory_space<vmem>>, vector<1x16x64xf32>,
    return
  }
  func.func @transform_0(%arg0: i32) -> (i32, i32, i32) {
    %c0_i32 = arith.constant 0 : i32
    %c0_i32_0 = arith.constant 0 : i32
    %c0_i32_1 = arith.constant 0 : i32
    return %arg0, %c0_i32, %c0_i32_0 : i32, i32, i32
  }
  func.func @transform_1(%arg0: i32) -> (i32, i32, i32, i32) {
    %c0_i32 = arith.constant 0 : i32
    %c0_i32_0 = arith.constant 0 : i32
    %c0_i32_1 = arith.constant 0 : i32
    %c0_i32_2 = arith.constant 0 : i32
    %c0_i32_3 = arith.constant 0 : i32
    return %c0_i32, %c0_i32_0, %c0_i32_1, %c0_i32_2 : i32, i32, i32, i32
  }
  func.func @transform_2(%arg0: i32) -> (i32, i32) {
    %c0_i32 = arith.constant 0 : i32
    %c0_i32_0 = arith.constant 0 : i32
    %c0_i32_1 = arith.constant 0 : i32
    return %c0_i32, %c0_i32_0 : i32, i32
  }
  func.func @transform_3(%arg0: i32) -> (i32, i32) {
    %c0_i32 = arith.constant 0 : i32
    %c0_i32_0 = arith.constant 0 : i32
    %c0_i32_1 = arith.constant 0 : i32
    return %c0_i32, %c0_i32_0 : i32, i32
  }
  func.func @transform_4(%arg0: i32) -> (i32, i32, i32) {
    %c0_i32 = arith.constant 0 : i32
    %c0_i32_0 = arith.constant 0 : i32
    %c0_i32_1 = arith.constant 0 : i32
    return %arg0, %c0_i32, %c0_i32_0 : i32, i32, i32
  }
}

module attributes {stable_mosaic.version = 11 : i64} {
  func.func @kernel(%arg0: i32, %arg1: memref<16x128xf32, #tpu.memory_space<vmem>>, %arg2: memref<1x128xf32, #tpu.memory_space<vmem>>, %arg3: memref<1x128xf32, #tpu.memory_space<vmem>>, %arg4: memref<128x64xf32, #tpu.memory_space<vmem>>, %arg5: memref<16x64xf32, #tpu.memory_space<vmem>>) attributes {dimension_semantics = [#tpu.dimension_semantics<parallel>], iteration_bounds = array<i64: 2>, scalar_prefetch = 0 : i64, scratch_operands = 0 : i64, tpu.core_type = #tpu.core_type<tc>, window_params = [{transform_indices = @transform_0, window_bounds = array<i64: 16, 128>}, {pipeline_mode = #tpu.pipeline_mode<synchronous>, transform_indices = @transform_1, window_bounds = array<i64: 1, 128>}, {pipeline_mode = #tpu.pipeline_mode<synchronous>, transform_indices = @transform_2, window_bounds = array<i64: 1, 128>}, {pipeline_mode = #tpu.pipeline_mode<synchronous>, transform_indices = @transform_3, window_bounds = array<i64: 128, 64>}, {transform_indices = @transform_4, window_bounds = array<i64: 16, 64>}]} {
    %c0 = arith.constant 0 : index
    %c0_0 = arith.constant 0 : index
    %0 = vector.load %arg1[%c0, %c0_0] : memref<16x128xf32, #tpu.memory_space<vmem>>, vector<16x128xf32>
    %cst = arith.constant dense<0.000000e+00> : vector<16xf32>
    %1 = vector.multi_reduction <add>, %0, %cst [1] : vector<16x128xf32> to vector<16xf32>
    %2 = vector.shape_cast %1 : vector<16xf32> to vector<16x1xf32>
    %cst_1 = arith.constant 1.280000e+02 : f32
    %3 = vector.broadcast %cst_1 : f32 to vector<16x1xf32>
    %4 = arith.divf %2, %3 : vector<16x1xf32>
    %5 = vector.broadcast %4 : vector<16x1xf32> to vector<16x128xf32>
    %6 = arith.subf %0, %5 : vector<16x128xf32>
    %7 = arith.mulf %6, %6 : vector<16x128xf32>
    %cst_2 = arith.constant dense<0.000000e+00> : vector<16xf32>
    %8 = vector.multi_reduction <add>, %7, %cst_2 [1] : vector<16x128xf32> to vector<16xf32>
    %9 = vector.shape_cast %8 : vector<16xf32> to vector<16x1xf32>
    %cst_3 = arith.constant 1.280000e+02 : f32
    %10 = vector.broadcast %cst_3 : f32 to vector<16x1xf32>
    %11 = arith.divf %9, %10 : vector<16x1xf32>
    %12 = vector.broadcast %4 : vector<16x1xf32> to vector<16x128xf32>
    %13 = arith.subf %0, %12 : vector<16x128xf32>
    %cst_4 = arith.constant 9.99999974E-6 : f32
    %14 = vector.broadcast %cst_4 : f32 to vector<16x1xf32>
    %15 = arith.addf %11, %14 : vector<16x1xf32>
    %16 = math.rsqrt %15 : vector<16x1xf32>
    %17 = vector.broadcast %16 : vector<16x1xf32> to vector<16x128xf32>
    %18 = arith.mulf %13, %17 : vector<16x128xf32>
    %c0_5 = arith.constant 0 : index
    %c0_6 = arith.constant 0 : index
    %19 = vector.load %arg2[%c0_5, %c0_6] : memref<1x128xf32, #tpu.memory_space<vmem>>, vector<1x128xf32>
    %20 = vector.broadcast %19 : vector<1x128xf32> to vector<16x128xf32>
    %21 = arith.mulf %18, %20 : vector<16x128xf32>
    %c0_7 = arith.constant 0 : index
    %c0_8 = arith.constant 0 : index
    %22 = vector.load %arg3[%c0_7, %c0_8] : memref<1x128xf32, #tpu.memory_space<vmem>>, vector<1x128xf32>
    %23 = vector.broadcast %22 : vector<1x128xf32> to vector<16x128xf32>
    %24 = arith.addf %21, %23 : vector<16x128xf32>
    %c0_9 = arith.constant 0 : index
    %c0_10 = arith.constant 0 : index
    %25 = vector.load %arg4[%c0_9, %c0_10] : memref<128x64xf32, #tpu.memory_space<vmem>>, vector<128x64xf32>
    %cst_11 = arith.constant dense<0.000000e+00> : vector<16x64xf32>
    %26 = tpu.matmul %24, %25, %cst_11 {dimension_numbers = #tpu.dot_dimension_numbers<[1], [0], [0], [1], [0, 0, 1, 1], [], []>} : vector<16x128xf32>, vector<128x64xf32>, vector<16x64xf32> -> vector<16x64xf32>
    %c0_12 = arith.constant 0 : index
    %c0_13 = arith.constant 0 : index
    %27 = vector.load %arg5[%c0_12, %c0_13] : memref<16x64xf32, #tpu.memory_space<vmem>>, vector<16x64xf32>
    tpu.vector_store %arg5[%c0_12, %c0_13], %26 {strides = array<i32>} : memref<16x64xf32, #tpu.memory_space<vmem>>, vector<16x64xf32>,
    return
  }
  func.func @transform_0(%arg0: i32) -> (i32, i32) {
    %c0_i32 = arith.constant 0 : i32
    %c0_i32_0 = arith.constant 0 : i32
    return %arg0, %c0_i32 : i32, i32
  }
  func.func @transform_1(%arg0: i32) -> (i32, i32) {
    %c0_i32 = arith.constant 0 : i32
    %c0_i32_0 = arith.constant 0 : i32
    %c0_i32_1 = arith.constant 0 : i32
    return %c0_i32, %c0_i32_0 : i32, i32
  }
  func.func @transform_2(%arg0: i32) -> (i32, i32) {
    %c0_i32 = arith.constant 0 : i32
    %c0_i32_0 = arith.constant 0 : i32
    %c0_i32_1 = arith.constant 0 : i32
    return %c0_i32, %c0_i32_0 : i32, i32
  }
  func.func @transform_3(%arg0: i32) -> (i32, i32) {
    %c0_i32 = arith.constant 0 : i32
    %c0_i32_0 = arith.constant 0 : i32
    %c0_i32_1 = arith.constant 0 : i32
    return %c0_i32, %c0_i32_0 : i32, i32
  }
  func.func @transform_4(%arg0: i32) -> (i32, i32) {
    %c0_i32 = arith.constant 0 : i32
    %c0_i32_0 = arith.constant 0 : i32
    return %arg0, %c0_i32 : i32, i32
  }
}

module attributes {stable_mosaic.version = 11 : i64} {
  func.func @kernel(%arg0: i32, %arg1: memref<16x64xf32, #tpu.memory_space<vmem>>, %arg2: memref<1x64xf32, #tpu.memory_space<vmem>>, %arg3: memref<1x64xf32, #tpu.memory_space<vmem>>, %arg4: memref<64x256xf32, #tpu.memory_space<vmem>>, %arg5: memref<1x256xf32, #tpu.memory_space<vmem>>, %arg6: memref<16x256xf32, #tpu.memory_space<vmem>>) attributes {dimension_semantics = [#tpu.dimension_semantics<parallel>], iteration_bounds = array<i64: 2>, scalar_prefetch = 0 : i64, scratch_operands = 0 : i64, tpu.core_type = #tpu.core_type<tc>, window_params = [{transform_indices = @transform_0, window_bounds = array<i64: 16, 64>}, {pipeline_mode = #tpu.pipeline_mode<synchronous>, transform_indices = @transform_1, window_bounds = array<i64: 1, 64>}, {pipeline_mode = #tpu.pipeline_mode<synchronous>, transform_indices = @transform_2, window_bounds = array<i64: 1, 64>}, {pipeline_mode = #tpu.pipeline_mode<synchronous>, transform_indices = @transform_3, window_bounds = array<i64: 64, 256>}, {pipeline_mode = #tpu.pipeline_mode<synchronous>, transform_indices = @transform_4, window_bounds = array<i64: 1, 256>}, {transform_indices = @transform_5, window_bounds = array<i64: 16, 256>}]} {
    %c0 = arith.constant 0 : index
    %c0_0 = arith.constant 0 : index
    %0 = vector.load %arg1[%c0, %c0_0] : memref<16x64xf32, #tpu.memory_space<vmem>>, vector<16x64xf32>
    %cst = arith.constant dense<0.000000e+00> : vector<16xf32>
    %1 = vector.multi_reduction <add>, %0, %cst [1] : vector<16x64xf32> to vector<16xf32>
    %2 = vector.shape_cast %1 : vector<16xf32> to vector<16x1xf32>
    %cst_1 = arith.constant 6.400000e+01 : f32
    %3 = vector.broadcast %cst_1 : f32 to vector<16x1xf32>
    %4 = arith.divf %2, %3 : vector<16x1xf32>
    %5 = vector.broadcast %4 : vector<16x1xf32> to vector<16x64xf32>
    %6 = arith.subf %0, %5 : vector<16x64xf32>
    %7 = arith.mulf %6, %6 : vector<16x64xf32>
    %cst_2 = arith.constant dense<0.000000e+00> : vector<16xf32>
    %8 = vector.multi_reduction <add>, %7, %cst_2 [1] : vector<16x64xf32> to vector<16xf32>
    %9 = vector.shape_cast %8 : vector<16xf32> to vector<16x1xf32>
    %cst_3 = arith.constant 6.400000e+01 : f32
    %10 = vector.broadcast %cst_3 : f32 to vector<16x1xf32>
    %11 = arith.divf %9, %10 : vector<16x1xf32>
    %12 = vector.broadcast %4 : vector<16x1xf32> to vector<16x64xf32>
    %13 = arith.subf %0, %12 : vector<16x64xf32>
    %cst_4 = arith.constant 9.99999974E-6 : f32
    %14 = vector.broadcast %cst_4 : f32 to vector<16x1xf32>
    %15 = arith.addf %11, %14 : vector<16x1xf32>
    %16 = math.rsqrt %15 : vector<16x1xf32>
    %17 = vector.broadcast %16 : vector<16x1xf32> to vector<16x64xf32>
    %18 = arith.mulf %13, %17 : vector<16x64xf32>
    %c0_5 = arith.constant 0 : index
    %c0_6 = arith.constant 0 : index
    %19 = vector.load %arg2[%c0_5, %c0_6] : memref<1x64xf32, #tpu.memory_space<vmem>>, vector<1x64xf32>
    %20 = vector.broadcast %19 : vector<1x64xf32> to vector<16x64xf32>
    %21 = arith.mulf %18, %20 : vector<16x64xf32>
    %c0_7 = arith.constant 0 : index
    %c0_8 = arith.constant 0 : index
    %22 = vector.load %arg3[%c0_7, %c0_8] : memref<1x64xf32, #tpu.memory_space<vmem>>, vector<1x64xf32>
    %23 = vector.broadcast %22 : vector<1x64xf32> to vector<16x64xf32>
    %24 = arith.addf %21, %23 : vector<16x64xf32>
    %c0_9 = arith.constant 0 : index
    %c0_10 = arith.constant 0 : index
    %25 = vector.load %arg4[%c0_9, %c0_10] : memref<64x256xf32, #tpu.memory_space<vmem>>, vector<64x256xf32>
    %cst_11 = arith.constant dense<0.000000e+00> : vector<16x256xf32>
    %26 = tpu.matmul %24, %25, %cst_11 {dimension_numbers = #tpu.dot_dimension_numbers<[1], [0], [0], [1], [0, 0, 1, 1], [], []>} : vector<16x64xf32>, vector<64x256xf32>, vector<16x256xf32> -> vector<16x256xf32>
    %c0_12 = arith.constant 0 : index
    %c0_13 = arith.constant 0 : index
    %27 = vector.load %arg5[%c0_12, %c0_13] : memref<1x256xf32, #tpu.memory_space<vmem>>, vector<1x256xf32>
    %28 = vector.broadcast %27 : vector<1x256xf32> to vector<16x256xf32>
    %29 = arith.addf %26, %28 : vector<16x256xf32>
    %cst_14 = arith.constant 0.707106769 : f32
    %30 = vector.broadcast %cst_14 : f32 to vector<16x256xf32>
    %31 = arith.mulf %29, %30 : vector<16x256xf32>
    %32 = math.absf %31 : vector<16x256xf32>
    %cst_15 = arith.constant 0.327591091 : f32
    %33 = vector.broadcast %cst_15 : f32 to vector<16x256xf32>
    %34 = arith.mulf %33, %32 : vector<16x256xf32>
    %cst_16 = arith.constant 1.000000e+00 : f32
    %35 = vector.broadcast %cst_16 : f32 to vector<16x256xf32>
    %36 = arith.addf %35, %34 : vector<16x256xf32>
    %cst_17 = arith.constant 1.000000e+00 : f32
    %37 = vector.broadcast %cst_17 : f32 to vector<16x256xf32>
    %38 = arith.divf %37, %36 : vector<16x256xf32>
    %cst_18 = arith.constant 1.06140542 : f32
    %39 = vector.broadcast %cst_18 : f32 to vector<16x256xf32>
    %40 = arith.mulf %38, %39 : vector<16x256xf32>
    %cst_19 = arith.constant -1.45315206 : f32
    %41 = vector.broadcast %cst_19 : f32 to vector<16x256xf32>
    %42 = arith.addf %41, %40 : vector<16x256xf32>
    %43 = arith.mulf %38, %42 : vector<16x256xf32>
    %cst_20 = arith.constant 1.42141378 : f32
    %44 = vector.broadcast %cst_20 : f32 to vector<16x256xf32>
    %45 = arith.addf %44, %43 : vector<16x256xf32>
    %46 = arith.mulf %38, %45 : vector<16x256xf32>
    %cst_21 = arith.constant -0.284496725 : f32
    %47 = vector.broadcast %cst_21 : f32 to vector<16x256xf32>
    %48 = arith.addf %47, %46 : vector<16x256xf32>
    %49 = arith.mulf %38, %48 : vector<16x256xf32>
    %cst_22 = arith.constant 0.254829586 : f32
    %50 = vector.broadcast %cst_22 : f32 to vector<16x256xf32>
    %51 = arith.addf %50, %49 : vector<16x256xf32>
    %52 = arith.mulf %38, %51 : vector<16x256xf32>
    %cst_23 = arith.constant 0.000000e+00 : f32
    %53 = vector.broadcast %cst_23 : f32 to vector<16x256xf32>
    %54 = arith.subf %53, %32 : vector<16x256xf32>
    %55 = arith.mulf %54, %32 : vector<16x256xf32>
    %56 = math.exp %55 : vector<16x256xf32>
    %57 = arith.mulf %52, %56 : vector<16x256xf32>
    %cst_24 = arith.constant 1.000000e+00 : f32
    %58 = vector.broadcast %cst_24 : f32 to vector<16x256xf32>
    %59 = arith.subf %58, %57 : vector<16x256xf32>
    %cst_25 = arith.constant 0.000000e+00 : f32
    %60 = vector.broadcast %cst_25 : f32 to vector<16x256xf32>
    %61 = arith.cmpf oge, %31, %60 : vector<16x256xf32>
    %cst_26 = arith.constant 0.000000e+00 : f32
    %62 = vector.broadcast %cst_26 : f32 to vector<16x256xf32>
    %63 = arith.subf %62, %59 : vector<16x256xf32>
    %64 = arith.select %61, %59, %63 : vector<16x256xi1>, vector<16x256xf32>
    %cst_27 = arith.constant 5.000000e-01 : f32
    %65 = vector.broadcast %cst_27 : f32 to vector<16x256xf32>
    %66 = arith.mulf %65, %29 : vector<16x256xf32>
    %cst_28 = arith.constant 1.000000e+00 : f32
    %67 = vector.broadcast %cst_28 : f32 to vector<16x256xf32>
    %68 = arith.addf %67, %64 : vector<16x256xf32>
    %69 = arith.mulf %66, %68 : vector<16x256xf32>
    %c0_29 = arith.constant 0 : index
    %c0_30 = arith.constant 0 : index
    %70 = vector.load %arg6[%c0_29, %c0_30] : memref<16x256xf32, #tpu.memory_space<vmem>>, vector<16x256xf32>
    tpu.vector_store %arg6[%c0_29, %c0_30], %69 {strides = array<i32>} : memref<16x256xf32, #tpu.memory_space<vmem>>, vector<16x256xf32>,
    return
  }
  func.func @transform_0(%arg0: i32) -> (i32, i32) {
    %c0_i32 = arith.constant 0 : i32
    %c0_i32_0 = arith.constant 0 : i32
    return %arg0, %c0_i32 : i32, i32
  }
  func.func @transform_1(%arg0: i32) -> (i32, i32) {
    %c0_i32 = arith.constant 0 : i32
    %c0_i32_0 = arith.constant 0 : i32
    %c0_i32_1 = arith.constant 0 : i32
    return %c0_i32, %c0_i32_0 : i32, i32
  }
  func.func @transform_2(%arg0: i32) -> (i32, i32) {
    %c0_i32 = arith.constant 0 : i32
    %c0_i32_0 = arith.constant 0 : i32
    %c0_i32_1 = arith.constant 0 : i32
    return %c0_i32, %c0_i32_0 : i32, i32
  }
  func.func @transform_3(%arg0: i32) -> (i32, i32) {
    %c0_i32 = arith.constant 0 : i32
    %c0_i32_0 = arith.constant 0 : i32
    %c0_i32_1 = arith.constant 0 : i32
    return %c0_i32, %c0_i32_0 : i32, i32
  }
  func.func @transform_4(%arg0: i32) -> (i32, i32) {
    %c0_i32 = arith.constant 0 : i32
    %c0_i32_0 = arith.constant 0 : i32
    %c0_i32_1 = arith.constant 0 : i32
    return %c0_i32, %c0_i32_0 : i32, i32
  }
  func.func @transform_5(%arg0: i32) -> (i32, i32) {
    %c0_i32 = arith.constant 0 : i32
    %c0_i32_0 = arith.constant 0 : i32
    return %arg0, %c0_i32 : i32, i32
  }
}

module attributes {stable_mosaic.version = 11 : i64} {
  func.func @kernel(%arg0: i32, %arg1: i32, %arg2: i32, %arg3: memref<16x128xf32, #tpu.memory_space<vmem>>, %arg4: memref<128x64xf32, #tpu.memory_space<vmem>>, %arg5: memref<1x64xf32, #tpu.memory_space<vmem>>, %arg6: memref<16x64xf32, #tpu.memory_space<vmem>>, %arg7: memref<16x64xf32, #tpu.memory_space<vmem>>) attributes {dimension_semantics = [#tpu.dimension_semantics<parallel>, #tpu.dimension_semantics<parallel>, #tpu.dimension_semantics<arbitrary>], iteration_bounds = array<i64: 2, 1, 2>, scalar_prefetch = 0 : i64, scratch_operands = 1 : i64, tpu.core_type = #tpu.core_type<tc>, window_params = [{transform_indices = @transform_0, window_bounds = array<i64: 16, 128>}, {transform_indices = @transform_1, window_bounds = array<i64: 128, 64>}, {transform_indices = @transform_2, window_bounds = array<i64: 1, 64>}, {transform_indices = @transform_3, window_bounds = array<i64: 16, 64>}]} {
    %c0_i32 = arith.constant 0 : i32
    %0 = arith.cmpi eq, %arg2, %c0_i32 : i32
    %1 = arith.extui %0 : i1 to i32
    %c0_i32_0 = arith.constant 0 : i32
    %2 = arith.cmpi ne, %1, %c0_i32_0 : i32
    scf.if %2 {
      %cst_9 = arith.constant 0.000000e+00 : f32
      %12 = vector.broadcast %cst_9 : f32 to vector<16x64xf32>
      %c0_10 = arith.constant 0 : index
      %c0_11 = arith.constant 0 : index
      %13 = vector.load %arg7[%c0_10, %c0_11] : memref<16x64xf32, #tpu.memory_space<vmem>>, vector<16x64xf32>
      tpu.vector_store %arg7[%c0_10, %c0_11], %12 {strides = array<i32>} : memref<16x64xf32, #tpu.memory_space<vmem>>, vector<16x64xf32>,
    } else {
    }
    %c0 = arith.constant 0 : index
    %c0_1 = arith.constant 0 : index
    %3 = vector.load %arg7[%c0, %c0_1] : memref<16x64xf32, #tpu.memory_space<vmem>>, vector<16x64xf32>
    %c0_2 = arith.constant 0 : index
    %c0_3 = arith.constant 0 : index
    %4 = vector.load %arg3[%c0_2, %c0_3] : memref<16x128xf32, #tpu.memory_space<vmem>>, vector<16x128xf32>
    %c0_4 = arith.constant 0 : index
    %c0_5 = arith.constant 0 : index
    %5 = vector.load %arg4[%c0_4, %c0_5] : memref<128x64xf32, #tpu.memory_space<vmem>>, vector<128x64xf32>
    %cst = arith.constant dense<0.000000e+00> : vector<16x64xf32>
    %6 = tpu.matmul %4, %5, %cst {dimension_numbers = #tpu.dot_dimension_numbers<[1], [0], [0], [1], [0, 0, 1, 1], [], []>} : vector<16x128xf32>, vector<128x64xf32>, vector<16x64xf32> -> vector<16x64xf32>
    %7 = arith.addf %3, %6 : vector<16x64xf32>
    %c0_6 = arith.constant 0 : index
    %c0_7 = arith.constant 0 : index
    %8 = vector.load %arg7[%c0_6, %c0_7] : memref<16x64xf32, #tpu.memory_space<vmem>>, vector<16x64xf32>
    tpu.vector_store %arg7[%c0_6, %c0_7], %7 {strides = array<i32>} : memref<16x64xf32, #tpu.memory_space<vmem>>, vector<16x64xf32>,
    %c1_i32 = arith.constant 1 : i32
    %9 = arith.cmpi eq, %arg2, %c1_i32 : i32
    %10 = arith.extui %9 : i1 to i32
    %c0_i32_8 = arith.constant 0 : i32
    %11 = arith.cmpi ne, %10, %c0_i32_8 : i32
    scf.if %11 {
      %c0_9 = arith.constant 0 : index
      %c0_10 = arith.constant 0 : index
      %12 = vector.load %arg7[%c0_9, %c0_10] : memref<16x64xf32, #tpu.memory_space<vmem>>, vector<16x64xf32>
      %c0_11 = arith.constant 0 : index
      %c0_12 = arith.constant 0 : index
      %13 = vector.load %arg5[%c0_11, %c0_12] : memref<1x64xf32, #tpu.memory_space<vmem>>, vector<1x64xf32>
      %14 = vector.broadcast %13 : vector<1x64xf32> to vector<16x64xf32>
      %15 = arith.addf %12, %14 : vector<16x64xf32>
      %c0_13 = arith.constant 0 : index
      %c0_14 = arith.constant 0 : index
      %16 = vector.load %arg6[%c0_13, %c0_14] : memref<16x64xf32, #tpu.memory_space<vmem>>, vector<16x64xf32>
      tpu.vector_store %arg6[%c0_13, %c0_14], %15 {strides = array<i32>} : memref<16x64xf32, #tpu.memory_space<vmem>>, vector<16x64xf32>,
    } else {
    }
    return
  }
  func.func @transform_0(%arg0: i32, %arg1: i32, %arg2: i32) -> (i32, i32) {
    %c0_i32 = arith.constant 0 : i32
    return %arg0, %arg2 : i32, i32
  }
  func.func @transform_1(%arg0: i32, %arg1: i32, %arg2: i32) -> (i32, i32) {
    %c0_i32 = arith.constant 0 : i32
    return %arg2, %arg1 : i32, i32
  }
  func.func @transform_2(%arg0: i32, %arg1: i32, %arg2: i32) -> (i32, i32) {
    %c0_i32 = arith.constant 0 : i32
    %c0_i32_0 = arith.constant 0 : i32
    return %c0_i32, %arg1 : i32, i32
  }
  func.func @transform_3(%arg0: i32, %arg1: i32, %arg2: i32) -> (i32, i32) {
    %c0_i32 = arith.constant 0 : i32
    return %arg0, %arg1 : i32, i32
  }
}

module attributes {stable_mosaic.version = 11 : i64} {
  func.func @kernel(%arg0: i32, %arg1: memref<64x32xf32, #tpu.memory_space<vmem>>, %arg2: memref<1x32xf32, #tpu.memory_space<vmem>>, %arg3: memref<1x32xf32, #tpu.memory_space<vmem>>, %arg4: memref<64x32xf32, #tpu.memory_space<vmem>>) attributes {dimension_semantics = [#tpu.dimension_semantics<parallel>], iteration_bounds = array<i64: 2>, scalar_prefetch = 0 : i64, scratch_operands = 0 : i64, tpu.core_type = #tpu.core_type<tc>, window_params = [{transform_indices = @transform_0, window_bounds = array<i64: 64, 32>}, {pipeline_mode = #tpu.pipeline_mode<synchronous>, transform_indices = @transform_1, window_bounds = array<i64: 1, 32>}, {pipeline_mode = #tpu.pipeline_mode<synchronous>, transform_indices = @transform_2, window_bounds = array<i64: 1, 32>}, {transform_indices = @transform_3, window_bounds = array<i64: 64, 32>}]} {
    %c0 = arith.constant 0 : index
    %c0_0 = arith.constant 0 : index
    %0 = vector.load %arg1[%c0, %c0_0] : memref<64x32xf32, #tpu.memory_space<vmem>>, vector<64x32xf32>
    %cst = arith.constant dense<0.000000e+00> : vector<64xf32>
    %1 = vector.multi_reduction <add>, %0, %cst [1] : vector<64x32xf32> to vector<64xf32>
    %2 = vector.shape_cast %1 : vector<64xf32> to vector<64x1xf32>
    %cst_1 = arith.constant 3.200000e+01 : f32
    %3 = vector.broadcast %cst_1 : f32 to vector<64x1xf32>
    %4 = arith.divf %2, %3 : vector<64x1xf32>
    %5 = vector.broadcast %4 : vector<64x1xf32> to vector<64x32xf32>
    %6 = arith.subf %0, %5 : vector<64x32xf32>
    %7 = arith.mulf %6, %6 : vector<64x32xf32>
    %cst_2 = arith.constant dense<0.000000e+00> : vector<64xf32>
    %8 = vector.multi_reduction <add>, %7, %cst_2 [1] : vector<64x32xf32> to vector<64xf32>
    %9 = vector.shape_cast %8 : vector<64xf32> to vector<64x1xf32>
    %cst_3 = arith.constant 3.200000e+01 : f32
    %10 = vector.broadcast %cst_3 : f32 to vector<64x1xf32>
    %11 = arith.divf %9, %10 : vector<64x1xf32>
    %12 = vector.broadcast %4 : vector<64x1xf32> to vector<64x32xf32>
    %13 = arith.subf %0, %12 : vector<64x32xf32>
    %cst_4 = arith.constant 9.99999974E-6 : f32
    %14 = vector.broadcast %cst_4 : f32 to vector<64x1xf32>
    %15 = arith.addf %11, %14 : vector<64x1xf32>
    %16 = math.rsqrt %15 : vector<64x1xf32>
    %17 = vector.broadcast %16 : vector<64x1xf32> to vector<64x32xf32>
    %18 = arith.mulf %13, %17 : vector<64x32xf32>
    %c0_5 = arith.constant 0 : index
    %c0_6 = arith.constant 0 : index
    %19 = vector.load %arg2[%c0_5, %c0_6] : memref<1x32xf32, #tpu.memory_space<vmem>>, vector<1x32xf32>
    %20 = vector.broadcast %19 : vector<1x32xf32> to vector<64x32xf32>
    %21 = arith.mulf %18, %20 : vector<64x32xf32>
    %c0_7 = arith.constant 0 : index
    %c0_8 = arith.constant 0 : index
    %22 = vector.load %arg3[%c0_7, %c0_8] : memref<1x32xf32, #tpu.memory_space<vmem>>, vector<1x32xf32>
    %23 = vector.broadcast %22 : vector<1x32xf32> to vector<64x32xf32>
    %24 = arith.addf %21, %23 : vector<64x32xf32>
    %c0_9 = arith.constant 0 : index
    %c0_10 = arith.constant 0 : index
    %25 = vector.load %arg4[%c0_9, %c0_10] : memref<64x32xf32, #tpu.memory_space<vmem>>, vector<64x32xf32>
    tpu.vector_store %arg4[%c0_9, %c0_10], %24 {strides = array<i32>} : memref<64x32xf32, #tpu.memory_space<vmem>>, vector<64x32xf32>,
    return
  }
  func.func @transform_0(%arg0: i32) -> (i32, i32) {
    %c0_i32 = arith.constant 0 : i32
    %c0_i32_0 = arith.constant 0 : i32
    return %arg0, %c0_i32 : i32, i32
  }
  func.func @transform_1(%arg0: i32) -> (i32, i32) {
    %c0_i32 = arith.constant 0 : i32
    %c0_i32_0 = arith.constant 0 : i32
    %c0_i32_1 = arith.constant 0 : i32
    return %c0_i32, %c0_i32_0 : i32, i32
  }
  func.func @transform_2(%arg0: i32) -> (i32, i32) {
    %c0_i32 = arith.constant 0 : i32
    %c0_i32_0 = arith.constant 0 : i32
    %c0_i32_1 = arith.constant 0 : i32
    return %c0_i32, %c0_i32_0 : i32, i32
  }
  func.func @transform_3(%arg0: i32) -> (i32, i32) {
    %c0_i32 = arith.constant 0 : i32
    %c0_i32_0 = arith.constant 0 : i32
    return %arg0, %c0_i32 : i32, i32
  }
}

module attributes {stable_mosaic.version = 11 : i64} {
  func.func @kernel(%arg0: i32, %arg1: memref<16x64xf32, #tpu.memory_space<vmem>>, %arg2: memref<1x64xf32, #tpu.memory_space<vmem>>, %arg3: memref<1x64xf32, #tpu.memory_space<vmem>>, %arg4: memref<16x64xf32, #tpu.memory_space<vmem>>) attributes {dimension_semantics = [#tpu.dimension_semantics<parallel>], iteration_bounds = array<i64: 2>, scalar_prefetch = 0 : i64, scratch_operands = 0 : i64, tpu.core_type = #tpu.core_type<tc>, window_params = [{transform_indices = @transform_0, window_bounds = array<i64: 16, 64>}, {pipeline_mode = #tpu.pipeline_mode<synchronous>, transform_indices = @transform_1, window_bounds = array<i64: 1, 64>}, {pipeline_mode = #tpu.pipeline_mode<synchronous>, transform_indices = @transform_2, window_bounds = array<i64: 1, 64>}, {transform_indices = @transform_3, window_bounds = array<i64: 16, 64>}]} {
    %c0 = arith.constant 0 : index
    %c0_0 = arith.constant 0 : index
    %0 = vector.load %arg1[%c0, %c0_0] : memref<16x64xf32, #tpu.memory_space<vmem>>, vector<16x64xf32>
    %cst = arith.constant dense<0.000000e+00> : vector<16xf32>
    %1 = vector.multi_reduction <add>, %0, %cst [1] : vector<16x64xf32> to vector<16xf32>
    %2 = vector.shape_cast %1 : vector<16xf32> to vector<16x1xf32>
    %cst_1 = arith.constant 6.400000e+01 : f32
    %3 = vector.broadcast %cst_1 : f32 to vector<16x1xf32>
    %4 = arith.divf %2, %3 : vector<16x1xf32>
    %5 = vector.broadcast %4 : vector<16x1xf32> to vector<16x64xf32>
    %6 = arith.subf %0, %5 : vector<16x64xf32>
    %7 = arith.mulf %6, %6 : vector<16x64xf32>
    %cst_2 = arith.constant dense<0.000000e+00> : vector<16xf32>
    %8 = vector.multi_reduction <add>, %7, %cst_2 [1] : vector<16x64xf32> to vector<16xf32>
    %9 = vector.shape_cast %8 : vector<16xf32> to vector<16x1xf32>
    %cst_3 = arith.constant 6.400000e+01 : f32
    %10 = vector.broadcast %cst_3 : f32 to vector<16x1xf32>
    %11 = arith.divf %9, %10 : vector<16x1xf32>
    %12 = vector.broadcast %4 : vector<16x1xf32> to vector<16x64xf32>
    %13 = arith.subf %0, %12 : vector<16x64xf32>
    %cst_4 = arith.constant 9.99999974E-6 : f32
    %14 = vector.broadcast %cst_4 : f32 to vector<16x1xf32>
    %15 = arith.addf %11, %14 : vector<16x1xf32>
    %16 = math.rsqrt %15 : vector<16x1xf32>
    %17 = vector.broadcast %16 : vector<16x1xf32> to vector<16x64xf32>
    %18 = arith.mulf %13, %17 : vector<16x64xf32>
    %c0_5 = arith.constant 0 : index
    %c0_6 = arith.constant 0 : index
    %19 = vector.load %arg2[%c0_5, %c0_6] : memref<1x64xf32, #tpu.memory_space<vmem>>, vector<1x64xf32>
    %20 = vector.broadcast %19 : vector<1x64xf32> to vector<16x64xf32>
    %21 = arith.mulf %18, %20 : vector<16x64xf32>
    %c0_7 = arith.constant 0 : index
    %c0_8 = arith.constant 0 : index
    %22 = vector.load %arg3[%c0_7, %c0_8] : memref<1x64xf32, #tpu.memory_space<vmem>>, vector<1x64xf32>
    %23 = vector.broadcast %22 : vector<1x64xf32> to vector<16x64xf32>
    %24 = arith.addf %21, %23 : vector<16x64xf32>
    %c0_9 = arith.constant 0 : index
    %c0_10 = arith.constant 0 : index
    %25 = vector.load %arg4[%c0_9, %c0_10] : memref<16x64xf32, #tpu.memory_space<vmem>>, vector<16x64xf32>
    tpu.vector_store %arg4[%c0_9, %c0_10], %24 {strides = array<i32>} : memref<16x64xf32, #tpu.memory_space<vmem>>, vector<16x64xf32>,
    return
  }
  func.func @transform_0(%arg0: i32) -> (i32, i32) {
    %c0_i32 = arith.constant 0 : i32
    %c0_i32_0 = arith.constant 0 : i32
    return %arg0, %c0_i32 : i32, i32
  }
  func.func @transform_1(%arg0: i32) -> (i32, i32) {
    %c0_i32 = arith.constant 0 : i32
    %c0_i32_0 = arith.constant 0 : i32
    %c0_i32_1 = arith.constant 0 : i32
    return %c0_i32, %c0_i32_0 : i32, i32
  }
  func.func @transform_2(%arg0: i32) -> (i32, i32) {
    %c0_i32 = arith.constant 0 : i32
    %c0_i32_0 = arith.constant 0 : i32
    %c0_i32_1 = arith.constant 0 : i32
    return %c0_i32, %c0_i32_0 : i32, i32
  }
  func.func @transform_3(%arg0: i32) -> (i32, i32) {
    %c0_i32 = arith.constant 0 : i32
    %c0_i32_0 = arith.constant 0 : i32
    return %arg0, %c0_i32 : i32, i32
  }
}

</mosaic_0001>

<bundles_post_ra>
// kernel: swin_transformer_forward.22
= control target key start
LH: loop header
LB: loop body
LE: loop exit
PB: predicated region body
PF: predicated region fallthrough
CT: control target
= control target key end

     0   :  { %s447_s12 = smov 0   ;;  %s551_s0 = inlined_call_operand.vmem [shape: f32[128,32], index: 0, kind: input, shape index: {}]   ;;  %s552_s1 = inlined_call_operand.vmem [shape: f32[1,32], index: 1, kind: input, shape index: {}]   ;;  %s553_s2 = inlined_call_operand.vmem [shape: f32[1,32], index: 2, kind: input, shape index: {}]   ;;  %s554_s3 = inlined_call_operand.vmem [shape: f32[128,32], index: 3, kind: output, shape index: {}]  }
   0x1 LB: > { %s382_s13 = sadd.s32 4294967295, %s425_s12   ;;  %p386_p0 = scmp.ge.s32.totalorder %s425_s12, 1  ;;  %s425_s12 = sphi %s447_s12, %s13_s12  }
   0x2   : > { %p138_p1 = scmp.lt.s32.totalorder %s425_s12, 3 }
   0x4   : > { %p139_p2 = pnand %p386_p0, %p138_p1 }
   0x5   : > { %s387_s14 = sshll.u32 (!%p139_p2), %s382_s13, 3 }
   0x6   : > { %142 = sbr.rel (%p139_p2) target bundleno = 340 (0x154), region = 32  ;;  %p163_p3 = scmp.lt.s32.totalorder (!%p139_p2), %s387_s14, 15 }
   0xb   : > { %s556_s14 = smov (!%p163_p3, %s387_s14), 15  ;;  %vm182_vm0 = vcmask 261120  }
   0xc   : > { %s388_s15 = sshll.u32 %s556_s14, 3 }
   0xd   : > { %s166_s18 = scalar_lea.vmem %s551_s0, %s388_s15  ;;  %s523_s25 = scalar_lea.vmem %s554_s3, %s388_s15 }
   0xe   : > { %v174_v0 = vld [vmem:[%s166_s18] sm:$0xff]  ;;  %v176_v1 = vld [vmem:[%s166_s18 + $0x10] sm:$0xff]  ;;  %v175_v2 = vld [vmem:[%s166_s18 + $0x8] sm:$0xff] }
   0xf   : > { %v183_v3 = vsel %vm182_vm0, %v174_v0, 0.0  ;;  %v189_v4 = vsel %vm182_vm0, %v176_v1, 0.0  ;;  %v177_v5 = vld [vmem:[%s166_s18 + $0x18] sm:$0xff]  ;;  %v186_v6 = vsel %vm182_vm0, %v175_v2, 0.0  ;;  %v178_v8 = vld [vmem:[%s166_s18 + $0x20] sm:$0xff]  ;;  %v179_v9 = vld [vmem:[%s166_s18 + $0x28] sm:$0xff] }
  0x10   : > { %184 = vadd.xlane.f32.xlu0 %v183_v3  ;;  %190 = vadd.xlane.f32.xlu1 %v189_v4  ;;  %v192_v7 = vsel %vm182_vm0, %v177_v5, 0.0  ;;  %v195_v10 = vsel %vm182_vm0, %v178_v8, 0.0  ;;  %v198_v11 = vsel %vm182_vm0, %v179_v9, 0.0  ;;  %v180_v12 = vld [vmem:[%s166_s18 + $0x30] sm:$0xff]  ;;  %v181_v13 = vld [vmem:[%s166_s18 + $0x38] sm:$0xff] }
  0x11   : > { %v201_v14 = vsel %vm182_vm0, %v180_v12, 0.0  ;;  %v204_v15 = vsel %vm182_vm0, %v181_v13, 0.0 }
  0x14   : > { %187 = vadd.xlane.f32.xlu0 %v186_v6  ;;  %193 = vadd.xlane.f32.xlu1 %v192_v7 }
  0x18   : > { %196 = vadd.xlane.f32.xlu0 %v195_v10  ;;  %199 = vadd.xlane.f32.xlu1 %v198_v11 }
  0x1c   : > { %202 = vadd.xlane.f32.xlu0 %v201_v14  ;;  %205 = vadd.xlane.f32.xlu1 %v204_v15 }
  0x99   : > { %v185_v16 = vpop.xlane.xlu0 %184  ;;  %v191_v17 = vpop.xlane.xlu1 %190 }
  0x9a   : > { %v208_v18 = vmul.f32 0.03125, %v185_v16  ;;  %v210_v19 = vmul.f32 0.03125, %v191_v17  ;;  %v391_v16 = vld [vmem:[%s552_s1] ss:$0 sm:$0xff] }
  0x9c   : > { %v471_v20 = vsub.f32 %v174_v0, %v208_v18  ;;  %v473_v21 = vsub.f32 %v176_v1, %v210_v19  ;;  %v392_v19 = vld [vmem:[%s553_s2] ss:$0 sm:$0xff] }
  0x9d   : > { %v188_v22 = vpop.xlane.xlu0 %187  ;;  %v194_v23 = vpop.xlane.xlu1 %193 }
  0x9e   : > { %v209_v24 = vmul.f32 0.03125, %v188_v22  ;;  %v211_v25 = vmul.f32 0.03125, %v194_v23  ;;  %v224_v26 = vmul.f32 %v471_v20, %v471_v20  ;;  %v226_v27 = vmul.f32 %v473_v21, %v473_v21 }
  0xa0   : > { %v479_v28 = vsub.f32 %v175_v2, %v209_v24  ;;  %v481_v29 = vsub.f32 %v177_v5, %v211_v25  ;;  %v232_v30 = vsel %vm182_vm0, %v224_v26, 0.0  ;;  %v238_v33 = vsel %vm182_vm0, %v226_v27, 0.0 }
  0xa1   : > { %233 = vadd.xlane.f32.xlu0 %v232_v30  ;;  %v197_v31 = vpop.xlane.xlu0 %196  ;;  %v200_v32 = vpop.xlane.xlu1 %199 }
  0xa2   : > { %v212_v34 = vmul.f32 0.03125, %v197_v31  ;;  %v213_v35 = vmul.f32 0.03125, %v200_v32  ;;  %v225_v36 = vmul.f32 %v479_v28, %v479_v28  ;;  %v227_v37 = vmul.f32 %v481_v29, %v481_v29 }
  0xa4   : > { %v489_v38 = vsub.f32 %v178_v8, %v212_v34  ;;  %v491_v39 = vsub.f32 %v179_v9, %v213_v35  ;;  %v235_v40 = vsel %vm182_vm0, %v225_v36, 0.0  ;;  %v241_v43 = vsel %vm182_vm0, %v227_v37, 0.0 }
  0xa5   : > { %239 = vadd.xlane.f32.xlu0 %v238_v33  ;;  %236 = vadd.xlane.f32.xlu1 %v235_v40  ;;  %v203_v41 = vpop.xlane.xlu0 %202  ;;  %v206_v42 = vpop.xlane.xlu1 %205 }
  0xa6   : > { %v214_v44 = vmul.f32 0.03125, %v203_v41  ;;  %v215_v45 = vmul.f32 0.03125, %v206_v42  ;;  %v228_v46 = vmul.f32 %v489_v38, %v489_v38  ;;  %v229_v47 = vmul.f32 %v491_v39, %v491_v39 }
  0xa8   : > { %v499_v48 = vsub.f32 %v180_v12, %v214_v44  ;;  %v501_v49 = vsub.f32 %v181_v13, %v215_v45  ;;  %v244_v50 = vsel %vm182_vm0, %v228_v46, 0.0  ;;  %v247_v51 = vsel %vm182_vm0, %v229_v47, 0.0 }
  0xa9   : > { %242 = vadd.xlane.f32.xlu1 %v241_v43  ;;  %245 = vadd.xlane.f32.xlu0 %v244_v50 }
  0xaa   : > { %v230_v52 = vmul.f32 %v499_v48, %v499_v48  ;;  %v231_v53 = vmul.f32 %v501_v49, %v501_v49 }
  0xac   : > { %v250_v54 = vsel %vm182_vm0, %v230_v52, 0.0  ;;  %v253_v55 = vsel %vm182_vm0, %v231_v53, 0.0 }
  0xad   : > { %248 = vadd.xlane.f32.xlu1 %v247_v51  ;;  %251 = vadd.xlane.f32.xlu0 %v250_v54 }
  0xb1   : > { %254 = vadd.xlane.f32.xlu1 %v253_v55 }
 0x12a   : > { %v234_v56 = vpop.xlane.xlu0 %233 }
 0x12b   : > { %v256_v57 = vmul.f32 0.03125, %v234_v56 }
 0x12d   : > { %v264_v58 = vadd.f32 1e-05, %v256_v57 }
 0x12e   : > { %v237_v59 = vpop.xlane.xlu1 %236  ;;  %v240_v60 = vpop.xlane.xlu0 %239 }
 0x12f   : > { %403 = vrsqrt.f32 %v264_v58  ;;  %v257_v61 = vmul.f32 0.03125, %v237_v59  ;;  %v258_v62 = vmul.f32 0.03125, %v240_v60 }
 0x131   : > { %v265_v63 = vadd.f32 1e-05, %v257_v61  ;;  %v266_v0 = vadd.f32 1e-05, %v258_v62 }
 0x132   : > { %v243_v1 = vpop.xlane.xlu1 %242  ;;  %v246_v2 = vpop.xlane.xlu0 %245 }
 0x133   : > { %405 = vrsqrt.f32 %v265_v63  ;;  %v259_v3 = vmul.f32 0.03125, %v243_v1  ;;  %v260_v4 = vmul.f32 0.03125, %v246_v2 }
 0x134   : > { %407 = vrsqrt.f32 %v266_v0 }
 0x135   : > { %v267_v5 = vadd.f32 1e-05, %v259_v3  ;;  %v268_v6 = vadd.f32 1e-05, %v260_v4 }
 0x136   : > { %v249_v7 = vpop.xlane.xlu1 %248  ;;  %v252_v8 = vpop.xlane.xlu0 %251 }
 0x137   : > { %409 = vrsqrt.f32 %v267_v5  ;;  %v261_v9 = vmul.f32 0.03125, %v249_v7  ;;  %v262_v10 = vmul.f32 0.03125, %v252_v8 }
 0x138   : > { %411 = vrsqrt.f32 %v268_v6 }
 0x139   : > { %v269_v11 = vadd.f32 1e-05, %v261_v9  ;;  %v270_v12 = vadd.f32 1e-05, %v262_v10 }
 0x13a   : > { %v255_v13 = vpop.xlane.xlu1 %254 }
 0x13b   : > { %413 = vrsqrt.f32 %v269_v11  ;;  %v263_v14 = vmul.f32 0.03125, %v255_v13 }
 0x13c   : > { %v404_v15 = vpop.eup %403  ;;  %415 = vrsqrt.f32 %v270_v12 }
 0x13d   : > { %v280_v17 = vmul.f32 %v404_v15, %v471_v20  ;;  %v271_v18 = vadd.f32 1e-05, %v263_v14 }
 0x13f   : > { %v295_v22 = vmul.f32 %v391_v16, %v280_v17  ;;  %417 = vrsqrt.f32 %v271_v18 }
 0x140   : > { %v406_v23 = vpop.eup %405 }
 0x141   : > { %v408_v24 = vpop.eup %407  ;;  %v310_v25 = vadd.f32 %v392_v19, %v295_v22  ;;  %v281_v20 = vmul.f32 %v406_v23, %v479_v28 }
 0x142   : > { %v282_v26 = vmul.f32 %v408_v24, %v473_v21 }
 0x143   : > { %318 = vst.msk [vmem:[%s523_s25] sm:$0xff] %vm182_vm0, %v310_v25  ;;  %v296_v27 = vmul.f32 %v391_v16, %v281_v20 }
 0x144   : > { %v410_v30 = vpop.eup %409  ;;  %v297_v31 = vmul.f32 %v391_v16, %v282_v26 }
 0x145   : > { %v412_v32 = vpop.eup %411  ;;  %v311_v33 = vadd.f32 %v392_v19, %v296_v27  ;;  %v283_v34 = vmul.f32 %v410_v30, %v481_v29 }
 0x146   : > { %v312_v35 = vadd.f32 %v392_v19, %v297_v31  ;;  %v284_v36 = vmul.f32 %v412_v32, %v489_v38 }
 0x147   : > { %319 = vst.msk [vmem:[%s523_s25 + $0x8] sm:$0xff] %vm182_vm0, %v311_v33  ;;  %v298_v37 = vmul.f32 %v391_v16, %v283_v34 }
 0x148   : > { %v414_v28 = vpop.eup %413  ;;  %320 = vst.msk [vmem:[%s523_s25 + $0x10] sm:$0xff] %vm182_vm0, %v312_v35  ;;  %v299_v21 = vmul.f32 %v391_v16, %v284_v36 }
 0x149   : > { %v416_v40 = vpop.eup %415  ;;  %v313_v41 = vadd.f32 %v392_v19, %v298_v37  ;;  %v285_v42 = vmul.f32 %v414_v28, %v491_v39 }
 0x14a   : > { %v314_v43 = vadd.f32 %v392_v19, %v299_v21  ;;  %v286_v29 = vmul.f32 %v416_v40, %v499_v48 }
 0x14b   : > { %321 = vst.msk [vmem:[%s523_s25 + $0x18] sm:$0xff] %vm182_vm0, %v313_v41  ;;  %v300_v38 = vmul.f32 %v391_v16, %v285_v42 }
 0x14c   : > { %v418_v44 = vpop.eup %417  ;;  %322 = vst.msk [vmem:[%s523_s25 + $0x20] sm:$0xff] %vm182_vm0, %v314_v43  ;;  %v301_v45 = vmul.f32 %v391_v16, %v286_v29 }
 0x14d   : > { %v315_v46 = vadd.f32 %v392_v19, %v300_v38  ;;  %v287_v47 = vmul.f32 %v418_v44, %v501_v49 }
 0x14e   : > { %v316_v50 = vadd.f32 %v392_v19, %v301_v45 }
 0x14f   : > { %323 = vst.msk [vmem:[%s523_s25 + $0x28] sm:$0xff] %vm182_vm0, %v315_v46  ;;  %v302_v51 = vmul.f32 %v391_v16, %v287_v47 }
 0x150   : > { %324 = vst.msk [vmem:[%s523_s25 + $0x30] sm:$0xff] %vm182_vm0, %v316_v50 }
 0x151   : > { %v317_v39 = vadd.f32 %v392_v19, %v302_v51 }
 0x153   : > { %325 = vst.msk [vmem:[%s523_s25 + $0x38] sm:$0xff] %vm182_vm0, %v317_v39 }
 0x154 PF: > { %s13_s12 = sadd.s32 1, %s425_s12  }
 0x155   : > { %p10_p4 = scmp.ge.s32.totalorder %s13_s12, 4  }
 0x157   :  { %12 = sbr.rel (!%p10_p4) target bundleno = 1 (0x1), region = 62 }

// kernel: swin_transformer_forward.21
= control target key start
LH: loop header
LB: loop body
LE: loop exit
PB: predicated region body
PF: predicated region fallthrough
CT: control target
= control target key end

     0   :  { %s728_s12 = smov 0   ;;  %s730_s13 = smov 0   ;;  %s830_s0 = inlined_call_operand.vmem [shape: f32[128,48], index: 0, kind: input, shape index: {}]   ;;  %s831_s1 = inlined_call_operand.vmem [shape: f32[48,32], index: 1, kind: input, shape index: {}]   ;;  %s832_s2 = inlined_call_operand.vmem [shape: f32[1,32], index: 2, kind: input, shape index: {}]   ;;  %s833_s3 = inlined_call_operand.vmem [shape: f32[128,32], index: 3, kind: output, shape index: {}]  }
   0x1   :  { %s732_s14 = smov 0  }
   0x2 LB: > { %s32_s15 = sadd.s32 1, %s701_s13  ;;  %p592_p0 = scmp.ge.s32.totalorder %s705_s14, 1  ;;  %s705_s14 = sphi %s732_s14, %s13_s14   ;;  %s701_s13 = sphi %s730_s13, %s836_s13   ;;  %s697_s12 = sphi %s728_s12, %s835_s12  }
   0x3   : > { %p34_p1 = scmp.ge.s32.totalorder %s32_s15, 2  ;;  %p188_p2 = scmp.lt.s32.totalorder %s705_s14, 3 }
   0x5   : > { %s838_s15 = smov (%p34_p1, %s32_s15), 0  ;;  %p189_p3 = pnand %p592_p0, %p188_p2 }
   0x6   : > { %s593_s20 = sshll.u32 (!%p189_p3), %s697_s12, 3 }
   0x7   : > { %192 = sbr.rel (%p189_p3) target bundleno = 239 (0xef), region = 32  ;;  %p755_p4 = scmp.lt.s32.totalorder (!%p189_p3), %s593_s20, 15 }
   0xc   : > { %v293_v0 = vld [vmem:[%s831_s1 + $0x28] sm:$0xff]  ;;  %v292_v1 = vld [vmem:[%s831_s1 + $0x20] sm:$0xff]  ;;  %vm263_vm0 = vcmask 261120   ;;  %v291_v2 = vld [vmem:[%s831_s1 + $0x18] sm:$0xff]  ;;  %v707_v3 = vmov 0.0   ;;  %s840_s20 = smov (!%p755_p4, %s593_s20), 15 }
   0xd   : > { %622 = vmatprep.subr.mxu0 %v293_v0  ;;  %646 = vmatprep.subr.mxu1 %v293_v0  ;;  %265 = vst.msk [vmem:[#allocation2 + $0x8] sm:$0xff] %vm263_vm0, %v707_v3  ;;  %264 = vst.msk [vmem:[#allocation2] sm:$0xff] %vm263_vm0, %v707_v3  ;;  %v290_v4 = vld [vmem:[%s831_s1 + $0x10] sm:$0xff]  ;;  %s594_s26 = sshll.u32 %s840_s20, 3  ;;  %v289_v5 = vld [vmem:[%s831_s1 + $0x8] sm:$0xff]  ;;  %vm294_vm1 = vcmask 392192  }
   0xe   : > { %623 = vmatpush3.msra.mxu0 %v293_v0  ;;  %652 = vmatpush3.msra.mxu1 %v293_v0  ;;  %266 = vst.msk [vmem:[#allocation2 + $0x10] sm:$0xff] %vm263_vm0, %v707_v3  ;;  %267 = vst.msk [vmem:[#allocation2 + $0x18] sm:$0xff] %vm263_vm0, %v707_v3  ;;  %s236_s4 = scalar_lea.vmem %s830_s0, %s594_s26  ;;  %v288_v6 = vld [vmem:[%s831_s1] sm:$0xff]  ;;  %s257_s11 = scalar_lea.vmem %s833_s3, %s594_s26 }
   0xf   : > { %268 = vst.msk [vmem:[#allocation2 + $0x20] sm:$0xff] %vm263_vm0, %v707_v3  ;;  %269 = vst.msk [vmem:[#allocation2 + $0x28] sm:$0xff] %vm263_vm0, %v707_v3  ;;  %624 = vmatprep.subr.mxu0 %v292_v1  ;;  %647 = vmatprep.subr.mxu1 %v292_v1  ;;  %v280_v7 = vld [vmem:[%s236_s4] sm:$0xff]  ;;  %v281_v9 = vld [vmem:[%s236_s4 + $0x8] sm:$0xff] }
  0x10   : > { %270 = vst.msk [vmem:[#allocation2 + $0x30] sm:$0xff] %vm263_vm0, %v707_v3  ;;  %271 = vst.msk [vmem:[#allocation2 + $0x38] sm:$0xff] %vm263_vm0, %v707_v3  ;;  %625 = vmatpush3.msra.mxu0 %v292_v1  ;;  %653 = vmatpush3.msra.mxu1 %v292_v1  ;;  %v284_v8 = vld [vmem:[%s236_s4 + $0x20] sm:$0xff]  ;;  %v285_v10 = vld [vmem:[%s236_s4 + $0x28] sm:$0xff] }
  0x11   : > { %626 = vmatprep.subr.mxu0 %v291_v2  ;;  %648 = vmatprep.subr.mxu1 %v291_v2  ;;  %v282_v11 = vld [vmem:[%s236_s4 + $0x10] sm:$0xff]  ;;  %v283_v13 = vld [vmem:[%s236_s4 + $0x18] sm:$0xff]  ;;  %v605_v39 = vld [vmem:[%s832_s2] ss:$0 sm:$0xff] }
  0x12   : > { %627 = vmatpush3.msra.mxu0 %v291_v2  ;;  %654 = vmatpush3.msra.mxu1 %v291_v2  ;;  %v286_v12 = vld [vmem:[%s236_s4 + $0x30] sm:$0xff]  ;;  %v287_v14 = vld [vmem:[%s236_s4 + $0x38] sm:$0xff] }
  0x13   : > { %628 = vmatprep.subr.mxu0 %v290_v4  ;;  %649 = vmatprep.subr.mxu1 %v290_v4 }
  0x14   : > { %629 = vmatpush3.msra.mxu0 %v290_v4  ;;  %655 = vmatpush3.msra.mxu1 %v290_v4  ;;  %v273_v15 = vld [vmem:[#allocation2 + $0x8] sm:$0xff]  ;;  %v272_v19 = vld [vmem:[#allocation2] sm:$0xff] }
  0x15   : > { %630 = vmatprep.subr.mxu0 %v289_v5  ;;  %650 = vmatprep.subr.mxu1 %v289_v5  ;;  %v275_v25 = vld [vmem:[#allocation2 + $0x18] sm:$0xff]  ;;  %v274_v31 = vld [vmem:[#allocation2 + $0x10] sm:$0xff] }
  0x16   : > { %631 = vmatpush3.msra.mxu0 %v289_v5  ;;  %656 = vmatpush3.msra.mxu1 %v289_v5  ;;  %v277_v16 = vld [vmem:[#allocation2 + $0x28] sm:$0xff]  ;;  %v276_v20 = vld [vmem:[#allocation2 + $0x20] sm:$0xff] }
  0x17   : > { %632 = vmatprep.subr.mxu0 %v288_v6  ;;  %651 = vmatprep.subr.mxu1 %v288_v6  ;;  %v279_v26 = vld [vmem:[#allocation2 + $0x38] sm:$0xff]  ;;  %v278_v32 = vld [vmem:[#allocation2 + $0x30] sm:$0xff] }
  0x18   : > { %633 = vmatpush3.msra.mxu0 %v288_v6  ;;  %657 = vmatpush3.msra.mxu1 %v288_v6 }
  0x19   : > { %634 = vmatprep.mubr.msk.f32.mxu0 %vm294_vm1, %v280_v7  ;;  %640 = vmatprep.mubr.msk.f32.mxu1 %vm294_vm1, %v284_v8 }
  0x1a   : > { %635 = vmatmul.mubr.msk.f32.vlgmr.msra.gmra.mxu0 %vm294_vm1, %v281_v9  ;;  %641 = vmatmul.mubr.msk.f32.vlgmr.msra.gmra.mxu1 %vm294_vm1, %v285_v10 }
  0x1b   : > { %637 = vmatprep.mubr.msk.f32.mxu0 %vm294_vm1, %v282_v11  ;;  %643 = vmatprep.mubr.msk.f32.mxu1 %vm294_vm1, %v286_v12 }
  0x1e   : > { %638 = vmatmul.mubr.msk.f32.gmra.mxu0 %vm294_vm1, %v283_v13  ;;  %644 = vmatmul.mubr.msk.f32.gmra.mxu1 %vm294_vm1, %v287_v14 }
  0xda   : > { %v636_v17 = vpop.f32.mrf.mxu0  ;;  %v642_v18 = vpop.f32.mrf.mxu1 }
  0xdb   : > { %v425_v21 = vadd.f32 %v636_v17, %v273_v15  ;;  %v429_v22 = vadd.f32 %v642_v18, %v277_v16 }
  0xdc   : > { %v385_v23 = vpop.f32.mrf.mxu0  ;;  %v405_v24 = vpop.f32.mrf.mxu1 }
  0xdd   : > { %434 = vst.msk [vmem:[#allocation2 + $0x8] sm:$0xff] %vm263_vm0, %v425_v21  ;;  %438 = vst.msk [vmem:[#allocation2 + $0x28] sm:$0xff] %vm263_vm0, %v429_v22  ;;  %v424_v27 = vadd.f32 %v385_v23, %v272_v19  ;;  %v428_v28 = vadd.f32 %v405_v24, %v276_v20 }
  0xde   : > { %v639_v29 = vpop.f32.mrf.mxu0  ;;  %v645_v30 = vpop.f32.mrf.mxu1 }
  0xdf   : > { %433 = vst.msk [vmem:[#allocation2] sm:$0xff] %vm263_vm0, %v424_v27  ;;  %437 = vst.msk [vmem:[#allocation2 + $0x20] sm:$0xff] %vm263_vm0, %v428_v28  ;;  %v427_v33 = vadd.f32 %v639_v29, %v275_v25  ;;  %v431_v34 = vadd.f32 %v645_v30, %v279_v26 }
  0xe0   : > { %v395_v35 = vpop.f32.mrf.mxu0  ;;  %v415_v36 = vpop.f32.mrf.mxu1 }
  0xe1   : > { %436 = vst.msk [vmem:[#allocation2 + $0x18] sm:$0xff] %vm263_vm0, %v427_v33  ;;  %440 = vst.msk [vmem:[#allocation2 + $0x38] sm:$0xff] %vm263_vm0, %v431_v34  ;;  %v426_v37 = vadd.f32 %v395_v35, %v274_v31  ;;  %v430_v38 = vadd.f32 %v415_v36, %v278_v32 }
  0xe3   : > { %435 = vst.msk [vmem:[#allocation2 + $0x10] sm:$0xff] %vm263_vm0, %v426_v37  ;;  %439 = vst.msk [vmem:[#allocation2 + $0x30] sm:$0xff] %vm263_vm0, %v430_v38 }
  0xe4   : > { %v445_v40 = vld [vmem:[#allocation2 + $0x8] sm:$0xff] }
  0xe5   : > { %v449_v41 = vld [vmem:[#allocation2 + $0x28] sm:$0xff]  ;;  %v460_v42 = vadd.f32 %v605_v39, %v445_v40 }
  0xe6   : > { %v464_v43 = vadd.f32 %v605_v39, %v449_v41  ;;  %v444_v44 = vld [vmem:[#allocation2] sm:$0xff] }
  0xe7   : > { %v448_v45 = vld [vmem:[#allocation2 + $0x20] sm:$0xff]  ;;  %468 = vst.msk [vmem:[%s257_s11 + $0x8] sm:$0xff] %vm263_vm0, %v460_v42  ;;  %v459_v46 = vadd.f32 %v605_v39, %v444_v44 }
  0xe8   : > { %472 = vst.msk [vmem:[%s257_s11 + $0x28] sm:$0xff] %vm263_vm0, %v464_v43  ;;  %v463_v47 = vadd.f32 %v605_v39, %v448_v45  ;;  %v447_v48 = vld [vmem:[#allocation2 + $0x18] sm:$0xff] }
  0xe9   : > { %v451_v49 = vld [vmem:[#allocation2 + $0x38] sm:$0xff]  ;;  %467 = vst.msk [vmem:[%s257_s11] sm:$0xff] %vm263_vm0, %v459_v46  ;;  %v462_v50 = vadd.f32 %v605_v39, %v447_v48 }
  0xea   : > { %471 = vst.msk [vmem:[%s257_s11 + $0x20] sm:$0xff] %vm263_vm0, %v463_v47  ;;  %v466_v51 = vadd.f32 %v605_v39, %v451_v49  ;;  %v446_v52 = vld [vmem:[#allocation2 + $0x10] sm:$0xff] }
  0xeb   : > { %v450_v53 = vld [vmem:[#allocation2 + $0x30] sm:$0xff]  ;;  %470 = vst.msk [vmem:[%s257_s11 + $0x18] sm:$0xff] %vm263_vm0, %v462_v50  ;;  %v461_v54 = vadd.f32 %v605_v39, %v446_v52 }
  0xec   : > { %474 = vst.msk [vmem:[%s257_s11 + $0x38] sm:$0xff] %vm263_vm0, %v466_v51  ;;  %v465_v55 = vadd.f32 %v605_v39, %v450_v53 }
  0xed   : > { %469 = vst.msk [vmem:[%s257_s11 + $0x10] sm:$0xff] %vm263_vm0, %v461_v54 }
  0xee   : > { %473 = vst.msk [vmem:[%s257_s11 + $0x30] sm:$0xff] %vm263_vm0, %v465_v55 }
  0xef PF: > { %s13_s14 = sadd.s32 1, %s705_s14   ;;  %s835_s12 = smov %s701_s13 }
  0xf0   : > { %p10_p5 = scmp.ge.s32.totalorder %s13_s14, 4   ;;  %s836_s13 = smov %s838_s15 }
  0xf2   :  { %12 = sbr.rel (!%p10_p5) target bundleno = 2 (0x2), region = 76 }

// kernel: swin_transformer_forward.23
= control target key start
LH: loop header
LB: loop body
LE: loop exit
PB: predicated region body
PF: predicated region fallthrough
CT: control target
= control target key end

     0   :  { %s701_s18 = smov 0   ;;  %s818_s0 = inlined_call_operand.vmem [shape: f32[128,32], index: 0, kind: input, shape index: {}]   ;;  %s819_s1 = inlined_call_operand.vmem [shape: f32[1,32], index: 1, kind: input, shape index: {}]   ;;  %s820_s2 = inlined_call_operand.vmem [shape: f32[1,32], index: 2, kind: input, shape index: {}]   ;;  %s821_s3 = inlined_call_operand.vmem [shape: f32[32,96], index: 3, kind: input, shape index: {}]   ;;  %s822_s4 = inlined_call_operand.vmem [shape: f32[1,96], index: 4, kind: input, shape index: {}]   ;;  %s823_s5 = inlined_call_operand.vmem [shape: f32[128,96], index: 5, kind: output, shape index: {}]  }
   0x1 LB: > { %s577_s19 = sadd.s32 4294967295, %s669_s18   ;;  %p581_p0 = scmp.ge.s32.totalorder %s669_s18, 1  ;;  %s669_s18 = sphi %s701_s18, %s15_s18  }
   0x2   : > { %p188_p1 = scmp.lt.s32.totalorder %s669_s18, 3 }
   0x4   : > { %p189_p2 = pnand %p581_p0, %p188_p1 }
   0x5   : > { %s582_s20 = sshll.u32 (!%p189_p2), %s577_s19, 3 }
   0x6   : > { %192 = sbr.rel (%p189_p2) target bundleno = 537 (0x219), region = 40  ;;  %p217_p3 = scmp.lt.s32.totalorder (!%p189_p2), %s582_s20, 15 }
   0xb   : > { %s825_s20 = smov (!%p217_p3, %s582_s20), 15  ;;  %vm236_vm0 = vcmask 261120   ;;  %v375_v56 = vld [vmem:[%s821_s3 + $0x18] sm:$0xff]  ;;  %v374_v57 = vld [vmem:[%s821_s3 + $0x10] sm:$0xff]  ;;  %v373_v58 = vld [vmem:[%s821_s3 + $0x8] sm:$0xff]  ;;  %vm512_vm1 = vcmask 785408  }
   0xc   : > { %s583_s21 = sshll.u32 %s825_s20, 3  ;;  %611 = vmatprep.subr.mxu0 %v375_v56  ;;  %631 = vmatprep.subr.mxu1 %v375_v56  ;;  %v372_v59 = vld [vmem:[%s821_s3] sm:$0xff] }
   0xd   : > { %s220_s24 = scalar_lea.vmem %s818_s0, %s583_s21  ;;  %612 = vmatpush3.msra.mxu0 %v375_v56  ;;  %635 = vmatpush3.msra.mxu1 %v375_v56  ;;  %s226_s16 = scalar_lea.vmem %s823_s5, %s583_s21 }
   0xe   : > { %v228_v0 = vld [vmem:[%s220_s24] sm:$0xff]  ;;  %v229_v1 = vld [vmem:[%s220_s24 + $0x8] sm:$0xff]  ;;  %v230_v8 = vld [vmem:[%s220_s24 + $0x10] sm:$0xff]  ;;  %613 = vmatprep.subr.mxu0 %v374_v57  ;;  %632 = vmatprep.subr.mxu1 %v374_v57 }
   0xf   : > { %v232_v2 = vld [vmem:[%s220_s24 + $0x20] sm:$0xff]  ;;  %v237_v3 = vsel %vm236_vm0, %v228_v0, 0.0  ;;  %v240_v4 = vsel %vm236_vm0, %v229_v1, 0.0  ;;  %v233_v5 = vld [vmem:[%s220_s24 + $0x28] sm:$0xff]  ;;  %v234_v9 = vld [vmem:[%s220_s24 + $0x30] sm:$0xff]  ;;  %v243_v10 = vsel %vm236_vm0, %v230_v8, 0.0  ;;  %614 = vmatpush3.msra.mxu0 %v374_v57  ;;  %636 = vmatpush3.msra.mxu1 %v374_v57 }
  0x10   : > { %238 = vadd.xlane.f32.xlu0 %v237_v3  ;;  %241 = vadd.xlane.f32.xlu1 %v240_v4  ;;  %v249_v6 = vsel %vm236_vm0, %v232_v2, 0.0  ;;  %v252_v7 = vsel %vm236_vm0, %v233_v5, 0.0  ;;  %v255_v11 = vsel %vm236_vm0, %v234_v9, 0.0  ;;  %v231_v12 = vld [vmem:[%s220_s24 + $0x18] sm:$0xff] }
  0x11   : > { %v235_v13 = vld [vmem:[%s220_s24 + $0x38] sm:$0xff]  ;;  %v246_v14 = vsel %vm236_vm0, %v231_v12, 0.0  ;;  %615 = vmatprep.subr.mxu0 %v373_v58  ;;  %633 = vmatprep.subr.mxu1 %v373_v58 }
  0x12   : > { %v258_v15 = vsel %vm236_vm0, %v235_v13, 0.0  ;;  %616 = vmatpush3.msra.mxu0 %v373_v58  ;;  %637 = vmatpush3.msra.mxu1 %v373_v58 }
  0x13   : > { %617 = vmatprep.subr.mxu0 %v372_v59  ;;  %634 = vmatprep.subr.mxu1 %v372_v59 }
  0x14   : > { %250 = vadd.xlane.f32.xlu0 %v249_v6  ;;  %253 = vadd.xlane.f32.xlu1 %v252_v7 }
  0x15   : > { %618 = vmatpush3.msra.mxu0 %v372_v59  ;;  %638 = vmatpush3.msra.mxu1 %v372_v59 }
  0x18   : > { %244 = vadd.xlane.f32.xlu0 %v243_v10  ;;  %256 = vadd.xlane.f32.xlu1 %v255_v11 }
  0x1c   : > { %247 = vadd.xlane.f32.xlu0 %v246_v14  ;;  %259 = vadd.xlane.f32.xlu1 %v258_v15 }
  0x99   : > { %v239_v16 = vpop.xlane.xlu0 %238  ;;  %v242_v17 = vpop.xlane.xlu1 %241 }
  0x9a   : > { %v262_v18 = vmul.f32 0.03125, %v239_v16  ;;  %v263_v19 = vmul.f32 0.03125, %v242_v17 }
  0x9c   : > { %v725_v20 = vsub.f32 %v228_v0, %v262_v18  ;;  %v727_v21 = vsub.f32 %v229_v1, %v263_v19 }
  0x9d   : > { %v251_v22 = vpop.xlane.xlu0 %250  ;;  %v254_v23 = vpop.xlane.xlu1 %253 }
  0x9e   : > { %v266_v24 = vmul.f32 0.03125, %v251_v22  ;;  %v267_v25 = vmul.f32 0.03125, %v254_v23  ;;  %v278_v26 = vmul.f32 %v725_v20, %v725_v20  ;;  %v279_v27 = vmul.f32 %v727_v21, %v727_v21  ;;  %v586_v22 = vld [vmem:[%s819_s1] ss:$0 sm:$0xff] }
  0xa0   : > { %v733_v28 = vsub.f32 %v232_v2, %v266_v24  ;;  %v735_v29 = vsub.f32 %v233_v5, %v267_v25  ;;  %v286_v30 = vsel %vm236_vm0, %v278_v26, 0.0  ;;  %v289_v33 = vsel %vm236_vm0, %v279_v27, 0.0  ;;  %v587_v25 = vld [vmem:[%s820_s2] ss:$0 sm:$0xff] }
  0xa1   : > { %287 = vadd.xlane.f32.xlu0 %v286_v30  ;;  %v245_v31 = vpop.xlane.xlu0 %244  ;;  %v257_v32 = vpop.xlane.xlu1 %256 }
  0xa2   : > { %v264_v34 = vmul.f32 0.03125, %v245_v31  ;;  %v268_v35 = vmul.f32 0.03125, %v257_v32  ;;  %v282_v36 = vmul.f32 %v733_v28, %v733_v28  ;;  %v283_v37 = vmul.f32 %v735_v29, %v735_v29 }
  0xa4   : > { %v743_v38 = vsub.f32 %v230_v8, %v264_v34  ;;  %v745_v39 = vsub.f32 %v234_v9, %v268_v35  ;;  %v298_v40 = vsel %vm236_vm0, %v282_v36, 0.0  ;;  %v301_v43 = vsel %vm236_vm0, %v283_v37, 0.0 }
  0xa5   : > { %290 = vadd.xlane.f32.xlu0 %v289_v33  ;;  %299 = vadd.xlane.f32.xlu1 %v298_v40  ;;  %v248_v41 = vpop.xlane.xlu0 %247  ;;  %v260_v42 = vpop.xlane.xlu1 %259 }
  0xa6   : > { %v265_v44 = vmul.f32 0.03125, %v248_v41  ;;  %v269_v45 = vmul.f32 0.03125, %v260_v42  ;;  %v280_v46 = vmul.f32 %v743_v38, %v743_v38  ;;  %v284_v47 = vmul.f32 %v745_v39, %v745_v39 }
  0xa8   : > { %v753_v48 = vsub.f32 %v231_v12, %v265_v44  ;;  %v755_v49 = vsub.f32 %v235_v13, %v269_v45  ;;  %v292_v50 = vsel %vm236_vm0, %v280_v46, 0.0  ;;  %v304_v51 = vsel %vm236_vm0, %v284_v47, 0.0 }
  0xa9   : > { %302 = vadd.xlane.f32.xlu1 %v301_v43  ;;  %293 = vadd.xlane.f32.xlu0 %v292_v50 }
  0xaa   : > { %v281_v52 = vmul.f32 %v753_v48, %v753_v48  ;;  %v285_v53 = vmul.f32 %v755_v49, %v755_v49 }
  0xac   : > { %v295_v54 = vsel %vm236_vm0, %v281_v52, 0.0  ;;  %v307_v55 = vsel %vm236_vm0, %v285_v53, 0.0 }
  0xad   : > { %305 = vadd.xlane.f32.xlu1 %v304_v51  ;;  %296 = vadd.xlane.f32.xlu0 %v295_v54 }
  0xb1   : > { %308 = vadd.xlane.f32.xlu1 %v307_v55 }
 0x12a   : > { %v288_v60 = vpop.xlane.xlu0 %287 }
 0x12b   : > { %v310_v61 = vmul.f32 0.03125, %v288_v60 }
 0x12d   : > { %v318_v62 = vadd.f32 1e-05, %v310_v61 }
 0x12e   : > { %v300_v63 = vpop.xlane.xlu1 %299  ;;  %v291_v0 = vpop.xlane.xlu0 %290 }
 0x12f   : > { %647 = vrsqrt.f32 %v318_v62  ;;  %v314_v1 = vmul.f32 0.03125, %v300_v63  ;;  %v311_v2 = vmul.f32 0.03125, %v291_v0 }
 0x131   : > { %v322_v3 = vadd.f32 1e-05, %v314_v1  ;;  %v319_v4 = vadd.f32 1e-05, %v311_v2 }
 0x132   : > { %v303_v5 = vpop.xlane.xlu1 %302  ;;  %v294_v6 = vpop.xlane.xlu0 %293 }
 0x133   : > { %649 = vrsqrt.f32 %v322_v3  ;;  %v315_v7 = vmul.f32 0.03125, %v303_v5  ;;  %v312_v8 = vmul.f32 0.03125, %v294_v6 }
 0x134   : > { %651 = vrsqrt.f32 %v319_v4 }
 0x135   : > { %v323_v9 = vadd.f32 1e-05, %v315_v7  ;;  %v320_v10 = vadd.f32 1e-05, %v312_v8 }
 0x136   : > { %v306_v11 = vpop.xlane.xlu1 %305  ;;  %v297_v12 = vpop.xlane.xlu0 %296 }
 0x137   : > { %653 = vrsqrt.f32 %v323_v9  ;;  %v316_v13 = vmul.f32 0.03125, %v306_v11  ;;  %v313_v14 = vmul.f32 0.03125, %v297_v12 }
 0x138   : > { %655 = vrsqrt.f32 %v320_v10 }
 0x139   : > { %v324_v15 = vadd.f32 1e-05, %v316_v13  ;;  %v321_v16 = vadd.f32 1e-05, %v313_v14 }
 0x13a   : > { %v309_v17 = vpop.xlane.xlu1 %308 }
 0x13b   : > { %657 = vrsqrt.f32 %v324_v15  ;;  %v317_v18 = vmul.f32 0.03125, %v309_v17 }
 0x13c   : > { %v648_v19 = vpop.eup %647  ;;  %659 = vrsqrt.f32 %v321_v16 }
 0x13d   : > { %v325_v23 = vadd.f32 1e-05, %v317_v18  ;;  %v334_v24 = vmul.f32 %v648_v19, %v725_v20 }
 0x13f   : > { %661 = vrsqrt.f32 %v325_v23  ;;  %v349_v26 = vmul.f32 %v586_v22, %v334_v24 }
 0x140   : > { %v650_v27 = vpop.eup %649 }
 0x141   : > { %v652_v30 = vpop.eup %651  ;;  %v364_v31 = vadd.f32 %v587_v25, %v349_v26  ;;  %v338_v32 = vmul.f32 %v650_v27, %v733_v28 }
 0x142   : > { %v335_v33 = vmul.f32 %v652_v30, %v727_v21 }
 0x143   : > { %619 = vmatprep.mubr.msk.f32.mxu0 %vm236_vm0, %v364_v31  ;;  %v353_v34 = vmul.f32 %v586_v22, %v338_v32 }
 0x144   : > { %v654_v35 = vpop.eup %653  ;;  %v350_v36 = vmul.f32 %v586_v22, %v335_v33 }
 0x145   : > { %v656_v37 = vpop.eup %655  ;;  %v368_v20 = vadd.f32 %v587_v25, %v353_v34  ;;  %v339_v40 = vmul.f32 %v654_v35, %v735_v29 }
 0x146   : > { %v365_v41 = vadd.f32 %v587_v25, %v350_v36  ;;  %v336_v42 = vmul.f32 %v656_v37, %v743_v38 }
 0x147   : > { %625 = vmatprep.mubr.msk.f32.mxu1 %vm236_vm0, %v368_v20  ;;  %v354_v43 = vmul.f32 %v586_v22, %v339_v40 }
 0x148   : > { %v658_v44 = vpop.eup %657  ;;  %620 = vmatmul.mubr.msk.f32.vlgmr.msra.gmra.mxu0 %vm236_vm0, %v365_v41  ;;  %v351_v28 = vmul.f32 %v586_v22, %v336_v42 }
 0x149   : > { %v660_v21 = vpop.eup %659  ;;  %v369_v45 = vadd.f32 %v587_v25, %v354_v43  ;;  %v340_v46 = vmul.f32 %v658_v44, %v745_v39 }
 0x14a   : > { %v366_v47 = vadd.f32 %v587_v25, %v351_v28  ;;  %v337_v50 = vmul.f32 %v660_v21, %v753_v48  ;;  %v588_v48 = vld [vmem:[%s822_s4] ss:$0 sm:$0xff] }
 0x14b   : > { %626 = vmatmul.mubr.msk.f32.vlgmr.msra.gmra.mxu1 %vm236_vm0, %v369_v45  ;;  %v355_v29 = vmul.f32 %v586_v22, %v340_v46 }
 0x14c   : > { %v662_v51 = vpop.eup %661  ;;  %622 = vmatprep.mubr.msk.f32.mxu0 %vm236_vm0, %v366_v47  ;;  %v352_v38 = vmul.f32 %v586_v22, %v337_v50 }
 0x14d   : > { %v370_v52 = vadd.f32 %v587_v25, %v355_v29  ;;  %v341_v53 = vmul.f32 %v662_v51, %v755_v49 }
 0x14e   : > { %v367_v54 = vadd.f32 %v587_v25, %v352_v38 }
 0x14f   : > { %628 = vmatprep.mubr.msk.f32.mxu1 %vm236_vm0, %v370_v52  ;;  %v356_v55 = vmul.f32 %v586_v22, %v341_v53 }
 0x150   : > { %623 = vmatmul.mubr.msk.f32.gmra.mxu0 %vm236_vm0, %v367_v54 }
 0x151   : > { %v371_v39 = vadd.f32 %v587_v25, %v356_v55 }
 0x153   : > { %629 = vmatmul.mubr.msk.f32.gmra.mxu1 %vm236_vm0, %v371_v39 }
 0x208   : > { %v621_v56 = vpop.f32.mrf.mxu0 }
 0x209   : > { %v479_v49 = vadd.f32 %v621_v56, %v588_v48 }
 0x20a   : > { %v473_v57 = vpop.f32.mrf.mxu0 }
 0x20b   : > { %514 = vst.msk [vmem:[%s226_s16 + $0x8] sm:$0xff] %vm512_vm1, %v479_v49  ;;  %v474_v58 = vadd.f32 %v588_v48, %v473_v57  ;;  %v627_v59 = vpop.f32.mrf.mxu1 }
 0x20c   : > { %v499_v60 = vadd.f32 %v627_v59, %v588_v48 }
 0x20d   : > { %513 = vst.msk [vmem:[%s226_s16] sm:$0xff] %vm512_vm1, %v474_v58  ;;  %v493_v61 = vpop.f32.mrf.mxu1 }
 0x20e   : > { %518 = vst.msk [vmem:[%s226_s16 + $0x28] sm:$0xff] %vm512_vm1, %v499_v60  ;;  %v494_v62 = vadd.f32 %v588_v48, %v493_v61 }
 0x210   : > { %517 = vst.msk [vmem:[%s226_s16 + $0x20] sm:$0xff] %vm512_vm1, %v494_v62  ;;  %v624_v63 = vpop.f32.mrf.mxu0 }
 0x211   : > { %v489_v0 = vadd.f32 %v624_v63, %v588_v48 }
 0x212   : > { %v483_v1 = vpop.f32.mrf.mxu0 }
 0x213   : > { %516 = vst.msk [vmem:[%s226_s16 + $0x18] sm:$0xff] %vm512_vm1, %v489_v0  ;;  %v484_v2 = vadd.f32 %v588_v48, %v483_v1  ;;  %v630_v3 = vpop.f32.mrf.mxu1 }
 0x214   : > { %v509_v4 = vadd.f32 %v630_v3, %v588_v48 }
 0x215   : > { %515 = vst.msk [vmem:[%s226_s16 + $0x10] sm:$0xff] %vm512_vm1, %v484_v2  ;;  %v503_v5 = vpop.f32.mrf.mxu1 }
 0x216   : > { %520 = vst.msk [vmem:[%s226_s16 + $0x38] sm:$0xff] %vm512_vm1, %v509_v4  ;;  %v504_v6 = vadd.f32 %v588_v48, %v503_v5 }
 0x218   : > { %519 = vst.msk [vmem:[%s226_s16 + $0x30] sm:$0xff] %vm512_vm1, %v504_v6 }
 0x219 PF: > { %s15_s18 = sadd.s32 1, %s669_s18  }
 0x21a   : > { %p12_p4 = scmp.ge.s32.totalorder %s15_s18, 4  }
 0x21c   :  { %14 = sbr.rel (!%p12_p4) target bundleno = 1 (0x1), region = 70 }

// kernel: swin_transformer_forward.24
= control target key start
LH: loop header
LB: loop body
LE: loop exit
PB: predicated region body
PF: predicated region fallthrough
CT: control target
= control target key end

     0   :  { %s2594_s15 = smov 0   ;;  %s2967_s0 = inlined_call_operand.vmem [shape: f32[8,16,96], index: 0, kind: input, shape index: {}]   ;;  %s2968_s1 = inlined_call_operand.vmem [shape: f32[1,2,16,16], index: 1, kind: input, shape index: {}]   ;;  %s2969_s2 = inlined_call_operand.vmem [shape: f32[32,32], index: 2, kind: input, shape index: {}]   ;;  %s2970_s3 = inlined_call_operand.vmem [shape: f32[1,32], index: 3, kind: input, shape index: {}]   ;;  %s2971_s4 = inlined_call_operand.vmem [shape: f32[8,16,32], index: 4, kind: output, shape index: {}]  }
   0x1 LB: > { %s2171_s16 = sadd.s32 4294967295, %s2562_s15   ;;  %p2175_p0 = scmp.ge.s32.totalorder %s2562_s15, 1  ;;  %s2562_s15 = sphi %s2594_s15, %s14_s15  }
   0x2   : > { %p164_p1 = scmp.lt.s32.totalorder %s2562_s15, 3 }
   0x4   : > { %p165_p2 = pnand %p2175_p0, %p164_p1 }
   0x5   : > { %s2176_s17 = sshll.u32 (!%p165_p2), %s2171_s16, 2  ;;  %s2564_s22 = smov (!%p165_p2), 96  }
   0x6   : > { %168 = sbr.rel (%p165_p2) target bundleno = 1327 (0x52f), region = 36  ;;  %p193_p3 = scmp.lt.s32.totalorder (!%p165_p2), %s2176_s17, 7 }
   0x7   : > { %s2565_s23 = smov (!%p165_p2), 64   ;;  %s2566_s24 = smov (!%p165_p2), 80  }
   0x8   : > { %s2567_s25 = smov (!%p165_p2), 112   ;;  %s2568_s30 = smov (!%p165_p2), 48  }
   0xb   : > { %s2973_s17 = smov (!%p193_p3, %s2176_s17), 7  ;;  %vm236_vm0 = vcmask 130048   ;;  %v215_v30 = vld [vmem:[%s2968_s1 + $0x8] sm:$0xff]  ;;  %v214_v32 = vld [vmem:[%s2968_s1] sm:$0xff]  ;;  %vm2104_vm1 = vcmask 261120  }
   0xc   : > { %s2249_s18 = sshll.u32 %s2973_s17, 4 }
   0xd   : > { %s197_s21 = scalar_lea.vmem %s2967_s0, %s2249_s18 }
   0xe   : > { %v2610_v0 = vld [vmem:[%s197_s21 + $0x8] sm:$0xff]  ;;  %v2612_v1 = vld [vmem:[%s197_s21 + $0x18] sm:$0xff]  ;;  %v2614_v2 = vld [vmem:[%s197_s21] sm:$0xff] }
   0xf   : > { %234 = vrot.lane.b32.xlu0 %v2610_v0, %s2564_s22  ;;  %326 = vrot.lane.b32.xlu1 %v2612_v1, %s2564_s22  ;;  %v2618_v3 = vld [vmem:[%s197_s21 + $0x10] sm:$0xff]  ;;  %v222_v4 = vmul.f32 0.25, %v2614_v2  ;;  %v2629_v6 = vld [vmem:[%s197_s21 + $0x28] sm:$0xff]  ;;  %v2663_v14 = vmul.f32 0.25, %v2610_v0  ;;  %v2666_v15 = vmul.f32 0.25, %v2612_v1 }
  0x10   : > { %v2622_v5 = vmul.f32 0.25, %v2618_v3  ;;  %v2631_v7 = vld [vmem:[%s197_s21 + $0x20] sm:$0xff]  ;;  %v2635_v8 = vld [vmem:[%s197_s21 + $0x38] sm:$0xff]  ;;  %v2637_v9 = vld [vmem:[%s197_s21 + $0x30] sm:$0xff]  ;;  %v227_v22 = vmul.f32 0.25, %v2629_v6 }
  0x11   : > { %2339 = vmatprep.mubr.msk.f32.mxu0 %vm236_vm0, %v222_v4  ;;  %v2671_v16 = vmul.f32 0.25, %v2631_v7  ;;  %v2674_v17 = vmul.f32 0.25, %v2637_v9  ;;  %v2693_v23 = vmul.f32 0.25, %v2635_v8 }
  0x12   : > { %2346 = vmatprep.mubr.msk.f32.mxu1 %vm236_vm0, %v2622_v5 }
  0x13   : > { %232 = vrot.lane.b32.xlu0 %v2614_v2, %s2564_s22  ;;  %324 = vrot.lane.b32.xlu1 %v2618_v3, %s2564_s22 }
  0x17   : > { %417 = vrot.lane.b32.xlu0 %v2629_v6, %s2564_s22  ;;  %415 = vrot.lane.b32.xlu1 %v2631_v7, %s2564_s22 }
  0x1b   : > { %508 = vrot.lane.b32.xlu0 %v2635_v8, %s2564_s22  ;;  %506 = vrot.lane.b32.xlu1 %v2637_v9, %s2564_s22 }
  0x1f   : > { %669 = vrot.lane.b32.xlu1 %v2610_v0, %s2565_s23  ;;  %667 = vrot.lane.b32.xlu0 %v2614_v2, %s2565_s23 }
  0x23   : > { %756 = vrot.lane.b32.xlu1 %v2612_v1, %s2565_s23  ;;  %754 = vrot.lane.b32.xlu0 %v2618_v3, %s2565_s23 }
  0x27   : > { %843 = vrot.lane.b32.xlu1 %v2629_v6, %s2565_s23  ;;  %930 = vrot.lane.b32.xlu0 %v2635_v8, %s2565_s23 }
  0x2b   : > { %841 = vrot.lane.b32.xlu1 %v2631_v7, %s2565_s23  ;;  %928 = vrot.lane.b32.xlu0 %v2637_v9, %s2565_s23 }
  0x2f   : > { %1037 = vrot.lane.b32.xlu1 %v2610_v0, %s2566_s24  ;;  %1128 = vrot.lane.b32.xlu0 %v2612_v1, %s2566_s24 }
  0x33   : > { %1035 = vrot.lane.b32.xlu1 %v2614_v2, %s2566_s24 }
  0x37   : > { %1031 = vrot.lane.b32.xlu1 %v222_v4, %s2567_s25 }
  0x81   : > { %v235_v10 = vpop.permute.xlu0 %234  ;;  %v327_v11 = vpop.permute.xlu1 %326 }
  0x82   : > { %2335 = vmatprep.subr.msk.mxu0 %vm236_vm0, %v235_v10  ;;  %2342 = vmatprep.subr.msk.mxu1 %vm236_vm0, %v327_v11 }
  0x83   : > { %2336 = vmatpush3.xpose.msk.msra.mxu0 %vm236_vm0, %v235_v10  ;;  %2343 = vmatpush3.xpose.msk.msra.mxu1 %vm236_vm0, %v327_v11 }
  0x85   : > { %v233_v12 = vpop.permute.xlu0 %232  ;;  %v325_v13 = vpop.permute.xlu1 %324 }
  0x86   : > { %2337 = vmatprep.subr.msk.mxu0 %vm236_vm0, %v233_v12  ;;  %2344 = vmatprep.subr.msk.mxu1 %vm236_vm0, %v325_v13 }
  0x87   : > { %2338 = vmatpush3.xpose.msk.msra.mxu0 %vm236_vm0, %v233_v12  ;;  %2345 = vmatpush3.xpose.msk.msra.mxu1 %vm236_vm0, %v325_v13 }
  0x89   : > { %v418_v18 = vpop.permute.xlu0 %417  ;;  %v416_v19 = vpop.permute.xlu1 %415 }
  0x8a   : > { %2340 = vmatmul.mubr.msk.f32.vlgmr.msra.gmra.mxu0 %vm236_vm0, %v2663_v14  ;;  %2347 = vmatmul.mubr.msk.f32.vlgmr.msra.gmra.mxu1 %vm236_vm0, %v2666_v15 }
  0x8b   : > { %2349 = vmatprep.subr.msk.mxu0 %vm236_vm0, %v418_v18  ;;  %2353 = vmatprep.mubr.msk.f32.mxu0 %vm236_vm0, %v2671_v16 }
  0x8c   : > { %2350 = vmatpush3.xpose.msk.msra.mxu0 %vm236_vm0, %v418_v18  ;;  %2360 = vmatprep.mubr.msk.f32.mxu1 %vm236_vm0, %v2674_v17 }
  0x8d   : > { %v509_v20 = vpop.permute.xlu0 %508  ;;  %2351 = vmatprep.subr.msk.mxu0 %vm236_vm0, %v416_v19  ;;  %v507_v21 = vpop.permute.xlu1 %506 }
  0x8e   : > { %2356 = vmatprep.subr.msk.mxu1 %vm236_vm0, %v509_v20 }
  0x8f   : > { %2357 = vmatpush3.xpose.msk.msra.mxu1 %vm236_vm0, %v509_v20 }
  0x90   : > { %2352 = vmatpush3.xpose.msk.msra.mxu0 %vm236_vm0, %v416_v19  ;;  %2358 = vmatprep.subr.msk.mxu1 %vm236_vm0, %v507_v21 }
  0x91   : > { %v670_v24 = vpop.permute.xlu1 %669  ;;  %v668_v25 = vpop.permute.xlu0 %667 }
  0x92   : > { %2363 = vmatprep.subr.mxu0 %v670_v24 }
  0x93   : > { %2354 = vmatmul.mubr.msk.f32.vlgmr.msra.gmra.mxu0 %vm236_vm0, %v227_v22  ;;  %2359 = vmatpush3.xpose.msk.msra.mxu1 %vm236_vm0, %v507_v21 }
  0x94   : > { %2364 = vmatpush3.msra.mxu0 %v670_v24 }
  0x95   : > { %2365 = vmatprep.subr.mxu0 %v668_v25  ;;  %v757_v26 = vpop.permute.xlu1 %756  ;;  %v755_v28 = vpop.permute.xlu0 %754 }
  0x96   : > { %2361 = vmatmul.mubr.msk.f32.vlgmr.msra.gmra.mxu1 %vm236_vm0, %v2693_v23  ;;  %2366 = vmatpush3.msra.mxu0 %v668_v25 }
  0x97   : > { %2370 = vmatprep.subr.mxu1 %v757_v26 }
  0x98   : > { %2371 = vmatpush3.msra.mxu1 %v757_v26 }
  0x99   : > { %v2699_v27 = vpop.permute.xlu1 %843  ;;  %2372 = vmatprep.subr.mxu1 %v755_v28  ;;  %v2702_v29 = vpop.permute.xlu0 %930 }
  0x9a   : > { %2377 = vmatprep.subr.mxu0 %v2699_v27  ;;  %2373 = vmatpush3.msra.mxu1 %v755_v28 }
  0x9b   : > { %2384 = vmatprep.subr.mxu1 %v2702_v29 }
  0x9d   : > { %v842_v56 = vpop.permute.xlu1 %841  ;;  %v929_v59 = vpop.permute.xlu0 %928 }
  0xa1   : > { %v1038_v57 = vpop.permute.xlu1 %1037  ;;  %v2766_v61 = vpop.permute.xlu0 %1128 }
  0xa5   : > { %v1036_v58 = vpop.permute.xlu1 %1035 }
  0xa9   : > { %v1032_v60 = vpop.permute.xlu1 %1031 }
 0x14a   : > { %v2341_v31 = vpop.f32.mrf.mxu0  ;;  %v2348_v33 = vpop.f32.mrf.mxu1 }
 0x14b   : > { %v319_v34 = vadd.f32 %v2341_v31, %v215_v30  ;;  %v2711_v35 = vadd.f32 %v2348_v33, %v215_v30 }
 0x14c   : > { %v313_v36 = vpop.f32.mrf.mxu0  ;;  %v404_v37 = vpop.f32.mrf.mxu1 }
 0x14d   : > { %v314_v38 = vadd.f32 %v313_v36, %v214_v32  ;;  %v598_v39 = vsel %vm236_vm0, %v319_v34, -inf  ;;  %v405_v40 = vadd.f32 %v404_v37, %v214_v32  ;;  %v604_v42 = vsel %vm236_vm0, %v2711_v35, -inf }
 0x14e   : > { %599 = vmax.xlane.f32.xlu1 %v598_v39 }
 0x14f   : > { %v595_v41 = vsel %vm236_vm0, %v314_v38, -inf  ;;  %v601_v44 = vsel %vm236_vm0, %v405_v40, -inf }
 0x150   : > { %596 = vmax.xlane.f32.xlu0 %v595_v41 }
 0x152   : > { %605 = vmax.xlane.f32.xlu1 %v604_v42 }
 0x153   : > { %v2355_v43 = vpop.f32.mrf.mxu0 }
 0x154   : > { %v2718_v45 = vadd.f32 %v2355_v43, %v215_v30  ;;  %602 = vmax.xlane.f32.xlu0 %v601_v44 }
 0x155   : > { %v495_v48 = vpop.f32.mrf.mxu0 }
 0x156   : > { %v2362_v46 = vpop.f32.mrf.mxu1  ;;  %v610_v47 = vsel %vm236_vm0, %v2718_v45, -inf  ;;  %v496_v50 = vadd.f32 %v495_v48, %v214_v32 }
 0x157   : > { %v2722_v49 = vadd.f32 %v2362_v46, %v215_v30 }
 0x158   : > { %611 = vmax.xlane.f32.xlu0 %v610_v47  ;;  %v607_v52 = vsel %vm236_vm0, %v496_v50, -inf  ;;  %v586_v53 = vpop.f32.mrf.mxu1 }
 0x159   : > { %v616_v51 = vsel %vm236_vm0, %v2722_v49, -inf  ;;  %v2739_v54 = vadd.f32 %v586_v53, %v214_v32  ;;  %v217_v53 = vld [vmem:[%s2968_s1 + $0x18] sm:$0xff] }
 0x15b   : > { %v613_v55 = vsel %vm236_vm0, %v2739_v54, -inf }
 0x15c   : > { %617 = vmax.xlane.f32.xlu0 %v616_v51 }
 0x160   : > { %608 = vmax.xlane.f32.xlu0 %v607_v52 }
 0x163   : > { %1126 = vrot.lane.b32.xlu1 %v2618_v3, %s2566_s24 }
 0x167   : > { %1122 = vrot.lane.b32.xlu1 %v2622_v5, %s2567_s25 }
 0x176   : > { %1033 = vrot.lane.b32.xlu0 %v2663_v14, %s2567_s25 }
 0x17a   : > { %1219 = vrot.lane.b32.xlu0 %v2629_v6, %s2566_s24 }
 0x17e   : > { %1124 = vrot.lane.b32.xlu0 %v2666_v15, %s2567_s25 }
 0x182   : > { %1310 = vrot.lane.b32.xlu0 %v2635_v8, %s2566_s24 }
 0x186   : > { %1215 = vrot.lane.b32.xlu0 %v227_v22, %s2567_s25 }
 0x18a   : > { %1304 = vrot.lane.b32.xlu0 %v2674_v17, %s2567_s25 }
 0x18b   : > { %614 = vmax.xlane.f32.xlu1 %v613_v55 }
 0x18e   : > { %1467 = vrot.lane.b32.xlu0 %v2614_v2, %s2568_s30 }
 0x192   : > { %1643 = vrot.lane.b32.xlu0 %v2629_v6, %s2568_s30 }
 0x19c   : > { %1217 = vrot.lane.b32.xlu1 %v2631_v7, %s2566_s24 }
 0x1a0   : > { %1213 = vrot.lane.b32.xlu1 %v2671_v16, %s2567_s25 }
 0x1a4   : > { %1308 = vrot.lane.b32.xlu1 %v2637_v9, %s2566_s24  ;;  %s2946_s24 = scalar_lea.vmem %s2971_s4, %s2249_s18 }
 0x1a8   : > { %1306 = vrot.lane.b32.xlu1 %v2693_v23, %s2567_s25 }
 0x1ac   : > { %1469 = vrot.lane.b32.xlu1 %v2610_v0, %s2568_s30 }
 0x1b0   : > { %1556 = vrot.lane.b32.xlu1 %v2612_v1, %s2568_s30 }
 0x1b4   : > { %1554 = vrot.lane.b32.xlu1 %v2618_v3, %s2568_s30 }
 0x1b8   : > { %1641 = vrot.lane.b32.xlu1 %v2631_v7, %s2568_s30 }
 0x1d7   : > { %v600_v62 = vpop.xlane.xlu1 %599 }
 0x1d8   : > { %v620_v63 = vsub.f32 %v319_v34, %v600_v62 }
 0x1d9   : > { %v597_v0 = vpop.xlane.xlu0 %596 }
 0x1da   : > { %v619_v1 = vsub.f32 %v314_v38, %v597_v0  ;;  %v629_v2 = vmul.f32 1.442695, %v620_v63 }
 0x1db   : > { %v606_v4 = vpop.xlane.xlu1 %605 }
 0x1dc   : > { %v627_v5 = vmul.f32 1.442695, %v619_v1  ;;  %v622_v6 = vsub.f32 %v2711_v35, %v606_v4 }
 0x1dd   : > { %v603_v10 = vpop.xlane.xlu0 %602 }
 0x1de   : > { %2492 = vpow2.f32 %v627_v5  ;;  %v621_v3 = vsub.f32 %v405_v40, %v603_v10  ;;  %v633_v7 = vmul.f32 1.442695, %v622_v6 }
 0x1df   : > { %2494 = vpow2.f32 %v629_v2 }
 0x1e0   : > { %v631_v11 = vmul.f32 1.442695, %v621_v3 }
 0x1e1   : > { %v612_v12 = vpop.xlane.xlu0 %611 }
 0x1e2   : > { %2496 = vpow2.f32 %v631_v11  ;;  %v624_v14 = vsub.f32 %v2718_v45, %v612_v12 }
 0x1e3   : > { %2498 = vpow2.f32 %v633_v7 }
 0x1e4   : > { %v637_v18 = vmul.f32 1.442695, %v624_v14 }
 0x1e5   : > { %v618_v13 = vpop.xlane.xlu0 %617 }
 0x1e6   : > { %v626_v30 = vsub.f32 %v2722_v49, %v618_v13 }
 0x1e8   : > { %v641_v34 = vmul.f32 1.442695, %v626_v30 }
 0x1e9   : > { %v609_v15 = vpop.xlane.xlu0 %608 }
 0x1ea   : > { %v623_v16 = vsub.f32 %v496_v50, %v609_v15 }
 0x1eb   : > { %v2770_v17 = vpop.eup %2492 }
 0x1ec   : > { %v2772_v19 = vpop.eup %2494  ;;  %v635_v20 = vmul.f32 1.442695, %v623_v16  ;;  %2367 = vmatprep.mubr.msk.f32.mxu0 %vm236_vm0, %v2770_v17 }
 0x1ed   : > { %2368 = vmatmul.mubr.msk.f32.vlgmr.msra.gmra.mxu0 %vm236_vm0, %v2772_v19  ;;  %v1034_v25 = vpop.permute.xlu0 %1033  ;;  %v646_v30 = vsel %vm236_vm0, %v2772_v19, 0.0 }
 0x1ee   : > { %2500 = vpow2.f32 %v635_v20  ;;  %2378 = vmatpush3.msra.mxu0 %v2699_v27  ;;  %v1127_v27 = vpop.permute.xlu1 %1126 }
 0x1ef   : > { %v2779_v21 = vpop.eup %2496  ;;  %2502 = vpow2.f32 %v637_v18  ;;  %2379 = vmatprep.subr.mxu0 %v842_v56 }
 0x1f0   : > { %v2781_v22 = vpop.eup %2498  ;;  %2380 = vmatpush3.msra.mxu0 %v842_v56  ;;  %2374 = vmatprep.mubr.msk.f32.mxu1 %vm236_vm0, %v2779_v21 }
 0x1f1   : > { %2391 = vmatprep.subr.msk.mxu0 %vm236_vm0, %v1038_v57  ;;  %2375 = vmatmul.mubr.msk.f32.vlgmr.msra.gmra.mxu1 %vm236_vm0, %v2781_v22  ;;  %v1220_v26 = vpop.permute.xlu0 %1219 }
 0x1f2   : > { %2385 = vmatpush3.msra.mxu1 %v2702_v29  ;;  %v1123_v29 = vpop.permute.xlu1 %1122 }
 0x1f3   : > { %2386 = vmatprep.subr.mxu1 %v929_v59 }
 0x1f4   : > { %2387 = vmatpush3.msra.mxu1 %v929_v59 }
 0x1f5   : > { %2398 = vmatprep.subr.msk.mxu1 %vm236_vm0, %v2766_v61  ;;  %v1125_v28 = vpop.permute.xlu0 %1124 }
 0x1f9   : > { %v1311_v33 = vpop.permute.xlu0 %1310 }
 0x1fb   : > { %v2791_v23 = vpop.eup %2500 }
 0x1fc   : > { %v2793_v24 = vpop.eup %2502  ;;  %2381 = vmatprep.mubr.msk.f32.mxu0 %vm236_vm0, %v2791_v23 }
 0x1fd   : > { %2382 = vmatmul.mubr.msk.f32.vlgmr.msra.gmra.mxu0 %vm236_vm0, %v2793_v24  ;;  %v1216_v37 = vpop.permute.xlu0 %1215 }
 0x1fe   : > { %2392 = vmatpush3.xpose.msk.msra.mxu0 %vm236_vm0, %v1038_v57  ;;  %2395 = vmatprep.mubr.msk.f32.mxu0 %vm236_vm0, %v1032_v60 }
 0x1ff   : > { %2393 = vmatprep.subr.msk.mxu0 %vm236_vm0, %v1036_v58 }
 0x201   : > { %v1305_v41 = vpop.permute.xlu0 %1304 }
 0x202   : > { %2394 = vmatpush3.xpose.msk.msra.mxu0 %vm236_vm0, %v1036_v58  ;;  %v216_v58 = vld [vmem:[%s2968_s1 + $0x10] sm:$0xff] }
 0x203   : > { %2405 = vmatprep.subr.msk.mxu0 %vm236_vm0, %v1220_v26 }
 0x205   : > { %2396 = vmatmul.mubr.msk.f32.vlgmr.msra.gmra.mxu0 %vm236_vm0, %v1034_v25  ;;  %v1468_v48 = vpop.permute.xlu0 %1467 }
 0x206   : > { %2406 = vmatpush3.xpose.msk.msra.mxu0 %vm236_vm0, %v1220_v26 }
 0x209   : > { %v2838_v51 = vpop.permute.xlu0 %1643 }
 0x214   : > { %v615_v31 = vpop.xlane.xlu1 %614 }
 0x215   : > { %v625_v32 = vsub.f32 %v2739_v54, %v615_v31 }
 0x217   : > { %v639_v35 = vmul.f32 1.442695, %v625_v32 }
 0x218   : > { %v1218_v36 = vpop.permute.xlu1 %1217 }
 0x219   : > { %2504 = vpow2.f32 %v639_v35  ;;  %2407 = vmatprep.subr.msk.mxu0 %vm236_vm0, %v1218_v36 }
 0x21a   : > { %2506 = vpow2.f32 %v641_v34  ;;  %2408 = vmatpush3.xpose.msk.msra.mxu0 %vm236_vm0, %v1218_v36 }
 0x21c   : > { %v1214_v38 = vpop.permute.xlu1 %1213 }
 0x21d   : > { %2409 = vmatprep.mubr.msk.f32.mxu0 %vm236_vm0, %v1214_v38 }
 0x21e   : > { %2410 = vmatmul.mubr.msk.f32.vlgmr.msra.gmra.mxu0 %vm236_vm0, %v1216_v37 }
 0x220   : > { %v1309_v42 = vpop.permute.xlu1 %1308 }
 0x224   : > { %v1307_v43 = vpop.permute.xlu1 %1306 }
 0x226   : > { %v2812_v39 = vpop.eup %2504 }
 0x227   : > { %v2814_v40 = vpop.eup %2506  ;;  %2388 = vmatprep.mubr.msk.f32.mxu1 %vm236_vm0, %v2812_v39 }
 0x228   : > { %2389 = vmatmul.mubr.msk.f32.vlgmr.msra.gmra.mxu1 %vm236_vm0, %v2814_v40  ;;  %v1470_v45 = vpop.permute.xlu1 %1469 }
 0x229   : > { %2399 = vmatpush3.xpose.msk.msra.mxu1 %vm236_vm0, %v2766_v61  ;;  %2402 = vmatprep.mubr.msk.f32.mxu1 %vm236_vm0, %v1123_v29  ;;  %v643_v29 = vsel %vm236_vm0, %v2770_v17, 0.0 }
 0x22a   : > { %2400 = vmatprep.subr.msk.mxu1 %vm236_vm0, %v1127_v27  ;;  %2419 = vmatprep.subr.mxu0 %v1470_v45 }
 0x22b   : > { %2420 = vmatpush3.msra.mxu0 %v1470_v45 }
 0x22c   : > { %v1557_v47 = vpop.permute.xlu1 %1556  ;;  %2421 = vmatprep.subr.mxu0 %v1468_v48 }
 0x22d   : > { %2401 = vmatpush3.xpose.msk.msra.mxu1 %vm236_vm0, %v1127_v27  ;;  %2422 = vmatpush3.msra.mxu0 %v1468_v48  ;;  %v649_v27 = vsel %vm236_vm0, %v2779_v21, 0.0 }
 0x22e   : > { %2412 = vmatprep.subr.msk.mxu1 %vm236_vm0, %v1311_v33  ;;  %2433 = vmatprep.subr.mxu0 %v2838_v51 }
 0x230   : > { %2403 = vmatmul.mubr.msk.f32.vlgmr.msra.gmra.mxu1 %vm236_vm0, %v1125_v28  ;;  %v1555_v50 = vpop.permute.xlu1 %1554  ;;  %v652_v28 = vsel %vm236_vm0, %v2781_v22, 0.0 }
 0x231   : > { %2413 = vmatpush3.xpose.msk.msra.mxu1 %vm236_vm0, %v1311_v33  ;;  %2416 = vmatprep.mubr.msk.f32.mxu1 %vm236_vm0, %v1305_v41 }
 0x232   : > { %2414 = vmatprep.subr.msk.mxu1 %vm236_vm0, %v1309_v42 }
 0x235   : > { %2415 = vmatpush3.xpose.msk.msra.mxu1 %vm236_vm0, %v1309_v42 }
 0x236   : > { %2426 = vmatprep.subr.mxu1 %v1557_v47 }
 0x238   : > { %2417 = vmatmul.mubr.msk.f32.vlgmr.msra.gmra.mxu1 %vm236_vm0, %v1307_v43 }
 0x239   : > { %2427 = vmatpush3.msra.mxu1 %v1557_v47 }
 0x23a   : > { %2428 = vmatprep.subr.mxu1 %v1555_v50 }
 0x23b   : > { %2429 = vmatpush3.msra.mxu1 %v1555_v50 }
 0x2ad   : > { %v2832_v44 = vpop.f32.mrf.mxu0 }
 0x2af   : > { %v2834_v46 = vpop.f32.mrf.mxu0 }
 0x2b1   : > { %v2851_v63 = vpop.f32.mrf.mxu1 }
 0x2b3   : > { %v2853_v0 = vpop.f32.mrf.mxu1 }
 0x2bd   : > { %v2836_v49 = vpop.f32.mrf.mxu0 }
 0x2bf   : > { %v2840_v52 = vpop.f32.mrf.mxu0 }
 0x2c5   : > { %v2397_v54 = vpop.f32.mrf.mxu0 }
 0x2c6   : > { %v1119_v55 = vadd.f32 %v2397_v54, %v217_v53 }
 0x2c7   : > { %v1113_v57 = vpop.f32.mrf.mxu0 }
 0x2c8   : > { %v1398_v56 = vsel %vm236_vm0, %v1119_v55, -inf  ;;  %v1114_v6 = vadd.f32 %v1113_v57, %v216_v58 }
 0x2c9   : > { %1399 = vmax.xlane.f32.xlu1 %v1398_v56 }
 0x2ca   : > { %v1395_v11 = vsel %vm236_vm0, %v1114_v6, -inf }
 0x2de   : > { %v2411_v59 = vpop.f32.mrf.mxu0 }
 0x2df   : > { %v1301_v14 = vadd.f32 %v2411_v59, %v217_v53 }
 0x2e0   : > { %v1295_v60 = vpop.f32.mrf.mxu0 }
 0x2e1   : > { %v1296_v61 = vadd.f32 %v1295_v60, %v216_v58  ;;  %v1410_v25 = vsel %vm236_vm0, %v1301_v14, -inf }
 0x2e3   : > { %v1407_v62 = vsel %vm236_vm0, %v1296_v61, -inf }
 0x2e4   : > { %1408 = vmax.xlane.f32.xlu1 %v1407_v62 }
 0x2e8   : > { %v2855_v1 = vpop.f32.mrf.mxu1 }
 0x2ea   : > { %v2857_v2 = vpop.f32.mrf.mxu1 }
 0x2f0   : > { %v2404_v4 = vpop.f32.mrf.mxu1 }
 0x2f1   : > { %v1210_v5 = vadd.f32 %v2404_v4, %v217_v53 }
 0x2f2   : > { %v1204_v3 = vpop.f32.mrf.mxu1 }
 0x2f3   : > { %v1404_v10 = vsel %vm236_vm0, %v1210_v5, -inf  ;;  %v1205_v7 = vadd.f32 %v1204_v3, %v216_v58 }
 0x2f4   : > { %1405 = vmax.xlane.f32.xlu0 %v1404_v10  ;;  %v655_v10 = vsel %vm236_vm0, %v2791_v23, 0.0  ;;  %v658_v23 = vsel %vm236_vm0, %v2793_v24, 0.0 }
 0x2f5   : > { %v1401_v16 = vsel %vm236_vm0, %v1205_v7, -inf }
 0x2f8   : > { %1396 = vmax.xlane.f32.xlu0 %v1395_v11  ;;  %v2418_v12 = vpop.f32.mrf.mxu1 }
 0x2f9   : > { %v1392_v20 = vadd.f32 %v2418_v12, %v217_v53  ;;  %v219_v12 = vld [vmem:[%s2969_s2 + $0x8] sm:$0xff] }
 0x2fa   : > { %v1386_v13 = vpop.f32.mrf.mxu1 }
 0x2fb   : > { %v1387_v15 = vadd.f32 %v1386_v13, %v216_v58  ;;  %v1416_v26 = vsel %vm236_vm0, %v1392_v20, -inf }
 0x2fc   : > { %1402 = vmax.xlane.f32.xlu0 %v1401_v16  ;;  %v661_v16 = vsel %vm236_vm0, %v2812_v39, 0.0 }
 0x2fd   : > { %v1413_v18 = vsel %vm236_vm0, %v1387_v15, -inf }
 0x2fe   : > { %1414 = vmax.xlane.f32.xlu1 %v1413_v18  ;;  %v664_v18 = vsel %vm236_vm0, %v2814_v40, 0.0 }
 0x300   : > { %1411 = vmax.xlane.f32.xlu0 %v1410_v25 }
 0x304   : > { %1417 = vmax.xlane.f32.xlu0 %v1416_v26 }
 0x30f   : > { %1728 = vrot.lane.b32.xlu1 %v2637_v9, %s2568_s30  ;;  %v1642_v9 = vpop.permute.xlu1 %1641 }
 0x31a   : > { %1730 = vrot.lane.b32.xlu0 %v2635_v8, %s2568_s30 }
 0x333   : > { %650 = vadd.xlane.f32.xlu1 %v649_v27 }
 0x337   : > { %653 = vadd.xlane.f32.xlu1 %v652_v28 }
 0x339   : > { %644 = vadd.xlane.f32.xlu0 %v643_v29 }
 0x33d   : > { %647 = vadd.xlane.f32.xlu0 %v646_v30 }
 0x352   : > { %v1400_v31 = vpop.xlane.xlu1 %1399 }
 0x353   : > { %v1420_v32 = vsub.f32 %v1119_v55, %v1400_v31 }
 0x355   : > { %v1429_v8 = vmul.f32 1.442695, %v1420_v32 }
 0x357   : > { %2508 = vpow2.f32 %v1429_v8 }
 0x364   : > { %v2509_v33 = vpop.eup %2508 }
 0x365   : > { %v1446_v21 = vsel %vm236_vm0, %v2509_v33, 0.0 }
 0x366   : > { %1447 = vadd.xlane.f32.xlu0 %v1446_v21 }
 0x36d   : > { %v1409_v34 = vpop.xlane.xlu1 %1408 }
 0x36e   : > { %v1423_v36 = vsub.f32 %v1296_v61, %v1409_v34 }
 0x370   : > { %v1435_v41 = vmul.f32 1.442695, %v1423_v36 }
 0x37d   : > { %v1406_v22 = vpop.xlane.xlu0 %1405 }
 0x37e   : > { %v1422_v35 = vsub.f32 %v1210_v5, %v1406_v22 }
 0x380   : > { %v1433_v37 = vmul.f32 1.442695, %v1422_v35 }
 0x381   : > { %v1397_v17 = vpop.xlane.xlu0 %1396 }
 0x382   : > { %2510 = vpow2.f32 %v1433_v37  ;;  %v1419_v38 = vsub.f32 %v1114_v6, %v1397_v17 }
 0x384   : > { %v1427_v19 = vmul.f32 1.442695, %v1419_v38 }
 0x385   : > { %v1403_v42 = vpop.xlane.xlu0 %1402 }
 0x386   : > { %2512 = vpow2.f32 %v1427_v19  ;;  %v1421_v43 = vsub.f32 %v1205_v7, %v1403_v42 }
 0x387   : > { %v1415_v45 = vpop.xlane.xlu1 %1414  ;;  %2514 = vpow2.f32 %v1435_v41 }
 0x388   : > { %v1431_v47 = vmul.f32 1.442695, %v1421_v43  ;;  %v1425_v48 = vsub.f32 %v1387_v15, %v1415_v45  ;;  %v218_v15 = vld [vmem:[%s2969_s2] sm:$0xff] }
 0x389   : > { %v1412_v50 = vpop.xlane.xlu0 %1411 }
 0x38a   : > { %2516 = vpow2.f32 %v1431_v47  ;;  %v1439_v53 = vmul.f32 1.442695, %v1425_v48  ;;  %v1424_v54 = vsub.f32 %v1301_v14, %v1412_v50 }
 0x38b   : > { %v1729_v11 = vpop.permute.xlu1 %1728 }
 0x38c   : > { %2518 = vpow2.f32 %v1439_v53  ;;  %v1437_v55 = vmul.f32 1.442695, %v1424_v54 }
 0x38d   : > { %v1418_v56 = vpop.xlane.xlu0 %1417 }
 0x38e   : > { %2520 = vpow2.f32 %v1437_v55  ;;  %v1426_v57 = vsub.f32 %v1392_v20, %v1418_v56 }
 0x38f   : > { %v2511_v58 = vpop.eup %2510 }
 0x390   : > { %v1441_v59 = vmul.f32 1.442695, %v1426_v57  ;;  %v1452_v60 = vsel %vm236_vm0, %v2511_v58, 0.0 }
 0x391   : > { %1453 = vadd.xlane.f32.xlu0 %v1452_v60  ;;  %v1731_v61 = vpop.permute.xlu0 %1730 }
 0x392   : > { %2522 = vpow2.f32 %v1441_v59  ;;  %2440 = vmatprep.subr.mxu1 %v1731_v61 }
 0x393   : > { %v2513_v62 = vpop.eup %2512 }
 0x394   : > { %2423 = vmatprep.mubr.msk.f32.mxu0 %vm236_vm0, %v2513_v62  ;;  %v1443_v4 = vsel %vm236_vm0, %v2513_v62, 0.0  ;;  %v2515_v5 = vpop.eup %2514 }
 0x395   : > { %2424 = vmatmul.mubr.msk.f32.vlgmr.msra.gmra.mxu0 %vm236_vm0, %v2509_v33  ;;  %1444 = vadd.xlane.f32.xlu1 %v1443_v4  ;;  %v1455_v24 = vsel %vm236_vm0, %v2515_v5, 0.0  ;;  %v221_v33 = vld [vmem:[%s2969_s2 + $0x18] sm:$0xff] }
 0x396   : > { %2434 = vmatpush3.msra.mxu0 %v2838_v51  ;;  %2437 = vmatprep.mubr.msk.f32.mxu0 %vm236_vm0, %v2515_v5 }
 0x397   : > { %v2517_v6 = vpop.eup %2516  ;;  %2435 = vmatprep.subr.mxu0 %v1642_v9 }
 0x398   : > { %2436 = vmatpush3.msra.mxu0 %v1642_v9  ;;  %2430 = vmatprep.mubr.msk.f32.mxu1 %vm236_vm0, %v2517_v6  ;;  %v1449_v3 = vsel %vm236_vm0, %v2517_v6, 0.0 }
 0x399   : > { %v2519_v7 = vpop.eup %2518  ;;  %656 = vadd.xlane.f32.xlu1 %v655_v10  ;;  %2431 = vmatmul.mubr.msk.f32.vlgmr.msra.gmra.mxu1 %vm236_vm0, %v2511_v58 }
 0x39a   : > { %1450 = vadd.xlane.f32.xlu0 %v1449_v3  ;;  %2444 = vmatprep.mubr.msk.f32.mxu1 %vm236_vm0, %v2519_v7  ;;  %v1461_v20 = vsel %vm236_vm0, %v2519_v7, 0.0 }
 0x39b   : > { %v2521_v51 = vpop.eup %2520  ;;  %2441 = vmatpush3.msra.mxu1 %v1731_v61  ;;  %2447 = vmatprep.subr.mxu0 %v221_v33 }
 0x39c   : > { %2438 = vmatmul.mubr.msk.f32.vlgmr.msra.gmra.mxu0 %vm236_vm0, %v2521_v51  ;;  %v1458_v13 = vsel %vm236_vm0, %v2521_v51, 0.0  ;;  %2442 = vmatprep.subr.mxu1 %v1729_v11 }
 0x39d   : > { %659 = vadd.xlane.f32.xlu1 %v658_v23  ;;  %2443 = vmatpush3.msra.mxu1 %v1729_v11 }
 0x39e   : > { %1459 = vadd.xlane.f32.xlu0 %v1458_v13  ;;  %2463 = vmatprep.subr.mxu1 %v219_v12 }
 0x39f   : > { %v2523_v14 = vpop.eup %2522  ;;  %2448 = vmatpush3.msra.mxu0 %v221_v33 }
 0x3a0   : > { %2445 = vmatmul.mubr.msk.f32.vlgmr.msra.gmra.mxu1 %vm236_vm0, %v2523_v14  ;;  %v1464_v25 = vsel %vm236_vm0, %v2523_v14, 0.0 }
 0x3a1   : > { %662 = vadd.xlane.f32.xlu1 %v661_v16  ;;  %2464 = vmatpush3.msra.mxu1 %v219_v12 }
 0x3a2   : > { %1456 = vadd.xlane.f32.xlu0 %v1455_v24  ;;  %2465 = vmatprep.subr.mxu1 %v218_v15 }
 0x3a3   : > { %2466 = vmatpush3.msra.mxu1 %v218_v15 }
 0x3a5   : > { %665 = vadd.xlane.f32.xlu1 %v664_v18 }
 0x3a6   : > { %1462 = vadd.xlane.f32.xlu0 %v1461_v20  ;;  %v2246_v20 = vld [vmem:[%s2970_s3] ss:$0 sm:$0xff] }
 0x3aa   : > { %1465 = vadd.xlane.f32.xlu0 %v1464_v25 }
 0x3bc   : > { %v651_v26 = vpop.xlane.xlu1 %650 }
 0x3c0   : > { %v654_v39 = vpop.xlane.xlu1 %653 }
 0x3c2   : > { %v645_v27 = vpop.xlane.xlu0 %644 }
 0x3c3   : > { %2524 = vrcp.f32 %v645_v27 }
 0x3c4   : > { %2526 = vrcp.f32 %v651_v26 }
 0x3c6   : > { %v648_v28 = vpop.xlane.xlu0 %647 }
 0x3c7   : > { %2528 = vrcp.f32 %v648_v28 }
 0x3c8   : > { %2530 = vrcp.f32 %v654_v39 }
 0x3d0   : > { %v2525_v29 = vpop.eup %2524 }
 0x3d1   : > { %v1023_v30 = vmul.f32 %v2525_v29, %v2834_v46  ;;  %v2527_v9 = vpop.eup %2526  ;;  %v220_v46 = vld [vmem:[%s2969_s2 + $0x10] sm:$0xff] }
 0x3d2   : > { %v1025_v8 = vmul.f32 %v2527_v9, %v2853_v0  ;;  %2449 = vmatprep.subr.mxu0 %v220_v46 }
 0x3d3   : > { %2467 = vmatprep.mubr.msk.f32.mxu1 %vm236_vm0, %v1023_v30  ;;  %2450 = vmatpush3.msra.mxu0 %v220_v46 }
 0x3d4   : > { %v2529_v40 = vpop.eup %2528 }
 0x3d5   : > { %v1024_v31 = vmul.f32 %v2529_v40, %v2832_v44  ;;  %v2531_v32 = vpop.eup %2530 }
 0x3d6   : > { %v1026_v21 = vmul.f32 %v2531_v32, %v2851_v63 }
 0x3d7   : > { %2468 = vmatmul.mubr.msk.f32.vlgmr.msra.gmra.mxu1 %vm236_vm0, %v1024_v31 }
 0x3d8   : > { %2470 = vmatprep.mubr.msk.f32.mxu1 %vm236_vm0, %v1025_v8 }
 0x3db   : > { %2471 = vmatmul.mubr.msk.f32.gmra.mxu1 %vm236_vm0, %v1026_v21 }
 0x3ef   : > { %v1448_v63 = vpop.xlane.xlu0 %1447 }
 0x41a   : > { %v1454_v19 = vpop.xlane.xlu0 %1453 }
 0x41e   : > { %v1445_v44 = vpop.xlane.xlu1 %1444 }
 0x422   : > { %v657_v0 = vpop.xlane.xlu1 %656 }
 0x423   : > { %2532 = vrcp.f32 %v657_v0  ;;  %v1451_v45 = vpop.xlane.xlu0 %1450 }
 0x426   : > { %v660_v34 = vpop.xlane.xlu1 %659 }
 0x427   : > { %2534 = vrcp.f32 %v660_v34 }
 0x42a   : > { %v663_v22 = vpop.xlane.xlu1 %662 }
 0x42b   : > { %2536 = vrcp.f32 %v663_v22 }
 0x42e   : > { %v666_v35 = vpop.xlane.xlu1 %665 }
 0x42f   : > { %2538 = vrcp.f32 %v666_v35 }
 0x430   : > { %v2533_v36 = vpop.eup %2532  ;;  %2540 = vrcp.f32 %v1445_v44 }
 0x431   : > { %v1027_v37 = vmul.f32 %v2533_v36, %v2840_v52  ;;  %v1460_v52 = vpop.xlane.xlu0 %1459  ;;  %2542 = vrcp.f32 %v1448_v63 }
 0x432   : > { %2544 = vrcp.f32 %v1451_v45 }
 0x433   : > { %2473 = vmatprep.mubr.msk.f32.mxu1 %vm236_vm0, %v1027_v37  ;;  %2546 = vrcp.f32 %v1454_v19 }
 0x434   : > { %v2535_v17 = vpop.eup %2534 }
 0x435   : > { %v1028_v38 = vmul.f32 %v2535_v17, %v2836_v49  ;;  %v1457_v48 = vpop.xlane.xlu0 %1456 }
 0x436   : > { %2548 = vrcp.f32 %v1457_v48 }
 0x437   : > { %2474 = vmatmul.mubr.msk.f32.gmra.mxu1 %vm236_vm0, %v1028_v38  ;;  %2550 = vrcp.f32 %v1460_v52 }
 0x438   : > { %v2537_v41 = vpop.eup %2536 }
 0x439   : > { %v1029_v42 = vmul.f32 %v2537_v41, %v2857_v2  ;;  %v1463_v49 = vpop.xlane.xlu0 %1462 }
 0x43a   : > { %2552 = vrcp.f32 %v1463_v49 }
 0x43b   : > { %2476 = vmatprep.mubr.msk.f32.mxu1 %vm236_vm0, %v1029_v42 }
 0x43c   : > { %v2539_v43 = vpop.eup %2538 }
 0x43d   : > { %v1030_v47 = vmul.f32 %v2539_v43, %v2855_v1  ;;  %v1466_v50 = vpop.xlane.xlu0 %1465  ;;  %v2541_v53 = vpop.eup %2540 }
 0x43e   : > { %2554 = vrcp.f32 %v1466_v50  ;;  %v2543_v55 = vpop.eup %2542 }
 0x43f   : > { %2477 = vmatmul.mubr.msk.f32.gmra.mxu1 %vm236_vm0, %v1030_v47  ;;  %v2545_v58 = vpop.eup %2544 }
 0x440   : > { %v2547_v60 = vpop.eup %2546 }
 0x443   : > { %v2549_v5 = vpop.eup %2548 }
 0x444   : > { %v2551_v3 = vpop.eup %2550 }
 0x447   : > { %v2553_v51 = vpop.eup %2552 }
 0x44b   : > { %v2555_v13 = vpop.eup %2554 }
 0x455   : > { %v2425_v2 = vpop.f32.mrf.mxu0 }
 0x456   : > { %v1824_v1 = vmul.f32 %v2543_v55, %v2425_v2 }
 0x457   : > { %v1545_v54 = vpop.f32.mrf.mxu0 }
 0x458   : > { %v1823_v56 = vmul.f32 %v2541_v53, %v1545_v54 }
 0x459   : > { %v2432_v57 = vpop.f32.mrf.mxu1 }
 0x45a   : > { %2451 = vmatprep.mubr.msk.f32.mxu0 %vm236_vm0, %v1823_v56  ;;  %v1826_v4 = vmul.f32 %v2547_v60, %v2432_v57 }
 0x45b   : > { %v1632_v59 = vpop.f32.mrf.mxu1  ;;  %2452 = vmatmul.mubr.msk.f32.vlgmr.msra.gmra.mxu0 %vm236_vm0, %v1824_v1 }
 0x45c   : > { %v1825_v61 = vmul.f32 %v2545_v58, %v1632_v59  ;;  %v2439_v62 = vpop.f32.mrf.mxu0 }
 0x45d   : > { %v1828_v11 = vmul.f32 %v2551_v3, %v2439_v62 }
 0x45e   : > { %v1719_v6 = vpop.f32.mrf.mxu0  ;;  %2454 = vmatprep.mubr.msk.f32.mxu0 %vm236_vm0, %v1825_v61 }
 0x45f   : > { %v1827_v10 = vmul.f32 %v2549_v5, %v1719_v6  ;;  %2455 = vmatmul.mubr.msk.f32.gmra.mxu0 %vm236_vm0, %v1826_v4 }
 0x460   : > { %v2446_v7 = vpop.f32.mrf.mxu1 }
 0x461   : > { %2457 = vmatprep.mubr.msk.f32.mxu0 %vm236_vm0, %v1827_v10  ;;  %v1830_v14 = vmul.f32 %v2555_v13, %v2446_v7 }
 0x462   : > { %v1806_v12 = vpop.f32.mrf.mxu1 }
 0x463   : > { %v1829_v23 = vmul.f32 %v2553_v51, %v1806_v12  ;;  %2458 = vmatmul.mubr.msk.f32.gmra.mxu0 %vm236_vm0, %v1828_v11 }
 0x465   : > { %2460 = vmatprep.mubr.msk.f32.mxu0 %vm236_vm0, %v1829_v23 }
 0x467   : > { %2461 = vmatmul.mubr.msk.f32.gmra.mxu0 %vm236_vm0, %v1830_v14 }
 0x497   : > { %v2469_v15 = vpop.f32.mrf.mxu1 }
 0x499   : > { %v2050_v16 = vpop.f32.mrf.mxu1 }
 0x49b   : > { %v2472_v24 = vpop.f32.mrf.mxu1 }
 0x49d   : > { %v2060_v26 = vpop.f32.mrf.mxu1 }
 0x4f7   : > { %v2475_v29 = vpop.f32.mrf.mxu1 }
 0x4f9   : > { %v2070_v33 = vpop.f32.mrf.mxu1 }
 0x4ff   : > { %v2478_v0 = vpop.f32.mrf.mxu1 }
 0x501   : > { %v2080_v63 = vpop.f32.mrf.mxu1 }
 0x51b   : > { %v2453_v18 = vpop.f32.mrf.mxu0 }
 0x51c   : > { %v2056_v25 = vadd.f32 %v2469_v15, %v2453_v18 }
 0x51d   : > { %v1921_v27 = vpop.f32.mrf.mxu0 }
 0x51e   : > { %v2097_v39 = vadd.f32 %v2246_v20, %v2056_v25  ;;  %v2051_v28 = vadd.f32 %v2050_v16, %v1921_v27 }
 0x51f   : > { %v2456_v30 = vpop.f32.mrf.mxu0 }
 0x520   : > { %2106 = vst.msk [vmem:[%s2946_s24 + $0x8] sm:$0xff] %vm2104_vm1, %v2097_v39  ;;  %v2096_v9 = vadd.f32 %v2246_v20, %v2051_v28  ;;  %v2066_v40 = vadd.f32 %v2472_v24, %v2456_v30 }
 0x521   : > { %v1931_v31 = vpop.f32.mrf.mxu0 }
 0x522   : > { %2105 = vst.msk [vmem:[%s2946_s24] sm:$0xff] %vm2104_vm1, %v2096_v9  ;;  %v2099_v32 = vadd.f32 %v2246_v20, %v2066_v40  ;;  %v2061_v8 = vadd.f32 %v2060_v26, %v1931_v31 }
 0x523   : > { %v2459_v46 = vpop.f32.mrf.mxu0 }
 0x524   : > { %2108 = vst.msk [vmem:[%s2946_s24 + $0x18] sm:$0xff] %vm2104_vm1, %v2099_v32  ;;  %v2098_v21 = vadd.f32 %v2246_v20, %v2061_v8  ;;  %v2076_v44 = vadd.f32 %v2475_v29, %v2459_v46 }
 0x525   : > { %v1941_v34 = vpop.f32.mrf.mxu0 }
 0x526   : > { %2107 = vst.msk [vmem:[%s2946_s24 + $0x10] sm:$0xff] %vm2104_vm1, %v2098_v21  ;;  %v2101_v22 = vadd.f32 %v2246_v20, %v2076_v44  ;;  %v2071_v35 = vadd.f32 %v2070_v33, %v1941_v34 }
 0x527   : > { %v2462_v36 = vpop.f32.mrf.mxu0 }
 0x528   : > { %2110 = vst.msk [vmem:[%s2946_s24 + $0x28] sm:$0xff] %vm2104_vm1, %v2101_v22  ;;  %v2100_v37 = vadd.f32 %v2246_v20, %v2071_v35  ;;  %v2086_v17 = vadd.f32 %v2478_v0, %v2462_v36 }
 0x529   : > { %v1951_v38 = vpop.f32.mrf.mxu0 }
 0x52a   : > { %2109 = vst.msk [vmem:[%s2946_s24 + $0x20] sm:$0xff] %vm2104_vm1, %v2100_v37  ;;  %v2103_v41 = vadd.f32 %v2246_v20, %v2086_v17  ;;  %v2081_v19 = vadd.f32 %v2080_v63, %v1951_v38 }
 0x52c   : > { %2112 = vst.msk [vmem:[%s2946_s24 + $0x38] sm:$0xff] %vm2104_vm1, %v2103_v41  ;;  %v2102_v42 = vadd.f32 %v2246_v20, %v2081_v19 }
 0x52e   : > { %2111 = vst.msk [vmem:[%s2946_s24 + $0x30] sm:$0xff] %vm2104_vm1, %v2102_v42 }
 0x52f PF: > { %s14_s15 = sadd.s32 1, %s2562_s15  }
 0x530   : > { %p11_p4 = scmp.ge.s32.totalorder %s14_s15, 4  }
 0x532   :  { %13 = sbr.rel (!%p11_p4) target bundleno = 1 (0x1), region = 66 }

// kernel: swin_transformer_forward.26
= control target key start
LH: loop header
LB: loop body
LE: loop exit
PB: predicated region body
PF: predicated region fallthrough
CT: control target
= control target key end

     0   :  { %s755_s12 = smov 0   ;;  %s757_s13 = smov 0   ;;  %s873_s0 = inlined_call_operand.vmem [shape: f32[128,128], index: 0, kind: input, shape index: {}]   ;;  %s874_s1 = inlined_call_operand.vmem [shape: f32[128,32], index: 1, kind: input, shape index: {}]   ;;  %s875_s2 = inlined_call_operand.vmem [shape: f32[1,32], index: 2, kind: input, shape index: {}]   ;;  %s876_s3 = inlined_call_operand.vmem [shape: f32[128,32], index: 3, kind: output, shape index: {}]  }
   0x1   :  { %s759_s14 = smov 0  }
   0x2 LB: > { %s32_s15 = sadd.s32 1, %s728_s13  ;;  %p577_p0 = scmp.ge.s32.totalorder %s732_s14, 1  ;;  %s732_s14 = sphi %s759_s14, %s13_s14   ;;  %s728_s13 = sphi %s757_s13, %s878_s13   ;;  %s724_s12 = sphi %s755_s12, %s877_s12  }
   0x3   : > { %p34_p1 = scmp.ge.s32.totalorder %s32_s15, 2  ;;  %p188_p2 = scmp.lt.s32.totalorder %s732_s14, 3 }
   0x5   : > { %s880_s15 = smov (%p34_p1, %s32_s15), 0  ;;  %p189_p3 = pnand %p577_p0, %p188_p2 }
   0x6   : > { %s578_s5 = sshll.u32 (!%p189_p3), %s724_s12, 3 }
   0x7   : > { %192 = sbr.rel (%p189_p3) target bundleno = 259 (0x103), region = 32  ;;  %p230_p4 = scmp.lt.s32.totalorder (!%p189_p3), %s578_s5, 15 }
   0xc   : > { %v303_v0 = vld [vmem:[%s874_s1 + $0x78] sm:$0xff]  ;;  %v302_v1 = vld [vmem:[%s874_s1 + $0x70] sm:$0xff]  ;;  %vm263_vm0 = vcmask 261120   ;;  %v734_v2 = vmov 0.0   ;;  %v301_v3 = vld [vmem:[%s874_s1 + $0x68] sm:$0xff]  ;;  %s882_s5 = smov (!%p230_p4, %s578_s5), 15 }
   0xd   : > { %609 = vmatprep.subr.mxu0 %v303_v0  ;;  %653 = vmatprep.subr.mxu1 %v303_v0  ;;  %265 = vst.msk [vmem:[#allocation2 + $0x8] sm:$0xff] %vm263_vm0, %v734_v2  ;;  %264 = vst.msk [vmem:[#allocation2] sm:$0xff] %vm263_vm0, %v734_v2  ;;  %v300_v4 = vld [vmem:[%s874_s1 + $0x60] sm:$0xff]  ;;  %v299_v5 = vld [vmem:[%s874_s1 + $0x58] sm:$0xff]  ;;  %s579_s21 = sshll.u32 %s882_s5, 3 }
   0xe   : > { %266 = vst.msk [vmem:[#allocation2 + $0x10] sm:$0xff] %vm263_vm0, %v734_v2  ;;  %267 = vst.msk [vmem:[#allocation2 + $0x18] sm:$0xff] %vm263_vm0, %v734_v2  ;;  %610 = vmatpush3.msra.mxu0 %v303_v0  ;;  %669 = vmatpush3.msra.mxu1 %v303_v0  ;;  %v298_v6 = vld [vmem:[%s874_s1 + $0x50] sm:$0xff]  ;;  %v297_v7 = vld [vmem:[%s874_s1 + $0x48] sm:$0xff]  ;;  %s236_s26 = scalar_lea.vmem %s873_s0, %s579_s21  ;;  %s257_s7 = scalar_lea.vmem %s876_s3, %s579_s21 }
   0xf   : > { %268 = vst.msk [vmem:[#allocation2 + $0x20] sm:$0xff] %vm263_vm0, %v734_v2  ;;  %269 = vst.msk [vmem:[#allocation2 + $0x28] sm:$0xff] %vm263_vm0, %v734_v2  ;;  %611 = vmatprep.subr.mxu0 %v302_v1  ;;  %654 = vmatprep.subr.mxu1 %v302_v1  ;;  %v296_v8 = vld [vmem:[%s874_s1 + $0x40] sm:$0xff]  ;;  %v295_v9 = vld [vmem:[%s874_s1 + $0x38] sm:$0xff] }
  0x10   : > { %270 = vst.msk [vmem:[#allocation2 + $0x30] sm:$0xff] %vm263_vm0, %v734_v2  ;;  %271 = vst.msk [vmem:[#allocation2 + $0x38] sm:$0xff] %vm263_vm0, %v734_v2  ;;  %612 = vmatpush3.msra.mxu0 %v302_v1  ;;  %670 = vmatpush3.msra.mxu1 %v302_v1  ;;  %v294_v10 = vld [vmem:[%s874_s1 + $0x30] sm:$0xff]  ;;  %v293_v11 = vld [vmem:[%s874_s1 + $0x28] sm:$0xff] }
  0x11   : > { %613 = vmatprep.subr.mxu0 %v301_v3  ;;  %655 = vmatprep.subr.mxu1 %v301_v3  ;;  %v292_v12 = vld [vmem:[%s874_s1 + $0x20] sm:$0xff]  ;;  %v291_v13 = vld [vmem:[%s874_s1 + $0x18] sm:$0xff]  ;;  %v290_v14 = vld [vmem:[%s874_s1 + $0x10] sm:$0xff] }
  0x12   : > { %614 = vmatpush3.msra.mxu0 %v301_v3  ;;  %671 = vmatpush3.msra.mxu1 %v301_v3  ;;  %v289_v15 = vld [vmem:[%s874_s1 + $0x8] sm:$0xff]  ;;  %v288_v16 = vld [vmem:[%s874_s1] sm:$0xff]  ;;  %v282_v21 = vld [vmem:[%s236_s26 + $0x10] sm:$0xff] }
  0x13   : > { %615 = vmatprep.subr.mxu0 %v300_v4  ;;  %656 = vmatprep.subr.mxu1 %v300_v4  ;;  %v280_v17 = vld [vmem:[%s236_s26] sm:$0xff]  ;;  %v281_v19 = vld [vmem:[%s236_s26 + $0x8] sm:$0xff]  ;;  %v286_v22 = vld [vmem:[%s236_s26 + $0x30] sm:$0xff] }
  0x14   : > { %616 = vmatpush3.msra.mxu0 %v300_v4  ;;  %672 = vmatpush3.msra.mxu1 %v300_v4  ;;  %v284_v18 = vld [vmem:[%s236_s26 + $0x20] sm:$0xff]  ;;  %v285_v20 = vld [vmem:[%s236_s26 + $0x28] sm:$0xff]  ;;  %v283_v23 = vld [vmem:[%s236_s26 + $0x18] sm:$0xff] }
  0x15   : > { %617 = vmatprep.subr.mxu0 %v299_v5  ;;  %657 = vmatprep.subr.mxu1 %v299_v5  ;;  %v287_v24 = vld [vmem:[%s236_s26 + $0x38] sm:$0xff]  ;;  %v273_v25 = vld [vmem:[#allocation2 + $0x8] sm:$0xff]  ;;  %v272_v29 = vld [vmem:[#allocation2] sm:$0xff] }
  0x16   : > { %618 = vmatpush3.msra.mxu0 %v299_v5  ;;  %673 = vmatpush3.msra.mxu1 %v299_v5  ;;  %v277_v26 = vld [vmem:[#allocation2 + $0x28] sm:$0xff]  ;;  %v276_v30 = vld [vmem:[#allocation2 + $0x20] sm:$0xff]  ;;  %v275_v35 = vld [vmem:[#allocation2 + $0x18] sm:$0xff] }
  0x17   : > { %619 = vmatprep.subr.mxu0 %v298_v6  ;;  %658 = vmatprep.subr.mxu1 %v298_v6  ;;  %v279_v36 = vld [vmem:[#allocation2 + $0x38] sm:$0xff]  ;;  %v274_v41 = vld [vmem:[#allocation2 + $0x10] sm:$0xff]  ;;  %v582_v49 = vld [vmem:[%s875_s2] ss:$0 sm:$0xff] }
  0x18   : > { %620 = vmatpush3.msra.mxu0 %v298_v6  ;;  %674 = vmatpush3.msra.mxu1 %v298_v6  ;;  %v278_v42 = vld [vmem:[#allocation2 + $0x30] sm:$0xff] }
  0x19   : > { %621 = vmatprep.subr.mxu0 %v297_v7  ;;  %659 = vmatprep.subr.mxu1 %v297_v7 }
  0x1a   : > { %622 = vmatpush3.msra.mxu0 %v297_v7  ;;  %675 = vmatpush3.msra.mxu1 %v297_v7 }
  0x1b   : > { %623 = vmatprep.subr.mxu0 %v296_v8  ;;  %660 = vmatprep.subr.mxu1 %v296_v8 }
  0x1c   : > { %624 = vmatpush3.msra.mxu0 %v296_v8  ;;  %676 = vmatpush3.msra.mxu1 %v296_v8 }
  0x1d   : > { %625 = vmatprep.subr.mxu0 %v295_v9  ;;  %661 = vmatprep.subr.mxu1 %v295_v9 }
  0x1e   : > { %626 = vmatpush3.msra.mxu0 %v295_v9  ;;  %677 = vmatpush3.msra.mxu1 %v295_v9 }
  0x1f   : > { %627 = vmatprep.subr.mxu0 %v294_v10  ;;  %662 = vmatprep.subr.mxu1 %v294_v10 }
  0x20   : > { %628 = vmatpush3.msra.mxu0 %v294_v10  ;;  %678 = vmatpush3.msra.mxu1 %v294_v10 }
  0x21   : > { %629 = vmatprep.subr.mxu0 %v293_v11  ;;  %663 = vmatprep.subr.mxu1 %v293_v11 }
  0x22   : > { %630 = vmatpush3.msra.mxu0 %v293_v11  ;;  %679 = vmatpush3.msra.mxu1 %v293_v11 }
  0x23   : > { %631 = vmatprep.subr.mxu0 %v292_v12  ;;  %664 = vmatprep.subr.mxu1 %v292_v12 }
  0x24   : > { %632 = vmatpush3.msra.mxu0 %v292_v12  ;;  %680 = vmatpush3.msra.mxu1 %v292_v12 }
  0x25   : > { %633 = vmatprep.subr.mxu0 %v291_v13  ;;  %665 = vmatprep.subr.mxu1 %v291_v13 }
  0x26   : > { %634 = vmatpush3.msra.mxu0 %v291_v13  ;;  %681 = vmatpush3.msra.mxu1 %v291_v13 }
  0x27   : > { %635 = vmatprep.subr.mxu0 %v290_v14  ;;  %666 = vmatprep.subr.mxu1 %v290_v14 }
  0x28   : > { %636 = vmatpush3.msra.mxu0 %v290_v14  ;;  %682 = vmatpush3.msra.mxu1 %v290_v14 }
  0x29   : > { %637 = vmatprep.subr.mxu0 %v289_v15  ;;  %667 = vmatprep.subr.mxu1 %v289_v15 }
  0x2a   : > { %638 = vmatpush3.msra.mxu0 %v289_v15  ;;  %683 = vmatpush3.msra.mxu1 %v289_v15 }
  0x2b   : > { %639 = vmatprep.subr.mxu0 %v288_v16  ;;  %668 = vmatprep.subr.mxu1 %v288_v16 }
  0x2c   : > { %640 = vmatpush3.msra.mxu0 %v288_v16  ;;  %684 = vmatpush3.msra.mxu1 %v288_v16 }
  0x2d   : > { %641 = vmatprep.mubr.f32.mxu0 %v280_v17  ;;  %647 = vmatprep.mubr.f32.mxu1 %v284_v18 }
  0x2e   : > { %642 = vmatmul.mubr.f32.vlgmr.msra.gmra.mxu0 %v281_v19  ;;  %648 = vmatmul.mubr.f32.vlgmr.msra.gmra.mxu1 %v285_v20 }
  0x2f   : > { %644 = vmatprep.mubr.f32.mxu0 %v282_v21  ;;  %650 = vmatprep.mubr.f32.mxu1 %v286_v22 }
  0x32   : > { %645 = vmatmul.mubr.f32.gmra.mxu0 %v283_v23  ;;  %651 = vmatmul.mubr.f32.gmra.mxu1 %v287_v24 }
  0xee   : > { %v643_v27 = vpop.f32.mrf.mxu0  ;;  %v649_v28 = vpop.f32.mrf.mxu1 }
  0xef   : > { %v410_v31 = vadd.f32 %v643_v27, %v273_v25  ;;  %v414_v32 = vadd.f32 %v649_v28, %v277_v26 }
  0xf0   : > { %v370_v33 = vpop.f32.mrf.mxu0  ;;  %v390_v34 = vpop.f32.mrf.mxu1 }
  0xf1   : > { %419 = vst.msk [vmem:[#allocation2 + $0x8] sm:$0xff] %vm263_vm0, %v410_v31  ;;  %423 = vst.msk [vmem:[#allocation2 + $0x28] sm:$0xff] %vm263_vm0, %v414_v32  ;;  %v409_v37 = vadd.f32 %v370_v33, %v272_v29  ;;  %v413_v38 = vadd.f32 %v390_v34, %v276_v30 }
  0xf2   : > { %v646_v39 = vpop.f32.mrf.mxu0  ;;  %v652_v40 = vpop.f32.mrf.mxu1 }
  0xf3   : > { %418 = vst.msk [vmem:[#allocation2] sm:$0xff] %vm263_vm0, %v409_v37  ;;  %422 = vst.msk [vmem:[#allocation2 + $0x20] sm:$0xff] %vm263_vm0, %v413_v38  ;;  %v412_v43 = vadd.f32 %v646_v39, %v275_v35  ;;  %v416_v44 = vadd.f32 %v652_v40, %v279_v36 }
  0xf4   : > { %v380_v45 = vpop.f32.mrf.mxu0  ;;  %v400_v46 = vpop.f32.mrf.mxu1 }
  0xf5   : > { %421 = vst.msk [vmem:[#allocation2 + $0x18] sm:$0xff] %vm263_vm0, %v412_v43  ;;  %425 = vst.msk [vmem:[#allocation2 + $0x38] sm:$0xff] %vm263_vm0, %v416_v44  ;;  %v411_v47 = vadd.f32 %v380_v45, %v274_v41  ;;  %v415_v48 = vadd.f32 %v400_v46, %v278_v42 }
  0xf7   : > { %420 = vst.msk [vmem:[#allocation2 + $0x10] sm:$0xff] %vm263_vm0, %v411_v47  ;;  %424 = vst.msk [vmem:[#allocation2 + $0x30] sm:$0xff] %vm263_vm0, %v415_v48 }
  0xf8   : > { %v430_v50 = vld [vmem:[#allocation2 + $0x8] sm:$0xff] }
  0xf9   : > { %v434_v51 = vld [vmem:[#allocation2 + $0x28] sm:$0xff]  ;;  %v445_v52 = vadd.f32 %v582_v49, %v430_v50 }
  0xfa   : > { %v449_v53 = vadd.f32 %v582_v49, %v434_v51  ;;  %v429_v54 = vld [vmem:[#allocation2] sm:$0xff] }
  0xfb   : > { %v433_v55 = vld [vmem:[#allocation2 + $0x20] sm:$0xff]  ;;  %453 = vst.msk [vmem:[%s257_s7 + $0x8] sm:$0xff] %vm263_vm0, %v445_v52  ;;  %v444_v56 = vadd.f32 %v582_v49, %v429_v54 }
  0xfc   : > { %457 = vst.msk [vmem:[%s257_s7 + $0x28] sm:$0xff] %vm263_vm0, %v449_v53  ;;  %v448_v57 = vadd.f32 %v582_v49, %v433_v55  ;;  %v432_v58 = vld [vmem:[#allocation2 + $0x18] sm:$0xff] }
  0xfd   : > { %v436_v59 = vld [vmem:[#allocation2 + $0x38] sm:$0xff]  ;;  %452 = vst.msk [vmem:[%s257_s7] sm:$0xff] %vm263_vm0, %v444_v56  ;;  %v447_v60 = vadd.f32 %v582_v49, %v432_v58 }
  0xfe   : > { %456 = vst.msk [vmem:[%s257_s7 + $0x20] sm:$0xff] %vm263_vm0, %v448_v57  ;;  %v451_v61 = vadd.f32 %v582_v49, %v436_v59  ;;  %v431_v62 = vld [vmem:[#allocation2 + $0x10] sm:$0xff] }
  0xff   : > { %v435_v63 = vld [vmem:[#allocation2 + $0x30] sm:$0xff]  ;;  %455 = vst.msk [vmem:[%s257_s7 + $0x18] sm:$0xff] %vm263_vm0, %v447_v60  ;;  %v446_v0 = vadd.f32 %v582_v49, %v431_v62 }
 0x100   : > { %459 = vst.msk [vmem:[%s257_s7 + $0x38] sm:$0xff] %vm263_vm0, %v451_v61  ;;  %v450_v1 = vadd.f32 %v582_v49, %v435_v63 }
 0x101   : > { %454 = vst.msk [vmem:[%s257_s7 + $0x10] sm:$0xff] %vm263_vm0, %v446_v0 }
 0x102   : > { %458 = vst.msk [vmem:[%s257_s7 + $0x30] sm:$0xff] %vm263_vm0, %v450_v1 }
 0x103 PF: > { %s13_s14 = sadd.s32 1, %s732_s14   ;;  %s877_s12 = smov %s728_s13 }
 0x104   : > { %p10_p5 = scmp.ge.s32.totalorder %s13_s14, 4   ;;  %s878_s13 = smov %s880_s15 }
 0x106   :  { %12 = sbr.rel (!%p10_p5) target bundleno = 2 (0x2), region = 76 }

// kernel: swin_transformer_forward.25
= control target key start
LH: loop header
LB: loop body
LE: loop exit
PB: predicated region body
PF: predicated region fallthrough
CT: control target
= control target key end

     0   :  { %s948_s18 = smov 0   ;;  %s1202_s0 = inlined_call_operand.vmem [shape: f32[128,32], index: 0, kind: input, shape index: {}]   ;;  %s1203_s1 = inlined_call_operand.vmem [shape: f32[1,32], index: 1, kind: input, shape index: {}]   ;;  %s1204_s2 = inlined_call_operand.vmem [shape: f32[1,32], index: 2, kind: input, shape index: {}]   ;;  %s1205_s3 = inlined_call_operand.vmem [shape: f32[32,128], index: 3, kind: input, shape index: {}]   ;;  %s1206_s4 = inlined_call_operand.vmem [shape: f32[1,128], index: 4, kind: input, shape index: {}]   ;;  %s1207_s5 = inlined_call_operand.vmem [shape: f32[128,128], index: 5, kind: output, shape index: {}]  }
   0x1 LB: > { %s792_s19 = sadd.s32 4294967295, %s916_s18   ;;  %p796_p0 = scmp.ge.s32.totalorder %s916_s18, 1  ;;  %s916_s18 = sphi %s948_s18, %s15_s18  }
   0x2   : > { %p188_p1 = scmp.lt.s32.totalorder %s916_s18, 3 }
   0x4   : > { %p189_p2 = pnand %p796_p0, %p188_p1 }
   0x5   : > { %s797_s20 = sshll.u32 (!%p189_p2), %s792_s19, 3 }
   0x6   : > { %192 = sbr.rel (%p189_p2) target bundleno = 594 (0x252), region = 40  ;;  %p217_p3 = scmp.lt.s32.totalorder (!%p189_p2), %s797_s20, 15 }
   0xb   : > { %s1209_s20 = smov (!%p217_p3, %s797_s20), 15  ;;  %vm236_vm0 = vcmask 261120   ;;  %v375_v56 = vld [vmem:[%s1205_s3 + $0x18] sm:$0xff]  ;;  %v374_v57 = vld [vmem:[%s1205_s3 + $0x10] sm:$0xff]  ;;  %v373_v58 = vld [vmem:[%s1205_s3 + $0x8] sm:$0xff] }
   0xc   : > { %s798_s21 = sshll.u32 %s1209_s20, 3  ;;  %826 = vmatprep.subr.mxu0 %v375_v56  ;;  %846 = vmatprep.subr.mxu1 %v375_v56  ;;  %v372_v59 = vld [vmem:[%s1205_s3] sm:$0xff] }
   0xd   : > { %s220_s24 = scalar_lea.vmem %s1202_s0, %s798_s21  ;;  %827 = vmatpush3.msra.mxu0 %v375_v56  ;;  %850 = vmatpush3.msra.mxu1 %v375_v56  ;;  %s1163_s16 = scalar_lea.vmem %s1207_s5, %s798_s21 }
   0xe   : > { %v228_v0 = vld [vmem:[%s220_s24] sm:$0xff]  ;;  %v229_v1 = vld [vmem:[%s220_s24 + $0x8] sm:$0xff]  ;;  %v230_v8 = vld [vmem:[%s220_s24 + $0x10] sm:$0xff]  ;;  %828 = vmatprep.subr.mxu0 %v374_v57  ;;  %847 = vmatprep.subr.mxu1 %v374_v57 }
   0xf   : > { %v232_v2 = vld [vmem:[%s220_s24 + $0x20] sm:$0xff]  ;;  %v237_v3 = vsel %vm236_vm0, %v228_v0, 0.0  ;;  %v240_v4 = vsel %vm236_vm0, %v229_v1, 0.0  ;;  %v233_v5 = vld [vmem:[%s220_s24 + $0x28] sm:$0xff]  ;;  %v234_v9 = vld [vmem:[%s220_s24 + $0x30] sm:$0xff]  ;;  %v243_v10 = vsel %vm236_vm0, %v230_v8, 0.0  ;;  %829 = vmatpush3.msra.mxu0 %v374_v57  ;;  %851 = vmatpush3.msra.mxu1 %v374_v57 }
  0x10   : > { %238 = vadd.xlane.f32.xlu0 %v237_v3  ;;  %241 = vadd.xlane.f32.xlu1 %v240_v4  ;;  %v249_v6 = vsel %vm236_vm0, %v232_v2, 0.0  ;;  %v252_v7 = vsel %vm236_vm0, %v233_v5, 0.0  ;;  %v255_v11 = vsel %vm236_vm0, %v234_v9, 0.0  ;;  %v231_v12 = vld [vmem:[%s220_s24 + $0x18] sm:$0xff] }
  0x11   : > { %v235_v13 = vld [vmem:[%s220_s24 + $0x38] sm:$0xff]  ;;  %v246_v14 = vsel %vm236_vm0, %v231_v12, 0.0  ;;  %830 = vmatprep.subr.mxu0 %v373_v58  ;;  %848 = vmatprep.subr.mxu1 %v373_v58 }
  0x12   : > { %v258_v15 = vsel %vm236_vm0, %v235_v13, 0.0  ;;  %831 = vmatpush3.msra.mxu0 %v373_v58  ;;  %852 = vmatpush3.msra.mxu1 %v373_v58 }
  0x13   : > { %832 = vmatprep.subr.mxu0 %v372_v59  ;;  %849 = vmatprep.subr.mxu1 %v372_v59 }
  0x14   : > { %250 = vadd.xlane.f32.xlu0 %v249_v6  ;;  %253 = vadd.xlane.f32.xlu1 %v252_v7 }
  0x15   : > { %833 = vmatpush3.msra.mxu0 %v372_v59  ;;  %853 = vmatpush3.msra.mxu1 %v372_v59 }
  0x18   : > { %244 = vadd.xlane.f32.xlu0 %v243_v10  ;;  %256 = vadd.xlane.f32.xlu1 %v255_v11 }
  0x1c   : > { %247 = vadd.xlane.f32.xlu0 %v246_v14  ;;  %259 = vadd.xlane.f32.xlu1 %v258_v15 }
  0x99   : > { %v239_v16 = vpop.xlane.xlu0 %238  ;;  %v242_v17 = vpop.xlane.xlu1 %241 }
  0x9a   : > { %v262_v18 = vmul.f32 0.03125, %v239_v16  ;;  %v263_v19 = vmul.f32 0.03125, %v242_v17 }
  0x9c   : > { %v972_v20 = vsub.f32 %v228_v0, %v262_v18  ;;  %v974_v21 = vsub.f32 %v229_v1, %v263_v19 }
  0x9d   : > { %v251_v22 = vpop.xlane.xlu0 %250  ;;  %v254_v23 = vpop.xlane.xlu1 %253 }
  0x9e   : > { %v266_v24 = vmul.f32 0.03125, %v251_v22  ;;  %v267_v25 = vmul.f32 0.03125, %v254_v23  ;;  %v278_v26 = vmul.f32 %v972_v20, %v972_v20  ;;  %v279_v27 = vmul.f32 %v974_v21, %v974_v21  ;;  %v801_v22 = vld [vmem:[%s1203_s1] ss:$0 sm:$0xff] }
  0xa0   : > { %v980_v28 = vsub.f32 %v232_v2, %v266_v24  ;;  %v982_v29 = vsub.f32 %v233_v5, %v267_v25  ;;  %v286_v30 = vsel %vm236_vm0, %v278_v26, 0.0  ;;  %v289_v33 = vsel %vm236_vm0, %v279_v27, 0.0  ;;  %v802_v25 = vld [vmem:[%s1204_s2] ss:$0 sm:$0xff] }
  0xa1   : > { %287 = vadd.xlane.f32.xlu0 %v286_v30  ;;  %v245_v31 = vpop.xlane.xlu0 %244  ;;  %v257_v32 = vpop.xlane.xlu1 %256 }
  0xa2   : > { %v264_v34 = vmul.f32 0.03125, %v245_v31  ;;  %v268_v35 = vmul.f32 0.03125, %v257_v32  ;;  %v282_v36 = vmul.f32 %v980_v28, %v980_v28  ;;  %v283_v37 = vmul.f32 %v982_v29, %v982_v29 }
  0xa4   : > { %v990_v38 = vsub.f32 %v230_v8, %v264_v34  ;;  %v992_v39 = vsub.f32 %v234_v9, %v268_v35  ;;  %v298_v40 = vsel %vm236_vm0, %v282_v36, 0.0  ;;  %v301_v43 = vsel %vm236_vm0, %v283_v37, 0.0 }
  0xa5   : > { %290 = vadd.xlane.f32.xlu0 %v289_v33  ;;  %299 = vadd.xlane.f32.xlu1 %v298_v40  ;;  %v248_v41 = vpop.xlane.xlu0 %247  ;;  %v260_v42 = vpop.xlane.xlu1 %259 }
  0xa6   : > { %v265_v44 = vmul.f32 0.03125, %v248_v41  ;;  %v269_v45 = vmul.f32 0.03125, %v260_v42  ;;  %v280_v46 = vmul.f32 %v990_v38, %v990_v38  ;;  %v284_v47 = vmul.f32 %v992_v39, %v992_v39 }
  0xa8   : > { %v1000_v48 = vsub.f32 %v231_v12, %v265_v44  ;;  %v1002_v49 = vsub.f32 %v235_v13, %v269_v45  ;;  %v292_v50 = vsel %vm236_vm0, %v280_v46, 0.0  ;;  %v304_v51 = vsel %vm236_vm0, %v284_v47, 0.0 }
  0xa9   : > { %302 = vadd.xlane.f32.xlu1 %v301_v43  ;;  %293 = vadd.xlane.f32.xlu0 %v292_v50 }
  0xaa   : > { %v281_v52 = vmul.f32 %v1000_v48, %v1000_v48  ;;  %v285_v53 = vmul.f32 %v1002_v49, %v1002_v49 }
  0xac   : > { %v295_v54 = vsel %vm236_vm0, %v281_v52, 0.0  ;;  %v307_v55 = vsel %vm236_vm0, %v285_v53, 0.0 }
  0xad   : > { %305 = vadd.xlane.f32.xlu1 %v304_v51  ;;  %296 = vadd.xlane.f32.xlu0 %v295_v54 }
  0xb1   : > { %308 = vadd.xlane.f32.xlu1 %v307_v55 }
 0x12a   : > { %v288_v60 = vpop.xlane.xlu0 %287 }
 0x12b   : > { %v310_v61 = vmul.f32 0.03125, %v288_v60 }
 0x12d   : > { %v318_v62 = vadd.f32 1e-05, %v310_v61 }
 0x12e   : > { %v300_v63 = vpop.xlane.xlu1 %299  ;;  %v291_v0 = vpop.xlane.xlu0 %290 }
 0x12f   : > { %862 = vrsqrt.f32 %v318_v62  ;;  %v314_v1 = vmul.f32 0.03125, %v300_v63  ;;  %v311_v2 = vmul.f32 0.03125, %v291_v0 }
 0x131   : > { %v322_v3 = vadd.f32 1e-05, %v314_v1  ;;  %v319_v4 = vadd.f32 1e-05, %v311_v2 }
 0x132   : > { %v303_v5 = vpop.xlane.xlu1 %302  ;;  %v294_v6 = vpop.xlane.xlu0 %293 }
 0x133   : > { %864 = vrsqrt.f32 %v322_v3  ;;  %v315_v7 = vmul.f32 0.03125, %v303_v5  ;;  %v312_v8 = vmul.f32 0.03125, %v294_v6 }
 0x134   : > { %866 = vrsqrt.f32 %v319_v4 }
 0x135   : > { %v323_v9 = vadd.f32 1e-05, %v315_v7  ;;  %v320_v10 = vadd.f32 1e-05, %v312_v8 }
 0x136   : > { %v306_v11 = vpop.xlane.xlu1 %305  ;;  %v297_v12 = vpop.xlane.xlu0 %296 }
 0x137   : > { %868 = vrsqrt.f32 %v323_v9  ;;  %v316_v13 = vmul.f32 0.03125, %v306_v11  ;;  %v313_v14 = vmul.f32 0.03125, %v297_v12 }
 0x138   : > { %870 = vrsqrt.f32 %v320_v10 }
 0x139   : > { %v324_v15 = vadd.f32 1e-05, %v316_v13  ;;  %v321_v16 = vadd.f32 1e-05, %v313_v14 }
 0x13a   : > { %v309_v17 = vpop.xlane.xlu1 %308 }
 0x13b   : > { %872 = vrsqrt.f32 %v324_v15  ;;  %v317_v18 = vmul.f32 0.03125, %v309_v17 }
 0x13c   : > { %v863_v19 = vpop.eup %862  ;;  %874 = vrsqrt.f32 %v321_v16 }
 0x13d   : > { %v325_v23 = vadd.f32 1e-05, %v317_v18  ;;  %v334_v24 = vmul.f32 %v863_v19, %v972_v20 }
 0x13f   : > { %876 = vrsqrt.f32 %v325_v23  ;;  %v349_v26 = vmul.f32 %v801_v22, %v334_v24 }
 0x140   : > { %v865_v27 = vpop.eup %864 }
 0x141   : > { %v867_v30 = vpop.eup %866  ;;  %v364_v31 = vadd.f32 %v802_v25, %v349_v26  ;;  %v338_v32 = vmul.f32 %v865_v27, %v980_v28 }
 0x142   : > { %v335_v33 = vmul.f32 %v867_v30, %v974_v21 }
 0x143   : > { %834 = vmatprep.mubr.msk.f32.mxu0 %vm236_vm0, %v364_v31  ;;  %v353_v34 = vmul.f32 %v801_v22, %v338_v32 }
 0x144   : > { %v869_v35 = vpop.eup %868  ;;  %v350_v36 = vmul.f32 %v801_v22, %v335_v33 }
 0x145   : > { %v871_v37 = vpop.eup %870  ;;  %v368_v20 = vadd.f32 %v802_v25, %v353_v34  ;;  %v339_v40 = vmul.f32 %v869_v35, %v982_v29 }
 0x146   : > { %v365_v41 = vadd.f32 %v802_v25, %v350_v36  ;;  %v336_v42 = vmul.f32 %v871_v37, %v990_v38 }
 0x147   : > { %840 = vmatprep.mubr.msk.f32.mxu1 %vm236_vm0, %v368_v20  ;;  %v354_v43 = vmul.f32 %v801_v22, %v339_v40 }
 0x148   : > { %v873_v44 = vpop.eup %872  ;;  %835 = vmatmul.mubr.msk.f32.vlgmr.msra.gmra.mxu0 %vm236_vm0, %v365_v41  ;;  %v351_v28 = vmul.f32 %v801_v22, %v336_v42 }
 0x149   : > { %v875_v21 = vpop.eup %874  ;;  %v369_v45 = vadd.f32 %v802_v25, %v354_v43  ;;  %v340_v46 = vmul.f32 %v873_v44, %v992_v39 }
 0x14a   : > { %v366_v47 = vadd.f32 %v802_v25, %v351_v28  ;;  %v337_v50 = vmul.f32 %v875_v21, %v1000_v48  ;;  %v803_v48 = vld [vmem:[%s1206_s4] ss:$0 sm:$0xff] }
 0x14b   : > { %841 = vmatmul.mubr.msk.f32.vlgmr.msra.gmra.mxu1 %vm236_vm0, %v369_v45  ;;  %v355_v29 = vmul.f32 %v801_v22, %v340_v46 }
 0x14c   : > { %v877_v51 = vpop.eup %876  ;;  %837 = vmatprep.mubr.msk.f32.mxu0 %vm236_vm0, %v366_v47  ;;  %v352_v38 = vmul.f32 %v801_v22, %v337_v50 }
 0x14d   : > { %v370_v52 = vadd.f32 %v802_v25, %v355_v29  ;;  %v341_v53 = vmul.f32 %v877_v51, %v1002_v49 }
 0x14e   : > { %v367_v54 = vadd.f32 %v802_v25, %v352_v38 }
 0x14f   : > { %843 = vmatprep.mubr.msk.f32.mxu1 %vm236_vm0, %v370_v52  ;;  %v356_v55 = vmul.f32 %v801_v22, %v341_v53 }
 0x150   : > { %838 = vmatmul.mubr.msk.f32.gmra.mxu0 %vm236_vm0, %v367_v54 }
 0x151   : > { %v371_v39 = vadd.f32 %v802_v25, %v356_v55 }
 0x153   : > { %844 = vmatmul.mubr.msk.f32.gmra.mxu1 %vm236_vm0, %v371_v39 }
 0x208   : > { %v836_v56 = vpop.f32.mrf.mxu0 }
 0x209   : > { %v1049_v57 = vadd.f32 %v836_v56, %v803_v48 }
 0x20a   : > { %v473_v58 = vpop.f32.mrf.mxu0 }
 0x20b   : > { %v1052_v59 = vmul.f32 0.70710677, %v1049_v57  ;;  %v1054_v49 = vadd.f32 %v803_v48, %v473_v58  ;;  %v842_v60 = vpop.f32.mrf.mxu1 }
 0x20c   : > { %v1056_v61 = vadd.f32 %v842_v60, %v803_v48 }
 0x20d   : > { %v521_v62 = vand.u32 2147483647, %v1052_v59  ;;  %v1060_v63 = vmul.f32 0.70710677, %v1054_v49  ;;  %v493_v0 = vpop.f32.mrf.mxu1  ;;  %vm681_vm1 = vcmp.ge.f32.partialorder %v1052_v59, 0.0 }
 0x20e   : > { %v1063_v1 = vmul.f32 0.70710677, %v1056_v61  ;;  %v1065_v2 = vadd.f32 %v803_v48, %v493_v0 }
 0x20f   : > { %v529_v3 = vmul.f32 0.3275911, %v521_v62  ;;  %v520_v4 = vand.u32 2147483647, %v1060_v63  ;;  %v633_v24 = vsub.f32 0.0, %v521_v62  ;;  %vm680_vm2 = vcmp.ge.f32.partialorder %v1060_v63, 0.0 }
 0x210   : > { %v525_v5 = vand.u32 2147483647, %v1063_v1  ;;  %v1070_v6 = vmul.f32 0.70710677, %v1065_v2  ;;  %v839_v7 = vpop.f32.mrf.mxu0  ;;  %vm685_vm3 = vcmp.ge.f32.partialorder %v1063_v1, 0.0 }
 0x211   : > { %v537_v8 = vadd.f32 1.0, %v529_v3  ;;  %v528_v9 = vmul.f32 0.3275911, %v520_v4  ;;  %v1073_v16 = vadd.f32 %v839_v7, %v803_v48  ;;  %v632_v31 = vsub.f32 0.0, %v520_v4 }
 0x212   : > { %v533_v10 = vmul.f32 0.3275911, %v525_v5  ;;  %v524_v11 = vand.u32 2147483647, %v1070_v6  ;;  %v483_v12 = vpop.f32.mrf.mxu0  ;;  %v641_v35 = vmul.f32 %v633_v24, %v521_v62  ;;  %v637_v42 = vsub.f32 0.0, %v525_v5 }
 0x213   : > { %878 = vrcp.f32 %v537_v8  ;;  %v536_v13 = vadd.f32 1.0, %v528_v9  ;;  %v1075_v17 = vadd.f32 %v803_v48, %v483_v12  ;;  %v845_v18 = vpop.f32.mrf.mxu1  ;;  %v1078_v22 = vmul.f32 0.70710677, %v1073_v16 }
 0x214   : > { %v541_v14 = vadd.f32 1.0, %v533_v10  ;;  %v532_v15 = vmul.f32 0.3275911, %v524_v11  ;;  %v1083_v25 = vadd.f32 %v845_v18, %v803_v48  ;;  %v640_v41 = vmul.f32 %v632_v31, %v520_v4 }
 0x215   : > { %880 = vrcp.f32 %v536_v13  ;;  %v1081_v23 = vmul.f32 0.70710677, %v1075_v17  ;;  %v523_v26 = vand.u32 2147483647, %v1078_v22  ;;  %v503_v30 = vpop.f32.mrf.mxu1  ;;  %v650_v21 = vmul.f32 1.442695, %v641_v35 }
 0x216   : > { %v540_v19 = vadd.f32 1.0, %v532_v15  ;;  %882 = vrcp.f32 %v541_v14  ;;  %v1088_v32 = vmul.f32 0.70710677, %v1083_v25  ;;  %v1091_v37 = vadd.f32 %v803_v48, %v503_v30 }
 0x217   : > { %v522_v27 = vand.u32 2147483647, %v1081_v23  ;;  %v531_v33 = vmul.f32 0.3275911, %v523_v26  ;;  %v636_v45 = vsub.f32 0.0, %v524_v11  ;;  %v635_v50 = vsub.f32 0.0, %v523_v26 }
 0x218   : > { %884 = vrcp.f32 %v540_v19  ;;  %v527_v36 = vand.u32 2147483647, %v1088_v32  ;;  %v1094_v44 = vmul.f32 0.70710677, %v1091_v37  ;;  %v648_v51 = vmul.f32 1.442695, %v640_v41 }
 0x219   : > { %v530_v34 = vmul.f32 0.3275911, %v522_v27  ;;  %v539_v20 = vadd.f32 1.0, %v531_v33  ;;  %v645_v38 = vmul.f32 %v637_v42, %v525_v5  ;;  %v634_v54 = vsub.f32 0.0, %v522_v27 }
 0x21a   : > { %v535_v43 = vmul.f32 0.3275911, %v527_v36  ;;  %v526_v29 = vand.u32 2147483647, %v1094_v44  ;;  %v644_v48 = vmul.f32 %v636_v45, %v524_v11  ;;  %v643_v60 = vmul.f32 %v635_v50, %v523_v26 }
 0x21b   : > { %v538_v40 = vadd.f32 1.0, %v530_v34  ;;  %886 = vrcp.f32 %v539_v20  ;;  %v639_v62 = vsub.f32 0.0, %v527_v36  ;;  %v658_v5 = vmul.f32 1.442695, %v645_v38 }
 0x21c   : > { %v543_v46 = vadd.f32 1.0, %v535_v43  ;;  %v534_v55 = vmul.f32 0.3275911, %v526_v29  ;;  %v1110_v9 = vmul.f32 0.5, %v1049_v57  ;;  %v642_v10 = vmul.f32 %v634_v54, %v522_v27 }
 0x21d   : > { %888 = vrcp.f32 %v538_v40  ;;  %v656_v14 = vmul.f32 1.442695, %v644_v48  ;;  %v1116_v18 = vmul.f32 0.5, %v1054_v49  ;;  %v654_v19 = vmul.f32 1.442695, %v643_v60 }
 0x21e   : > { %890 = vrcp.f32 %v543_v46  ;;  %v542_v0 = vadd.f32 1.0, %v534_v55  ;;  %v647_v24 = vmul.f32 %v639_v62, %v527_v36  ;;  %v1120_v31 = vmul.f32 0.5, %v1056_v61 }
 0x21f   : > { %892 = vpow2.f32 %v650_v21  ;;  %v652_v33 = vmul.f32 1.442695, %v642_v10  ;;  %v638_v34 = vsub.f32 0.0, %v526_v29  ;;  %vm684_vm4 = vcmp.ge.f32.partialorder %v1070_v6, 0.0 }
 0x220   : > { %v1096_v28 = vpop.eup %878  ;;  %894 = vpow2.f32 %v648_v51  ;;  %v662_v43 = vmul.f32 1.442695, %v647_v24  ;;  %vm683_vm5 = vcmp.ge.f32.partialorder %v1078_v22, 0.0  ;;  %vm682_vm6 = vcmp.ge.f32.partialorder %v1081_v23, 0.0 }
 0x221   : > { %v561_v47 = vmul.f32 1.0614054, %v1096_v28  ;;  %896 = vrcp.f32 %v542_v0  ;;  %v646_v51 = vmul.f32 %v638_v34, %v526_v29  ;;  %vm687_vm7 = vcmp.ge.f32.partialorder %v1088_v32, 0.0 }
 0x222   : > { %v1100_v52 = vpop.eup %880  ;;  %898 = vpow2.f32 %v658_v5  ;;  %v711_v23 = vmul.f32 0.5, %v1083_v25  ;;  %vm686_vm8 = vcmp.ge.f32.partialorder %v1094_v44, 0.0 }
 0x223   : > { %v569_v53 = vadd.f32 -1.4531521, %v561_v47  ;;  %v560_v39 = vmul.f32 1.0614054, %v1100_v52  ;;  %v1103_v56 = vpop.eup %882  ;;  %900 = vpow2.f32 %v656_v14 }
 0x224   : > { %v565_v4 = vmul.f32 1.0614054, %v1103_v56  ;;  %902 = vpow2.f32 %v654_v19 }
 0x225   : > { %v577_v58 = vmul.f32 %v1096_v28, %v569_v53  ;;  %v568_v3 = vadd.f32 -1.4531521, %v560_v39  ;;  %v1107_v7 = vpop.eup %884  ;;  %904 = vpow2.f32 %v652_v33 }
 0x226   : > { %v573_v12 = vadd.f32 -1.4531521, %v565_v4  ;;  %v564_v13 = vmul.f32 1.0614054, %v1107_v7  ;;  %906 = vpow2.f32 %v662_v43 }
 0x227   : > { %v585_v8 = vadd.f32 1.4214138, %v577_v58  ;;  %v576_v11 = vmul.f32 %v1100_v52, %v568_v3 }
 0x228   : > { %v581_v30 = vmul.f32 %v1103_v56, %v573_v12  ;;  %v572_v57 = vadd.f32 -1.4531521, %v564_v13  ;;  %v1122_v35 = vpop.eup %886  ;;  %v660_v12 = vmul.f32 1.442695, %v646_v51 }
 0x229   : > { %v593_v15 = vmul.f32 %v1096_v28, %v585_v8  ;;  %v584_v26 = vadd.f32 1.4214138, %v576_v11  ;;  %v563_v42 = vmul.f32 1.0614054, %v1122_v35 }
 0x22a   : > { %v589_v40 = vadd.f32 1.4214138, %v581_v30  ;;  %v580_v49 = vmul.f32 %v1107_v7, %v572_v57  ;;  %v1126_v36 = vpop.eup %888  ;;  %908 = vpow2.f32 %v660_v12 }
 0x22b   : > { %v601_v27 = vadd.f32 -0.28449672, %v593_v15  ;;  %v592_v20 = vmul.f32 %v1100_v52, %v584_v26  ;;  %v562_v46 = vmul.f32 1.0614054, %v1126_v36  ;;  %v571_v50 = vadd.f32 -1.4531521, %v563_v42  ;;  %v1132_v38 = vpop.eup %890 }
 0x22c   : > { %v597_v21 = vmul.f32 %v1103_v56, %v589_v40  ;;  %v588_v45 = vadd.f32 1.4214138, %v580_v49  ;;  %v893_v48 = vpop.eup %892  ;;  %v567_v62 = vmul.f32 1.0614054, %v1132_v38 }
 0x22d   : > { %v609_v41 = vmul.f32 %v1096_v28, %v601_v27  ;;  %v600_v61 = vadd.f32 -0.28449672, %v592_v20  ;;  %v570_v39 = vadd.f32 -1.4531521, %v562_v46  ;;  %v579_v60 = vmul.f32 %v1122_v35, %v571_v50  ;;  %v895_v5 = vpop.eup %894 }
 0x22e   : > { %v605_v54 = vadd.f32 -0.28449672, %v597_v21  ;;  %v596_v55 = vmul.f32 %v1107_v7, %v588_v45  ;;  %v575_v11 = vadd.f32 -1.4531521, %v567_v62  ;;  %v1143_v13 = vpop.eup %896 }
 0x22f   : > { %v617_v47 = vadd.f32 0.2548296, %v609_v41  ;;  %v608_v53 = vmul.f32 %v1100_v52, %v600_v61  ;;  %v578_v4 = vmul.f32 %v1126_v36, %v570_v39  ;;  %v587_v10 = vadd.f32 1.4214138, %v579_v60 }
 0x230   : > { %v613_v29 = vmul.f32 %v1103_v56, %v605_v54  ;;  %v604_v3 = vadd.f32 -0.28449672, %v596_v55  ;;  %v583_v30 = vmul.f32 %v1132_v38, %v575_v11  ;;  %v566_v57 = vmul.f32 1.0614054, %v1143_v13 }
 0x231   : > { %v625_v58 = vmul.f32 %v1096_v28, %v617_v47  ;;  %v616_v0 = vadd.f32 0.2548296, %v608_v53  ;;  %v586_v19 = vadd.f32 1.4214138, %v578_v4  ;;  %v595_v26 = vmul.f32 %v1122_v35, %v587_v10 }
 0x232   : > { %v621_v14 = vadd.f32 0.2548296, %v613_v29  ;;  %v612_v15 = vmul.f32 %v1107_v7, %v604_v3  ;;  %v591_v41 = vadd.f32 1.4214138, %v583_v30  ;;  %v574_v50 = vadd.f32 -1.4531521, %v566_v57 }
 0x233   : > { %v665_v8 = vmul.f32 %v893_v48, %v625_v58  ;;  %v624_v28 = vmul.f32 %v1100_v52, %v616_v0  ;;  %v594_v20 = vmul.f32 %v1126_v36, %v586_v19  ;;  %v899_v52 = vpop.eup %898  ;;  %v603_v49 = vadd.f32 -0.28449672, %v595_v26 }
 0x234   : > { %v629_v33 = vmul.f32 %v1103_v56, %v621_v14  ;;  %v620_v34 = vadd.f32 0.2548296, %v612_v15  ;;  %v901_v45 = vpop.eup %900  ;;  %v599_v47 = vmul.f32 %v1132_v38, %v591_v41  ;;  %v582_v58 = vmul.f32 %v1143_v13, %v574_v50 }
 0x235   : > { %v673_v24 = vsub.f32 1.0, %v665_v8  ;;  %v664_v27 = vmul.f32 %v895_v5, %v624_v28  ;;  %v602_v21 = vadd.f32 -0.28449672, %v594_v20  ;;  %v611_v56 = vmul.f32 %v1122_v35, %v603_v49  ;;  %v903_v51 = vpop.eup %902 }
 0x236   : > { %v669_v43 = vmul.f32 %v899_v52, %v629_v33  ;;  %v628_v61 = vmul.f32 %v1107_v7, %v620_v34  ;;  %v607_v48 = vadd.f32 -0.28449672, %v599_v47  ;;  %v905_v60 = vpop.eup %904  ;;  %v590_v28 = vadd.f32 1.4214138, %v582_v58 }
 0x237   : > { %v689_v40 = vsub.f32 0.0, %v673_v24  ;;  %v672_v42 = vsub.f32 1.0, %v664_v27  ;;  %v619_v7 = vadd.f32 0.2548296, %v611_v56  ;;  %v610_v59 = vmul.f32 %v1126_v36, %v602_v21  ;;  %v907_v11 = vpop.eup %906 }
 0x238   : > { %v677_v55 = vsub.f32 1.0, %v669_v43  ;;  %v668_v39 = vmul.f32 %v901_v45, %v628_v61  ;;  %v615_v10 = vmul.f32 %v1132_v38, %v607_v48  ;;  %v598_v30 = vmul.f32 %v1143_v13, %v590_v28  ;;  %v909_v52 = vpop.eup %908 }
 0x239   : > { %v697_v46 = vsel %vm681_vm1, %v673_v24, %v689_v40  ;;  %v688_v54 = vsub.f32 0.0, %v672_v42  ;;  %v627_v5 = vmul.f32 %v1122_v35, %v619_v7  ;;  %v618_v8 = vadd.f32 0.2548296, %v610_v59 }
 0x23a   : > { %v713_v53 = vadd.f32 1.0, %v697_v46  ;;  %v693_v29 = vsub.f32 0.0, %v677_v55  ;;  %v676_v3 = vsub.f32 1.0, %v668_v39  ;;  %v708_v24 = vmul.f32 0.5, %v1065_v2 }
 0x23b   : > { %v696_v0 = vsel %vm680_vm2, %v672_v42, %v688_v54  ;;  %v667_v15 = vmul.f32 %v903_v51, %v627_v5  ;;  %v626_v35 = vmul.f32 %v1126_v36, %v618_v8  ;;  %v623_v26 = vadd.f32 0.2548296, %v615_v10 }
 0x23c   : > { %v721_v62 = vmul.f32 %v713_v53, %v1110_v9  ;;  %v712_v4 = vadd.f32 1.0, %v696_v0  ;;  %v701_v12 = vsel %vm685_vm3, %v677_v55, %v693_v29  ;;  %v692_v9 = vsub.f32 0.0, %v676_v3 }
 0x23d   : > { %v717_v14 = vadd.f32 1.0, %v701_v12  ;;  %v675_v57 = vsub.f32 1.0, %v667_v15  ;;  %v666_v27 = vmul.f32 %v905_v60, %v626_v35  ;;  %v631_v33 = vmul.f32 %v1132_v38, %v623_v26 }
 0x23e   : > { %729 = vst [vmem:[%s1163_s16 + $0x8] sm:$0xff] %v721_v62  ;;  %v720_v63 = vmul.f32 %v712_v4, %v1116_v18  ;;  %v700_v19 = vsel %vm684_vm4, %v676_v3, %v692_v9  ;;  %v606_v18 = vadd.f32 -0.28449672, %v598_v30  ;;  %v706_v21 = vmul.f32 0.5, %v1075_v17 }
 0x23f   : > { %v725_v1 = vmul.f32 %v717_v14, %v1120_v31  ;;  %v716_v6 = vadd.f32 1.0, %v700_v19  ;;  %v691_v20 = vsub.f32 0.0, %v675_v57  ;;  %v674_v36 = vsub.f32 1.0, %v666_v27 }
 0x240   : > { %728 = vst [vmem:[%s1163_s16] sm:$0xff] %v720_v63  ;;  %v671_v2 = vmul.f32 %v907_v11, %v631_v33  ;;  %v614_v40 = vmul.f32 %v1143_v13, %v606_v18  ;;  %v707_v31 = vmul.f32 0.5, %v1073_v16 }
 0x241   : > { %733 = vst [vmem:[%s1163_s16 + $0x28] sm:$0xff] %v725_v1  ;;  %v724_v34 = vmul.f32 %v716_v6, %v708_v24  ;;  %v699_v49 = vsel %vm683_vm5, %v675_v57, %v691_v20  ;;  %v690_v41 = vsub.f32 0.0, %v674_v36 }
 0x242   : > { %v715_v42 = vadd.f32 1.0, %v699_v49  ;;  %v679_v38 = vsub.f32 1.0, %v671_v2  ;;  %v622_v43 = vadd.f32 0.2548296, %v614_v40 }
 0x243   : > { %732 = vst [vmem:[%s1163_s16 + $0x20] sm:$0xff] %v724_v34  ;;  %v698_v61 = vsel %vm682_vm6, %v674_v36, %v690_v41 }
 0x244   : > { %v723_v22 = vmul.f32 %v715_v42, %v707_v31  ;;  %v714_v45 = vadd.f32 1.0, %v698_v61  ;;  %v695_v46 = vsub.f32 0.0, %v679_v38  ;;  %v630_v56 = vmul.f32 %v1143_v13, %v622_v43 }
 0x245   : > { %v710_v13 = vmul.f32 0.5, %v1091_v37 }
 0x246   : > { %731 = vst [vmem:[%s1163_s16 + $0x18] sm:$0xff] %v723_v22  ;;  %v722_v16 = vmul.f32 %v714_v45, %v706_v21  ;;  %v703_v47 = vsel %vm687_vm7, %v679_v38, %v695_v46  ;;  %v670_v50 = vmul.f32 %v909_v52, %v630_v56 }
 0x247   : > { %v719_v51 = vadd.f32 1.0, %v703_v47 }
 0x248   : > { %730 = vst [vmem:[%s1163_s16 + $0x10] sm:$0xff] %v722_v16  ;;  %v678_v53 = vsub.f32 1.0, %v670_v50 }
 0x249   : > { %v727_v54 = vmul.f32 %v719_v51, %v711_v23 }
 0x24a   : > { %v694_v17 = vsub.f32 0.0, %v678_v53 }
 0x24b   : > { %735 = vst [vmem:[%s1163_s16 + $0x38] sm:$0xff] %v727_v54 }
 0x24c   : > { %v702_v55 = vsel %vm686_vm8, %v678_v53, %v694_v17 }
 0x24d   : > { %v718_v39 = vadd.f32 1.0, %v702_v55 }
 0x24f   : > { %v726_v32 = vmul.f32 %v718_v39, %v710_v13 }
 0x251   : > { %734 = vst [vmem:[%s1163_s16 + $0x30] sm:$0xff] %v726_v32 }
 0x252 PF: > { %s15_s18 = sadd.s32 1, %s916_s18  }
 0x253   : > { %p12_p4 = scmp.ge.s32.totalorder %s15_s18, 4  }
 0x255   :  { %14 = sbr.rel (!%p12_p4) target bundleno = 1 (0x1), region = 70 }

// kernel: swin_transformer_forward.33
= control target key start
LH: loop header
LB: loop body
LE: loop exit
PB: predicated region body
PF: predicated region fallthrough
CT: control target
= control target key end

     0   :  { %s536_s18 = smov 0   ;;  %s632_s0 = inlined_call_operand.vmem [shape: f32[32,64], index: 0, kind: input, shape index: {}]   ;;  %s633_s1 = inlined_call_operand.vmem [shape: f32[1,64], index: 1, kind: input, shape index: {}]   ;;  %s634_s2 = inlined_call_operand.vmem [shape: f32[1,64], index: 2, kind: input, shape index: {}]   ;;  %s635_s3 = inlined_call_operand.vmem [shape: f32[64,192], index: 3, kind: input, shape index: {}]   ;;  %s636_s4 = inlined_call_operand.vmem [shape: f32[1,192], index: 4, kind: input, shape index: {}]   ;;  %s637_s5 = inlined_call_operand.vmem [shape: f32[32,192], index: 5, kind: output, shape index: {}]  }
   0x1 LB: > { %s451_s19 = sadd.s32 4294967295, %s503_s18   ;;  %p455_p0 = scmp.ge.s32.totalorder %s503_s18, 1  ;;  %s503_s18 = sphi %s536_s18, %s15_s18  }
   0x2   : > { %p188_p1 = scmp.lt.s32.totalorder %s503_s18, 3 }
   0x4   : > { %p189_p2 = pnand %p455_p0, %p188_p1 }
   0x5   : > { %s456_s20 = sshll.u32 (!%p189_p2), %s451_s19, 1 }
   0x6   : > { %192 = sbr.rel (%p189_p2) target bundleno = 525 (0x20d), region = 40  ;;  %p218_p3 = scmp.lt.s32.totalorder (!%p189_p2), %s456_s20, 3 }
   0xb   : > { %s639_s20 = smov (!%p218_p3, %s456_s20), 3  ;;  %vm232_vm0 = vcmask 523264   ;;  %v293_v14 = vld [vmem:[%s635_s3 + $0x78] sm:$0xff]  ;;  %v292_v15 = vld [vmem:[%s635_s3 + $0x70] sm:$0xff]  ;;  %v291_v16 = vld [vmem:[%s635_s3 + $0x68] sm:$0xff]  ;;  %v505_v30 = vmov 0.0   ;;  %v296_v47 = vlaneseq }
   0xc   : > { %s457_s21 = sshll.u32 %s639_s20, 3  ;;  %328 = vmatprep.subr.mxu0 %v293_v14  ;;  %v290_v17 = vld [vmem:[%s635_s3 + $0x60] sm:$0xff]  ;;  %468 = vmatprep.subr.mxu1 %v293_v14  ;;  %v289_v18 = vld [vmem:[%s635_s3 + $0x58] sm:$0xff]  ;;  %v288_v19 = vld [vmem:[%s635_s3 + $0x50] sm:$0xff]  ;;  %s467_s15 = sshll.u32 %s639_s20, 4 }
   0xd   : > { %s221_s24 = scalar_lea.vmem %s632_s0, %s457_s21  ;;  %329 = vmatpush1.msra.mxu0 %v292_v15  ;;  %476 = vmatpush1.msra.mxu1 %v292_v15  ;;  %v287_v20 = vld [vmem:[%s635_s3 + $0x48] sm:$0xff]  ;;  %v286_v21 = vld [vmem:[%s635_s3 + $0x40] sm:$0xff]  ;;  %v285_v22 = vld [vmem:[%s635_s3 + $0x38] sm:$0xff]  ;;  %v297_v48 = vshrl.u32 %v296_v47, 7  ;;  %s228_s19 = scalar_lea.vmem %s637_s5, %s467_s15 }
   0xe   : > { %v230_v0 = vld [vmem:[%s221_s24] sm:$0xff]  ;;  %v231_v1 = vld [vmem:[%s221_s24 + $0x8] sm:$0xff]  ;;  %330 = vmatprep.subr.mxu0 %v291_v16  ;;  %469 = vmatprep.subr.mxu1 %v291_v16  ;;  %v284_v23 = vld [vmem:[%s635_s3 + $0x30] sm:$0xff] }
   0xf   : > { %v233_v2 = vsel %vm232_vm0, %v230_v0, 0.0  ;;  %v236_v3 = vsel %vm232_vm0, %v231_v1, 0.0  ;;  %331 = vmatpush1.msra.mxu0 %v290_v17  ;;  %477 = vmatpush1.msra.mxu1 %v290_v17  ;;  %v283_v24 = vld [vmem:[%s635_s3 + $0x28] sm:$0xff]  ;;  %v282_v25 = vld [vmem:[%s635_s3 + $0x20] sm:$0xff]  ;;  %v281_v26 = vld [vmem:[%s635_s3 + $0x18] sm:$0xff]  ;;  %v298_v49 = vsub.s32 0, %v297_v48 }
  0x10   : > { %234 = vadd.xlane.f32.xlu0 %v233_v2  ;;  %332 = vmatprep.subr.mxu0 %v289_v18  ;;  %v280_v27 = vld [vmem:[%s635_s3 + $0x10] sm:$0xff]  ;;  %v279_v28 = vld [vmem:[%s635_s3 + $0x8] sm:$0xff]  ;;  %v278_v29 = vld [vmem:[%s635_s3] sm:$0xff]  ;;  %v302_v51 = vsub.s32 1, %v297_v48 }
  0x11   : > { %470 = vmatprep.subr.mxu1 %v289_v18  ;;  %333 = vmatpush1.msra.mxu0 %v288_v19  ;;  %v461_v38 = vld [vmem:[%s633_s1] ss:$0 sm:$0xff] }
  0x12   : > { %478 = vmatpush1.msra.mxu1 %v288_v19  ;;  %334 = vmatprep.subr.mxu0 %v287_v20  ;;  %v462_v40 = vld [vmem:[%s634_s2] ss:$0 sm:$0xff] }
  0x13   : > { %471 = vmatprep.subr.mxu1 %v287_v20  ;;  %335 = vmatpush1.msra.mxu0 %v286_v21  ;;  %v294_v50 = vld [vmem:[%s636_s4] sm:$0x3] }
  0x14   : > { %237 = vadd.xlane.f32.xlu0 %v236_v3  ;;  %479 = vmatpush1.msra.mxu1 %v286_v21  ;;  %v299_v52 = vrot.slane %v294_v50, %v298_v49  ;;  %v303_v53 = vrot.slane %v294_v50, %v302_v51 }
  0x15   : > { %336 = vmatprep.subr.mxu0 %v285_v22  ;;  %472 = vmatprep.subr.mxu1 %v285_v22 }
  0x16   : > { %337 = vmatpush1.msra.mxu0 %v284_v23  ;;  %480 = vmatpush1.msra.mxu1 %v284_v23 }
  0x17   : > { %338 = vmatprep.subr.mxu0 %v283_v24  ;;  %473 = vmatprep.subr.mxu1 %v283_v24 }
  0x18   : > { %339 = vmatpush1.msra.mxu0 %v282_v25  ;;  %481 = vmatpush1.msra.mxu1 %v282_v25 }
  0x19   : > { %340 = vmatprep.subr.mxu0 %v281_v26  ;;  %376 = vmatprep.mubr.f32.mxu0 %v505_v30 }
  0x1a   : > { %341 = vmatpush1.msra.mxu0 %v280_v27  ;;  %474 = vmatprep.subr.mxu1 %v281_v26 }
  0x1b   : > { %342 = vmatprep.subr.mxu0 %v279_v28  ;;  %482 = vmatpush1.msra.mxu1 %v280_v27 }
  0x1c   : > { %343 = vmatpush1.msra.mxu0 %v278_v29  ;;  %475 = vmatprep.subr.mxu1 %v279_v28 }
  0x1d   : > { %483 = vmatpush1.msra.mxu1 %v278_v29  ;;  %382 = vmatprep.mubr.f32.mxu1 %v505_v30 }
  0x99   : > { %v235_v4 = vpop.xlane.xlu0 %234 }
  0x9a   : > { %v240_v5 = vmul.f32 0.015625, %v235_v4 }
  0x9c   : > { %v552_v6 = vsub.f32 %v230_v0, %v240_v5 }
  0x9d   : > { %v238_v7 = vpop.xlane.xlu0 %237 }
  0x9e   : > { %v241_v8 = vmul.f32 0.015625, %v238_v7  ;;  %v244_v9 = vmul.f32 %v552_v6, %v552_v6 }
  0xa0   : > { %v556_v10 = vsub.f32 %v231_v1, %v241_v8  ;;  %v246_v11 = vsel %vm232_vm0, %v244_v9, 0.0 }
  0xa1   : > { %247 = vadd.xlane.f32.xlu1 %v246_v11 }
  0xa2   : > { %v245_v12 = vmul.f32 %v556_v10, %v556_v10 }
  0xa4   : > { %v249_v13 = vsel %vm232_vm0, %v245_v12, 0.0 }
  0xa5   : > { %250 = vadd.xlane.f32.xlu1 %v249_v13 }
 0x12a   : > { %v248_v31 = vpop.xlane.xlu1 %247 }
 0x12b   : > { %v252_v32 = vmul.f32 0.015625, %v248_v31 }
 0x12d   : > { %v254_v33 = vadd.f32 1e-05, %v252_v32 }
 0x12e   : > { %v251_v34 = vpop.xlane.xlu1 %250 }
 0x12f   : > { %493 = vrsqrt.f32 %v254_v33  ;;  %v253_v35 = vmul.f32 0.015625, %v251_v34 }
 0x131   : > { %v255_v36 = vadd.f32 1e-05, %v253_v35 }
 0x133   : > { %495 = vrsqrt.f32 %v255_v36 }
 0x13c   : > { %v494_v37 = vpop.eup %493 }
 0x13d   : > { %v258_v39 = vmul.f32 %v494_v37, %v552_v6 }
 0x13f   : > { %v267_v41 = vmul.f32 %v461_v38, %v258_v39 }
 0x140   : > { %v496_v42 = vpop.eup %495 }
 0x141   : > { %v276_v43 = vadd.f32 %v462_v40, %v267_v41  ;;  %v259_v44 = vmul.f32 %v496_v42, %v556_v10 }
 0x143   : > { %463 = vmatmul.mubr.msk.f32.vlgmr.msra.gmra.mxu0 %vm232_vm0, %v276_v43  ;;  %v268_v45 = vmul.f32 %v461_v38, %v259_v44 }
 0x145   : > { %v277_v46 = vadd.f32 %v462_v40, %v268_v45 }
 0x147   : > { %464 = vmatmul.mubr.msk.f32.vlgmr.msra.gmra.mxu1 %vm232_vm0, %v277_v46 }
 0x203   : > { %v378_v54 = vpop.f32.mrf.mxu0 }
 0x204   : > { %v379_v55 = vadd.f32 %v378_v54, %v299_v52 }
 0x205   : > { %v380_v56 = vpop.f32.mrf.mxu0 }
 0x206   : > { %389 = vst [vmem:[%s228_s19] sm:$0xff] %v379_v55  ;;  %v381_v57 = vadd.f32 %v380_v56, %v303_v53 }
 0x207   : > { %v384_v58 = vpop.f32.mrf.mxu1 }
 0x208   : > { %390 = vst.msk [vmem:[%s228_s19 + $0x8] sm:$0xff] %vm232_vm0, %v381_v57  ;;  %v385_v59 = vadd.f32 %v384_v58, %v299_v52 }
 0x209   : > { %v386_v60 = vpop.f32.mrf.mxu1 }
 0x20a   : > { %391 = vst [vmem:[%s228_s19 + $0x10] sm:$0xff] %v385_v59  ;;  %v387_v61 = vadd.f32 %v386_v60, %v303_v53 }
 0x20c   : > { %392 = vst.msk [vmem:[%s228_s19 + $0x18] sm:$0xff] %vm232_vm0, %v387_v61 }
 0x20d PF: > { %s15_s18 = sadd.s32 1, %s503_s18  }
 0x20e   : > { %p12_p4 = scmp.ge.s32.totalorder %s15_s18, 4  }
 0x210   :  { %14 = sbr.rel (!%p12_p4) target bundleno = 1 (0x1), region = 70 }

// kernel: swin_transformer_forward.32
= control target key start
LH: loop header
LB: loop body
LE: loop exit
PB: predicated region body
PF: predicated region fallthrough
CT: control target
= control target key end

     0   :  { %s505_s15 = smov 0   ;;  %s583_s0 = inlined_call_operand.vmem [shape: f32[32,128], index: 0, kind: input, shape index: {}]   ;;  %s584_s1 = inlined_call_operand.vmem [shape: f32[1,128], index: 1, kind: input, shape index: {}]   ;;  %s585_s2 = inlined_call_operand.vmem [shape: f32[1,128], index: 2, kind: input, shape index: {}]   ;;  %s586_s3 = inlined_call_operand.vmem [shape: f32[128,64], index: 3, kind: input, shape index: {}]   ;;  %s587_s4 = inlined_call_operand.vmem [shape: f32[32,64], index: 4, kind: output, shape index: {}]  }
   0x1 LB: > { %s394_s16 = sadd.s32 4294967295, %s478_s15   ;;  %p398_p0 = scmp.ge.s32.totalorder %s478_s15, 1  ;;  %s478_s15 = sphi %s505_s15, %s14_s15  }
   0x2   : > { %p163_p1 = scmp.lt.s32.totalorder %s478_s15, 3 }
   0x4   : > { %p164_p2 = pnand %p398_p0, %p163_p1 }
   0x5   : > { %s399_s17 = sshll.u32 (!%p164_p2), %s394_s16, 1 }
   0x6   : > { %167 = sbr.rel (%p164_p2) target bundleno = 521 (0x209), region = 36  ;;  %p190_p3 = scmp.lt.s32.totalorder (!%p164_p2), %s399_s17, 3 }
   0xb   : > { %s589_s17 = smov (!%p190_p3, %s399_s17), 3  ;;  %v259_v2 = vld [vmem:[%s586_s3 + $0x78] sm:$0xff]  ;;  %v258_v3 = vld [vmem:[%s586_s3 + $0x70] sm:$0xff]  ;;  %v257_v12 = vld [vmem:[%s586_s3 + $0x68] sm:$0xff]  ;;  %vm335_vm0 = vcmask 523264  }
   0xc   : > { %s400_s18 = sshll.u32 %s589_s17, 3  ;;  %425 = vmatprep.subr.mxu0 %v259_v2  ;;  %v256_v13 = vld [vmem:[%s586_s3 + $0x60] sm:$0xff]  ;;  %v255_v14 = vld [vmem:[%s586_s3 + $0x58] sm:$0xff]  ;;  %v254_v15 = vld [vmem:[%s586_s3 + $0x50] sm:$0xff] }
   0xd   : > { %s193_s21 = scalar_lea.vmem %s583_s0, %s400_s18  ;;  %426 = vmatpush3.msra.mxu0 %v259_v2  ;;  %v253_v16 = vld [vmem:[%s586_s3 + $0x48] sm:$0xff]  ;;  %v252_v17 = vld [vmem:[%s586_s3 + $0x40] sm:$0xff]  ;;  %v251_v18 = vld [vmem:[%s586_s3 + $0x38] sm:$0xff]  ;;  %s199_s11 = scalar_lea.vmem %s587_s4, %s400_s18 }
   0xe   : > { %v201_v0 = vld [vmem:[%s193_s21] sm:$0xff]  ;;  %v202_v1 = vld [vmem:[%s193_s21 + $0x8] sm:$0xff]  ;;  %427 = vmatprep.subr.mxu0 %v258_v3  ;;  %v250_v19 = vld [vmem:[%s586_s3 + $0x30] sm:$0xff] }
   0xf   : > { %203 = vadd.xlane.f32.xlu0 %v201_v0  ;;  %428 = vmatpush3.msra.mxu0 %v258_v3  ;;  %v249_v20 = vld [vmem:[%s586_s3 + $0x28] sm:$0xff]  ;;  %v248_v21 = vld [vmem:[%s586_s3 + $0x20] sm:$0xff]  ;;  %v247_v22 = vld [vmem:[%s586_s3 + $0x18] sm:$0xff] }
  0x10   : > { %429 = vmatprep.subr.mxu0 %v257_v12  ;;  %v246_v23 = vld [vmem:[%s586_s3 + $0x10] sm:$0xff]  ;;  %v245_v24 = vld [vmem:[%s586_s3 + $0x8] sm:$0xff]  ;;  %v244_v25 = vld [vmem:[%s586_s3] sm:$0xff] }
  0x11   : > { %430 = vmatpush3.msra.mxu0 %v257_v12  ;;  %v403_v33 = vld [vmem:[%s584_s1] ss:$0 sm:$0xff] }
  0x12   : > { %431 = vmatprep.subr.mxu0 %v256_v13  ;;  %v404_v35 = vld [vmem:[%s585_s2] ss:$0 sm:$0xff] }
  0x13   : > { %205 = vadd.xlane.f32.xlu0 %v202_v1  ;;  %432 = vmatpush3.msra.mxu0 %v256_v13 }
  0x14   : > { %433 = vmatprep.subr.mxu0 %v255_v14 }
  0x15   : > { %434 = vmatpush3.msra.mxu0 %v255_v14 }
  0x16   : > { %435 = vmatprep.subr.mxu0 %v254_v15 }
  0x17   : > { %436 = vmatpush3.msra.mxu0 %v254_v15 }
  0x18   : > { %437 = vmatprep.subr.mxu0 %v253_v16 }
  0x19   : > { %438 = vmatpush3.msra.mxu0 %v253_v16 }
  0x1a   : > { %439 = vmatprep.subr.mxu0 %v252_v17 }
  0x1b   : > { %440 = vmatpush3.msra.mxu0 %v252_v17 }
  0x1c   : > { %441 = vmatprep.subr.mxu0 %v251_v18 }
  0x1d   : > { %442 = vmatpush3.msra.mxu0 %v251_v18 }
  0x1e   : > { %443 = vmatprep.subr.mxu0 %v250_v19 }
  0x1f   : > { %444 = vmatpush3.msra.mxu0 %v250_v19 }
  0x20   : > { %445 = vmatprep.subr.mxu0 %v249_v20 }
  0x21   : > { %446 = vmatpush3.msra.mxu0 %v249_v20 }
  0x22   : > { %447 = vmatprep.subr.mxu0 %v248_v21 }
  0x23   : > { %448 = vmatpush3.msra.mxu0 %v248_v21 }
  0x24   : > { %449 = vmatprep.subr.mxu0 %v247_v22 }
  0x25   : > { %450 = vmatpush3.msra.mxu0 %v247_v22 }
  0x26   : > { %451 = vmatprep.subr.mxu0 %v246_v23 }
  0x27   : > { %452 = vmatpush3.msra.mxu0 %v246_v23 }
  0x28   : > { %453 = vmatprep.subr.mxu0 %v245_v24 }
  0x29   : > { %454 = vmatpush3.msra.mxu0 %v245_v24 }
  0x2a   : > { %455 = vmatprep.subr.mxu0 %v244_v25 }
  0x2b   : > { %456 = vmatpush3.msra.mxu0 %v244_v25 }
  0x98   : > { %v204_v4 = vpop.xlane.xlu0 %203 }
  0x99   : > { %v208_v5 = vmul.f32 0.0078125, %v204_v4 }
  0x9b   : > { %v210_v6 = vsub.f32 %v201_v0, %v208_v5 }
  0x9c   : > { %v206_v7 = vpop.xlane.xlu0 %205 }
  0x9d   : > { %v209_v8 = vmul.f32 0.0078125, %v206_v7  ;;  %v212_v9 = vmul.f32 %v210_v6, %v210_v6 }
  0x9f   : > { %v211_v10 = vsub.f32 %v202_v1, %v209_v8  ;;  %214 = vadd.xlane.f32.xlu1 %v212_v9 }
  0xa1   : > { %v213_v11 = vmul.f32 %v211_v10, %v211_v10 }
  0xa3   : > { %216 = vadd.xlane.f32.xlu1 %v213_v11 }
 0x128   : > { %v215_v26 = vpop.xlane.xlu1 %214 }
 0x129   : > { %v218_v27 = vmul.f32 0.0078125, %v215_v26 }
 0x12b   : > { %v220_v28 = vadd.f32 1e-05, %v218_v27 }
 0x12c   : > { %v217_v29 = vpop.xlane.xlu1 %216 }
 0x12d   : > { %468 = vrsqrt.f32 %v220_v28  ;;  %v219_v30 = vmul.f32 0.0078125, %v217_v29 }
 0x12f   : > { %v221_v31 = vadd.f32 1e-05, %v219_v30 }
 0x131   : > { %470 = vrsqrt.f32 %v221_v31 }
 0x13a   : > { %v469_v32 = vpop.eup %468 }
 0x13b   : > { %v224_v34 = vmul.f32 %v469_v32, %v210_v6 }
 0x13d   : > { %v233_v36 = vmul.f32 %v403_v33, %v224_v34 }
 0x13e   : > { %v471_v37 = vpop.eup %470 }
 0x13f   : > { %v225_v38 = vmul.f32 %v471_v37, %v211_v10  ;;  %v242_v39 = vadd.f32 %v404_v35, %v233_v36 }
 0x141   : > { %v234_v40 = vmul.f32 %v403_v33, %v225_v38  ;;  %457 = vmatprep.mubr.f32.mxu0 %v242_v39 }
 0x143   : > { %v243_v41 = vadd.f32 %v404_v35, %v234_v40 }
 0x145   : > { %458 = vmatmul.mubr.f32.vlgmr.msra.gmra.mxu0 %v243_v41 }
 0x205   : > { %v459_v42 = vpop.f32.mrf.mxu0 }
 0x206   : > { %337 = vst.msk [vmem:[%s199_s11 + $0x8] sm:$0xff] %vm335_vm0, %v459_v42 }
 0x207   : > { %v326_v43 = vpop.f32.mrf.mxu0 }
 0x208   : > { %336 = vst.msk [vmem:[%s199_s11] sm:$0xff] %vm335_vm0, %v326_v43 }
 0x209 PF: > { %s14_s15 = sadd.s32 1, %s478_s15  }
 0x20a   : > { %p11_p4 = scmp.ge.s32.totalorder %s14_s15, 4  }
 0x20c   :  { %13 = sbr.rel (!%p11_p4) target bundleno = 1 (0x1), region = 66 }

// kernel: swin_transformer_forward.28
= control target key start
LH: loop header
LB: loop body
LE: loop exit
PB: predicated region body
PF: predicated region fallthrough
CT: control target
= control target key end

     0   :  { %s2606_s15 = smov 0   ;;  %s3027_s0 = inlined_call_operand.vmem [shape: f32[8,16,96], index: 0, kind: input, shape index: {}]   ;;  %s3028_s1 = inlined_call_operand.vmem [shape: f32[4,2,16,16], index: 1, kind: input, shape index: {}]   ;;  %s3029_s2 = inlined_call_operand.vmem [shape: f32[32,32], index: 2, kind: input, shape index: {}]   ;;  %s3030_s3 = inlined_call_operand.vmem [shape: f32[1,32], index: 3, kind: input, shape index: {}]   ;;  %s3031_s4 = inlined_call_operand.vmem [shape: f32[8,16,32], index: 4, kind: output, shape index: {}]  }
   0x1 LB: > { %s2183_s16 = sadd.s32 4294967295, %s2574_s15   ;;  %p2187_p0 = scmp.ge.s32.totalorder %s2574_s15, 1  ;;  %s2574_s15 = sphi %s2606_s15, %s14_s15  }
   0x2   : > { %p164_p1 = scmp.lt.s32.totalorder %s2574_s15, 3 }
   0x4   : > { %p165_p2 = pnand %p2187_p0, %p164_p1 }
   0x5   : > { %s2188_s17 = sshll.u32 (!%p165_p2), %s2183_s16, 2  ;;  %s2576_s22 = smov (!%p165_p2), 96  }
   0x6   : > { %168 = sbr.rel (%p165_p2) target bundleno = 1327 (0x52f), region = 36  ;;  %p193_p3 = scmp.lt.s32.totalorder (!%p165_p2), %s2188_s17, 7 }
   0x7   : > { %s2577_s23 = smov (!%p165_p2), 64   ;;  %s2578_s24 = smov (!%p165_p2), 80  }
   0x8   : > { %s2579_s25 = smov (!%p165_p2), 112   ;;  %s2580_s19 = smov (!%p165_p2), 48  }
   0xb   : > { %s3033_s17 = smov (!%p193_p3, %s2188_s17), 7  ;;  %vm248_vm0 = vcmask 130048   ;;  %v215_v30 = vld [vmem:[%s3028_s1 + $0x8] sm:$0xff]  ;;  %v214_v33 = vld [vmem:[%s3028_s1] sm:$0xff]  ;;  %vm2116_vm1 = vcmask 261120  }
   0xc   : > { %s2261_s18 = sshll.u32 %s3033_s17, 4  ;;  %v219_v31 = vld [vmem:[%s3028_s1 + $0x28] sm:$0xff]  ;;  %v218_v39 = vld [vmem:[%s3028_s1 + $0x20] sm:$0xff] }
   0xd   : > { %s197_s21 = scalar_lea.vmem %s3027_s0, %s2261_s18  ;;  %v223_v45 = vld [vmem:[%s3028_s1 + $0x48] sm:$0xff]  ;;  %v222_v53 = vld [vmem:[%s3028_s1 + $0x40] sm:$0xff] }
   0xe   : > { %v2622_v0 = vld [vmem:[%s197_s21 + $0x8] sm:$0xff]  ;;  %v2624_v1 = vld [vmem:[%s197_s21 + $0x18] sm:$0xff]  ;;  %v2626_v2 = vld [vmem:[%s197_s21] sm:$0xff] }
   0xf   : > { %246 = vrot.lane.b32.xlu0 %v2622_v0, %s2576_s22  ;;  %338 = vrot.lane.b32.xlu1 %v2624_v1, %s2576_s22  ;;  %v2630_v3 = vld [vmem:[%s197_s21 + $0x10] sm:$0xff]  ;;  %v234_v4 = vmul.f32 0.25, %v2626_v2  ;;  %v2641_v6 = vld [vmem:[%s197_s21 + $0x28] sm:$0xff]  ;;  %v2675_v14 = vmul.f32 0.25, %v2622_v0  ;;  %v2678_v15 = vmul.f32 0.25, %v2624_v1 }
  0x10   : > { %v2634_v5 = vmul.f32 0.25, %v2630_v3  ;;  %v2643_v7 = vld [vmem:[%s197_s21 + $0x20] sm:$0xff]  ;;  %v2647_v8 = vld [vmem:[%s197_s21 + $0x38] sm:$0xff]  ;;  %v2649_v9 = vld [vmem:[%s197_s21 + $0x30] sm:$0xff]  ;;  %v2702_v22 = vmul.f32 0.25, %v2641_v6 }
  0x11   : > { %2351 = vmatprep.mubr.msk.f32.mxu0 %vm248_vm0, %v234_v4  ;;  %v2683_v16 = vmul.f32 0.25, %v2643_v7  ;;  %v2686_v17 = vmul.f32 0.25, %v2649_v9  ;;  %v2707_v23 = vmul.f32 0.25, %v2647_v8  ;;  %v227_v49 = vld [vmem:[%s3028_s1 + $0x68] sm:$0xff]  ;;  %v226_v59 = vld [vmem:[%s3028_s1 + $0x60] sm:$0xff] }
  0x12   : > { %2358 = vmatprep.mubr.msk.f32.mxu1 %vm248_vm0, %v2634_v5 }
  0x13   : > { %244 = vrot.lane.b32.xlu0 %v2626_v2, %s2576_s22  ;;  %336 = vrot.lane.b32.xlu1 %v2630_v3, %s2576_s22 }
  0x17   : > { %429 = vrot.lane.b32.xlu0 %v2641_v6, %s2576_s22  ;;  %427 = vrot.lane.b32.xlu1 %v2643_v7, %s2576_s22 }
  0x1b   : > { %520 = vrot.lane.b32.xlu0 %v2647_v8, %s2576_s22  ;;  %518 = vrot.lane.b32.xlu1 %v2649_v9, %s2576_s22 }
  0x1f   : > { %681 = vrot.lane.b32.xlu1 %v2622_v0, %s2577_s23  ;;  %679 = vrot.lane.b32.xlu0 %v2626_v2, %s2577_s23 }
  0x23   : > { %768 = vrot.lane.b32.xlu1 %v2624_v1, %s2577_s23  ;;  %766 = vrot.lane.b32.xlu0 %v2630_v3, %s2577_s23 }
  0x27   : > { %855 = vrot.lane.b32.xlu1 %v2641_v6, %s2577_s23  ;;  %942 = vrot.lane.b32.xlu0 %v2647_v8, %s2577_s23 }
  0x2b   : > { %853 = vrot.lane.b32.xlu1 %v2643_v7, %s2577_s23  ;;  %940 = vrot.lane.b32.xlu0 %v2649_v9, %s2577_s23 }
  0x2f   : > { %1049 = vrot.lane.b32.xlu1 %v2622_v0, %s2578_s24  ;;  %1140 = vrot.lane.b32.xlu0 %v2624_v1, %s2578_s24 }
  0x33   : > { %1047 = vrot.lane.b32.xlu1 %v2626_v2, %s2578_s24 }
  0x37   : > { %1043 = vrot.lane.b32.xlu1 %v234_v4, %s2579_s25 }
  0x81   : > { %v247_v10 = vpop.permute.xlu0 %246  ;;  %v339_v11 = vpop.permute.xlu1 %338 }
  0x82   : > { %2347 = vmatprep.subr.msk.mxu0 %vm248_vm0, %v247_v10  ;;  %2354 = vmatprep.subr.msk.mxu1 %vm248_vm0, %v339_v11 }
  0x83   : > { %2348 = vmatpush3.xpose.msk.msra.mxu0 %vm248_vm0, %v247_v10  ;;  %2355 = vmatpush3.xpose.msk.msra.mxu1 %vm248_vm0, %v339_v11 }
  0x85   : > { %v245_v12 = vpop.permute.xlu0 %244  ;;  %v337_v13 = vpop.permute.xlu1 %336 }
  0x86   : > { %2349 = vmatprep.subr.msk.mxu0 %vm248_vm0, %v245_v12  ;;  %2356 = vmatprep.subr.msk.mxu1 %vm248_vm0, %v337_v13 }
  0x87   : > { %2350 = vmatpush3.xpose.msk.msra.mxu0 %vm248_vm0, %v245_v12  ;;  %2357 = vmatpush3.xpose.msk.msra.mxu1 %vm248_vm0, %v337_v13 }
  0x89   : > { %v430_v18 = vpop.permute.xlu0 %429  ;;  %v428_v19 = vpop.permute.xlu1 %427 }
  0x8a   : > { %2352 = vmatmul.mubr.msk.f32.vlgmr.msra.gmra.mxu0 %vm248_vm0, %v2675_v14  ;;  %2359 = vmatmul.mubr.msk.f32.vlgmr.msra.gmra.mxu1 %vm248_vm0, %v2678_v15 }
  0x8b   : > { %2361 = vmatprep.subr.msk.mxu0 %vm248_vm0, %v430_v18  ;;  %2365 = vmatprep.mubr.msk.f32.mxu0 %vm248_vm0, %v2683_v16 }
  0x8c   : > { %2362 = vmatpush3.xpose.msk.msra.mxu0 %vm248_vm0, %v430_v18  ;;  %2372 = vmatprep.mubr.msk.f32.mxu1 %vm248_vm0, %v2686_v17 }
  0x8d   : > { %v521_v20 = vpop.permute.xlu0 %520  ;;  %2363 = vmatprep.subr.msk.mxu0 %vm248_vm0, %v428_v19  ;;  %v519_v21 = vpop.permute.xlu1 %518 }
  0x8e   : > { %2368 = vmatprep.subr.msk.mxu1 %vm248_vm0, %v521_v20 }
  0x8f   : > { %2369 = vmatpush3.xpose.msk.msra.mxu1 %vm248_vm0, %v521_v20 }
  0x90   : > { %2364 = vmatpush3.xpose.msk.msra.mxu0 %vm248_vm0, %v428_v19  ;;  %2370 = vmatprep.subr.msk.mxu1 %vm248_vm0, %v519_v21 }
  0x91   : > { %v682_v24 = vpop.permute.xlu1 %681  ;;  %v680_v25 = vpop.permute.xlu0 %679 }
  0x92   : > { %2375 = vmatprep.subr.mxu0 %v682_v24 }
  0x93   : > { %2366 = vmatmul.mubr.msk.f32.vlgmr.msra.gmra.mxu0 %vm248_vm0, %v2702_v22  ;;  %2371 = vmatpush3.xpose.msk.msra.mxu1 %vm248_vm0, %v519_v21 }
  0x94   : > { %2376 = vmatpush3.msra.mxu0 %v682_v24 }
  0x95   : > { %2377 = vmatprep.subr.mxu0 %v680_v25  ;;  %v769_v26 = vpop.permute.xlu1 %768  ;;  %v767_v28 = vpop.permute.xlu0 %766 }
  0x96   : > { %2373 = vmatmul.mubr.msk.f32.vlgmr.msra.gmra.mxu1 %vm248_vm0, %v2707_v23  ;;  %2378 = vmatpush3.msra.mxu0 %v680_v25 }
  0x97   : > { %2382 = vmatprep.subr.mxu1 %v769_v26 }
  0x98   : > { %2383 = vmatpush3.msra.mxu1 %v769_v26 }
  0x99   : > { %v2714_v27 = vpop.permute.xlu1 %855  ;;  %2384 = vmatprep.subr.mxu1 %v767_v28  ;;  %v2717_v29 = vpop.permute.xlu0 %942 }
  0x9a   : > { %2389 = vmatprep.subr.mxu0 %v2714_v27  ;;  %2385 = vmatpush3.msra.mxu1 %v767_v28 }
  0x9b   : > { %2396 = vmatprep.subr.mxu1 %v2717_v29 }
  0x9d   : > { %v854_v62 = vpop.permute.xlu1 %853 }
  0xa1   : > { %v1050_v63 = vpop.permute.xlu1 %1049 }
  0xa5   : > { %v1048_v4 = vpop.permute.xlu1 %1047 }
 0x14a   : > { %v2353_v32 = vpop.f32.mrf.mxu0  ;;  %v2360_v34 = vpop.f32.mrf.mxu1 }
 0x14b   : > { %v2729_v35 = vadd.f32 %v2353_v32, %v215_v30  ;;  %v2731_v36 = vadd.f32 %v2360_v34, %v219_v31 }
 0x14c   : > { %v325_v37 = vpop.f32.mrf.mxu0  ;;  %v416_v38 = vpop.f32.mrf.mxu1 }
 0x14d   : > { %v326_v40 = vadd.f32 %v325_v37, %v214_v33  ;;  %v610_v41 = vsel %vm248_vm0, %v2729_v35, -inf  ;;  %v2738_v42 = vadd.f32 %v416_v38, %v218_v39  ;;  %v616_v44 = vsel %vm248_vm0, %v2731_v36, -inf }
 0x14e   : > { %611 = vmax.xlane.f32.xlu1 %v610_v41 }
 0x14f   : > { %v607_v43 = vsel %vm248_vm0, %v326_v40, -inf  ;;  %v613_v47 = vsel %vm248_vm0, %v2738_v42, -inf }
 0x150   : > { %608 = vmax.xlane.f32.xlu0 %v607_v43 }
 0x152   : > { %617 = vmax.xlane.f32.xlu1 %v616_v44 }
 0x153   : > { %v2367_v46 = vpop.f32.mrf.mxu0 }
 0x154   : > { %v2748_v48 = vadd.f32 %v2367_v46, %v223_v45  ;;  %614 = vmax.xlane.f32.xlu0 %v613_v47 }
 0x155   : > { %v507_v52 = vpop.f32.mrf.mxu0 }
 0x156   : > { %v2374_v50 = vpop.f32.mrf.mxu1  ;;  %v622_v51 = vsel %vm248_vm0, %v2748_v48, -inf  ;;  %v508_v55 = vadd.f32 %v507_v52, %v222_v53 }
 0x157   : > { %v2758_v54 = vadd.f32 %v2374_v50, %v227_v49 }
 0x158   : > { %623 = vmax.xlane.f32.xlu0 %v622_v51  ;;  %v619_v57 = vsel %vm248_vm0, %v508_v55, -inf  ;;  %v598_v58 = vpop.f32.mrf.mxu1 }
 0x159   : > { %v628_v56 = vsel %vm248_vm0, %v2758_v54, -inf  ;;  %v2778_v60 = vadd.f32 %v598_v58, %v226_v59  ;;  %v217_v59 = vld [vmem:[%s3028_s1 + $0x18] sm:$0xff] }
 0x15b   : > { %v625_v61 = vsel %vm248_vm0, %v2778_v60, -inf }
 0x15c   : > { %629 = vmax.xlane.f32.xlu0 %v628_v56 }
 0x160   : > { %620 = vmax.xlane.f32.xlu0 %v619_v57 }
 0x163   : > { %1138 = vrot.lane.b32.xlu1 %v2630_v3, %s2578_s24 }
 0x167   : > { %1134 = vrot.lane.b32.xlu1 %v2634_v5, %s2579_s25  ;;  %v941_v5 = vpop.permute.xlu0 %940 }
 0x16b   : > { %v2806_v10 = vpop.permute.xlu0 %1140 }
 0x176   : > { %1045 = vrot.lane.b32.xlu0 %v2675_v14, %s2579_s25 }
 0x17a   : > { %1231 = vrot.lane.b32.xlu0 %v2641_v6, %s2578_s24 }
 0x17e   : > { %1136 = vrot.lane.b32.xlu0 %v2678_v15, %s2579_s25 }
 0x182   : > { %1322 = vrot.lane.b32.xlu0 %v2647_v8, %s2578_s24 }
 0x186   : > { %1227 = vrot.lane.b32.xlu0 %v2702_v22, %s2579_s25 }
 0x18a   : > { %1316 = vrot.lane.b32.xlu0 %v2686_v17, %s2579_s25 }
 0x18b   : > { %626 = vmax.xlane.f32.xlu1 %v625_v61 }
 0x18e   : > { %1479 = vrot.lane.b32.xlu0 %v2626_v2, %s2580_s19 }
 0x192   : > { %1655 = vrot.lane.b32.xlu0 %v2641_v6, %s2580_s19 }
 0x19c   : > { %1229 = vrot.lane.b32.xlu1 %v2643_v7, %s2578_s24 }
 0x1a0   : > { %1225 = vrot.lane.b32.xlu1 %v2683_v16, %s2579_s25 }
 0x1a4   : > { %1320 = vrot.lane.b32.xlu1 %v2649_v9, %s2578_s24 }
 0x1a8   : > { %1318 = vrot.lane.b32.xlu1 %v2707_v23, %s2579_s25  ;;  %s3006_s25 = scalar_lea.vmem %s3031_s4, %s2261_s18 }
 0x1ac   : > { %1481 = vrot.lane.b32.xlu1 %v2622_v0, %s2580_s19  ;;  %v1044_v0 = vpop.permute.xlu1 %1043 }
 0x1b0   : > { %1568 = vrot.lane.b32.xlu1 %v2624_v1, %s2580_s19 }
 0x1b4   : > { %1566 = vrot.lane.b32.xlu1 %v2630_v3, %s2580_s19 }
 0x1b8   : > { %1653 = vrot.lane.b32.xlu1 %v2643_v7, %s2580_s19 }
 0x1d7   : > { %v612_v2 = vpop.xlane.xlu1 %611 }
 0x1d8   : > { %v632_v11 = vsub.f32 %v2729_v35, %v612_v2 }
 0x1d9   : > { %v609_v1 = vpop.xlane.xlu0 %608 }
 0x1da   : > { %v631_v12 = vsub.f32 %v326_v40, %v609_v1  ;;  %v641_v13 = vmul.f32 1.442695, %v632_v11 }
 0x1db   : > { %v618_v6 = vpop.xlane.xlu1 %617 }
 0x1dc   : > { %v639_v14 = vmul.f32 1.442695, %v631_v12  ;;  %v634_v15 = vsub.f32 %v2731_v36, %v618_v6  ;;  %v221_v6 = vld [vmem:[%s3028_s1 + $0x38] sm:$0xff] }
 0x1dd   : > { %v615_v3 = vpop.xlane.xlu0 %614 }
 0x1de   : > { %2504 = vpow2.f32 %v639_v14  ;;  %v633_v7 = vsub.f32 %v2738_v42, %v615_v3  ;;  %v645_v16 = vmul.f32 1.442695, %v634_v15  ;;  %v216_v14 = vld [vmem:[%s3028_s1 + $0x10] sm:$0xff] }
 0x1df   : > { %2506 = vpow2.f32 %v641_v13  ;;  %v1139_v33 = vpop.permute.xlu1 %1138 }
 0x1e0   : > { %v643_v17 = vmul.f32 1.442695, %v633_v7 }
 0x1e1   : > { %v624_v18 = vpop.xlane.xlu0 %623 }
 0x1e2   : > { %2508 = vpow2.f32 %v643_v17  ;;  %v636_v20 = vsub.f32 %v2748_v48, %v624_v18  ;;  %v220_v18 = vld [vmem:[%s3028_s1 + $0x30] sm:$0xff] }
 0x1e3   : > { %2510 = vpow2.f32 %v645_v16  ;;  %v1135_v35 = vpop.permute.xlu1 %1134 }
 0x1e4   : > { %v649_v24 = vmul.f32 1.442695, %v636_v20 }
 0x1e5   : > { %v630_v19 = vpop.xlane.xlu0 %629 }
 0x1e6   : > { %v638_v36 = vsub.f32 %v2758_v54, %v630_v19 }
 0x1e8   : > { %v653_v40 = vmul.f32 1.442695, %v638_v36 }
 0x1e9   : > { %v621_v21 = vpop.xlane.xlu0 %620 }
 0x1ea   : > { %v635_v22 = vsub.f32 %v508_v55, %v621_v21  ;;  %v225_v21 = vld [vmem:[%s3028_s1 + $0x58] sm:$0xff] }
 0x1eb   : > { %v2812_v23 = vpop.eup %2504 }
 0x1ec   : > { %v2814_v25 = vpop.eup %2506  ;;  %v647_v26 = vmul.f32 1.442695, %v635_v22  ;;  %2379 = vmatprep.mubr.msk.f32.mxu0 %vm248_vm0, %v2812_v23 }
 0x1ed   : > { %2380 = vmatmul.mubr.msk.f32.vlgmr.msra.gmra.mxu0 %vm248_vm0, %v2814_v25 }
 0x1ee   : > { %2512 = vpow2.f32 %v647_v26  ;;  %2390 = vmatpush3.msra.mxu0 %v2714_v27 }
 0x1ef   : > { %v2821_v28 = vpop.eup %2508  ;;  %2514 = vpow2.f32 %v649_v24  ;;  %2391 = vmatprep.subr.mxu0 %v854_v62  ;;  %v228_v24 = vld [vmem:[%s3028_s1 + $0x70] sm:$0xff] }
 0x1f0   : > { %v2823_v30 = vpop.eup %2510  ;;  %2392 = vmatpush3.msra.mxu0 %v854_v62  ;;  %2386 = vmatprep.mubr.msk.f32.mxu1 %vm248_vm0, %v2821_v28 }
 0x1f1   : > { %2403 = vmatprep.subr.msk.mxu0 %vm248_vm0, %v1050_v63  ;;  %2387 = vmatmul.mubr.msk.f32.vlgmr.msra.gmra.mxu1 %vm248_vm0, %v2823_v30 }
 0x1f2   : > { %2397 = vmatpush3.msra.mxu1 %v2717_v29  ;;  %v1046_v29 = vpop.permute.xlu0 %1045 }
 0x1f3   : > { %2398 = vmatprep.subr.mxu1 %v941_v5 }
 0x1f4   : > { %2399 = vmatpush3.msra.mxu1 %v941_v5  ;;  %v224_v5 = vld [vmem:[%s3028_s1 + $0x50] sm:$0xff] }
 0x1f5   : > { %2410 = vmatprep.subr.msk.mxu1 %vm248_vm0, %v2806_v10 }
 0x1f6   : > { %v1232_v32 = vpop.permute.xlu0 %1231 }
 0x1fa   : > { %v1137_v34 = vpop.permute.xlu0 %1136 }
 0x1fb   : > { %v2833_v27 = vpop.eup %2512 }
 0x1fc   : > { %v2835_v31 = vpop.eup %2514  ;;  %2393 = vmatprep.mubr.msk.f32.mxu0 %vm248_vm0, %v2833_v27 }
 0x1fd   : > { %2394 = vmatmul.mubr.msk.f32.vlgmr.msra.gmra.mxu0 %vm248_vm0, %v2835_v31 }
 0x1fe   : > { %2404 = vmatpush3.xpose.msk.msra.mxu0 %vm248_vm0, %v1050_v63  ;;  %2407 = vmatprep.mubr.msk.f32.mxu0 %vm248_vm0, %v1044_v0  ;;  %v1323_v39 = vpop.permute.xlu0 %1322 }
 0x1ff   : > { %2405 = vmatprep.subr.msk.mxu0 %vm248_vm0, %v1048_v4 }
 0x202   : > { %2406 = vmatpush3.xpose.msk.msra.mxu0 %vm248_vm0, %v1048_v4  ;;  %v1228_v43 = vpop.permute.xlu0 %1227 }
 0x203   : > { %2417 = vmatprep.subr.msk.mxu0 %vm248_vm0, %v1232_v32 }
 0x205   : > { %2408 = vmatmul.mubr.msk.f32.vlgmr.msra.gmra.mxu0 %vm248_vm0, %v1046_v29 }
 0x206   : > { %2418 = vmatpush3.xpose.msk.msra.mxu0 %vm248_vm0, %v1232_v32  ;;  %v1317_v47 = vpop.permute.xlu0 %1316 }
 0x20a   : > { %v1480_v54 = vpop.permute.xlu0 %1479 }
 0x20e   : > { %v2880_v57 = vpop.permute.xlu0 %1655 }
 0x214   : > { %v627_v37 = vpop.xlane.xlu1 %626 }
 0x215   : > { %v637_v38 = vsub.f32 %v2778_v60, %v627_v37 }
 0x217   : > { %v651_v41 = vmul.f32 1.442695, %v637_v38 }
 0x218   : > { %v1230_v42 = vpop.permute.xlu1 %1229 }
 0x219   : > { %2516 = vpow2.f32 %v651_v41  ;;  %2419 = vmatprep.subr.msk.mxu0 %vm248_vm0, %v1230_v42  ;;  %v655_v41 = vsel %vm248_vm0, %v2812_v23, 0.0 }
 0x21a   : > { %2518 = vpow2.f32 %v653_v40  ;;  %2420 = vmatpush3.xpose.msk.msra.mxu0 %vm248_vm0, %v1230_v42  ;;  %v664_v40 = vsel %vm248_vm0, %v2823_v30, 0.0  ;;  %v658_v42 = vsel %vm248_vm0, %v2814_v25, 0.0 }
 0x21c   : > { %v1226_v44 = vpop.permute.xlu1 %1225 }
 0x21d   : > { %2421 = vmatprep.mubr.msk.f32.mxu0 %vm248_vm0, %v1226_v44 }
 0x21e   : > { %2422 = vmatmul.mubr.msk.f32.vlgmr.msra.gmra.mxu0 %vm248_vm0, %v1228_v43 }
 0x220   : > { %v1321_v48 = vpop.permute.xlu1 %1320 }
 0x224   : > { %v1319_v49 = vpop.permute.xlu1 %1318 }
 0x226   : > { %v2854_v45 = vpop.eup %2516 }
 0x227   : > { %v2856_v46 = vpop.eup %2518  ;;  %2400 = vmatprep.mubr.msk.f32.mxu1 %vm248_vm0, %v2854_v45 }
 0x228   : > { %2401 = vmatmul.mubr.msk.f32.vlgmr.msra.gmra.mxu1 %vm248_vm0, %v2856_v46  ;;  %v1482_v51 = vpop.permute.xlu1 %1481 }
 0x229   : > { %2411 = vmatpush3.xpose.msk.msra.mxu1 %vm248_vm0, %v2806_v10  ;;  %2414 = vmatprep.mubr.msk.f32.mxu1 %vm248_vm0, %v1135_v35 }
 0x22a   : > { %2412 = vmatprep.subr.msk.mxu1 %vm248_vm0, %v1139_v33  ;;  %2431 = vmatprep.subr.mxu0 %v1482_v51 }
 0x22b   : > { %2432 = vmatpush3.msra.mxu0 %v1482_v51 }
 0x22c   : > { %v1569_v53 = vpop.permute.xlu1 %1568  ;;  %2433 = vmatprep.subr.mxu0 %v1480_v54 }
 0x22d   : > { %2413 = vmatpush3.xpose.msk.msra.mxu1 %vm248_vm0, %v1139_v33  ;;  %2434 = vmatpush3.msra.mxu0 %v1480_v54 }
 0x22e   : > { %2424 = vmatprep.subr.msk.mxu1 %vm248_vm0, %v1323_v39  ;;  %2445 = vmatprep.subr.mxu0 %v2880_v57 }
 0x230   : > { %2415 = vmatmul.mubr.msk.f32.vlgmr.msra.gmra.mxu1 %vm248_vm0, %v1137_v34  ;;  %v1567_v56 = vpop.permute.xlu1 %1566  ;;  %v229_v34 = vld [vmem:[%s3028_s1 + $0x78] sm:$0xff] }
 0x231   : > { %2425 = vmatpush3.xpose.msk.msra.mxu1 %vm248_vm0, %v1323_v39  ;;  %2428 = vmatprep.mubr.msk.f32.mxu1 %vm248_vm0, %v1317_v47  ;;  %v661_v39 = vsel %vm248_vm0, %v2821_v28, 0.0 }
 0x232   : > { %2426 = vmatprep.subr.msk.mxu1 %vm248_vm0, %v1321_v48 }
 0x235   : > { %2427 = vmatpush3.xpose.msk.msra.mxu1 %vm248_vm0, %v1321_v48 }
 0x236   : > { %2438 = vmatprep.subr.mxu1 %v1569_v53 }
 0x238   : > { %2429 = vmatmul.mubr.msk.f32.vlgmr.msra.gmra.mxu1 %vm248_vm0, %v1319_v49 }
 0x239   : > { %2439 = vmatpush3.msra.mxu1 %v1569_v53 }
 0x23a   : > { %2440 = vmatprep.subr.mxu1 %v1567_v56 }
 0x23b   : > { %2441 = vmatpush3.msra.mxu1 %v1567_v56 }
 0x2ad   : > { %v2874_v50 = vpop.f32.mrf.mxu0 }
 0x2af   : > { %v2876_v52 = vpop.f32.mrf.mxu0 }
 0x2b1   : > { %v2893_v11 = vpop.f32.mrf.mxu1 }
 0x2b3   : > { %v2895_v1 = vpop.f32.mrf.mxu1 }
 0x2bd   : > { %v2878_v55 = vpop.f32.mrf.mxu0 }
 0x2bf   : > { %v2882_v58 = vpop.f32.mrf.mxu0 }
 0x2c5   : > { %v2409_v60 = vpop.f32.mrf.mxu0 }
 0x2c6   : > { %v1131_v61 = vadd.f32 %v2409_v60, %v217_v59 }
 0x2c7   : > { %v1125_v63 = vpop.f32.mrf.mxu0 }
 0x2c8   : > { %v1410_v62 = vsel %vm248_vm0, %v1131_v61, -inf  ;;  %v1126_v7 = vadd.f32 %v1125_v63, %v216_v14 }
 0x2c9   : > { %1411 = vmax.xlane.f32.xlu1 %v1410_v62 }
 0x2ca   : > { %v1407_v20 = vsel %vm248_vm0, %v1126_v7, -inf }
 0x2de   : > { %v2423_v4 = vpop.f32.mrf.mxu0 }
 0x2df   : > { %v1313_v29 = vadd.f32 %v2423_v4, %v225_v21 }
 0x2e0   : > { %v1307_v0 = vpop.f32.mrf.mxu0 }
 0x2e1   : > { %v1308_v10 = vadd.f32 %v1307_v0, %v224_v5  ;;  %v1422_v37 = vsel %vm248_vm0, %v1313_v29, -inf }
 0x2e3   : > { %v1419_v2 = vsel %vm248_vm0, %v1308_v10, -inf }
 0x2e4   : > { %1420 = vmax.xlane.f32.xlu1 %v1419_v2 }
 0x2e8   : > { %v2897_v12 = vpop.f32.mrf.mxu1 }
 0x2ea   : > { %v2899_v13 = vpop.f32.mrf.mxu1 }
 0x2f0   : > { %v2416_v15 = vpop.f32.mrf.mxu1 }
 0x2f1   : > { %v1222_v3 = vadd.f32 %v2416_v15, %v221_v6 }
 0x2f2   : > { %v1216_v17 = vpop.f32.mrf.mxu1 }
 0x2f3   : > { %v1416_v16 = vsel %vm248_vm0, %v1222_v3, -inf  ;;  %v1217_v19 = vadd.f32 %v1216_v17, %v220_v18 }
 0x2f4   : > { %1417 = vmax.xlane.f32.xlu0 %v1416_v16 }
 0x2f5   : > { %v1413_v33 = vsel %vm248_vm0, %v1217_v19, -inf }
 0x2f8   : > { %1408 = vmax.xlane.f32.xlu0 %v1407_v20  ;;  %v2430_v22 = vpop.f32.mrf.mxu1  ;;  %v667_v20 = vsel %vm248_vm0, %v2833_v27, 0.0  ;;  %v670_v27 = vsel %vm248_vm0, %v2835_v31, 0.0 }
 0x2f9   : > { %v1404_v36 = vadd.f32 %v2430_v22, %v229_v34  ;;  %v673_v34 = vsel %vm248_vm0, %v2854_v45, 0.0 }
 0x2fa   : > { %v1398_v26 = vpop.f32.mrf.mxu1 }
 0x2fb   : > { %v1399_v32 = vadd.f32 %v1398_v26, %v228_v24  ;;  %v1428_v38 = vsel %vm248_vm0, %v1404_v36, -inf  ;;  %v231_v26 = vld [vmem:[%s3029_s2 + $0x8] sm:$0xff] }
 0x2fc   : > { %1414 = vmax.xlane.f32.xlu0 %v1413_v33  ;;  %v230_v33 = vld [vmem:[%s3029_s2] sm:$0xff] }
 0x2fd   : > { %v1425_v35 = vsel %vm248_vm0, %v1399_v32, -inf }
 0x2fe   : > { %1426 = vmax.xlane.f32.xlu1 %v1425_v35  ;;  %v676_v35 = vsel %vm248_vm0, %v2856_v46, 0.0 }
 0x300   : > { %1423 = vmax.xlane.f32.xlu0 %v1422_v37 }
 0x304   : > { %1429 = vmax.xlane.f32.xlu0 %v1428_v38 }
 0x30f   : > { %1740 = vrot.lane.b32.xlu1 %v2649_v9, %s2580_s19  ;;  %v1654_v9 = vpop.permute.xlu1 %1653 }
 0x31a   : > { %1742 = vrot.lane.b32.xlu0 %v2647_v8, %s2580_s19 }
 0x333   : > { %662 = vadd.xlane.f32.xlu1 %v661_v39 }
 0x337   : > { %665 = vadd.xlane.f32.xlu1 %v664_v40 }
 0x339   : > { %656 = vadd.xlane.f32.xlu0 %v655_v41 }
 0x33d   : > { %659 = vadd.xlane.f32.xlu0 %v658_v42 }
 0x352   : > { %v1412_v43 = vpop.xlane.xlu1 %1411 }
 0x353   : > { %v1432_v44 = vsub.f32 %v1131_v61, %v1412_v43 }
 0x355   : > { %v1441_v8 = vmul.f32 1.442695, %v1432_v44 }
 0x357   : > { %2520 = vpow2.f32 %v1441_v8 }
 0x364   : > { %v2521_v47 = vpop.eup %2520 }
 0x365   : > { %v1458_v28 = vsel %vm248_vm0, %v2521_v47, 0.0 }
 0x366   : > { %1459 = vadd.xlane.f32.xlu0 %v1458_v28 }
 0x36d   : > { %v1421_v48 = vpop.xlane.xlu1 %1420 }
 0x36e   : > { %v1435_v51 = vsub.f32 %v1308_v10, %v1421_v48 }
 0x370   : > { %v1447_v56 = vmul.f32 1.442695, %v1435_v51 }
 0x37d   : > { %v1418_v30 = vpop.xlane.xlu0 %1417 }
 0x37e   : > { %v1434_v49 = vsub.f32 %v1222_v3, %v1418_v30 }
 0x380   : > { %v1445_v53 = vmul.f32 1.442695, %v1434_v49 }
 0x381   : > { %v1409_v23 = vpop.xlane.xlu0 %1408 }
 0x382   : > { %2522 = vpow2.f32 %v1445_v53  ;;  %v1431_v54 = vsub.f32 %v1126_v7, %v1409_v23 }
 0x384   : > { %v1439_v25 = vmul.f32 1.442695, %v1431_v54 }
 0x385   : > { %v1415_v59 = vpop.xlane.xlu0 %1414 }
 0x386   : > { %2524 = vpow2.f32 %v1439_v25  ;;  %v1433_v60 = vsub.f32 %v1217_v19, %v1415_v59 }
 0x387   : > { %v1427_v61 = vpop.xlane.xlu1 %1426  ;;  %2526 = vpow2.f32 %v1447_v56 }
 0x388   : > { %v1443_v62 = vmul.f32 1.442695, %v1433_v60  ;;  %v1437_v63 = vsub.f32 %v1399_v32, %v1427_v61 }
 0x389   : > { %v1424_v4 = vpop.xlane.xlu0 %1423 }
 0x38a   : > { %2528 = vpow2.f32 %v1443_v62  ;;  %v1451_v5 = vmul.f32 1.442695, %v1437_v63  ;;  %v1436_v0 = vsub.f32 %v1313_v29, %v1424_v4 }
 0x38b   : > { %v1741_v24 = vpop.permute.xlu1 %1740 }
 0x38c   : > { %2530 = vpow2.f32 %v1451_v5  ;;  %v1449_v2 = vmul.f32 1.442695, %v1436_v0 }
 0x38d   : > { %v1430_v10 = vpop.xlane.xlu0 %1429 }
 0x38e   : > { %2532 = vpow2.f32 %v1449_v2  ;;  %v1438_v6 = vsub.f32 %v1404_v36, %v1430_v10 }
 0x38f   : > { %v2523_v14 = vpop.eup %2522 }
 0x390   : > { %v1453_v15 = vmul.f32 1.442695, %v1438_v6  ;;  %v1464_v3 = vsel %vm248_vm0, %v2523_v14, 0.0 }
 0x391   : > { %1465 = vadd.xlane.f32.xlu0 %v1464_v3  ;;  %v1743_v7 = vpop.permute.xlu0 %1742 }
 0x392   : > { %2534 = vpow2.f32 %v1453_v15  ;;  %2452 = vmatprep.subr.mxu1 %v1743_v7 }
 0x393   : > { %v2525_v16 = vpop.eup %2524 }
 0x394   : > { %2435 = vmatprep.mubr.msk.f32.mxu0 %vm248_vm0, %v2525_v16  ;;  %v1455_v17 = vsel %vm248_vm0, %v2525_v16, 0.0  ;;  %v2527_v18 = vpop.eup %2526 }
 0x395   : > { %2436 = vmatmul.mubr.msk.f32.vlgmr.msra.gmra.mxu0 %vm248_vm0, %v2521_v47  ;;  %1456 = vadd.xlane.f32.xlu1 %v1455_v17  ;;  %v1467_v31 = vsel %vm248_vm0, %v2527_v18, 0.0  ;;  %v233_v47 = vld [vmem:[%s3029_s2 + $0x18] sm:$0xff] }
 0x396   : > { %2446 = vmatpush3.msra.mxu0 %v2880_v57  ;;  %2449 = vmatprep.mubr.msk.f32.mxu0 %vm248_vm0, %v2527_v18 }
 0x397   : > { %v2529_v19 = vpop.eup %2528  ;;  %2447 = vmatprep.subr.mxu0 %v1654_v9 }
 0x398   : > { %2448 = vmatpush3.msra.mxu0 %v1654_v9  ;;  %2442 = vmatprep.mubr.msk.f32.mxu1 %vm248_vm0, %v2529_v19  ;;  %v1461_v21 = vsel %vm248_vm0, %v2529_v19, 0.0 }
 0x399   : > { %v2531_v22 = vpop.eup %2530  ;;  %668 = vadd.xlane.f32.xlu1 %v667_v20  ;;  %2443 = vmatmul.mubr.msk.f32.vlgmr.msra.gmra.mxu1 %vm248_vm0, %v2523_v14 }
 0x39a   : > { %1462 = vadd.xlane.f32.xlu0 %v1461_v21  ;;  %2456 = vmatprep.mubr.msk.f32.mxu1 %vm248_vm0, %v2531_v22  ;;  %v1473_v36 = vsel %vm248_vm0, %v2531_v22, 0.0 }
 0x39b   : > { %v2533_v57 = vpop.eup %2532  ;;  %2453 = vmatpush3.msra.mxu1 %v1743_v7  ;;  %2459 = vmatprep.subr.mxu0 %v233_v47 }
 0x39c   : > { %2450 = vmatmul.mubr.msk.f32.vlgmr.msra.gmra.mxu0 %vm248_vm0, %v2533_v57  ;;  %v1470_v29 = vsel %vm248_vm0, %v2533_v57, 0.0  ;;  %2454 = vmatprep.subr.mxu1 %v1741_v24 }
 0x39d   : > { %671 = vadd.xlane.f32.xlu1 %v670_v27  ;;  %2455 = vmatpush3.msra.mxu1 %v1741_v24 }
 0x39e   : > { %1471 = vadd.xlane.f32.xlu0 %v1470_v29  ;;  %2475 = vmatprep.subr.mxu1 %v231_v26 }
 0x39f   : > { %v2535_v32 = vpop.eup %2534  ;;  %2460 = vmatpush3.msra.mxu0 %v233_v47 }
 0x3a0   : > { %2457 = vmatmul.mubr.msk.f32.vlgmr.msra.gmra.mxu1 %vm248_vm0, %v2535_v32  ;;  %v1476_v37 = vsel %vm248_vm0, %v2535_v32, 0.0 }
 0x3a1   : > { %674 = vadd.xlane.f32.xlu1 %v673_v34  ;;  %2476 = vmatpush3.msra.mxu1 %v231_v26 }
 0x3a2   : > { %1468 = vadd.xlane.f32.xlu0 %v1467_v31  ;;  %2477 = vmatprep.subr.mxu1 %v230_v33 }
 0x3a3   : > { %2478 = vmatpush3.msra.mxu1 %v230_v33 }
 0x3a5   : > { %677 = vadd.xlane.f32.xlu1 %v676_v35 }
 0x3a6   : > { %1474 = vadd.xlane.f32.xlu0 %v1473_v36  ;;  %v2258_v36 = vld [vmem:[%s3030_s3] ss:$0 sm:$0xff] }
 0x3aa   : > { %1477 = vadd.xlane.f32.xlu0 %v1476_v37 }
 0x3bc   : > { %v663_v38 = vpop.xlane.xlu1 %662 }
 0x3c0   : > { %v666_v45 = vpop.xlane.xlu1 %665 }
 0x3c2   : > { %v657_v39 = vpop.xlane.xlu0 %656 }
 0x3c3   : > { %2536 = vrcp.f32 %v657_v39 }
 0x3c4   : > { %2538 = vrcp.f32 %v663_v38 }
 0x3c6   : > { %v660_v40 = vpop.xlane.xlu0 %659 }
 0x3c7   : > { %2540 = vrcp.f32 %v660_v40 }
 0x3c8   : > { %2542 = vrcp.f32 %v666_v45 }
 0x3d0   : > { %v2537_v41 = vpop.eup %2536 }
 0x3d1   : > { %v1035_v42 = vmul.f32 %v2537_v41, %v2876_v52  ;;  %v2539_v9 = vpop.eup %2538  ;;  %v232_v52 = vld [vmem:[%s3029_s2 + $0x10] sm:$0xff] }
 0x3d2   : > { %v1037_v8 = vmul.f32 %v2539_v9, %v2895_v1  ;;  %2461 = vmatprep.subr.mxu0 %v232_v52 }
 0x3d3   : > { %2479 = vmatprep.mubr.msk.f32.mxu1 %vm248_vm0, %v1035_v42  ;;  %2462 = vmatpush3.msra.mxu0 %v232_v52 }
 0x3d4   : > { %v2541_v46 = vpop.eup %2540 }
 0x3d5   : > { %v1036_v43 = vmul.f32 %v2541_v46, %v2874_v50  ;;  %v2543_v44 = vpop.eup %2542 }
 0x3d6   : > { %v1038_v28 = vmul.f32 %v2543_v44, %v2893_v11 }
 0x3d7   : > { %2480 = vmatmul.mubr.msk.f32.vlgmr.msra.gmra.mxu1 %vm248_vm0, %v1036_v43 }
 0x3d8   : > { %2482 = vmatprep.mubr.msk.f32.mxu1 %vm248_vm0, %v1037_v8 }
 0x3db   : > { %2483 = vmatmul.mubr.msk.f32.gmra.mxu1 %vm248_vm0, %v1038_v28 }
 0x3ef   : > { %v1460_v11 = vpop.xlane.xlu0 %1459 }
 0x41a   : > { %v1466_v25 = vpop.xlane.xlu0 %1465 }
 0x41e   : > { %v1457_v50 = vpop.xlane.xlu1 %1456 }
 0x422   : > { %v669_v1 = vpop.xlane.xlu1 %668 }
 0x423   : > { %2544 = vrcp.f32 %v669_v1  ;;  %v1463_v61 = vpop.xlane.xlu0 %1462 }
 0x426   : > { %v672_v48 = vpop.xlane.xlu1 %671 }
 0x427   : > { %2546 = vrcp.f32 %v672_v48 }
 0x42a   : > { %v675_v30 = vpop.xlane.xlu1 %674 }
 0x42b   : > { %2548 = vrcp.f32 %v675_v30 }
 0x42e   : > { %v678_v49 = vpop.xlane.xlu1 %677 }
 0x42f   : > { %2550 = vrcp.f32 %v678_v49 }
 0x430   : > { %v2545_v51 = vpop.eup %2544  ;;  %2552 = vrcp.f32 %v1457_v50 }
 0x431   : > { %v1039_v53 = vmul.f32 %v2545_v51, %v2882_v58  ;;  %v1472_v58 = vpop.xlane.xlu0 %1471  ;;  %2554 = vrcp.f32 %v1460_v11 }
 0x432   : > { %2556 = vrcp.f32 %v1463_v61 }
 0x433   : > { %2485 = vmatprep.mubr.msk.f32.mxu1 %vm248_vm0, %v1039_v53  ;;  %2558 = vrcp.f32 %v1466_v25 }
 0x434   : > { %v2547_v23 = vpop.eup %2546 }
 0x435   : > { %v1040_v54 = vmul.f32 %v2547_v23, %v2878_v55  ;;  %v1469_v63 = vpop.xlane.xlu0 %1468 }
 0x436   : > { %2560 = vrcp.f32 %v1469_v63 }
 0x437   : > { %2486 = vmatmul.mubr.msk.f32.gmra.mxu1 %vm248_vm0, %v1040_v54  ;;  %2562 = vrcp.f32 %v1472_v58 }
 0x438   : > { %v2549_v56 = vpop.eup %2548 }
 0x439   : > { %v1041_v59 = vmul.f32 %v2549_v56, %v2899_v13  ;;  %v1475_v55 = vpop.xlane.xlu0 %1474 }
 0x43a   : > { %2564 = vrcp.f32 %v1475_v55 }
 0x43b   : > { %2488 = vmatprep.mubr.msk.f32.mxu1 %vm248_vm0, %v1041_v59 }
 0x43c   : > { %v2551_v60 = vpop.eup %2550 }
 0x43d   : > { %v1042_v62 = vmul.f32 %v2551_v60, %v2897_v12  ;;  %v1478_v4 = vpop.xlane.xlu0 %1477  ;;  %v2553_v5 = vpop.eup %2552 }
 0x43e   : > { %2566 = vrcp.f32 %v1478_v4  ;;  %v2555_v2 = vpop.eup %2554 }
 0x43f   : > { %2489 = vmatmul.mubr.msk.f32.gmra.mxu1 %vm248_vm0, %v1042_v62  ;;  %v2557_v14 = vpop.eup %2556 }
 0x440   : > { %v2559_v3 = vpop.eup %2558 }
 0x443   : > { %v2561_v18 = vpop.eup %2560 }
 0x444   : > { %v2563_v21 = vpop.eup %2562 }
 0x447   : > { %v2565_v57 = vpop.eup %2564 }
 0x44b   : > { %v2567_v29 = vpop.eup %2566 }
 0x455   : > { %v2437_v13 = vpop.f32.mrf.mxu0 }
 0x456   : > { %v1836_v12 = vmul.f32 %v2555_v2, %v2437_v13 }
 0x457   : > { %v1557_v0 = vpop.f32.mrf.mxu0 }
 0x458   : > { %v1835_v10 = vmul.f32 %v2553_v5, %v1557_v0 }
 0x459   : > { %v2444_v6 = vpop.f32.mrf.mxu1 }
 0x45a   : > { %2463 = vmatprep.mubr.msk.f32.mxu0 %vm248_vm0, %v1835_v10  ;;  %v1838_v17 = vmul.f32 %v2559_v3, %v2444_v6 }
 0x45b   : > { %v1644_v15 = vpop.f32.mrf.mxu1  ;;  %2464 = vmatmul.mubr.msk.f32.vlgmr.msra.gmra.mxu0 %vm248_vm0, %v1836_v12 }
 0x45c   : > { %v1837_v7 = vmul.f32 %v2557_v14, %v1644_v15  ;;  %v2451_v16 = vpop.f32.mrf.mxu0 }
 0x45d   : > { %v1840_v24 = vmul.f32 %v2563_v21, %v2451_v16 }
 0x45e   : > { %v1731_v19 = vpop.f32.mrf.mxu0  ;;  %2466 = vmatprep.mubr.msk.f32.mxu0 %vm248_vm0, %v1837_v7 }
 0x45f   : > { %v1839_v20 = vmul.f32 %v2561_v18, %v1731_v19  ;;  %2467 = vmatmul.mubr.msk.f32.gmra.mxu0 %vm248_vm0, %v1838_v17 }
 0x460   : > { %v2458_v22 = vpop.f32.mrf.mxu1 }
 0x461   : > { %2469 = vmatprep.mubr.msk.f32.mxu0 %vm248_vm0, %v1839_v20  ;;  %v1842_v32 = vmul.f32 %v2567_v29, %v2458_v22 }
 0x462   : > { %v1818_v26 = vpop.f32.mrf.mxu1 }
 0x463   : > { %v1841_v27 = vmul.f32 %v2565_v57, %v1818_v26  ;;  %2470 = vmatmul.mubr.msk.f32.gmra.mxu0 %vm248_vm0, %v1840_v24 }
 0x465   : > { %2472 = vmatprep.mubr.msk.f32.mxu0 %vm248_vm0, %v1841_v27 }
 0x467   : > { %2473 = vmatmul.mubr.msk.f32.gmra.mxu0 %vm248_vm0, %v1842_v32 }
 0x497   : > { %v2481_v33 = vpop.f32.mrf.mxu1 }
 0x499   : > { %v2062_v34 = vpop.f32.mrf.mxu1 }
 0x49b   : > { %v2484_v31 = vpop.f32.mrf.mxu1 }
 0x49d   : > { %v2072_v38 = vpop.f32.mrf.mxu1 }
 0x4f7   : > { %v2487_v41 = vpop.f32.mrf.mxu1 }
 0x4f9   : > { %v2082_v47 = vpop.f32.mrf.mxu1 }
 0x4ff   : > { %v2490_v1 = vpop.f32.mrf.mxu1 }
 0x501   : > { %v2092_v11 = vpop.f32.mrf.mxu1 }
 0x51b   : > { %v2465_v35 = vpop.f32.mrf.mxu0 }
 0x51c   : > { %v2068_v37 = vadd.f32 %v2481_v33, %v2465_v35 }
 0x51d   : > { %v1933_v39 = vpop.f32.mrf.mxu0 }
 0x51e   : > { %v2109_v45 = vadd.f32 %v2258_v36, %v2068_v37  ;;  %v2063_v40 = vadd.f32 %v2062_v34, %v1933_v39 }
 0x51f   : > { %v2468_v42 = vpop.f32.mrf.mxu0 }
 0x520   : > { %2118 = vst.msk [vmem:[%s3006_s25 + $0x8] sm:$0xff] %vm2116_vm1, %v2109_v45  ;;  %v2108_v9 = vadd.f32 %v2258_v36, %v2063_v40  ;;  %v2078_v46 = vadd.f32 %v2484_v31, %v2468_v42 }
 0x521   : > { %v1943_v43 = vpop.f32.mrf.mxu0 }
 0x522   : > { %2117 = vst.msk [vmem:[%s3006_s25] sm:$0xff] %vm2116_vm1, %v2108_v9  ;;  %v2111_v44 = vadd.f32 %v2258_v36, %v2078_v46  ;;  %v2073_v8 = vadd.f32 %v2072_v38, %v1943_v43 }
 0x523   : > { %v2471_v52 = vpop.f32.mrf.mxu0 }
 0x524   : > { %2120 = vst.msk [vmem:[%s3006_s25 + $0x18] sm:$0xff] %vm2116_vm1, %v2111_v44  ;;  %v2110_v28 = vadd.f32 %v2258_v36, %v2073_v8  ;;  %v2088_v50 = vadd.f32 %v2487_v41, %v2471_v52 }
 0x525   : > { %v1953_v48 = vpop.f32.mrf.mxu0 }
 0x526   : > { %2119 = vst.msk [vmem:[%s3006_s25 + $0x10] sm:$0xff] %vm2116_vm1, %v2110_v28  ;;  %v2113_v30 = vadd.f32 %v2258_v36, %v2088_v50  ;;  %v2083_v49 = vadd.f32 %v2082_v47, %v1953_v48 }
 0x527   : > { %v2474_v51 = vpop.f32.mrf.mxu0 }
 0x528   : > { %2122 = vst.msk [vmem:[%s3006_s25 + $0x28] sm:$0xff] %vm2116_vm1, %v2113_v30  ;;  %v2112_v53 = vadd.f32 %v2258_v36, %v2083_v49  ;;  %v2098_v23 = vadd.f32 %v2490_v1, %v2474_v51 }
 0x529   : > { %v1963_v54 = vpop.f32.mrf.mxu0 }
 0x52a   : > { %2121 = vst.msk [vmem:[%s3006_s25 + $0x20] sm:$0xff] %vm2116_vm1, %v2112_v53  ;;  %v2115_v56 = vadd.f32 %v2258_v36, %v2098_v23  ;;  %v2093_v25 = vadd.f32 %v2092_v11, %v1963_v54 }
 0x52c   : > { %2124 = vst.msk [vmem:[%s3006_s25 + $0x38] sm:$0xff] %vm2116_vm1, %v2115_v56  ;;  %v2114_v59 = vadd.f32 %v2258_v36, %v2093_v25 }
 0x52e   : > { %2123 = vst.msk [vmem:[%s3006_s25 + $0x30] sm:$0xff] %vm2116_vm1, %v2114_v59 }
 0x52f PF: > { %s14_s15 = sadd.s32 1, %s2574_s15  }
 0x530   : > { %p11_p4 = scmp.ge.s32.totalorder %s14_s15, 4  }
 0x532   :  { %13 = sbr.rel (!%p11_p4) target bundleno = 1 (0x1), region = 66 }

// kernel: swin_transformer_forward.34
= control target key start
LH: loop header
LB: loop body
LE: loop exit
PB: predicated region body
PF: predicated region fallthrough
CT: control target
= control target key end

     0   :  { %s1677_s15 = smov 0   ;;  %s1879_s0 = inlined_call_operand.vmem [shape: f32[2,16,192], index: 0, kind: input, shape index: {}]   ;;  %s1880_s1 = inlined_call_operand.vmem [shape: f32[1,4,16,16], index: 1, kind: input, shape index: {}]   ;;  %s1881_s2 = inlined_call_operand.vmem [shape: f32[64,64], index: 2, kind: input, shape index: {}]   ;;  %s1882_s3 = inlined_call_operand.vmem [shape: f32[1,64], index: 3, kind: input, shape index: {}]   ;;  %s1883_s4 = inlined_call_operand.vmem [shape: f32[2,16,64], index: 4, kind: output, shape index: {}]  }
   0x1 LB: > { %s1412_s16 = sadd.s32 4294967295, %s1643_s15   ;;  %p1416_p0 = scmp.ge.s32.totalorder %s1643_s15, 1  ;;  %s1643_s15 = sphi %s1677_s15, %s14_s15  }
   0x2   : > { %p162_p1 = scmp.lt.s32.totalorder %s1643_s15, 3 }
   0x4   : > { %p163_p2 = pnand %p1416_p0, %p162_p1 }
   0x5   : > { %p188_p3 = scmp.lt.s32.totalorder (!%p163_p2), %s1412_s16, 1  ;;  %s1645_s21 = smov (!%p163_p2), 64  }
   0x6   : > { %166 = sbr.rel (%p163_p2) target bundleno = 2019 (0x7e3), region = 36  ;;  %s1646_s22 = smov (!%p163_p2), 48  }
   0x7   : > { %s1647_s23 = smov (!%p163_p2), 112   ;;  %s1648_s6 = smov (!%p163_p2), 32  }
   0x8   : > { %s1649_s7 = smov (!%p163_p2), 16   ;;  %s1650_s8 = smov (!%p163_p2), 80  }
   0x9   : > { %s1651_s9 = smov (!%p163_p2), 96  }
   0xb   : > { %s1885_s16 = smov (!%p188_p3, %s1412_s16), 1  ;;  %vm226_vm0 = vcmask 130048   ;;  %v203_v6 = vld [vmem:[%s1880_s1 + $0x8] sm:$0xff]  ;;  %v202_v8 = vld [vmem:[%s1880_s1] sm:$0xff]  ;;  %v205_v30 = vld [vmem:[%s1880_s1 + $0x18] sm:$0xff]  ;;  %vm1354_vm1 = vcmask 523264  }
   0xc   : > { %s1456_s17 = sshll.u32 %s1885_s16, 5  ;;  %v204_v32 = vld [vmem:[%s1880_s1 + $0x10] sm:$0xff]  ;;  %v213_v51 = vld [vmem:[%s1881_s2 + $0x18] sm:$0xff]  ;;  %v211_v54 = vld [vmem:[%s1881_s2 + $0x8] sm:$0xff]  ;;  %s1457_s10 = sshll.u32 %s1885_s16, 4 }
   0xd   : > { %s1691_s20 = scalar_lea.vmem %s1879_s0, %s1456_s17  ;;  %v212_v52 = vld [vmem:[%s1881_s2 + $0x10] sm:$0xff]  ;;  %v210_v55 = vld [vmem:[%s1881_s2] sm:$0xff]  ;;  %s197_s17 = scalar_lea.vmem %s1883_s4, %s1457_s10 }
   0xe   : > { %v1694_v0 = vld [vmem:[%s1691_s20 + $0x10] sm:$0xff]  ;;  %v1697_v1 = vld [vmem:[%s1691_s20] sm:$0xff]  ;;  %v1729_v14 = vld [vmem:[%s1691_s20 + $0x18] sm:$0xff] }
   0xf   : > { %224 = vrot.lane.b32.xlu0 %v1694_v0, %s1645_s21  ;;  %v1701_v2 = vmul.f32 0.25, %v1697_v1  ;;  %v1710_v5 = vmul.f32 0.25, %v1694_v0  ;;  %v1732_v15 = vld [vmem:[%s1691_s20 + $0x8] sm:$0xff]  ;;  %1513 = vmatprep.subr.mxu1 %v1729_v14 }
  0x10   : > { %1514 = vmatpush3.msra.mxu1 %v1729_v14 }
  0x11   : > { %1510 = vmatprep.mubr.msk.f32.mxu0 %vm226_vm0, %v1701_v2  ;;  %1515 = vmatprep.subr.mxu1 %v1732_v15 }
  0x12   : > { %1516 = vmatpush3.msra.mxu1 %v1732_v15 }
  0x13   : > { %222 = vrot.lane.b32.xlu0 %v1697_v1, %s1645_s21 }
  0x17   : > { %421 = vrot.lane.b32.xlu0 %v1694_v0, %s1646_s22 }
  0x1b   : > { %415 = vrot.lane.b32.xlu0 %v1701_v2, %s1647_s23 }
  0x1f   : > { %417 = vrot.lane.b32.xlu0 %v1710_v5, %s1647_s23 }
  0x81   : > { %v225_v3 = vpop.permute.xlu0 %224 }
  0x82   : > { %1506 = vmatprep.subr.msk.mxu0 %vm226_vm0, %v225_v3 }
  0x83   : > { %1507 = vmatpush3.xpose.msk.msra.mxu0 %vm226_vm0, %v225_v3 }
  0x85   : > { %v223_v4 = vpop.permute.xlu0 %222 }
  0x86   : > { %1508 = vmatprep.subr.msk.mxu0 %vm226_vm0, %v223_v4 }
  0x87   : > { %1509 = vmatpush3.xpose.msk.msra.mxu0 %vm226_vm0, %v223_v4 }
  0x89   : > { %v422_v16 = vpop.permute.xlu0 %421 }
  0x8a   : > { %1511 = vmatmul.mubr.msk.f32.vlgmr.msra.gmra.mxu0 %vm226_vm0, %v1710_v5  ;;  %1520 = vmatprep.subr.msk.mxu1 %vm226_vm0, %v422_v16 }
  0x8d   : > { %v416_v24 = vpop.permute.xlu0 %415 }
  0x91   : > { %v418_v27 = vpop.permute.xlu0 %417 }
 0x14a   : > { %v1512_v7 = vpop.f32.mrf.mxu0 }
 0x14b   : > { %v309_v9 = vadd.f32 %v1512_v7, %v203_v6 }
 0x14c   : > { %v303_v10 = vpop.f32.mrf.mxu0 }
 0x14d   : > { %v304_v11 = vadd.f32 %v303_v10, %v202_v8  ;;  %v315_v12 = vsel %vm226_vm0, %v309_v9, -inf }
 0x14e   : > { %316 = vmax.xlane.f32.xlu1 %v315_v12 }
 0x14f   : > { %v312_v13 = vsel %vm226_vm0, %v304_v11, -inf }
 0x152   : > { %313 = vmax.xlane.f32.xlu1 %v312_v13 }
 0x163   : > { %419 = vrot.lane.b32.xlu1 %v1697_v1, %s1646_s22 }
 0x1d7   : > { %v317_v17 = vpop.xlane.xlu1 %316 }
 0x1d8   : > { %v319_v18 = vsub.f32 %v309_v9, %v317_v17 }
 0x1da   : > { %v322_v21 = vmul.f32 1.442695, %v319_v18  ;;  %v207_v18 = vld [vmem:[%s1880_s1 + $0x28] sm:$0xff] }
 0x1db   : > { %v314_v19 = vpop.xlane.xlu1 %313 }
 0x1dc   : > { %v318_v20 = vsub.f32 %v304_v11, %v314_v19 }
 0x1de   : > { %v320_v22 = vmul.f32 1.442695, %v318_v20  ;;  %v206_v20 = vld [vmem:[%s1880_s1 + $0x20] sm:$0xff] }
 0x1df   : > { %v420_v26 = vpop.permute.xlu1 %419 }
 0x1e0   : > { %1605 = vpow2.f32 %v320_v22 }
 0x1e1   : > { %1607 = vpow2.f32 %v322_v21 }
 0x1ed   : > { %v1606_v23 = vpop.eup %1605 }
 0x1ee   : > { %v1740_v25 = vpop.eup %1607  ;;  %1517 = vmatprep.mubr.msk.f32.mxu1 %vm226_vm0, %v1606_v23  ;;  %v324_v50 = vsel %vm226_vm0, %v1606_v23, 0.0 }
 0x1ef   : > { %1518 = vmatmul.mubr.msk.f32.vlgmr.msra.gmra.mxu1 %vm226_vm0, %v1740_v25  ;;  %v327_v53 = vsel %vm226_vm0, %v1740_v25, 0.0 }
 0x1f0   : > { %1521 = vmatpush3.xpose.msk.msra.mxu1 %vm226_vm0, %v422_v16  ;;  %1524 = vmatprep.mubr.msk.f32.mxu1 %vm226_vm0, %v416_v24 }
 0x1f1   : > { %1522 = vmatprep.subr.msk.mxu1 %vm226_vm0, %v420_v26 }
 0x1f4   : > { %1523 = vmatpush3.xpose.msk.msra.mxu1 %vm226_vm0, %v420_v26 }
 0x1f5   : > { %1541 = vmatprep.subr.mxu1 %v211_v54 }
 0x1f7   : > { %1525 = vmatmul.mubr.msk.f32.vlgmr.msra.gmra.mxu1 %vm226_vm0, %v418_v27 }
 0x1f8   : > { %1542 = vmatpush3.msra.mxu1 %v211_v54 }
 0x1f9   : > { %1543 = vmatprep.subr.mxu1 %v210_v55 }
 0x1fa   : > { %1544 = vmatpush3.msra.mxu1 %v210_v55 }
 0x2af   : > { %v1750_v28 = vpop.f32.mrf.mxu1 }
 0x2b1   : > { %v1752_v29 = vpop.f32.mrf.mxu1 }
 0x2b7   : > { %v1526_v31 = vpop.f32.mrf.mxu1 }
 0x2b8   : > { %v503_v33 = vadd.f32 %v1526_v31, %v205_v30  ;;  %v208_v31 = vld [vmem:[%s1880_s1 + $0x30] sm:$0xff] }
 0x2b9   : > { %v497_v34 = vpop.f32.mrf.mxu1 }
 0x2ba   : > { %v498_v35 = vadd.f32 %v497_v34, %v204_v32  ;;  %v509_v36 = vsel %vm226_vm0, %v503_v33, -inf }
 0x2bb   : > { %510 = vmax.xlane.f32.xlu1 %v509_v36 }
 0x2bc   : > { %v506_v37 = vsel %vm226_vm0, %v498_v35, -inf }
 0x2bd   : > { %507 = vmax.xlane.f32.xlu0 %v506_v37 }
 0x2cc   : > { %526 = vrot.lane.b32.xlu1 %v1732_v15, %s1647_s23 }
 0x2d3   : > { %528 = vrot.lane.b32.xlu0 %v1729_v14, %s1647_s23 }
 0x344   : > { %v511_v38 = vpop.xlane.xlu1 %510 }
 0x345   : > { %v513_v39 = vsub.f32 %v503_v33, %v511_v38 }
 0x346   : > { %v508_v40 = vpop.xlane.xlu0 %507 }
 0x347   : > { %v516_v41 = vmul.f32 1.442695, %v513_v39  ;;  %v512_v42 = vsub.f32 %v498_v35, %v508_v40 }
 0x348   : > { %v527_v45 = vpop.permute.xlu1 %526 }
 0x349   : > { %1609 = vpow2.f32 %v516_v41  ;;  %v514_v43 = vmul.f32 1.442695, %v512_v42 }
 0x34a   : > { %v529_v44 = vpop.permute.xlu0 %528 }
 0x34b   : > { %1611 = vpow2.f32 %v514_v43  ;;  %1527 = vmatprep.subr.mxu0 %v529_v44 }
 0x34c   : > { %1528 = vmatpush3.msra.mxu0 %v529_v44 }
 0x34d   : > { %1529 = vmatprep.subr.mxu0 %v527_v45 }
 0x34e   : > { %1530 = vmatpush3.msra.mxu0 %v527_v45 }
 0x34f   : > { %1534 = vmatprep.subr.mxu0 %v213_v51 }
 0x356   : > { %v1610_v46 = vpop.eup %1609 }
 0x357   : > { %v521_v47 = vsel %vm226_vm0, %v1610_v46, 0.0 }
 0x358   : > { %v1612_v48 = vpop.eup %1611  ;;  %522 = vadd.xlane.f32.xlu1 %v521_v47 }
 0x359   : > { %1531 = vmatprep.mubr.msk.f32.mxu0 %vm226_vm0, %v1612_v48  ;;  %v518_v49 = vsel %vm226_vm0, %v1612_v48, 0.0 }
 0x35a   : > { %519 = vadd.xlane.f32.xlu0 %v518_v49  ;;  %1532 = vmatmul.mubr.msk.f32.vlgmr.msra.gmra.mxu0 %vm226_vm0, %v1610_v46 }
 0x35b   : > { %1535 = vmatpush3.msra.mxu0 %v213_v51 }
 0x35c   : > { %1536 = vmatprep.subr.mxu0 %v212_v52 }
 0x35d   : > { %1537 = vmatpush3.msra.mxu0 %v212_v52 }
 0x369   : > { %783 = vrot.lane.b32.xlu1 %v1697_v1, %s1648_s6 }
 0x36d   : > { %1068 = vrot.lane.b32.xlu1 %v1694_v0, %s1649_s7 }
 0x370   : > { %785 = vrot.lane.b32.xlu0 %v1694_v0, %s1648_s6 }
 0x371   : > { %1062 = vrot.lane.b32.xlu1 %v1701_v2, %s1650_s8 }
 0x374   : > { %779 = vrot.lane.b32.xlu0 %v1701_v2, %s1651_s9 }
 0x378   : > { %781 = vrot.lane.b32.xlu0 %v1710_v5, %s1651_s9 }
 0x37c   : > { %1066 = vrot.lane.b32.xlu0 %v1697_v1, %s1649_s7 }
 0x380   : > { %1064 = vrot.lane.b32.xlu0 %v1710_v5, %s1650_s8 }
 0x395   : > { %325 = vadd.xlane.f32.xlu1 %v324_v50 }
 0x39f   : > { %328 = vadd.xlane.f32.xlu0 %v327_v53 }
 0x3e1   : > { %v523_v58 = vpop.xlane.xlu1 %522 }
 0x3e3   : > { %v520_v56 = vpop.xlane.xlu0 %519 }
 0x3e4   : > { %1613 = vrcp.f32 %v520_v56 }
 0x3e5   : > { %v784_v59 = vpop.permute.xlu1 %783  ;;  %1615 = vrcp.f32 %v523_v58 }
 0x3e7   : > { %v786_v57 = vpop.permute.xlu0 %785 }
 0x3e8   : > { %1548 = vmatprep.subr.msk.mxu0 %vm226_vm0, %v786_v57 }
 0x3e9   : > { %v1069_v61 = vpop.permute.xlu1 %1068 }
 0x3eb   : > { %v780_v60 = vpop.permute.xlu0 %779 }
 0x3ed   : > { %v1063_v63 = vpop.permute.xlu1 %1062 }
 0x3ef   : > { %v782_v62 = vpop.permute.xlu0 %781 }
 0x3f1   : > { %v1614_v1 = vpop.eup %1613 }
 0x3f2   : > { %v1616_v4 = vpop.eup %1615 }
 0x3f3   : > { %v1067_v3 = vpop.permute.xlu0 %1066 }
 0x3f7   : > { %v1065_v8 = vpop.permute.xlu0 %1064 }
 0x41a   : > { %v1533_v0 = vpop.f32.mrf.mxu0 }
 0x41b   : > { %v616_v6 = vmul.f32 %v1616_v4, %v1533_v0 }
 0x41c   : > { %v604_v2 = vpop.f32.mrf.mxu0 }
 0x41d   : > { %v615_v5 = vmul.f32 %v1614_v1, %v604_v2 }
 0x41e   : > { %v326_v7 = vpop.xlane.xlu1 %325 }
 0x41f   : > { %1617 = vrcp.f32 %v326_v7  ;;  %1538 = vmatprep.mubr.msk.f32.mxu0 %vm226_vm0, %v615_v5  ;;  %v217_v5 = vld [vmem:[%s1881_s2 + $0x38] sm:$0xff] }
 0x420   : > { %1539 = vmatmul.mubr.msk.f32.vlgmr.msra.gmra.mxu0 %vm226_vm0, %v616_v6  ;;  %v216_v6 = vld [vmem:[%s1881_s2 + $0x30] sm:$0xff] }
 0x421   : > { %1549 = vmatpush3.xpose.msk.msra.mxu0 %vm226_vm0, %v786_v57  ;;  %1552 = vmatprep.mubr.msk.f32.mxu0 %vm226_vm0, %v780_v60 }
 0x422   : > { %1550 = vmatprep.subr.msk.mxu0 %vm226_vm0, %v784_v59 }
 0x425   : > { %1551 = vmatpush3.xpose.msk.msra.mxu0 %vm226_vm0, %v784_v59 }
 0x426   : > { %1569 = vmatprep.subr.msk.mxu0 %vm226_vm0, %v1069_v61 }
 0x428   : > { %1553 = vmatmul.mubr.msk.f32.vlgmr.msra.gmra.mxu0 %vm226_vm0, %v782_v62  ;;  %v329_v9 = vpop.xlane.xlu0 %328 }
 0x429   : > { %1619 = vrcp.f32 %v329_v9  ;;  %1570 = vmatpush3.xpose.msk.msra.mxu0 %vm226_vm0, %v1069_v61  ;;  %1573 = vmatprep.mubr.msk.f32.mxu0 %vm226_vm0, %v1063_v63 }
 0x42a   : > { %1571 = vmatprep.subr.msk.mxu0 %vm226_vm0, %v1067_v3 }
 0x42c   : > { %v1618_v10 = vpop.eup %1617 }
 0x42d   : > { %v413_v11 = vmul.f32 %v1618_v10, %v1752_v29  ;;  %1572 = vmatpush3.xpose.msk.msra.mxu0 %vm226_vm0, %v1067_v3  ;;  %v209_v29 = vld [vmem:[%s1880_s1 + $0x38] sm:$0xff] }
 0x42f   : > { %1545 = vmatprep.mubr.msk.f32.mxu1 %vm226_vm0, %v413_v11 }
 0x430   : > { %1574 = vmatmul.mubr.msk.f32.vlgmr.msra.gmra.mxu0 %vm226_vm0, %v1065_v8 }
 0x436   : > { %v1620_v12 = vpop.eup %1619 }
 0x437   : > { %v414_v13 = vmul.f32 %v1620_v12, %v1750_v28 }
 0x439   : > { %1546 = vmatmul.mubr.msk.f32.vlgmr.msra.gmra.mxu1 %vm226_vm0, %v414_v13 }
 0x4e0   : > { %v1540_v16 = vpop.f32.mrf.mxu0 }
 0x4e2   : > { %v1815_v17 = vpop.f32.mrf.mxu0 }
 0x4e8   : > { %v1554_v19 = vpop.f32.mrf.mxu0 }
 0x4e9   : > { %v867_v21 = vadd.f32 %v1554_v19, %v207_v18 }
 0x4ea   : > { %v861_v22 = vpop.f32.mrf.mxu0 }
 0x4eb   : > { %v862_v23 = vadd.f32 %v861_v22, %v206_v20  ;;  %v873_v24 = vsel %vm226_vm0, %v867_v21, -inf }
 0x4ec   : > { %874 = vmax.xlane.f32.xlu1 %v873_v24 }
 0x4ed   : > { %v870_v25 = vsel %vm226_vm0, %v862_v23, -inf }
 0x4ee   : > { %871 = vmax.xlane.f32.xlu0 %v870_v25 }
 0x4f0   : > { %v1575_v28 = vpop.f32.mrf.mxu0 }
 0x4f1   : > { %v1150_v32 = vadd.f32 %v1575_v28, %v209_v29 }
 0x4f2   : > { %v1144_v30 = vpop.f32.mrf.mxu0 }
 0x4f3   : > { %v1145_v33 = vadd.f32 %v1144_v30, %v208_v31  ;;  %v1156_v34 = vsel %vm226_vm0, %v1150_v32, -inf }
 0x4f5   : > { %v1153_v35 = vsel %vm226_vm0, %v1145_v33, -inf }
 0x4f9   : > { %v1547_v26 = vpop.f32.mrf.mxu1 }
 0x4fa   : > { %v1825_v27 = vadd.f32 %v1547_v26, %v1540_v16 }
 0x4fb   : > { %v770_v61 = vpop.f32.mrf.mxu1 }
 0x4fc   : > { %v771_v10 = vadd.f32 %v770_v61, %v1815_v17  ;;  %v1453_v17 = vld [vmem:[%s1882_s3] ss:$0 sm:$0xff] }
 0x4fd   : > { %888 = vrot.lane.b32.xlu1 %v1732_v15, %s1651_s9 }
 0x504   : > { %890 = vrot.lane.b32.xlu0 %v1729_v14, %s1651_s9 }
 0x521   : > { %1157 = vmax.xlane.f32.xlu1 %v1156_v34 }
 0x523   : > { %1154 = vmax.xlane.f32.xlu0 %v1153_v35 }
 0x575   : > { %v875_v36 = vpop.xlane.xlu1 %874 }
 0x576   : > { %v877_v37 = vsub.f32 %v867_v21, %v875_v36 }
 0x577   : > { %v872_v38 = vpop.xlane.xlu0 %871 }
 0x578   : > { %v880_v39 = vmul.f32 1.442695, %v877_v37  ;;  %v876_v40 = vsub.f32 %v862_v23, %v872_v38 }
 0x579   : > { %v889_v43 = vpop.permute.xlu1 %888 }
 0x57a   : > { %1621 = vpow2.f32 %v880_v39  ;;  %v878_v41 = vmul.f32 1.442695, %v876_v40 }
 0x57b   : > { %v891_v42 = vpop.permute.xlu0 %890 }
 0x57c   : > { %1623 = vpow2.f32 %v878_v41  ;;  %1555 = vmatprep.subr.mxu1 %v891_v42 }
 0x57d   : > { %1556 = vmatpush3.msra.mxu1 %v891_v42 }
 0x57e   : > { %1557 = vmatprep.subr.mxu1 %v889_v43 }
 0x57f   : > { %1558 = vmatpush3.msra.mxu1 %v889_v43 }
 0x587   : > { %v1622_v44 = vpop.eup %1621 }
 0x588   : > { %v885_v45 = vsel %vm226_vm0, %v1622_v44, 0.0 }
 0x589   : > { %v1624_v46 = vpop.eup %1623  ;;  %886 = vadd.xlane.f32.xlu0 %v885_v45 }
 0x58a   : > { %1559 = vmatprep.mubr.msk.f32.mxu1 %vm226_vm0, %v1624_v46  ;;  %v882_v47 = vsel %vm226_vm0, %v1624_v46, 0.0 }
 0x58b   : > { %883 = vadd.xlane.f32.xlu1 %v882_v47  ;;  %1560 = vmatmul.mubr.msk.f32.vlgmr.msra.gmra.mxu1 %vm226_vm0, %v1622_v44 }
 0x59c   : > { %1171 = vrot.lane.b32.xlu1 %v1732_v15, %s1650_s8  ;;  %v214_v15 = vld [vmem:[%s1881_s2 + $0x20] sm:$0xff] }
 0x59f   : > { %1173 = vrot.lane.b32.xlu0 %v1729_v14, %s1650_s8  ;;  %v215_v14 = vld [vmem:[%s1881_s2 + $0x28] sm:$0xff] }
 0x5a0   : > { %1562 = vmatprep.subr.mxu1 %v215_v14 }
 0x5a1   : > { %1563 = vmatpush3.msra.mxu1 %v215_v14 }
 0x5a2   : > { %1564 = vmatprep.subr.mxu1 %v214_v15 }
 0x5a3   : > { %1565 = vmatpush3.msra.mxu1 %v214_v15 }
 0x5aa   : > { %v1158_v48 = vpop.xlane.xlu1 %1157 }
 0x5ab   : > { %v1160_v49 = vsub.f32 %v1150_v32, %v1158_v48 }
 0x5ac   : > { %v1155_v50 = vpop.xlane.xlu0 %1154 }
 0x5ad   : > { %v1163_v51 = vmul.f32 1.442695, %v1160_v49  ;;  %v1159_v52 = vsub.f32 %v1145_v33, %v1155_v50 }
 0x5af   : > { %1625 = vpow2.f32 %v1163_v51  ;;  %v1161_v53 = vmul.f32 1.442695, %v1159_v52 }
 0x5b1   : > { %1627 = vpow2.f32 %v1161_v53 }
 0x5bc   : > { %v1626_v54 = vpop.eup %1625 }
 0x5bd   : > { %v1168_v55 = vsel %vm226_vm0, %v1626_v54, 0.0 }
 0x5be   : > { %v1628_v56 = vpop.eup %1627  ;;  %1169 = vadd.xlane.f32.xlu0 %v1168_v55 }
 0x5bf   : > { %v1165_v57 = vsel %vm226_vm0, %v1628_v56, 0.0 }
 0x5c0   : > { %1166 = vadd.xlane.f32.xlu1 %v1165_v57 }
 0x612   : > { %v887_v58 = vpop.xlane.xlu0 %886 }
 0x614   : > { %v884_v60 = vpop.xlane.xlu1 %883 }
 0x615   : > { %1629 = vrcp.f32 %v884_v60 }
 0x616   : > { %v1174_v59 = vpop.permute.xlu0 %1173  ;;  %1631 = vrcp.f32 %v887_v58 }
 0x617   : > { %1576 = vmatprep.subr.mxu1 %v1174_v59 }
 0x618   : > { %v1172_v4 = vpop.permute.xlu1 %1171 }
 0x622   : > { %v1630_v63 = vpop.eup %1629 }
 0x623   : > { %v1632_v1 = vpop.eup %1631 }
 0x647   : > { %v1170_v8 = vpop.xlane.xlu0 %1169 }
 0x649   : > { %v1167_v7 = vpop.xlane.xlu1 %1166 }
 0x64a   : > { %1633 = vrcp.f32 %v1167_v7 }
 0x64b   : > { %v1561_v62 = vpop.f32.mrf.mxu1  ;;  %1635 = vrcp.f32 %v1170_v8 }
 0x64c   : > { %v978_v3 = vmul.f32 %v1632_v1, %v1561_v62 }
 0x64d   : > { %v966_v0 = vpop.f32.mrf.mxu1 }
 0x64e   : > { %v977_v2 = vmul.f32 %v1630_v63, %v966_v0 }
 0x650   : > { %1566 = vmatprep.mubr.msk.f32.mxu1 %vm226_vm0, %v977_v2 }
 0x651   : > { %1567 = vmatmul.mubr.msk.f32.vlgmr.msra.gmra.mxu1 %vm226_vm0, %v978_v3 }
 0x652   : > { %1577 = vmatpush3.msra.mxu1 %v1174_v59  ;;  %1580 = vmatprep.mubr.msk.f32.mxu1 %vm226_vm0, %v1628_v56 }
 0x653   : > { %1578 = vmatprep.subr.mxu1 %v1172_v4 }
 0x654   : > { %1579 = vmatpush3.msra.mxu1 %v1172_v4 }
 0x655   : > { %1581 = vmatmul.mubr.msk.f32.vlgmr.msra.gmra.mxu1 %vm226_vm0, %v1626_v54  ;;  %1583 = vmatprep.subr.mxu1 %v217_v5 }
 0x656   : > { %1584 = vmatpush3.msra.mxu1 %v217_v5 }
 0x657   : > { %1585 = vmatprep.subr.mxu1 %v216_v6  ;;  %v1634_v18 = vpop.eup %1633 }
 0x658   : > { %1586 = vmatpush3.msra.mxu1 %v216_v6  ;;  %v1636_v20 = vpop.eup %1635 }
 0x711   : > { %v1568_v9 = vpop.f32.mrf.mxu1 }
 0x712   : > { %v1061_v11 = vadd.f32 %v1568_v9, %v1825_v27 }
 0x713   : > { %v1051_v12 = vpop.f32.mrf.mxu1 }
 0x714   : > { %v1060_v13 = vadd.f32 %v1051_v12, %v771_v10 }
 0x715   : > { %v1582_v16 = vpop.f32.mrf.mxu1 }
 0x716   : > { %v1261_v22 = vmul.f32 %v1636_v20, %v1582_v16 }
 0x717   : > { %v1249_v19 = vpop.f32.mrf.mxu1 }
 0x718   : > { %v1260_v21 = vmul.f32 %v1634_v18, %v1249_v19 }
 0x71a   : > { %1587 = vmatprep.mubr.msk.f32.mxu1 %vm226_vm0, %v1260_v21 }
 0x71b   : > { %1588 = vmatmul.mubr.msk.f32.vlgmr.msra.gmra.mxu1 %vm226_vm0, %v1261_v22 }
 0x7db   : > { %v1589_v23 = vpop.f32.mrf.mxu1 }
 0x7dc   : > { %v1344_v24 = vadd.f32 %v1589_v23, %v1061_v11 }
 0x7dd   : > { %v1334_v25 = vpop.f32.mrf.mxu1 }
 0x7de   : > { %v1353_v26 = vadd.f32 %v1453_v17, %v1344_v24  ;;  %v1343_v27 = vadd.f32 %v1334_v25, %v1060_v13 }
 0x7e0   : > { %1356 = vst.msk [vmem:[%s197_s17 + $0x8] sm:$0xff] %vm1354_vm1, %v1353_v26  ;;  %v1352_v28 = vadd.f32 %v1453_v17, %v1343_v27 }
 0x7e2   : > { %1355 = vst.msk [vmem:[%s197_s17] sm:$0xff] %vm1354_vm1, %v1352_v28 }
 0x7e3 PF: > { %s14_s15 = sadd.s32 1, %s1643_s15  }
 0x7e4   : > { %p11_p4 = scmp.ge.s32.totalorder %s14_s15, 4  }
 0x7e6   :  { %13 = sbr.rel (!%p11_p4) target bundleno = 1 (0x1), region = 66 }

// kernel: swin_transformer_forward.35
= control target key start
LH: loop header
LB: loop body
LE: loop exit
PB: predicated region body
PF: predicated region fallthrough
CT: control target
= control target key end

     0   :  { %s660_s18 = smov 0   ;;  %s786_s0 = inlined_call_operand.vmem [shape: f32[32,64], index: 0, kind: input, shape index: {}]   ;;  %s787_s1 = inlined_call_operand.vmem [shape: f32[1,64], index: 1, kind: input, shape index: {}]   ;;  %s788_s2 = inlined_call_operand.vmem [shape: f32[1,64], index: 2, kind: input, shape index: {}]   ;;  %s789_s3 = inlined_call_operand.vmem [shape: f32[64,256], index: 3, kind: input, shape index: {}]   ;;  %s790_s4 = inlined_call_operand.vmem [shape: f32[1,256], index: 4, kind: input, shape index: {}]   ;;  %s791_s5 = inlined_call_operand.vmem [shape: f32[32,256], index: 5, kind: output, shape index: {}]  }
   0x1 LB: > { %s559_s19 = sadd.s32 4294967295, %s627_s18   ;;  %p563_p0 = scmp.ge.s32.totalorder %s627_s18, 1  ;;  %s627_s18 = sphi %s660_s18, %s15_s18  }
   0x2   : > { %p188_p1 = scmp.lt.s32.totalorder %s627_s18, 3 }
   0x4   : > { %p189_p2 = pnand %p563_p0, %p188_p1 }
   0x5   : > { %s564_s20 = sshll.u32 (!%p189_p2), %s559_s19, 1 }
   0x6   : > { %192 = sbr.rel (%p189_p2) target bundleno = 577 (0x241), region = 40  ;;  %p218_p3 = scmp.lt.s32.totalorder (!%p189_p2), %s564_s20, 3 }
   0xb   : > { %s793_s20 = smov (!%p218_p3, %s564_s20), 3  ;;  %vm232_vm0 = vcmask 523264   ;;  %v293_v14 = vld [vmem:[%s789_s3 + $0x78] sm:$0xff]  ;;  %v292_v15 = vld [vmem:[%s789_s3 + $0x70] sm:$0xff]  ;;  %v291_v16 = vld [vmem:[%s789_s3 + $0x68] sm:$0xff]  ;;  %v629_v30 = vmov 0.0   ;;  %v296_v47 = vlaneseq }
   0xc   : > { %s565_s21 = sshll.u32 %s793_s20, 3  ;;  %328 = vmatprep.subr.mxu0 %v293_v14  ;;  %v290_v17 = vld [vmem:[%s789_s3 + $0x60] sm:$0xff]  ;;  %576 = vmatprep.subr.mxu1 %v293_v14  ;;  %v289_v18 = vld [vmem:[%s789_s3 + $0x58] sm:$0xff]  ;;  %v288_v19 = vld [vmem:[%s789_s3 + $0x50] sm:$0xff]  ;;  %s575_s15 = sshll.u32 %s793_s20, 4 }
   0xd   : > { %s221_s24 = scalar_lea.vmem %s786_s0, %s565_s21  ;;  %329 = vmatpush1.msra.mxu0 %v292_v15  ;;  %584 = vmatpush1.msra.mxu1 %v292_v15  ;;  %v287_v20 = vld [vmem:[%s789_s3 + $0x48] sm:$0xff]  ;;  %v286_v21 = vld [vmem:[%s789_s3 + $0x40] sm:$0xff]  ;;  %v285_v22 = vld [vmem:[%s789_s3 + $0x38] sm:$0xff]  ;;  %v297_v48 = vshrl.u32 %v296_v47, 7  ;;  %s228_s19 = scalar_lea.vmem %s791_s5, %s575_s15 }
   0xe   : > { %v230_v0 = vld [vmem:[%s221_s24] sm:$0xff]  ;;  %v231_v1 = vld [vmem:[%s221_s24 + $0x8] sm:$0xff]  ;;  %330 = vmatprep.subr.mxu0 %v291_v16  ;;  %577 = vmatprep.subr.mxu1 %v291_v16  ;;  %v284_v23 = vld [vmem:[%s789_s3 + $0x30] sm:$0xff] }
   0xf   : > { %v233_v2 = vsel %vm232_vm0, %v230_v0, 0.0  ;;  %v236_v3 = vsel %vm232_vm0, %v231_v1, 0.0  ;;  %331 = vmatpush1.msra.mxu0 %v290_v17  ;;  %585 = vmatpush1.msra.mxu1 %v290_v17  ;;  %v283_v24 = vld [vmem:[%s789_s3 + $0x28] sm:$0xff]  ;;  %v282_v25 = vld [vmem:[%s789_s3 + $0x20] sm:$0xff]  ;;  %v281_v26 = vld [vmem:[%s789_s3 + $0x18] sm:$0xff]  ;;  %v298_v49 = vsub.s32 0, %v297_v48 }
  0x10   : > { %234 = vadd.xlane.f32.xlu0 %v233_v2  ;;  %332 = vmatprep.subr.mxu0 %v289_v18  ;;  %v280_v27 = vld [vmem:[%s789_s3 + $0x10] sm:$0xff]  ;;  %v279_v28 = vld [vmem:[%s789_s3 + $0x8] sm:$0xff]  ;;  %v278_v29 = vld [vmem:[%s789_s3] sm:$0xff]  ;;  %v302_v51 = vsub.s32 1, %v297_v48 }
  0x11   : > { %578 = vmatprep.subr.mxu1 %v289_v18  ;;  %333 = vmatpush1.msra.mxu0 %v288_v19  ;;  %v569_v38 = vld [vmem:[%s787_s1] ss:$0 sm:$0xff] }
  0x12   : > { %586 = vmatpush1.msra.mxu1 %v288_v19  ;;  %334 = vmatprep.subr.mxu0 %v287_v20  ;;  %v570_v40 = vld [vmem:[%s788_s2] ss:$0 sm:$0xff] }
  0x13   : > { %579 = vmatprep.subr.mxu1 %v287_v20  ;;  %335 = vmatpush1.msra.mxu0 %v286_v21  ;;  %v294_v50 = vld [vmem:[%s790_s4] sm:$0x3] }
  0x14   : > { %237 = vadd.xlane.f32.xlu0 %v236_v3  ;;  %587 = vmatpush1.msra.mxu1 %v286_v21  ;;  %v299_v52 = vrot.slane %v294_v50, %v298_v49  ;;  %v303_v53 = vrot.slane %v294_v50, %v302_v51 }
  0x15   : > { %336 = vmatprep.subr.mxu0 %v285_v22  ;;  %580 = vmatprep.subr.mxu1 %v285_v22 }
  0x16   : > { %337 = vmatpush1.msra.mxu0 %v284_v23  ;;  %588 = vmatpush1.msra.mxu1 %v284_v23 }
  0x17   : > { %338 = vmatprep.subr.mxu0 %v283_v24  ;;  %581 = vmatprep.subr.mxu1 %v283_v24 }
  0x18   : > { %339 = vmatpush1.msra.mxu0 %v282_v25  ;;  %589 = vmatpush1.msra.mxu1 %v282_v25 }
  0x19   : > { %340 = vmatprep.subr.mxu0 %v281_v26  ;;  %376 = vmatprep.mubr.f32.mxu0 %v629_v30 }
  0x1a   : > { %341 = vmatpush1.msra.mxu0 %v280_v27  ;;  %582 = vmatprep.subr.mxu1 %v281_v26 }
  0x1b   : > { %342 = vmatprep.subr.mxu0 %v279_v28  ;;  %590 = vmatpush1.msra.mxu1 %v280_v27 }
  0x1c   : > { %343 = vmatpush1.msra.mxu0 %v278_v29  ;;  %583 = vmatprep.subr.mxu1 %v279_v28 }
  0x1d   : > { %591 = vmatpush1.msra.mxu1 %v278_v29  ;;  %382 = vmatprep.mubr.f32.mxu1 %v629_v30 }
  0x99   : > { %v235_v4 = vpop.xlane.xlu0 %234 }
  0x9a   : > { %v240_v5 = vmul.f32 0.015625, %v235_v4 }
  0x9c   : > { %v676_v6 = vsub.f32 %v230_v0, %v240_v5 }
  0x9d   : > { %v238_v7 = vpop.xlane.xlu0 %237 }
  0x9e   : > { %v241_v8 = vmul.f32 0.015625, %v238_v7  ;;  %v244_v9 = vmul.f32 %v676_v6, %v676_v6 }
  0xa0   : > { %v680_v10 = vsub.f32 %v231_v1, %v241_v8  ;;  %v246_v11 = vsel %vm232_vm0, %v244_v9, 0.0 }
  0xa1   : > { %247 = vadd.xlane.f32.xlu1 %v246_v11 }
  0xa2   : > { %v245_v12 = vmul.f32 %v680_v10, %v680_v10 }
  0xa4   : > { %v249_v13 = vsel %vm232_vm0, %v245_v12, 0.0 }
  0xa5   : > { %250 = vadd.xlane.f32.xlu1 %v249_v13 }
 0x12a   : > { %v248_v31 = vpop.xlane.xlu1 %247 }
 0x12b   : > { %v252_v32 = vmul.f32 0.015625, %v248_v31 }
 0x12d   : > { %v254_v33 = vadd.f32 1e-05, %v252_v32 }
 0x12e   : > { %v251_v34 = vpop.xlane.xlu1 %250 }
 0x12f   : > { %601 = vrsqrt.f32 %v254_v33  ;;  %v253_v35 = vmul.f32 0.015625, %v251_v34 }
 0x131   : > { %v255_v36 = vadd.f32 1e-05, %v253_v35 }
 0x133   : > { %603 = vrsqrt.f32 %v255_v36 }
 0x13c   : > { %v602_v37 = vpop.eup %601 }
 0x13d   : > { %v258_v39 = vmul.f32 %v602_v37, %v676_v6 }
 0x13f   : > { %v267_v41 = vmul.f32 %v569_v38, %v258_v39 }
 0x140   : > { %v604_v42 = vpop.eup %603 }
 0x141   : > { %v276_v43 = vadd.f32 %v570_v40, %v267_v41  ;;  %v259_v44 = vmul.f32 %v604_v42, %v680_v10 }
 0x143   : > { %571 = vmatmul.mubr.msk.f32.vlgmr.msra.gmra.mxu0 %vm232_vm0, %v276_v43  ;;  %v268_v45 = vmul.f32 %v569_v38, %v259_v44 }
 0x145   : > { %v277_v46 = vadd.f32 %v570_v40, %v268_v45 }
 0x147   : > { %572 = vmatmul.mubr.msk.f32.vlgmr.msra.gmra.mxu1 %vm232_vm0, %v277_v46 }
 0x203   : > { %v378_v54 = vpop.f32.mrf.mxu0 }
 0x204   : > { %v747_v55 = vadd.f32 %v378_v54, %v299_v52 }
 0x205   : > { %v380_v56 = vpop.f32.mrf.mxu0 }
 0x206   : > { %v750_v57 = vmul.f32 0.70710677, %v747_v55  ;;  %v752_v58 = vadd.f32 %v380_v56, %v303_v53 }
 0x207   : > { %v384_v59 = vpop.f32.mrf.mxu1 }
 0x208   : > { %v393_v60 = vand.u32 2147483647, %v750_v57  ;;  %v756_v61 = vmul.f32 0.70710677, %v752_v58  ;;  %v758_v62 = vadd.f32 %v384_v59, %v299_v52  ;;  %vm473_vm1 = vcmp.ge.f32.partialorder %v750_v57, 0.0 }
 0x209   : > { %v386_v63 = vpop.f32.mrf.mxu1 }
 0x20a   : > { %v397_v0 = vmul.f32 0.3275911, %v393_v60  ;;  %v394_v1 = vand.u32 2147483647, %v756_v61  ;;  %v762_v2 = vmul.f32 0.70710677, %v758_v62  ;;  %v764_v3 = vadd.f32 %v386_v63, %v303_v53 }
 0x20b   : > { %v449_v14 = vsub.f32 0.0, %v393_v60  ;;  %vm474_vm2 = vcmp.ge.f32.partialorder %v756_v61, 0.0 }
 0x20c   : > { %v401_v4 = vadd.f32 1.0, %v397_v0  ;;  %v398_v5 = vmul.f32 0.3275911, %v394_v1  ;;  %v395_v6 = vand.u32 2147483647, %v762_v2  ;;  %v450_v15 = vsub.f32 0.0, %v394_v1 }
 0x20d   : > { %v768_v7 = vmul.f32 0.70710677, %v764_v3  ;;  %v453_v16 = vmul.f32 %v449_v14, %v393_v60  ;;  %vm475_vm3 = vcmp.ge.f32.partialorder %v762_v2, 0.0 }
 0x20e   : > { %605 = vrcp.f32 %v401_v4  ;;  %v402_v8 = vadd.f32 1.0, %v398_v5  ;;  %v399_v9 = vmul.f32 0.3275911, %v395_v6  ;;  %v451_v17 = vsub.f32 0.0, %v395_v6 }
 0x20f   : > { %v396_v10 = vand.u32 2147483647, %v768_v7  ;;  %v454_v19 = vmul.f32 %v450_v15, %v394_v1  ;;  %v457_v21 = vmul.f32 1.442695, %v453_v16  ;;  %vm476_vm4 = vcmp.ge.f32.partialorder %v768_v7, 0.0 }
 0x210   : > { %607 = vrcp.f32 %v402_v8  ;;  %v403_v11 = vadd.f32 1.0, %v399_v9  ;;  %v455_v23 = vmul.f32 %v451_v17, %v395_v6 }
 0x211   : > { %v400_v12 = vmul.f32 0.3275911, %v396_v10  ;;  %v452_v22 = vsub.f32 0.0, %v396_v10  ;;  %v459_v27 = vmul.f32 1.442695, %v454_v19 }
 0x212   : > { %609 = vrcp.f32 %v403_v11  ;;  %v461_v33 = vmul.f32 1.442695, %v455_v23 }
 0x213   : > { %v404_v13 = vadd.f32 1.0, %v400_v12  ;;  %v456_v30 = vmul.f32 %v452_v22, %v396_v10 }
 0x215   : > { %611 = vrcp.f32 %v404_v13  ;;  %v463_v40 = vmul.f32 1.442695, %v456_v30 }
 0x216   : > { %613 = vpow2.f32 %v457_v21  ;;  %v485_v21 = vmul.f32 0.5, %v747_v55 }
 0x217   : > { %615 = vpow2.f32 %v459_v27 }
 0x218   : > { %617 = vpow2.f32 %v461_v33 }
 0x219   : > { %619 = vpow2.f32 %v463_v40 }
 0x21b   : > { %v606_v18 = vpop.eup %605 }
 0x21c   : > { %v413_v20 = vmul.f32 1.0614054, %v606_v18 }
 0x21d   : > { %v608_v24 = vpop.eup %607 }
 0x21e   : > { %v417_v25 = vadd.f32 -1.4531521, %v413_v20  ;;  %v414_v26 = vmul.f32 1.0614054, %v608_v24 }
 0x21f   : > { %v610_v28 = vpop.eup %609 }
 0x220   : > { %v421_v29 = vmul.f32 %v606_v18, %v417_v25  ;;  %v418_v31 = vadd.f32 -1.4531521, %v414_v26  ;;  %v415_v32 = vmul.f32 1.0614054, %v610_v28 }
 0x222   : > { %v425_v34 = vadd.f32 1.4214138, %v421_v29  ;;  %v612_v35 = vpop.eup %611  ;;  %v422_v36 = vmul.f32 %v608_v24, %v418_v31  ;;  %v419_v37 = vadd.f32 -1.4531521, %v415_v32  ;;  %v487_v32 = vmul.f32 0.5, %v758_v62 }
 0x223   : > { %v416_v39 = vmul.f32 1.0614054, %v612_v35  ;;  %v614_v60 = vpop.eup %613 }
 0x224   : > { %v429_v38 = vmul.f32 %v606_v18, %v425_v34  ;;  %v426_v41 = vadd.f32 1.4214138, %v422_v36  ;;  %v423_v42 = vmul.f32 %v610_v28, %v419_v37  ;;  %v616_v8 = vpop.eup %615  ;;  %v488_v36 = vmul.f32 0.5, %v764_v3 }
 0x225   : > { %v420_v44 = vadd.f32 -1.4531521, %v416_v39  ;;  %v618_v13 = vpop.eup %617 }
 0x226   : > { %v433_v43 = vadd.f32 -0.28449672, %v429_v38  ;;  %v430_v45 = vmul.f32 %v608_v24, %v426_v41  ;;  %v427_v46 = vadd.f32 1.4214138, %v423_v42  ;;  %v620_v20 = vpop.eup %619 }
 0x227   : > { %v424_v48 = vmul.f32 %v612_v35, %v420_v44 }
 0x228   : > { %v437_v47 = vmul.f32 %v606_v18, %v433_v43  ;;  %v434_v49 = vadd.f32 -0.28449672, %v430_v45  ;;  %v431_v50 = vmul.f32 %v610_v28, %v427_v46 }
 0x229   : > { %v428_v52 = vadd.f32 1.4214138, %v424_v48 }
 0x22a   : > { %v441_v51 = vadd.f32 0.2548296, %v437_v47  ;;  %v438_v53 = vmul.f32 %v608_v24, %v434_v49  ;;  %v435_v54 = vadd.f32 -0.28449672, %v431_v50 }
 0x22b   : > { %v432_v59 = vmul.f32 %v612_v35, %v428_v52 }
 0x22c   : > { %v445_v56 = vmul.f32 %v606_v18, %v441_v51  ;;  %v442_v63 = vadd.f32 0.2548296, %v438_v53  ;;  %v439_v0 = vmul.f32 %v610_v28, %v435_v54 }
 0x22d   : > { %v436_v4 = vadd.f32 -0.28449672, %v432_v59 }
 0x22e   : > { %v465_v1 = vmul.f32 %v614_v60, %v445_v56  ;;  %v446_v5 = vmul.f32 %v608_v24, %v442_v63  ;;  %v443_v6 = vadd.f32 0.2548296, %v439_v0 }
 0x22f   : > { %v440_v10 = vmul.f32 %v612_v35, %v436_v4 }
 0x230   : > { %v469_v9 = vsub.f32 1.0, %v465_v1  ;;  %v466_v11 = vmul.f32 %v616_v8, %v446_v5  ;;  %v447_v12 = vmul.f32 %v610_v28, %v443_v6  ;;  %v486_v28 = vmul.f32 0.5, %v752_v58 }
 0x231   : > { %v444_v15 = vadd.f32 0.2548296, %v440_v10 }
 0x232   : > { %v477_v14 = vsub.f32 0.0, %v469_v9  ;;  %v470_v16 = vsub.f32 1.0, %v466_v11  ;;  %v467_v17 = vmul.f32 %v618_v13, %v447_v12 }
 0x233   : > { %v448_v19 = vmul.f32 %v612_v35, %v444_v15 }
 0x234   : > { %v481_v18 = vsel %vm473_vm1, %v469_v9, %v477_v14  ;;  %v478_v23 = vsub.f32 0.0, %v470_v16  ;;  %v471_v24 = vsub.f32 1.0, %v467_v17 }
 0x235   : > { %v489_v22 = vadd.f32 1.0, %v481_v18  ;;  %v468_v25 = vmul.f32 %v620_v20, %v448_v19 }
 0x236   : > { %v482_v27 = vsel %vm474_vm2, %v470_v16, %v478_v23  ;;  %v479_v57 = vsub.f32 0.0, %v471_v24 }
 0x237   : > { %v493_v26 = vmul.f32 %v489_v22, %v485_v21  ;;  %v490_v29 = vadd.f32 1.0, %v482_v27  ;;  %v472_v30 = vsub.f32 1.0, %v468_v25 }
 0x238   : > { %v483_v55 = vsel %vm475_vm3, %v471_v24, %v479_v57 }
 0x239   : > { %497 = vst [vmem:[%s228_s19] sm:$0xff] %v493_v26  ;;  %v494_v31 = vmul.f32 %v490_v29, %v486_v28  ;;  %v491_v33 = vadd.f32 1.0, %v483_v55  ;;  %v480_v34 = vsub.f32 0.0, %v472_v30 }
 0x23b   : > { %498 = vst [vmem:[%s228_s19 + $0x8] sm:$0xff] %v494_v31  ;;  %v495_v61 = vmul.f32 %v491_v33, %v487_v32  ;;  %v484_v35 = vsel %vm476_vm4, %v472_v30, %v480_v34 }
 0x23c   : > { %v492_v37 = vadd.f32 1.0, %v484_v35 }
 0x23d   : > { %499 = vst [vmem:[%s228_s19 + $0x10] sm:$0xff] %v495_v61 }
 0x23e   : > { %v496_v58 = vmul.f32 %v492_v37, %v488_v36 }
 0x240   : > { %500 = vst [vmem:[%s228_s19 + $0x18] sm:$0xff] %v496_v58 }
 0x241 PF: > { %s15_s18 = sadd.s32 1, %s627_s18  }
 0x242   : > { %p12_p4 = scmp.ge.s32.totalorder %s15_s18, 4  }
 0x244   :  { %14 = sbr.rel (!%p12_p4) target bundleno = 1 (0x1), region = 70 }

// kernel: swin_transformer_forward.36
= control target key start
LH: loop header
LB: loop body
LE: loop exit
PB: predicated region body
PF: predicated region fallthrough
CT: control target
= control target key end

     0   :  { %s739_s12 = smov 0   ;;  %s741_s13 = smov 0   ;;  %s865_s0 = inlined_call_operand.vmem [shape: f32[32,256], index: 0, kind: input, shape index: {}]   ;;  %s866_s1 = inlined_call_operand.vmem [shape: f32[256,64], index: 1, kind: input, shape index: {}]   ;;  %s867_s2 = inlined_call_operand.vmem [shape: f32[1,64], index: 2, kind: input, shape index: {}]   ;;  %s868_s3 = inlined_call_operand.vmem [shape: f32[32,64], index: 3, kind: output, shape index: {}]  }
   0x1   :  { %s743_s14 = smov 0   ;;  %s745_s15 = smov 0  }
   0x2   :  { %s747_s16 = smov 0   ;;  %s749_s17 = smov 0  }
   0x3   :  { %s751_s18 = smov 0  }
   0x4 LB: > { %s25_s19 = sadd.s32 1, %s708_s16  ;;  %s32_s20 = sadd.s32 1, %s712_s17  ;;  %s716_s18 = sphi %s751_s18, %s13_s18   ;;  %s712_s17 = sphi %s749_s17, %s874_s17   ;;  %s708_s16 = sphi %s747_s16, %s873_s16   ;;  %s704_s15 = sphi %s745_s15, %s872_s15   ;;  %s700_s14 = sphi %s743_s14, %s871_s14   ;;  %s696_s13 = sphi %s741_s13, %s870_s13   ;;  %s692_s12 = sphi %s739_s12, %s869_s12  }
   0x5   : > { %p26_p0 = scmp.ge.s32.totalorder %s25_s19, 2  ;;  %p48_p1 = scmp.ne.s32.totalorder %s696_s13, %s692_s12 }
   0x6   : > { %p49_p2 = scmp.eq.s32.totalorder %s716_s18, 0  ;;  %s41_s24 = sadd.s32 1, %s696_s13 }
   0x7   : > { %s876_s19 = smov (%p26_p0, %s25_s19), 0  ;;  %s878_s20 = smov (!%p26_p0, %s32_s20), %s712_s17 }
   0x8   : > { %p50_p3 = por %p49_p2, %p48_p1  ;;  %p34_p4 = scmp.ge.s32.totalorder %s878_s20, 2 }
   0x9   : > { %s37_s21 = ssub.s32 %s708_s16, %s876_s19  ;;  %p535_p6 = scmp.ge.s32.totalorder %s716_s18, 4 }
   0xa   : > { %s880_s20 = smov (%p34_p4, %s878_s20), 0 }
   0xb   : > { %s36_s22 = ssub.s32 %s712_s17, %s880_s20  ;;  %162 = sbr.rel (%p535_p6) target bundleno = 23 (0x17), region = 20 }
   0xc   : > { %s38_s23 = sor.u32 %s37_s21, %s36_s22 }
   0xd   : > { %p39_p5 = scmp.eq.s32.totalorder %s38_s23, 0 }
   0xf   : > { %s790_s25 = scalar_select %p39_p5, %s696_s13, %s41_s24  }
  0x10   : > { %165 = sbr.rel (!%p50_p3) target bundleno = 23 (0x17), region = 24  ;;  %s167_s26 = sand.u32 (%p50_p3), 1, %s696_s13  }
  0x11   : > { %s551_s27 = sshll.u32 (%p50_p3), %s712_s17, 2  ;;  %s536_s28 = sshll.u32 (%p50_p3), %s167_s26, 4 }
  0x12   : > { %s172_s29 = sadd.s32 (%p50_p3), %s708_s16, %s551_s27  ;;  %s169_s7 = scalar_lea.vmem (%p50_p3), [#allocation3], %s536_s28 }
  0x13   : > { %s539_s30 = sshll.u32 (%p50_p3), %s172_s29, 3 }
  0x14   : > { %s174_s6 = scalar_lea.vmem (%p50_p3), %s865_s0, %s539_s30 }
  0x15   : > { %v205_v0 = vld [vmem:[%s174_s6] sm:$0xff]  ;;  %v207_v1 = vld [vmem:[%s174_s6 + $0x10] sm:$0xff] }
  0x16   : > { %206 = vst [vmem:[%s169_s7] sm:$0xff] %v205_v0  ;;  %208 = vst [vmem:[%s169_s7 + $0x8] sm:$0xff] %v207_v1 }
  0x17 PF: > { %p540_p7 = scmp.ge.s32.totalorder %s716_s18, 1  ;;  %p225_p8 = scmp.lt.s32.totalorder %s716_s18, 5 }
  0x19   : > { %p226_p9 = pnand %p540_p7, %p225_p8 }
  0x1a   : > { %s232_s8 = sand.u32 (!%p226_p9), 1, %s692_s12   ;;  %s542_s9 = sshll.u32 (!%p226_p9), %s700_s14, 4 }
  0x1b   : > { %229 = sbr.rel (%p226_p9) target bundleno = 283 (0x11b), region = 66  ;;  %s803_s10 = sshll.u32 (!%p226_p9), %s232_s8, 4 }
  0x1c   : > { %p271_p10 = scmp.lt.s32.totalorder (!%p226_p9), %s542_s9, 31  ;;  %s544_s11 = sshll.u32 (!%p226_p9), %s704_s15, 1 }
  0x1d   : > { %p283_p11 = scmp.lt.s32.totalorder (!%p226_p9), %s544_s11, 3  ;;  %s234_s29 = scalar_lea.vmem (!%p226_p9), [#allocation3], %s803_s10 }
  0x1e   : > { %p546_p12 = scmp.ne.s32.totalorder (!%p226_p9), %s700_s14, 0 }
  0x20   : > { %s882_s9 = smov (!%p271_p10, %s542_s9), 31  ;;  %s884_s11 = smov (!%p283_p11, %s544_s11), 3 }
  0x21   : > { %s543_s21 = sshll.u32 %s882_s9, 3  ;;  %s545_s26 = sshll.u32 %s884_s11, 3 }
  0x22   : > { %s809_s24 = scalar_lea.vmem %s866_s1, %s543_s21  ;;  %s814_s12 = scalar_lea.vmem %s868_s3, %s545_s26 }
  0x23   : > { %294 = sbr.rel (%p546_p12) target bundleno = 42 (0x2a), region = 74 }
  0x28   : > { %vm295_vm0 = vcmask 523264   ;;  %v718_v2 = vmov 0.0  }
  0x29   : > { %296 = vst.msk [vmem:[#allocation2] sm:$0xff] %vm295_vm0, %v718_v2  ;;  %297 = vst.msk [vmem:[#allocation2 + $0x8] sm:$0xff] %vm295_vm0, %v718_v2 }
  0x2a PF: > { %v317_v3 = vld [vmem:[%s809_s24 + $0x78] sm:$0xff]  ;;  %v316_v4 = vld [vmem:[%s809_s24 + $0x70] sm:$0xff]  ;;  %v315_v5 = vld [vmem:[%s809_s24 + $0x68] sm:$0xff]  ;;  %vm395_vm1 = vcmask 523264   ;;  %p547_p13 = scmp.ne.s32.totalorder %s700_s14, 1 }
  0x2b   : > { %570 = vmatprep.subr.mxu0 %v317_v3  ;;  %v314_v6 = vld [vmem:[%s809_s24 + $0x60] sm:$0xff]  ;;  %v313_v8 = vld [vmem:[%s809_s24 + $0x58] sm:$0xff]  ;;  %v312_v9 = vld [vmem:[%s809_s24 + $0x50] sm:$0xff] }
  0x2c   : > { %571 = vmatpush3.msra.mxu0 %v317_v3  ;;  %v300_v7 = vld [vmem:[%s234_s29] sm:$0xff]  ;;  %v311_v10 = vld [vmem:[%s809_s24 + $0x48] sm:$0xff]  ;;  %v309_v12 = vld [vmem:[%s809_s24 + $0x38] sm:$0xff] }
  0x2d   : > { %572 = vmatprep.subr.mxu0 %v316_v4  ;;  %602 = vmatprep.mubr.f32.mxu0 %v300_v7  ;;  %v310_v11 = vld [vmem:[%s809_s24 + $0x40] sm:$0xff]  ;;  %v308_v13 = vld [vmem:[%s809_s24 + $0x30] sm:$0xff]  ;;  %v307_v14 = vld [vmem:[%s809_s24 + $0x28] sm:$0xff] }
  0x2e   : > { %573 = vmatpush3.msra.mxu0 %v316_v4  ;;  %v306_v15 = vld [vmem:[%s809_s24 + $0x20] sm:$0xff]  ;;  %v305_v16 = vld [vmem:[%s809_s24 + $0x18] sm:$0xff]  ;;  %v304_v17 = vld [vmem:[%s809_s24 + $0x10] sm:$0xff] }
  0x2f   : > { %574 = vmatprep.subr.mxu0 %v315_v5  ;;  %v303_v18 = vld [vmem:[%s809_s24 + $0x8] sm:$0xff]  ;;  %v302_v19 = vld [vmem:[%s809_s24] sm:$0xff] }
  0x30   : > { %575 = vmatpush3.msra.mxu0 %v315_v5  ;;  %v301_v20 = vld [vmem:[%s234_s29 + $0x8] sm:$0xff]  ;;  %v298_v23 = vld [vmem:[#allocation2] sm:$0xff] }
  0x31   : > { %576 = vmatprep.subr.mxu0 %v314_v6  ;;  %v299_v21 = vld [vmem:[#allocation2 + $0x8] sm:$0xff] }
  0x32   : > { %577 = vmatpush3.msra.mxu0 %v314_v6 }
  0x33   : > { %578 = vmatprep.subr.mxu0 %v313_v8 }
  0x34   : > { %579 = vmatpush3.msra.mxu0 %v313_v8 }
  0x35   : > { %580 = vmatprep.subr.mxu0 %v312_v9 }
  0x36   : > { %581 = vmatpush3.msra.mxu0 %v312_v9 }
  0x37   : > { %582 = vmatprep.subr.mxu0 %v311_v10 }
  0x38   : > { %583 = vmatpush3.msra.mxu0 %v311_v10 }
  0x39   : > { %584 = vmatprep.subr.mxu0 %v310_v11 }
  0x3a   : > { %585 = vmatpush3.msra.mxu0 %v310_v11 }
  0x3b   : > { %586 = vmatprep.subr.mxu0 %v309_v12 }
  0x3c   : > { %587 = vmatpush3.msra.mxu0 %v309_v12 }
  0x3d   : > { %588 = vmatprep.subr.mxu0 %v308_v13 }
  0x3e   : > { %589 = vmatpush3.msra.mxu0 %v308_v13 }
  0x3f   : > { %590 = vmatprep.subr.mxu0 %v307_v14 }
  0x40   : > { %591 = vmatpush3.msra.mxu0 %v307_v14 }
  0x41   : > { %592 = vmatprep.subr.mxu0 %v306_v15 }
  0x42   : > { %593 = vmatpush3.msra.mxu0 %v306_v15 }
  0x43   : > { %594 = vmatprep.subr.mxu0 %v305_v16 }
  0x44   : > { %595 = vmatpush3.msra.mxu0 %v305_v16 }
  0x45   : > { %596 = vmatprep.subr.mxu0 %v304_v17 }
  0x46   : > { %597 = vmatpush3.msra.mxu0 %v304_v17 }
  0x47   : > { %598 = vmatprep.subr.mxu0 %v303_v18 }
  0x48   : > { %599 = vmatpush3.msra.mxu0 %v303_v18 }
  0x49   : > { %600 = vmatprep.subr.mxu0 %v302_v19 }
  0x4a   : > { %601 = vmatpush3.msra.mxu0 %v302_v19 }
  0x4b   : > { %603 = vmatmul.mubr.f32.vlgmr.msra.gmra.mxu0 %v301_v20 }
 0x10b   : > { %v604_v22 = vpop.f32.mrf.mxu0 }
 0x10c   : > { %v394_v24 = vadd.f32 %v604_v22, %v299_v21  ;;  %401 = sbr.rel (%p547_p13) target bundleno = 283 (0x11b), region = 78 }
 0x10d   : > { %v384_v25 = vpop.f32.mrf.mxu0 }
 0x10e   : > { %397 = vst.msk [vmem:[#allocation2 + $0x8] sm:$0xff] %vm395_vm1, %v394_v24  ;;  %v393_v26 = vadd.f32 %v384_v25, %v298_v23 }
 0x110   : > { %396 = vst.msk [vmem:[#allocation2] sm:$0xff] %vm395_vm1, %v393_v26 }
 0x111   : > { %v548_v28 = vld [vmem:[%s867_s2] ss:$0 sm:$0xff] }
 0x115   : > { %v403_v29 = vld [vmem:[#allocation2 + $0x8] sm:$0xff] }
 0x116   : > { %v412_v31 = vadd.f32 %v548_v28, %v403_v29 }
 0x117   : > { %v402_v27 = vld [vmem:[#allocation2] sm:$0xff] }
 0x118   : > { %v411_v30 = vadd.f32 %v548_v28, %v402_v27  ;;  %414 = vst.msk [vmem:[%s814_s12 + $0x8] sm:$0xff] %vm395_vm1, %v412_v31 }
 0x11a   : > { %413 = vst.msk [vmem:[%s814_s12] sm:$0xff] %vm395_vm1, %v411_v30 }
 0x11b PF: > { %s13_s18 = sadd.s32 1, %s716_s18   ;;  %s869_s12 = smov %s696_s13 }
 0x11c   : > { %p10_p0 = scmp.ge.s32.totalorder %s13_s18, 6   ;;  %s870_s13 = smov %s790_s25 }
 0x11d   : > { %s871_s14 = smov %s708_s16  ;;  %s872_s15 = smov %s712_s17 }
 0x11e   : > { %s873_s16 = smov %s876_s19  ;;  %s874_s17 = smov %s880_s20 }
 0x11f   :  { %12 = sbr.rel (!%p10_p0) target bundleno = 4 (0x4), region = 119 }

// kernel: swin_transformer_forward.41
= control target key start
LH: loop header
LB: loop body
LE: loop exit
PB: predicated region body
PF: predicated region fallthrough
CT: control target
= control target key end

     0   :  { %8 = vsyncpa [#allocation3], 0  ;;  %s556_s0 = inlined_call_operand.vmem [shape: f32[32,64], index: 0, kind: input, shape index: {}]   ;;  %s557_s1 = inlined_call_operand.vmem [shape: f32[1,64], index: 1, kind: input, shape index: {}]   ;;  %s558_s2 = inlined_call_operand.vmem [shape: f32[1,64], index: 2, kind: input, shape index: {}]   ;;  %s559_s3 = inlined_call_operand.hbm [shape: f32[32,64], index: 3, kind: output, shape index: {}]  }
   0x1   :  { %10 = vsyncpa [#allocation3 + $0x1], 0  ;;  %s443_s12 = smov 0   ;;  %s445_s13 = smov 0  }
   0x2   :  { %s447_s14 = smov 0   ;;  %s449_s15 = smov 0  }
   0x3 LB: > { %s464_s16 = sadd.s32 4294967295, %s418_s15   ;;  %s298_s17 = sadd.s32 4294967294, %s418_s15   ;;  %s418_s15 = sphi %s449_s15, %s565_s15   ;;  %s414_s14 = sphi %s447_s14, %s564_s14   ;;  %s410_s13 = sphi %s445_s13, %s563_s13   ;;  %s406_s12 = sphi %s443_s12, %s562_s12  }
   0x4   : > { %s468_s18 = sadd.s32 1, %s418_s15   ;;  %s91_s19 = sadd.s32 1, %s414_s14 }
   0x5   : > { %s88_s20 = ssub.s32 %s418_s15, %s468_s18  ;;  %p101_p0 = scmp.ne.s32.totalorder %s414_s14, %s410_s13 }
   0x6   : > { %p89_p1 = scmp.eq.s32.totalorder %s88_s20, 0  ;;  %p102_p2 = scmp.eq.s32.totalorder %s464_s16, 1 }
   0x7   : > { %p107_p3 = scmp.ne.s32.totalorder %s410_s13, %s406_s12  ;;  %p108_p4 = scmp.eq.s32.totalorder %s298_s17, 1 }
   0x8   : > { %s479_s21 = scalar_select %p89_p1, %s414_s14, %s91_s19  }
   0x9   : > { %p481_p5 = por %p102_p2, %p101_p0  ;;  %p485_p6 = por %p108_p4, %p107_p3 }
   0xa   : > { %p301_p7 = scmp.ge.s32.totalorder %s418_s15, 1  ;;  %p141_p8 = scmp.lt.s32.totalorder %s418_s15, 3 }
   0xc   : > { %p142_p9 = pnand %p301_p7, %p141_p8 }
   0xd   : > { %s303_s24 = sshll.u32 (!%p142_p9), %s464_s16, 1  ;;  %s162_s29 = sand.u32 (!%p142_p9), 1, %s410_s13  }
   0xe   : > { %145 = sbr.rel (%p142_p9) target bundleno = 349 (0x15d), region = 32  ;;  %p166_p10 = scmp.lt.s32.totalorder (!%p142_p9), %s303_s24, 3 }
   0xf   : > { %s302_s5 = sshll.u32 (!%p142_p9), %s162_s29, 4  ;;  %s312_s8 = sshll.u32 (!%p142_p9), %s464_s16, 8 }
  0x10   : > { %s164_s9 = scalar_lea.vmem (!%p142_p9), [#allocation2], %s302_s5  ;;  %s511_s19 = scalar_lea.hbm (!%p142_p9), %s559_s3, %s312_s8 }
  0x11   : > { %s236_s10 = sshll.u32 (!%p142_p9), %s164_s9, 4  ;;  %s516_s20 = scalar_lea.sflag (!%p142_p9), [#allocation3], %s162_s29  ;;  %s513_s10 = int_to_ptr.vmem [resolvable:$true] %s236_s10 }
  0x12   : > { %s358_s16 = scalar_lea.vmem (!%p142_p9), %s513_s10, 256 }
  0x13   : > { %s567_s24 = smov (!%p166_p10, %s303_s24), 3  ;;  %vm174_vm0 = vcmask 523264   ;;  %v305_v21 = vld [vmem:[%s557_s1] ss:$0 sm:$0xff]  ;;  %p359_p11 = scmp.ne.s32.totalorder %s513_s10, %s358_s16 }
  0x14   : > { %s304_s25 = sshll.u32 %s567_s24, 3  ;;  %v306_v23 = vld [vmem:[%s558_s2] ss:$0 sm:$0xff]  ;;  %s420_s24 = smov [#allocation2]  }
  0x15   : > { %s169_s28 = scalar_lea.vmem %s556_s0, %s304_s25  ;;  %p360_p12 = pnand %p359_p11, %p481_p5 }
  0x16   : > { %v172_v0 = vld [vmem:[%s169_s28] sm:$0xff]  ;;  %v173_v1 = vld [vmem:[%s169_s28 + $0x8] sm:$0xff]  ;;  %s362_s25 = sshll.u32 %s420_s24, 4  ;;  %s363_s25 = int_to_ptr.vmem [resolvable:$false] %s362_s25 }
  0x17   : > { %v175_v2 = vsel %vm174_vm0, %v172_v0, 0.0  ;;  %v178_v3 = vsel %vm174_vm0, %v173_v1, 0.0  ;;  %p361_p13 = pneg %p360_p12  ;;  %s364_s26 = scalar_lea.vmem %s363_s25, 512 }
  0x18   : > { %176 = vadd.xlane.f32.xlu0 %v175_v2  ;;  %p365_p0 = scmp.lt.s32.totalorder %s513_s10, %s363_s25  ;;  %p366_p1 = scmp.lt.s32.totalorder %s364_s26, %s358_s16 }
  0x1a   : > { %p367_p2 = por %p366_p1, %p365_p0 }
  0x1c   : > { %179 = vadd.xlane.f32.xlu0 %v178_v3  ;;  %p368_p3 = pnand %p367_p2, %p361_p13 }
  0xa1   : > { %v177_v4 = vpop.xlane.xlu0 %176 }
  0xa2   : > { %v182_v5 = vmul.f32 0.015625, %v177_v4 }
  0xa4   : > { %v184_v6 = vsub.f32 %v172_v0, %v182_v5 }
  0xa5   : > { %v180_v7 = vpop.xlane.xlu0 %179 }
  0xa6   : > { %v183_v8 = vmul.f32 0.015625, %v180_v7  ;;  %v186_v9 = vmul.f32 %v184_v6, %v184_v6 }
  0xa8   : > { %v185_v10 = vsub.f32 %v173_v1, %v183_v8  ;;  %v188_v11 = vsel %vm174_vm0, %v186_v9, 0.0 }
  0xa9   : > { %189 = vadd.xlane.f32.xlu1 %v188_v11 }
  0xaa   : > { %v187_v12 = vmul.f32 %v185_v10, %v185_v10 }
  0xac   : > { %v191_v13 = vsel %vm174_vm0, %v187_v12, 0.0 }
  0xad   : > { %192 = vadd.xlane.f32.xlu1 %v191_v13 }
 0x132   : > { %v190_v14 = vpop.xlane.xlu1 %189 }
 0x133   : > { %v194_v15 = vmul.f32 0.015625, %v190_v14 }
 0x135   : > { %v196_v16 = vadd.f32 1e-05, %v194_v15 }
 0x136   : > { %v193_v17 = vpop.xlane.xlu1 %192 }
 0x137   : > { %354 = vrsqrt.f32 %v196_v16  ;;  %v195_v18 = vmul.f32 0.015625, %v193_v17 }
 0x139   : > { %v197_v19 = vadd.f32 1e-05, %v195_v18 }
 0x13b   : > { %356 = vrsqrt.f32 %v197_v19 }
 0x144   : > { %v355_v20 = vpop.eup %354 }
 0x145   : > { %v200_v22 = vmul.f32 %v355_v20, %v184_v6 }
 0x147   : > { %v209_v24 = vmul.f32 %v305_v21, %v200_v22 }
 0x148   : > { %v357_v25 = vpop.eup %356 }
 0x149   : > { %v201_v26 = vmul.f32 %v357_v25, %v185_v10  ;;  %v218_v27 = vadd.f32 %v306_v23, %v209_v24 }
 0x14b   : > { %v210_v28 = vmul.f32 %v305_v21, %v201_v26  ;;  %220 = vst.msk [vmem:[%s164_s9] sm:$0xff] %vm174_vm0, %v218_v27 }
 0x14d   : > { %v219_v29 = vadd.f32 %v306_v23, %v210_v28 }
 0x14f   : > { %221 = vst.msk [vmem:[%s164_s9 + $0x8] sm:$0xff] %vm174_vm0, %v219_v29 }
 0x150   : > { %371 = shalt.err (!%p368_p3)
}
 0x151   : > { %s372_s27 = scalar_lea.hbm %s511_s19, 256  ;;  %s376_s30 = scalar_lea.hbm %s559_s3, 512 }
 0x152   : > { %p373_p4 = scmp.ne.s32.totalorder %s511_s19, %s372_s27  ;;  %p377_p9 = scmp.lt.s32.totalorder %s511_s19, %s559_s3 }
 0x153   : > { %p378_p10 = scmp.lt.s32.totalorder %s376_s30, %s372_s27 }
 0x154   : > { %p374_p7 = pnand %p373_p4, %p481_p5 }
 0x155   : > { %p379_p11 = por %p378_p10, %p377_p9 }
 0x156   : > { %p375_p8 = pneg %p374_p7 }
 0x158   : > { %p380_p12 = pnand %p379_p11, %p375_p8 }
 0x15a   : > { %383 = shalt.err (!%p380_p12)
}
 0x15b   : > { %s421_s6 = smov 128   ;;  %s422_s7 = smov 8  }
 0x15c   : > { %313 = dma.vmem_to_hbm [thread:$0]  (%p481_p5), %s513_s10, 256, %s511_s19, %s516_s20, %s421_s6, %s421_s6, %s422_s7  }
 0x15d PF: > { %p319_p13 = scmp.ge.s32.totalorder %s418_s15, 2  ;;  %s251_s8 = sand.u32 1, %s406_s12  }
 0x15e   : > { %s252_s9 = scalar_lea.sflag [#allocation3], %s251_s8 }
 0x15f   : > { %p316_p0 = pnand %p319_p13, %p485_p6 }
 0x161   : > { %p317_p1 = pneg %p316_p0 }
 0x163   : > { %401 = dma.done.wait (%p317_p1), %s252_s9, 256  }
 0x164   : > { %403 = vsyncadd (%p317_p1), %s252_s9, 4294967040  ;;  %p13_p2 = scmp.ge.s32.totalorder %s468_s18, 4   ;;  %s562_s12 = smov %s410_s13 }
 0x165   : > { %s563_s13 = smov %s414_s14  ;;  %s564_s14 = smov %s479_s21 }
 0x166   : > { %s565_s15 = smov %s468_s18  ;;  %15 = sbr.rel (!%p13_p2) target bundleno = 3 (0x3), region = 67 }
 0x16b   :  { %257 = vsyncpa [#allocation3], 1 }
 0x16c   :  { %259 = vsyncpa [#allocation3 + $0x1], 1 }

// kernel: swin_transformer_forward.31
= control target key start
LH: loop header
LB: loop body
LE: loop exit
PB: predicated region body
PF: predicated region fallthrough
CT: control target
= control target key end

     0   :  { %8 = vsyncpa [#allocation3], 0  ;;  %s743_s0 = inlined_call_operand.vmem [shape: f32[128,32], index: 0, kind: input, shape index: {}]   ;;  %s744_s1 = inlined_call_operand.vmem [shape: f32[1,32], index: 1, kind: input, shape index: {}]   ;;  %s745_s2 = inlined_call_operand.vmem [shape: f32[1,32], index: 2, kind: input, shape index: {}]   ;;  %s746_s3 = inlined_call_operand.hbm [shape: f32[128,32], index: 3, kind: output, shape index: {}]  }
   0x1   :  { %10 = vsyncpa [#allocation3 + $0x1], 0  ;;  %s557_s12 = smov 0   ;;  %s559_s13 = smov 0  }
   0x2   :  { %s561_s14 = smov 0   ;;  %s563_s15 = smov 0  }
   0x3 LB: > { %s578_s16 = sadd.s32 4294967295, %s532_s15   ;;  %s400_s17 = sadd.s32 4294967294, %s532_s15   ;;  %s532_s15 = sphi %s563_s15, %s752_s15   ;;  %s528_s14 = sphi %s561_s14, %s751_s14   ;;  %s524_s13 = sphi %s559_s13, %s750_s13   ;;  %s520_s12 = sphi %s557_s12, %s749_s12  }
   0x4   : > { %s582_s18 = sadd.s32 1, %s532_s15   ;;  %s91_s19 = sadd.s32 1, %s528_s14 }
   0x5   : > { %s88_s20 = ssub.s32 %s532_s15, %s582_s18  ;;  %p101_p0 = scmp.ne.s32.totalorder %s528_s14, %s524_s13 }
   0x6   : > { %p89_p1 = scmp.eq.s32.totalorder %s88_s20, 0  ;;  %p102_p2 = scmp.eq.s32.totalorder %s578_s16, 1 }
   0x7   : > { %p107_p3 = scmp.ne.s32.totalorder %s524_s13, %s520_s12  ;;  %p108_p4 = scmp.eq.s32.totalorder %s400_s17, 1 }
   0x8   : > { %s593_s21 = scalar_select %p89_p1, %s528_s14, %s91_s19  }
   0x9   : > { %p595_p5 = por %p102_p2, %p101_p0  ;;  %p599_p6 = por %p108_p4, %p107_p3 }
   0xa   : > { %p403_p7 = scmp.ge.s32.totalorder %s532_s15, 1  ;;  %p141_p8 = scmp.lt.s32.totalorder %s532_s15, 3 }
   0xc   : > { %p142_p9 = pnand %p403_p7, %p141_p8 }
   0xd   : > { %s405_s24 = sshll.u32 (!%p142_p9), %s578_s16, 3  ;;  %s162_s29 = sand.u32 (!%p142_p9), 1, %s524_s13  }
   0xe   : > { %145 = sbr.rel (%p142_p9) target bundleno = 361 (0x169), region = 32  ;;  %p166_p10 = scmp.lt.s32.totalorder (!%p142_p9), %s405_s24, 15 }
   0xf   : > { %s404_s5 = sshll.u32 (!%p142_p9), %s162_s29, 6  ;;  %s414_s9 = sshll.u32 (!%p142_p9), %s578_s16, 10 }
  0x10   : > { %s669_s8 = scalar_lea.vmem (!%p142_p9), [#allocation2], %s404_s5  ;;  %s695_s19 = scalar_lea.hbm (!%p142_p9), %s746_s3, %s414_s9 }
  0x11   : > { %s338_s10 = sshll.u32 (!%p142_p9), %s669_s8, 4  ;;  %s703_s16 = scalar_lea.sflag (!%p142_p9), [#allocation3], %s162_s29  ;;  %s697_s10 = int_to_ptr.vmem [resolvable:$true] %s338_s10 }
  0x12   : > { %s472_s20 = scalar_lea.vmem (!%p142_p9), %s697_s10, 1024 }
  0x13   : > { %s754_s24 = smov (!%p166_p10, %s405_s24), 15  ;;  %vm180_vm0 = vcmask 261120   ;;  %p473_p11 = scmp.ne.s32.totalorder %s697_s10, %s472_s20 }
  0x14   : > { %s406_s25 = sshll.u32 %s754_s24, 3  ;;  %s534_s24 = smov [#allocation2]  }
  0x15   : > { %s169_s28 = scalar_lea.vmem %s743_s0, %s406_s25  ;;  %p474_p12 = pnand %p473_p11, %p595_p5 }
  0x16   : > { %v172_v0 = vld [vmem:[%s169_s28] sm:$0xff]  ;;  %v174_v1 = vld [vmem:[%s169_s28 + $0x10] sm:$0xff]  ;;  %v173_v2 = vld [vmem:[%s169_s28 + $0x8] sm:$0xff]  ;;  %s476_s25 = sshll.u32 %s534_s24, 4  ;;  %s477_s25 = int_to_ptr.vmem [resolvable:$false] %s476_s25 }
  0x17   : > { %v181_v3 = vsel %vm180_vm0, %v172_v0, 0.0  ;;  %v187_v4 = vsel %vm180_vm0, %v174_v1, 0.0  ;;  %v175_v5 = vld [vmem:[%s169_s28 + $0x18] sm:$0xff]  ;;  %v184_v6 = vsel %vm180_vm0, %v173_v2, 0.0  ;;  %v176_v8 = vld [vmem:[%s169_s28 + $0x20] sm:$0xff]  ;;  %v177_v9 = vld [vmem:[%s169_s28 + $0x28] sm:$0xff]  ;;  %p475_p13 = pneg %p474_p12  ;;  %p479_p0 = scmp.lt.s32.totalorder %s697_s10, %s477_s25 }
  0x18   : > { %182 = vadd.xlane.f32.xlu0 %v181_v3  ;;  %188 = vadd.xlane.f32.xlu1 %v187_v4  ;;  %v190_v7 = vsel %vm180_vm0, %v175_v5, 0.0  ;;  %v193_v10 = vsel %vm180_vm0, %v176_v8, 0.0  ;;  %v196_v11 = vsel %vm180_vm0, %v177_v9, 0.0  ;;  %v178_v12 = vld [vmem:[%s169_s28 + $0x30] sm:$0xff]  ;;  %v179_v13 = vld [vmem:[%s169_s28 + $0x38] sm:$0xff]  ;;  %s478_s26 = scalar_lea.vmem %s477_s25, 2048 }
  0x19   : > { %v199_v14 = vsel %vm180_vm0, %v178_v12, 0.0  ;;  %v202_v15 = vsel %vm180_vm0, %v179_v13, 0.0  ;;  %p480_p1 = scmp.lt.s32.totalorder %s478_s26, %s472_s20 }
  0x1b   : > { %p481_p2 = por %p480_p1, %p479_p0 }
  0x1c   : > { %185 = vadd.xlane.f32.xlu0 %v184_v6  ;;  %191 = vadd.xlane.f32.xlu1 %v190_v7 }
  0x1d   : > { %p482_p3 = pnand %p481_p2, %p475_p13 }
  0x20   : > { %194 = vadd.xlane.f32.xlu0 %v193_v10  ;;  %197 = vadd.xlane.f32.xlu1 %v196_v11 }
  0x24   : > { %200 = vadd.xlane.f32.xlu0 %v199_v14  ;;  %203 = vadd.xlane.f32.xlu1 %v202_v15 }
  0xa1   : > { %v183_v16 = vpop.xlane.xlu0 %182  ;;  %v189_v17 = vpop.xlane.xlu1 %188 }
  0xa2   : > { %v206_v18 = vmul.f32 0.03125, %v183_v16  ;;  %v208_v19 = vmul.f32 0.03125, %v189_v17  ;;  %v407_v16 = vld [vmem:[%s744_s1] ss:$0 sm:$0xff] }
  0xa4   : > { %v617_v20 = vsub.f32 %v172_v0, %v206_v18  ;;  %v619_v21 = vsub.f32 %v174_v1, %v208_v19  ;;  %v408_v19 = vld [vmem:[%s745_s2] ss:$0 sm:$0xff] }
  0xa5   : > { %v186_v22 = vpop.xlane.xlu0 %185  ;;  %v192_v23 = vpop.xlane.xlu1 %191 }
  0xa6   : > { %v207_v24 = vmul.f32 0.03125, %v186_v22  ;;  %v209_v25 = vmul.f32 0.03125, %v192_v23  ;;  %v222_v26 = vmul.f32 %v617_v20, %v617_v20  ;;  %v224_v27 = vmul.f32 %v619_v21, %v619_v21 }
  0xa8   : > { %v625_v28 = vsub.f32 %v173_v2, %v207_v24  ;;  %v627_v29 = vsub.f32 %v175_v5, %v209_v25  ;;  %v230_v30 = vsel %vm180_vm0, %v222_v26, 0.0  ;;  %v236_v33 = vsel %vm180_vm0, %v224_v27, 0.0 }
  0xa9   : > { %231 = vadd.xlane.f32.xlu0 %v230_v30  ;;  %v195_v31 = vpop.xlane.xlu0 %194  ;;  %v198_v32 = vpop.xlane.xlu1 %197 }
  0xaa   : > { %v210_v34 = vmul.f32 0.03125, %v195_v31  ;;  %v211_v35 = vmul.f32 0.03125, %v198_v32  ;;  %v223_v36 = vmul.f32 %v625_v28, %v625_v28  ;;  %v225_v37 = vmul.f32 %v627_v29, %v627_v29 }
  0xac   : > { %v635_v38 = vsub.f32 %v176_v8, %v210_v34  ;;  %v637_v39 = vsub.f32 %v177_v9, %v211_v35  ;;  %v233_v40 = vsel %vm180_vm0, %v223_v36, 0.0  ;;  %v239_v43 = vsel %vm180_vm0, %v225_v37, 0.0 }
  0xad   : > { %237 = vadd.xlane.f32.xlu0 %v236_v33  ;;  %234 = vadd.xlane.f32.xlu1 %v233_v40  ;;  %v201_v41 = vpop.xlane.xlu0 %200  ;;  %v204_v42 = vpop.xlane.xlu1 %203 }
  0xae   : > { %v212_v44 = vmul.f32 0.03125, %v201_v41  ;;  %v213_v45 = vmul.f32 0.03125, %v204_v42  ;;  %v226_v46 = vmul.f32 %v635_v38, %v635_v38  ;;  %v227_v47 = vmul.f32 %v637_v39, %v637_v39 }
  0xb0   : > { %v645_v48 = vsub.f32 %v178_v12, %v212_v44  ;;  %v647_v49 = vsub.f32 %v179_v13, %v213_v45  ;;  %v242_v50 = vsel %vm180_vm0, %v226_v46, 0.0  ;;  %v245_v51 = vsel %vm180_vm0, %v227_v47, 0.0 }
  0xb1   : > { %240 = vadd.xlane.f32.xlu1 %v239_v43  ;;  %243 = vadd.xlane.f32.xlu0 %v242_v50 }
  0xb2   : > { %v228_v52 = vmul.f32 %v645_v48, %v645_v48  ;;  %v229_v53 = vmul.f32 %v647_v49, %v647_v49 }
  0xb4   : > { %v248_v54 = vsel %vm180_vm0, %v228_v52, 0.0  ;;  %v251_v55 = vsel %vm180_vm0, %v229_v53, 0.0 }
  0xb5   : > { %246 = vadd.xlane.f32.xlu1 %v245_v51  ;;  %249 = vadd.xlane.f32.xlu0 %v248_v54 }
  0xb9   : > { %252 = vadd.xlane.f32.xlu1 %v251_v55 }
 0x132   : > { %v232_v56 = vpop.xlane.xlu0 %231 }
 0x133   : > { %v254_v57 = vmul.f32 0.03125, %v232_v56 }
 0x135   : > { %v262_v58 = vadd.f32 1e-05, %v254_v57 }
 0x136   : > { %v235_v59 = vpop.xlane.xlu1 %234  ;;  %v238_v60 = vpop.xlane.xlu0 %237 }
 0x137   : > { %456 = vrsqrt.f32 %v262_v58  ;;  %v255_v61 = vmul.f32 0.03125, %v235_v59  ;;  %v256_v62 = vmul.f32 0.03125, %v238_v60 }
 0x139   : > { %v263_v63 = vadd.f32 1e-05, %v255_v61  ;;  %v264_v0 = vadd.f32 1e-05, %v256_v62 }
 0x13a   : > { %v241_v1 = vpop.xlane.xlu1 %240  ;;  %v244_v2 = vpop.xlane.xlu0 %243 }
 0x13b   : > { %458 = vrsqrt.f32 %v263_v63  ;;  %v257_v3 = vmul.f32 0.03125, %v241_v1  ;;  %v258_v4 = vmul.f32 0.03125, %v244_v2 }
 0x13c   : > { %460 = vrsqrt.f32 %v264_v0 }
 0x13d   : > { %v265_v5 = vadd.f32 1e-05, %v257_v3  ;;  %v266_v6 = vadd.f32 1e-05, %v258_v4 }
 0x13e   : > { %v247_v7 = vpop.xlane.xlu1 %246  ;;  %v250_v8 = vpop.xlane.xlu0 %249 }
 0x13f   : > { %462 = vrsqrt.f32 %v265_v5  ;;  %v259_v9 = vmul.f32 0.03125, %v247_v7  ;;  %v260_v10 = vmul.f32 0.03125, %v250_v8 }
 0x140   : > { %464 = vrsqrt.f32 %v266_v6 }
 0x141   : > { %v267_v11 = vadd.f32 1e-05, %v259_v9  ;;  %v268_v12 = vadd.f32 1e-05, %v260_v10 }
 0x142   : > { %v253_v13 = vpop.xlane.xlu1 %252 }
 0x143   : > { %466 = vrsqrt.f32 %v267_v11  ;;  %v261_v14 = vmul.f32 0.03125, %v253_v13 }
 0x144   : > { %v457_v15 = vpop.eup %456  ;;  %468 = vrsqrt.f32 %v268_v12 }
 0x145   : > { %v278_v17 = vmul.f32 %v457_v15, %v617_v20  ;;  %v269_v18 = vadd.f32 1e-05, %v261_v14 }
 0x147   : > { %v293_v22 = vmul.f32 %v407_v16, %v278_v17  ;;  %470 = vrsqrt.f32 %v269_v18 }
 0x148   : > { %v459_v23 = vpop.eup %458 }
 0x149   : > { %v461_v24 = vpop.eup %460  ;;  %v308_v25 = vadd.f32 %v408_v19, %v293_v22  ;;  %v279_v26 = vmul.f32 %v459_v23, %v625_v28 }
 0x14a   : > { %v280_v27 = vmul.f32 %v461_v24, %v619_v21 }
 0x14b   : > { %316 = vst.msk [vmem:[%s669_s8] sm:$0xff] %vm180_vm0, %v308_v25  ;;  %v294_v20 = vmul.f32 %v407_v16, %v279_v26 }
 0x14c   : > { %v463_v30 = vpop.eup %462  ;;  %v295_v31 = vmul.f32 %v407_v16, %v280_v27 }
 0x14d   : > { %v465_v32 = vpop.eup %464  ;;  %v309_v33 = vadd.f32 %v408_v19, %v294_v20  ;;  %v281_v34 = vmul.f32 %v463_v30, %v627_v29 }
 0x14e   : > { %v310_v35 = vadd.f32 %v408_v19, %v295_v31  ;;  %v282_v28 = vmul.f32 %v465_v32, %v635_v38 }
 0x14f   : > { %317 = vst.msk [vmem:[%s669_s8 + $0x8] sm:$0xff] %vm180_vm0, %v309_v33  ;;  %v296_v21 = vmul.f32 %v407_v16, %v281_v34 }
 0x150   : > { %v467_v36 = vpop.eup %466  ;;  %318 = vst.msk [vmem:[%s669_s8 + $0x10] sm:$0xff] %vm180_vm0, %v310_v35  ;;  %v297_v37 = vmul.f32 %v407_v16, %v282_v28 }
 0x151   : > { %v469_v40 = vpop.eup %468  ;;  %v311_v41 = vadd.f32 %v408_v19, %v296_v21  ;;  %v283_v42 = vmul.f32 %v467_v36, %v637_v39 }
 0x152   : > { %v312_v29 = vadd.f32 %v408_v19, %v297_v37  ;;  %v284_v43 = vmul.f32 %v469_v40, %v645_v48 }
 0x153   : > { %319 = vst.msk [vmem:[%s669_s8 + $0x18] sm:$0xff] %vm180_vm0, %v311_v41  ;;  %v298_v38 = vmul.f32 %v407_v16, %v283_v42 }
 0x154   : > { %v471_v44 = vpop.eup %470  ;;  %320 = vst.msk [vmem:[%s669_s8 + $0x20] sm:$0xff] %vm180_vm0, %v312_v29  ;;  %v299_v45 = vmul.f32 %v407_v16, %v284_v43 }
 0x155   : > { %v313_v46 = vadd.f32 %v408_v19, %v298_v38  ;;  %v285_v47 = vmul.f32 %v471_v44, %v647_v49 }
 0x156   : > { %v314_v50 = vadd.f32 %v408_v19, %v299_v45 }
 0x157   : > { %321 = vst.msk [vmem:[%s669_s8 + $0x28] sm:$0xff] %vm180_vm0, %v313_v46  ;;  %v300_v39 = vmul.f32 %v407_v16, %v285_v47 }
 0x158   : > { %322 = vst.msk [vmem:[%s669_s8 + $0x30] sm:$0xff] %vm180_vm0, %v314_v50 }
 0x159   : > { %v315_v48 = vadd.f32 %v408_v19, %v300_v39 }
 0x15b   : > { %323 = vst.msk [vmem:[%s669_s8 + $0x38] sm:$0xff] %vm180_vm0, %v315_v48 }
 0x15c   : > { %485 = shalt.err (!%p482_p3)
}
 0x15d   : > { %s486_s27 = scalar_lea.hbm %s695_s19, 1024  ;;  %s490_s30 = scalar_lea.hbm %s746_s3, 2048 }
 0x15e   : > { %p487_p4 = scmp.ne.s32.totalorder %s695_s19, %s486_s27  ;;  %p491_p9 = scmp.lt.s32.totalorder %s695_s19, %s746_s3 }
 0x15f   : > { %p492_p10 = scmp.lt.s32.totalorder %s490_s30, %s486_s27 }
 0x160   : > { %p488_p7 = pnand %p487_p4, %p595_p5 }
 0x161   : > { %p493_p11 = por %p492_p10, %p491_p9 }
 0x162   : > { %p489_p8 = pneg %p488_p7 }
 0x164   : > { %p494_p12 = pnand %p493_p11, %p489_p8 }
 0x166   : > { %497 = shalt.err (!%p494_p12)
}
 0x167   : > { %s535_s6 = smov 128   ;;  %s536_s7 = smov 8  }
 0x168   : > { %415 = dma.vmem_to_hbm [thread:$0]  (%p595_p5), %s697_s10, 1024, %s695_s19, %s703_s16, %s535_s6, %s535_s6, %s536_s7  }
 0x169 PF: > { %p421_p13 = scmp.ge.s32.totalorder %s532_s15, 2  ;;  %s353_s8 = sand.u32 1, %s520_s12  }
 0x16a   : > { %s354_s9 = scalar_lea.sflag [#allocation3], %s353_s8 }
 0x16b   : > { %p418_p0 = pnand %p421_p13, %p599_p6 }
 0x16d   : > { %p419_p1 = pneg %p418_p0 }
 0x16f   : > { %515 = dma.done.wait (%p419_p1), %s354_s9, 1024  }
 0x170   : > { %517 = vsyncadd (%p419_p1), %s354_s9, 4294966272  ;;  %p13_p2 = scmp.ge.s32.totalorder %s582_s18, 4   ;;  %s749_s12 = smov %s524_s13 }
 0x171   : > { %s750_s13 = smov %s528_s14  ;;  %s751_s14 = smov %s593_s21 }
 0x172   : > { %s752_s15 = smov %s582_s18  ;;  %15 = sbr.rel (!%p13_p2) target bundleno = 3 (0x3), region = 67 }
 0x177   :  { %359 = vsyncpa [#allocation3], 1 }
 0x178   :  { %361 = vsyncpa [#allocation3 + $0x1], 1 }

</bundles_post_ra>
